<compile_context>
chip_gen: v7x
topology: tpu7x:2x2x1
jax: 0.10.0
libtpu: 0.0.40
codegen_flags: <defaults>
</compile_context>

<pallas_src>
import functools

import jax
import jax.numpy as jnp
from jax.experimental import pallas as pl
from jax.experimental.pallas import tpu as pltpu


def _round_up(x, m):
    return ((x + m - 1) // m) * m


@functools.lru_cache(maxsize=1)
def _fc_config():
    """(max N tile, scoped VMEM limit) per TPU generation."""
    try:
        kind = jax.devices()[0].device_kind.lower()
    except Exception:
        kind = ""
    if ("v5" in kind) or ("v6" in kind):
        # 128 MiB physical VMEM, single TensorCore: bigger lane-dense weight tiles.
        return 1024, 64 * 1024 * 1024
    # v7x (64 MiB VMEM per TC, 2 TCs -> keep >=2 parallel j blocks) and unknown chips.
    return 512, 40 * 1024 * 1024


# Max bytes of a bf16 (K, tn) weight tile allowed on the single-K-step (no accumulator) path.
_B_TILE_BUDGET = 20 * 1024 * 1024


# ----------------------------------------------------------------------------
# Fused matmul + bias (+ optional ReLU) Pallas kernels.
# ----------------------------------------------------------------------------
def _matmul_bias_kernel(a_ref, b_ref, bias_ref, o_ref, *, relu):
    # Single K step: no accumulator scratch, no init/finalize predication.
    r = jnp.dot(a_ref[...], b_ref[...], preferred_element_type=jnp.float32)
    r = r + bias_ref[...]
    if relu:
        r = jnp.maximum(r, 0.0)
    o_ref[...] = r.astype(o_ref.dtype)


def _matmul_bias_acc_kernel(a_ref, b_ref, bias_ref, o_ref, acc_ref, *, relu):
    # Generic K-split fallback (unused for this network's shapes).
    @pl.when(pl.program_id(2) == 0)
    def _():
        acc_ref[...] = jnp.zeros_like(acc_ref)

    acc_ref[...] += jnp.dot(a_ref[...], b_ref[...],
                            preferred_element_type=jnp.float32)

    @pl.when(pl.program_id(2) == pl.num_programs(2) - 1)
    def _():
        r = acc_ref[...] + bias_ref[...]
        if relu:
            r = jnp.maximum(r, 0.0)
        o_ref[...] = r.astype(o_ref.dtype)


def matmul_bias_act(a, b, bias, *, relu=False, out_dtype=jnp.float32):
    """out = relu?(a @ b + bias).

    a:    (M, K) activations (bf16 preferred).
    b:    (Kb, Nb) bf16 weights, pre-padded at init: Kb >= K, Kb and Nb multiples of 128,
          extra rows/cols zero.
    bias: (Nb,) f32 (pre-padded).
    Returns (M, Nb) in out_dtype; callers slice the valid columns.
    """
    M, K = a.shape
    Kb, Nb = b.shape
    assert Kb >= K and Kb % 128 == 0 and Nb % 128 == 0
    assert bias.shape == (Nb,)

    tn_max, vmem_limit = _fc_config()

    tm = min(_round_up(M, 8), 128)
    if Nb <= tn_max:
        tn = Nb
    else:
        tn = tn_max
        while Nb % tn:
            tn -= 128

    # Single K step whenever the whole (Kb, tn) bf16 weight tile fits the budget
    # (true for every conv and FC layer here).
    if Kb * tn * 2 <= _B_TILE_BUDGET:
        tk = Kb
    else:
        tk = max(128, (_B_TILE_BUDGET // (tn * 2)) // 128 * 128)
        while Kb % tk:
            tk -= 128

    Mp = _round_up(M, tm)

    a_p = a.astype(jnp.bfloat16)                       # no-op when activations are bf16
    if Mp != M or Kb != K:
        a_p = jnp.pad(a_p, ((0, Mp - M), (0, Kb - K)))
    b_p = b.astype(jnp.bfloat16)                       # no-op: weights stored bf16 at init
    bias_p = bias.reshape(1, Nb).astype(jnp.float32)   # no-op reshape of the pre-padded bias

    if tk == Kb:
        out = pl.pallas_call(
            functools.partial(_matmul_bias_kernel, relu=relu),
            out_shape=jax.ShapeDtypeStruct((Mp, Nb), out_dtype),
            grid=(Mp // tm, Nb // tn),
            in_specs=[
                pl.BlockSpec((tm, Kb), lambda i, j: (i, 0)),
                pl.BlockSpec((Kb, tn), lambda i, j: (0, j)),
                pl.BlockSpec((1, tn), lambda i, j: (0, j)),
            ],
            out_specs=pl.BlockSpec((tm, tn), lambda i, j: (i, j)),
            compiler_params=pltpu.CompilerParams(
                dimension_semantics=("parallel", "parallel"),
                vmem_limit_bytes=vmem_limit),
        )(a_p, b_p, bias_p)
    else:
        out = pl.pallas_call(
            functools.partial(_matmul_bias_acc_kernel, relu=relu),
            out_shape=jax.ShapeDtypeStruct((Mp, Nb), out_dtype),
            grid=(Mp // tm, Nb // tn, Kb // tk),
            in_specs=[
                pl.BlockSpec((tm, tk), lambda i, j, k: (i, k)),
                pl.BlockSpec((tk, tn), lambda i, j, k: (k, j)),
                pl.BlockSpec((1, tn), lambda i, j, k: (0, j)),
            ],
            out_specs=pl.BlockSpec((tm, tn), lambda i, j, k: (i, j)),
            scratch_shapes=[pltpu.VMEM((tm, tn), jnp.float32)],
            compiler_params=pltpu.CompilerParams(
                dimension_semantics=("parallel", "parallel", "arbitrary"),
                vmem_limit_bytes=vmem_limit),
        )(a_p, b_p, bias_p)

    return out[:M]


# ----------------------------------------------------------------------------
# Max-pool window reduction Pallas kernel.
# ----------------------------------------------------------------------------
def _maxpool_kernel(x_ref, o_ref):
    o_ref[...] = jnp.max(x_ref[...], axis=0)


def maxpool2d(x, ksize=3, stride=2):
    """x: (N, H, W, C) NHWC (bf16), valid padding (PyTorch MaxPool2d default)."""
    # TODO(synk): at large (224^2) inputs move the (kh,kw) window extraction into the kernel
    # (strided reads from the NHWC tensor) to avoid this ksize^2 materialization in HBM;
    # at the demo sizes (and in bf16) it is a negligible fraction of total traffic.
    N, H, W, C = x.shape
    Ho = (H - ksize) // stride + 1
    Wo = (W - ksize) // stride + 1
    slices = []
    for kh in range(ksize):
        for kw in range(ksize):
            s = x[:, kh:kh + stride * (Ho - 1) + 1:stride,
                  kw:kw + stride * (Wo - 1) + 1:stride, :]
            slices.append(s.reshape(N * Ho * Wo, C))
    stacked = jnp.stack(slices, axis=0)  # (ksize*ksize, M, C)

    M = N * Ho * Wo
    tm = min(_round_up(M, 8), 512)
    Mp = _round_up(M, tm)
    stacked_p = stacked if Mp == M else jnp.pad(stacked, ((0, 0), (0, Mp - M), (0, 0)))

    out = pl.pallas_call(
        _maxpool_kernel,
        out_shape=jax.ShapeDtypeStruct((Mp, C), x.dtype),
        grid=(Mp // tm,),
        in_specs=[pl.BlockSpec((ksize * ksize, tm, C), lambda i: (0, i, 0))],
        out_specs=pl.BlockSpec((tm, C), lambda i: (i, 0)),
        compiler_params=pltpu.CompilerParams(
            dimension_semantics=("parallel",)),
    )(stacked_p)
    return out[:M].reshape(N, Ho, Wo, C)


# ----------------------------------------------------------------------------
# Conv2d via im2col (patch extraction is glue; the matmul is the Pallas hot path).
# ----------------------------------------------------------------------------
def conv2d(x, wmat, b, *, cout, ksize, stride, padding, relu=True):
    """x: (N,H,W,C) bf16 NHWC; wmat: (round_up(k*k*C,128), round_up(cout,128)) bf16; b: f32."""
    # TODO(synk): for realistic 224^2 inputs, fold im2col into the kernel ((kh,kw) grid axes)
    # instead of materializing the Kh*Kw-x patches tensor in HBM.
    N, H, W, C = x.shape
    Kh = Kw = ksize
    x_pad = jnp.pad(x, ((0, 0), (padding, padding), (padding, padding), (0, 0)))
    Hp, Wp = H + 2 * padding, W + 2 * padding
    Ho = (Hp - Kh) // stride + 1
    Wo = (Wp - Kw) // stride + 1

    patches = []
    for kh in range(Kh):
        for kw in range(Kw):
            s = x_pad[:, kh:kh + stride * (Ho - 1) + 1:stride,
                      kw:kw + stride * (Wo - 1) + 1:stride, :]
            patches.append(s)
    patches = jnp.stack(patches, axis=3)              # (N, Ho, Wo, Kh*Kw, C)
    a = patches.reshape(N * Ho * Wo, Kh * Kw * C)     # im2col matrix (bf16)

    out = matmul_bias_act(a, wmat, b, relu=relu, out_dtype=jnp.bfloat16)
    return out[:, :cout].reshape(N, Ho, Wo, cout)


# ----------------------------------------------------------------------------
# Adaptive average pool (tiny glue op; matches PyTorch AdaptiveAvgPool2d indexing).
# ----------------------------------------------------------------------------
def adaptive_avg_pool(x, out_h, out_w):
    N, H, W, C = x.shape
    rows = []
    for i in range(out_h):
        h0 = (i * H) // out_h
        h1 = -((-(i + 1) * H) // out_h)
        cols = []
        for j in range(out_w):
            w0 = (j * W) // out_w
            w1 = -((-(j + 1) * W) // out_w)
            win = x[:, h0:h1, w0:w1, :].astype(jnp.float32)
            cols.append(jnp.mean(win, axis=(1, 2)).astype(x.dtype))
        rows.append(jnp.stack(cols, axis=1))
    return jnp.stack(rows, axis=1)  # (N, out_h, out_w, C)


# ----------------------------------------------------------------------------
# Parameter init (deterministic, synthetic).  Weights stored in matmul-ready layout,
# pre-padded to 128 multiples and bf16 at init so the kernel never pads/copies them:
#   conv:   (round_up(Kh*Kw*Cin,128), round_up(Cout,128)) bf16  (im2col weight matrix)
#   linear: (in_features, round_up(out,128))              bf16
# ----------------------------------------------------------------------------
def init_params(key):
    def conv_p(key, cout, cin, k, scale=0.05):
        kw_, kb_ = jax.random.split(key)
        kdim = k * k * cin
        kpad = _round_up(kdim, 128)
        npad = _round_up(cout, 128)
        w = scale * jax.random.normal(kw_, (kdim, cout), jnp.float32)
        b = scale * jax.random.normal(kb_, (cout,), jnp.float32)
        w = jnp.pad(w, ((0, kpad - kdim), (0, npad - cout)))
        b = jnp.pad(b, ((0, npad - cout),))
        return w.astype(jnp.bfloat16), b

    def lin_p(key, out_f, in_f, scale=0.01):
        kw_, kb_ = jax.random.split(key)
        out_p = _round_up(out_f, 128)
        w = scale * jax.random.normal(kw_, (in_f, out_f), jnp.float32)
        b = scale * jax.random.normal(kb_, (out_f,), jnp.float32)
        if out_p != out_f:
            w = jnp.pad(w, ((0, 0), (0, out_p - out_f)))
            b = jnp.pad(b, ((0, out_p - out_f),))
        return w.astype(jnp.bfloat16), b

    keys = jax.random.split(key, 11)
    p = {}
    p["c1w"], p["c1b"] = conv_p(keys[0], 64, 3, 11)
    p["c2w"], p["c2b"] = conv_p(keys[1], 192, 64, 5)
    p["c3w"], p["c3b"] = conv_p(keys[2], 384, 192, 3)
    p["c4w"], p["c4b"] = conv_p(keys[3], 256, 384, 3)
    p["c5w"], p["c5b"] = conv_p(keys[4], 256, 256, 3)
    p["cls_w1"], p["cls_b1"] = lin_p(keys[5], 4096, 256 * 6 * 6)
    p["cls_w2"], p["cls_b2"] = lin_p(keys[6], 4096, 4096)
    p["cls_w3"], p["cls_b3"] = lin_p(keys[7], 1000, 4096)
    p["dann_w1"], p["dann_b1"] = lin_p(keys[8], 4096, 256 * 6 * 6)
    p["dann_w2"], p["dann_b2"] = lin_p(keys[9], 4096, 4096)
    p["dann_w3"], p["dann_b3"] = lin_p(keys[10], 1000, 4096)
    return p


# ----------------------------------------------------------------------------
# Forward pass.
# ----------------------------------------------------------------------------
def features_forward(x_nchw, params):
    # Input follows PyTorch NCHW; convert to NHWC and bf16 once for the kernel compute path.
    x = jnp.transpose(x_nchw, (0, 2, 3, 1)).astype(jnp.bfloat16)

    x = conv2d(x, params["c1w"], params["c1b"], cout=64, ksize=11, stride=4, padding=2)
    x = maxpool2d(x)
    x = conv2d(x, params["c2w"], params["c2b"], cout=192, ksize=5, stride=1, padding=2)
    x = maxpool2d(x)
    x = conv2d(x, params["c3w"], params["c3b"], cout=384, ksize=3, stride=1, padding=1)
    x = conv2d(x, params["c4w"], params["c4b"], cout=256, ksize=3, stride=1, padding=1)
    x = conv2d(x, params["c5w"], params["c5b"], cout=256, ksize=3, stride=1, padding=1)
    x = maxpool2d(x)

    x = adaptive_avg_pool(x, 6, 6)                                  # (N, 6, 6, 256)
    # torch.flatten(x, 1) on NCHW flattens in (C, H, W) order:
    return jnp.transpose(x, (0, 3, 1, 2)).reshape(x.shape[0], -1)   # (N, 9216) bf16


def head_forward(feat, params, head):
    # Dropout layers are identity in eval mode; grad_reverse is identity in forward.
    # TODO(synk): the custom backward of ReverseLayerF (-alpha * grad) is not represented here.
    h = matmul_bias_act(feat, params[f"{head}_w1"], params[f"{head}_b1"],
                        relu=True, out_dtype=jnp.bfloat16)
    h = matmul_bias_act(h, params[f"{head}_w2"], params[f"{head}_b2"],
                        relu=True, out_dtype=jnp.bfloat16)
    out = matmul_bias_act(h, params[f"{head}_w3"], params[f"{head}_b3"],
                          relu=False, out_dtype=jnp.float32)
    return out[:, :1000]   # un-pad the 1024-wide output layer


_features_jit = jax.jit(features_forward)
_head_jit = jax.jit(head_forward, static_argnames=("head",))


def forward(x_nchw, params, alpha=None):
    feat = _features_jit(x_nchw, params)
    head = "dann" if alpha is not None else "cls"
    return _head_jit(feat, params, head)


if __name__ == "__main__":
    key = jax.random.PRNGKey(0)
    k_params, k_x = jax.random.split(key)
    params = init_params(k_params)

    # Smallest spatial size that survives the AlexNet feature stack: 64x64.
    x = jax.random.normal(k_x, (2, 3, 64, 64), jnp.float32)

    # Compute features once and reuse them for both heads (weights stream once per head).
    feat = jax.block_until_ready(_features_jit(x, params))
    class_out = jax.block_until_ready(_head_jit(feat, params, "cls"))   # == forward(x, None)
    dann_out = jax.block_until_ready(_head_jit(feat, params, "dann"))   # == forward(x, alpha)

    assert class_out.shape == (2, 1000) and dann_out.shape == (2, 1000)
    assert bool(jnp.all(jnp.isfinite(class_out))) and bool(jnp.all(jnp.isfinite(dann_out)))
    print("KERNEL_OK")
</pallas_src>

<mosaic_0001>
module attributes {stable_mosaic.version = 11 : i64} {
  func.func @_matmul_bias_kernel(%arg0: i32, %arg1: i32, %arg2: memref<128x384xbf16, #tpu.memory_space<vmem>>, %arg3: memref<384x128xbf16, #tpu.memory_space<vmem>>, %arg4: memref<1x128xf32, #tpu.memory_space<vmem>>, %arg5: memref<128x128xbf16, #tpu.memory_space<vmem>>) attributes {dimension_semantics = [#tpu.dimension_semantics<parallel>, #tpu.dimension_semantics<parallel>], iteration_bounds = array<i64: 4, 1>, scalar_prefetch = 0 : i64, scratch_operands = 0 : i64, tpu.core_type = #tpu.core_type<tc>, window_params = [{transform_indices = @transform_0, window_bounds = array<i64: 128, 384>}, {transform_indices = @transform_1, window_bounds = array<i64: 384, 128>}, {transform_indices = @transform_2, window_bounds = array<i64: 1, 128>}, {transform_indices = @transform_3, window_bounds = array<i64: 128, 128>}]} {
    %c0 = arith.constant 0 : index
    %c0_0 = arith.constant 0 : index
    %0 = vector.load %arg2[%c0, %c0_0] : memref<128x384xbf16, #tpu.memory_space<vmem>>, vector<128x384xbf16>
    %c0_1 = arith.constant 0 : index
    %c0_2 = arith.constant 0 : index
    %1 = vector.load %arg3[%c0_1, %c0_2] : memref<384x128xbf16, #tpu.memory_space<vmem>>, vector<384x128xbf16>
    %cst = arith.constant dense<0.000000e+00> : vector<128x128xf32>
    %2 = tpu.matmul %0, %1, %cst {dimension_numbers = #tpu.dot_dimension_numbers<[1], [0], [0], [1], [0, 0, 1, 1], [], []>} : vector<128x384xbf16>, vector<384x128xbf16>, vector<128x128xf32> -> vector<128x128xf32>
    %c0_3 = arith.constant 0 : index
    %c0_4 = arith.constant 0 : index
    %3 = vector.load %arg4[%c0_3, %c0_4] : memref<1x128xf32, #tpu.memory_space<vmem>>, vector<1x128xf32>
    %4 = vector.broadcast %3 : vector<1x128xf32> to vector<128x128xf32>
    %5 = arith.addf %2, %4 : vector<128x128xf32>
    %cst_5 = arith.constant 0.000000e+00 : f32
    %6 = vector.broadcast %cst_5 : f32 to vector<128x128xf32>
    %7 = arith.maximumf %5, %6 : vector<128x128xf32>
    %8 = arith.truncf %7 : vector<128x128xf32> to vector<128x128xbf16>
    %c0_6 = arith.constant 0 : index
    %c0_7 = arith.constant 0 : index
    %9 = vector.load %arg5[%c0_6, %c0_7] : memref<128x128xbf16, #tpu.memory_space<vmem>>, vector<128x128xbf16>
    tpu.vector_store %arg5[%c0_6, %c0_7], %8 {strides = array<i32>} : memref<128x128xbf16, #tpu.memory_space<vmem>>, vector<128x128xbf16>,
    return
  }
  func.func @transform_0(%arg0: i32, %arg1: i32) -> (i32, i32) {
    %c0_i32 = arith.constant 0 : i32
    %c0_i32_0 = arith.constant 0 : i32
    return %arg0, %c0_i32 : i32, i32
  }
  func.func @transform_1(%arg0: i32, %arg1: i32) -> (i32, i32) {
    %c0_i32 = arith.constant 0 : i32
    %c0_i32_0 = arith.constant 0 : i32
    return %c0_i32, %arg1 : i32, i32
  }
  func.func @transform_2(%arg0: i32, %arg1: i32) -> (i32, i32) {
    %c0_i32 = arith.constant 0 : i32
    %c0_i32_0 = arith.constant 0 : i32
    return %c0_i32, %arg1 : i32, i32
  }
  func.func @transform_3(%arg0: i32, %arg1: i32) -> (i32, i32) {
    %c0_i32 = arith.constant 0 : i32
    return %arg0, %arg1 : i32, i32
  }
}

module attributes {stable_mosaic.version = 11 : i64} {
  func.func @_maxpool_kernel(%arg0: i32, %arg1: memref<9x104x64xbf16, #tpu.memory_space<vmem>>, %arg2: memref<104x64xbf16, #tpu.memory_space<vmem>>) attributes {dimension_semantics = [#tpu.dimension_semantics<parallel>], iteration_bounds = array<i64: 1>, scalar_prefetch = 0 : i64, scratch_operands = 0 : i64, tpu.core_type = #tpu.core_type<tc>, window_params = [{transform_indices = @transform_0, window_bounds = array<i64: 9, 104, 64>}, {transform_indices = @transform_1, window_bounds = array<i64: 104, 64>}]} {
    %c0 = arith.constant 0 : index
    %c0_0 = arith.constant 0 : index
    %c0_1 = arith.constant 0 : index
    %0 = vector.load %arg1[%c0, %c0_0, %c0_1] : memref<9x104x64xbf16, #tpu.memory_space<vmem>>, vector<9x104x64xbf16>
    %cst = arith.constant dense<0xFF80> : vector<104x64xbf16>
    %1 = vector.multi_reduction <maximumf>, %0, %cst [0] : vector<9x104x64xbf16> to vector<104x64xbf16>
    %c0_2 = arith.constant 0 : index
    %c0_3 = arith.constant 0 : index
    %2 = vector.load %arg2[%c0_2, %c0_3] : memref<104x64xbf16, #tpu.memory_space<vmem>>, vector<104x64xbf16>
    tpu.vector_store %arg2[%c0_2, %c0_3], %1 {strides = array<i32>} : memref<104x64xbf16, #tpu.memory_space<vmem>>, vector<104x64xbf16>,
    return
  }
  func.func @transform_0(%arg0: i32) -> (i32, i32, i32) {
    %c0_i32 = arith.constant 0 : i32
    %c0_i32_0 = arith.constant 0 : i32
    %c0_i32_1 = arith.constant 0 : i32
    return %c0_i32, %arg0, %c0_i32_0 : i32, i32, i32
  }
  func.func @transform_1(%arg0: i32) -> (i32, i32) {
    %c0_i32 = arith.constant 0 : i32
    %c0_i32_0 = arith.constant 0 : i32
    return %arg0, %c0_i32 : i32, i32
  }
}

module attributes {stable_mosaic.version = 11 : i64} {
  func.func @_matmul_bias_kernel(%arg0: i32, %arg1: i32, %arg2: memref<104x1664xbf16, #tpu.memory_space<vmem>>, %arg3: memref<1664x256xbf16, #tpu.memory_space<vmem>>, %arg4: memref<1x256xf32, #tpu.memory_space<vmem>>, %arg5: memref<104x256xbf16, #tpu.memory_space<vmem>>) attributes {dimension_semantics = [#tpu.dimension_semantics<parallel>, #tpu.dimension_semantics<parallel>], iteration_bounds = array<i64: 1, 1>, scalar_prefetch = 0 : i64, scratch_operands = 0 : i64, tpu.core_type = #tpu.core_type<tc>, window_params = [{transform_indices = @transform_0, window_bounds = array<i64: 104, 1664>}, {transform_indices = @transform_1, window_bounds = array<i64: 1664, 256>}, {transform_indices = @transform_2, window_bounds = array<i64: 1, 256>}, {transform_indices = @transform_3, window_bounds = array<i64: 104, 256>}]} {
    %c0 = arith.constant 0 : index
    %c0_0 = arith.constant 0 : index
    %0 = vector.load %arg2[%c0, %c0_0] : memref<104x1664xbf16, #tpu.memory_space<vmem>>, vector<104x1664xbf16>
    %c0_1 = arith.constant 0 : index
    %c0_2 = arith.constant 0 : index
    %1 = vector.load %arg3[%c0_1, %c0_2] : memref<1664x256xbf16, #tpu.memory_space<vmem>>, vector<1664x256xbf16>
    %cst = arith.constant dense<0.000000e+00> : vector<104x256xf32>
    %2 = tpu.matmul %0, %1, %cst {dimension_numbers = #tpu.dot_dimension_numbers<[1], [0], [0], [1], [0, 0, 1, 1], [], []>} : vector<104x1664xbf16>, vector<1664x256xbf16>, vector<104x256xf32> -> vector<104x256xf32>
    %c0_3 = arith.constant 0 : index
    %c0_4 = arith.constant 0 : index
    %3 = vector.load %arg4[%c0_3, %c0_4] : memref<1x256xf32, #tpu.memory_space<vmem>>, vector<1x256xf32>
    %4 = vector.broadcast %3 : vector<1x256xf32> to vector<104x256xf32>
    %5 = arith.addf %2, %4 : vector<104x256xf32>
    %cst_5 = arith.constant 0.000000e+00 : f32
    %6 = vector.broadcast %cst_5 : f32 to vector<104x256xf32>
    %7 = arith.maximumf %5, %6 : vector<104x256xf32>
    %8 = arith.truncf %7 : vector<104x256xf32> to vector<104x256xbf16>
    %c0_6 = arith.constant 0 : index
    %c0_7 = arith.constant 0 : index
    %9 = vector.load %arg5[%c0_6, %c0_7] : memref<104x256xbf16, #tpu.memory_space<vmem>>, vector<104x256xbf16>
    tpu.vector_store %arg5[%c0_6, %c0_7], %8 {strides = array<i32>} : memref<104x256xbf16, #tpu.memory_space<vmem>>, vector<104x256xbf16>,
    return
  }
  func.func @transform_0(%arg0: i32, %arg1: i32) -> (i32, i32) {
    %c0_i32 = arith.constant 0 : i32
    %c0_i32_0 = arith.constant 0 : i32
    return %arg0, %c0_i32 : i32, i32
  }
  func.func @transform_1(%arg0: i32, %arg1: i32) -> (i32, i32) {
    %c0_i32 = arith.constant 0 : i32
    %c0_i32_0 = arith.constant 0 : i32
    return %c0_i32, %arg1 : i32, i32
  }
  func.func @transform_2(%arg0: i32, %arg1: i32) -> (i32, i32) {
    %c0_i32 = arith.constant 0 : i32
    %c0_i32_0 = arith.constant 0 : i32
    return %c0_i32, %arg1 : i32, i32
  }
  func.func @transform_3(%arg0: i32, %arg1: i32) -> (i32, i32) {
    %c0_i32 = arith.constant 0 : i32
    return %arg0, %arg1 : i32, i32
  }
}

module attributes {stable_mosaic.version = 11 : i64} {
  func.func @_maxpool_kernel(%arg0: i32, %arg1: memref<9x24x192xbf16, #tpu.memory_space<vmem>>, %arg2: memref<24x192xbf16, #tpu.memory_space<vmem>>) attributes {dimension_semantics = [#tpu.dimension_semantics<parallel>], iteration_bounds = array<i64: 1>, scalar_prefetch = 0 : i64, scratch_operands = 0 : i64, tpu.core_type = #tpu.core_type<tc>, window_params = [{transform_indices = @transform_0, window_bounds = array<i64: 9, 24, 192>}, {transform_indices = @transform_1, window_bounds = array<i64: 24, 192>}]} {
    %c0 = arith.constant 0 : index
    %c0_0 = arith.constant 0 : index
    %c0_1 = arith.constant 0 : index
    %0 = vector.load %arg1[%c0, %c0_0, %c0_1] : memref<9x24x192xbf16, #tpu.memory_space<vmem>>, vector<9x24x192xbf16>
    %cst = arith.constant dense<0xFF80> : vector<24x192xbf16>
    %1 = vector.multi_reduction <maximumf>, %0, %cst [0] : vector<9x24x192xbf16> to vector<24x192xbf16>
    %c0_2 = arith.constant 0 : index
    %c0_3 = arith.constant 0 : index
    %2 = vector.load %arg2[%c0_2, %c0_3] : memref<24x192xbf16, #tpu.memory_space<vmem>>, vector<24x192xbf16>
    tpu.vector_store %arg2[%c0_2, %c0_3], %1 {strides = array<i32>} : memref<24x192xbf16, #tpu.memory_space<vmem>>, vector<24x192xbf16>,
    return
  }
  func.func @transform_0(%arg0: i32) -> (i32, i32, i32) {
    %c0_i32 = arith.constant 0 : i32
    %c0_i32_0 = arith.constant 0 : i32
    %c0_i32_1 = arith.constant 0 : i32
    return %c0_i32, %arg0, %c0_i32_0 : i32, i32, i32
  }
  func.func @transform_1(%arg0: i32) -> (i32, i32) {
    %c0_i32 = arith.constant 0 : i32
    %c0_i32_0 = arith.constant 0 : i32
    return %arg0, %c0_i32 : i32, i32
  }
}

module attributes {stable_mosaic.version = 11 : i64} {
  func.func @_matmul_bias_kernel(%arg0: i32, %arg1: i32, %arg2: memref<24x1792xbf16, #tpu.memory_space<vmem>>, %arg3: memref<1792x384xbf16, #tpu.memory_space<vmem>>, %arg4: memref<1x384xf32, #tpu.memory_space<vmem>>, %arg5: memref<24x384xbf16, #tpu.memory_space<vmem>>) attributes {dimension_semantics = [#tpu.dimension_semantics<parallel>, #tpu.dimension_semantics<parallel>], iteration_bounds = array<i64: 1, 1>, scalar_prefetch = 0 : i64, scratch_operands = 0 : i64, tpu.core_type = #tpu.core_type<tc>, window_params = [{transform_indices = @transform_0, window_bounds = array<i64: 24, 1792>}, {transform_indices = @transform_1, window_bounds = array<i64: 1792, 384>}, {transform_indices = @transform_2, window_bounds = array<i64: 1, 384>}, {transform_indices = @transform_3, window_bounds = array<i64: 24, 384>}]} {
    %c0 = arith.constant 0 : index
    %c0_0 = arith.constant 0 : index
    %0 = vector.load %arg2[%c0, %c0_0] : memref<24x1792xbf16, #tpu.memory_space<vmem>>, vector<24x1792xbf16>
    %c0_1 = arith.constant 0 : index
    %c0_2 = arith.constant 0 : index
    %1 = vector.load %arg3[%c0_1, %c0_2] : memref<1792x384xbf16, #tpu.memory_space<vmem>>, vector<1792x384xbf16>
    %cst = arith.constant dense<0.000000e+00> : vector<24x384xf32>
    %2 = tpu.matmul %0, %1, %cst {dimension_numbers = #tpu.dot_dimension_numbers<[1], [0], [0], [1], [0, 0, 1, 1], [], []>} : vector<24x1792xbf16>, vector<1792x384xbf16>, vector<24x384xf32> -> vector<24x384xf32>
    %c0_3 = arith.constant 0 : index
    %c0_4 = arith.constant 0 : index
    %3 = vector.load %arg4[%c0_3, %c0_4] : memref<1x384xf32, #tpu.memory_space<vmem>>, vector<1x384xf32>
    %4 = vector.broadcast %3 : vector<1x384xf32> to vector<24x384xf32>
    %5 = arith.addf %2, %4 : vector<24x384xf32>
    %cst_5 = arith.constant 0.000000e+00 : f32
    %6 = vector.broadcast %cst_5 : f32 to vector<24x384xf32>
    %7 = arith.maximumf %5, %6 : vector<24x384xf32>
    %8 = arith.truncf %7 : vector<24x384xf32> to vector<24x384xbf16>
    %c0_6 = arith.constant 0 : index
    %c0_7 = arith.constant 0 : index
    %9 = vector.load %arg5[%c0_6, %c0_7] : memref<24x384xbf16, #tpu.memory_space<vmem>>, vector<24x384xbf16>
    tpu.vector_store %arg5[%c0_6, %c0_7], %8 {strides = array<i32>} : memref<24x384xbf16, #tpu.memory_space<vmem>>, vector<24x384xbf16>,
    return
  }
  func.func @transform_0(%arg0: i32, %arg1: i32) -> (i32, i32) {
    %c0_i32 = arith.constant 0 : i32
    %c0_i32_0 = arith.constant 0 : i32
    return %arg0, %c0_i32 : i32, i32
  }
  func.func @transform_1(%arg0: i32, %arg1: i32) -> (i32, i32) {
    %c0_i32 = arith.constant 0 : i32
    %c0_i32_0 = arith.constant 0 : i32
    return %c0_i32, %arg1 : i32, i32
  }
  func.func @transform_2(%arg0: i32, %arg1: i32) -> (i32, i32) {
    %c0_i32 = arith.constant 0 : i32
    %c0_i32_0 = arith.constant 0 : i32
    return %c0_i32, %arg1 : i32, i32
  }
  func.func @transform_3(%arg0: i32, %arg1: i32) -> (i32, i32) {
    %c0_i32 = arith.constant 0 : i32
    return %arg0, %arg1 : i32, i32
  }
}

module attributes {stable_mosaic.version = 11 : i64} {
  func.func @_matmul_bias_kernel(%arg0: i32, %arg1: i32, %arg2: memref<24x3456xbf16, #tpu.memory_space<vmem>>, %arg3: memref<3456x256xbf16, #tpu.memory_space<vmem>>, %arg4: memref<1x256xf32, #tpu.memory_space<vmem>>, %arg5: memref<24x256xbf16, #tpu.memory_space<vmem>>) attributes {dimension_semantics = [#tpu.dimension_semantics<parallel>, #tpu.dimension_semantics<parallel>], iteration_bounds = array<i64: 1, 1>, scalar_prefetch = 0 : i64, scratch_operands = 0 : i64, tpu.core_type = #tpu.core_type<tc>, window_params = [{transform_indices = @transform_0, window_bounds = array<i64: 24, 3456>}, {transform_indices = @transform_1, window_bounds = array<i64: 3456, 256>}, {transform_indices = @transform_2, window_bounds = array<i64: 1, 256>}, {transform_indices = @transform_3, window_bounds = array<i64: 24, 256>}]} {
    %c0 = arith.constant 0 : index
    %c0_0 = arith.constant 0 : index
    %0 = vector.load %arg2[%c0, %c0_0] : memref<24x3456xbf16, #tpu.memory_space<vmem>>, vector<24x3456xbf16>
    %c0_1 = arith.constant 0 : index
    %c0_2 = arith.constant 0 : index
    %1 = vector.load %arg3[%c0_1, %c0_2] : memref<3456x256xbf16, #tpu.memory_space<vmem>>, vector<3456x256xbf16>
    %cst = arith.constant dense<0.000000e+00> : vector<24x256xf32>
    %2 = tpu.matmul %0, %1, %cst {dimension_numbers = #tpu.dot_dimension_numbers<[1], [0], [0], [1], [0, 0, 1, 1], [], []>} : vector<24x3456xbf16>, vector<3456x256xbf16>, vector<24x256xf32> -> vector<24x256xf32>
    %c0_3 = arith.constant 0 : index
    %c0_4 = arith.constant 0 : index
    %3 = vector.load %arg4[%c0_3, %c0_4] : memref<1x256xf32, #tpu.memory_space<vmem>>, vector<1x256xf32>
    %4 = vector.broadcast %3 : vector<1x256xf32> to vector<24x256xf32>
    %5 = arith.addf %2, %4 : vector<24x256xf32>
    %cst_5 = arith.constant 0.000000e+00 : f32
    %6 = vector.broadcast %cst_5 : f32 to vector<24x256xf32>
    %7 = arith.maximumf %5, %6 : vector<24x256xf32>
    %8 = arith.truncf %7 : vector<24x256xf32> to vector<24x256xbf16>
    %c0_6 = arith.constant 0 : index
    %c0_7 = arith.constant 0 : index
    %9 = vector.load %arg5[%c0_6, %c0_7] : memref<24x256xbf16, #tpu.memory_space<vmem>>, vector<24x256xbf16>
    tpu.vector_store %arg5[%c0_6, %c0_7], %8 {strides = array<i32>} : memref<24x256xbf16, #tpu.memory_space<vmem>>, vector<24x256xbf16>,
    return
  }
  func.func @transform_0(%arg0: i32, %arg1: i32) -> (i32, i32) {
    %c0_i32 = arith.constant 0 : i32
    %c0_i32_0 = arith.constant 0 : i32
    return %arg0, %c0_i32 : i32, i32
  }
  func.func @transform_1(%arg0: i32, %arg1: i32) -> (i32, i32) {
    %c0_i32 = arith.constant 0 : i32
    %c0_i32_0 = arith.constant 0 : i32
    return %c0_i32, %arg1 : i32, i32
  }
  func.func @transform_2(%arg0: i32, %arg1: i32) -> (i32, i32) {
    %c0_i32 = arith.constant 0 : i32
    %c0_i32_0 = arith.constant 0 : i32
    return %c0_i32, %arg1 : i32, i32
  }
  func.func @transform_3(%arg0: i32, %arg1: i32) -> (i32, i32) {
    %c0_i32 = arith.constant 0 : i32
    return %arg0, %arg1 : i32, i32
  }
}

module attributes {stable_mosaic.version = 11 : i64} {
  func.func @_matmul_bias_kernel(%arg0: i32, %arg1: i32, %arg2: memref<24x2304xbf16, #tpu.memory_space<vmem>>, %arg3: memref<2304x256xbf16, #tpu.memory_space<vmem>>, %arg4: memref<1x256xf32, #tpu.memory_space<vmem>>, %arg5: memref<24x256xbf16, #tpu.memory_space<vmem>>) attributes {dimension_semantics = [#tpu.dimension_semantics<parallel>, #tpu.dimension_semantics<parallel>], iteration_bounds = array<i64: 1, 1>, scalar_prefetch = 0 : i64, scratch_operands = 0 : i64, tpu.core_type = #tpu.core_type<tc>, window_params = [{transform_indices = @transform_0, window_bounds = array<i64: 24, 2304>}, {transform_indices = @transform_1, window_bounds = array<i64: 2304, 256>}, {transform_indices = @transform_2, window_bounds = array<i64: 1, 256>}, {transform_indices = @transform_3, window_bounds = array<i64: 24, 256>}]} {
    %c0 = arith.constant 0 : index
    %c0_0 = arith.constant 0 : index
    %0 = vector.load %arg2[%c0, %c0_0] : memref<24x2304xbf16, #tpu.memory_space<vmem>>, vector<24x2304xbf16>
    %c0_1 = arith.constant 0 : index
    %c0_2 = arith.constant 0 : index
    %1 = vector.load %arg3[%c0_1, %c0_2] : memref<2304x256xbf16, #tpu.memory_space<vmem>>, vector<2304x256xbf16>
    %cst = arith.constant dense<0.000000e+00> : vector<24x256xf32>
    %2 = tpu.matmul %0, %1, %cst {dimension_numbers = #tpu.dot_dimension_numbers<[1], [0], [0], [1], [0, 0, 1, 1], [], []>} : vector<24x2304xbf16>, vector<2304x256xbf16>, vector<24x256xf32> -> vector<24x256xf32>
    %c0_3 = arith.constant 0 : index
    %c0_4 = arith.constant 0 : index
    %3 = vector.load %arg4[%c0_3, %c0_4] : memref<1x256xf32, #tpu.memory_space<vmem>>, vector<1x256xf32>
    %4 = vector.broadcast %3 : vector<1x256xf32> to vector<24x256xf32>
    %5 = arith.addf %2, %4 : vector<24x256xf32>
    %cst_5 = arith.constant 0.000000e+00 : f32
    %6 = vector.broadcast %cst_5 : f32 to vector<24x256xf32>
    %7 = arith.maximumf %5, %6 : vector<24x256xf32>
    %8 = arith.truncf %7 : vector<24x256xf32> to vector<24x256xbf16>
    %c0_6 = arith.constant 0 : index
    %c0_7 = arith.constant 0 : index
    %9 = vector.load %arg5[%c0_6, %c0_7] : memref<24x256xbf16, #tpu.memory_space<vmem>>, vector<24x256xbf16>
    tpu.vector_store %arg5[%c0_6, %c0_7], %8 {strides = array<i32>} : memref<24x256xbf16, #tpu.memory_space<vmem>>, vector<24x256xbf16>,
    return
  }
  func.func @transform_0(%arg0: i32, %arg1: i32) -> (i32, i32) {
    %c0_i32 = arith.constant 0 : i32
    %c0_i32_0 = arith.constant 0 : i32
    return %arg0, %c0_i32 : i32, i32
  }
  func.func @transform_1(%arg0: i32, %arg1: i32) -> (i32, i32) {
    %c0_i32 = arith.constant 0 : i32
    %c0_i32_0 = arith.constant 0 : i32
    return %c0_i32, %arg1 : i32, i32
  }
  func.func @transform_2(%arg0: i32, %arg1: i32) -> (i32, i32) {
    %c0_i32 = arith.constant 0 : i32
    %c0_i32_0 = arith.constant 0 : i32
    return %c0_i32, %arg1 : i32, i32
  }
  func.func @transform_3(%arg0: i32, %arg1: i32) -> (i32, i32) {
    %c0_i32 = arith.constant 0 : i32
    return %arg0, %arg1 : i32, i32
  }
}

module attributes {stable_mosaic.version = 11 : i64} {
  func.func @_maxpool_kernel(%arg0: i32, %arg1: memref<9x8x256xbf16, #tpu.memory_space<vmem>>, %arg2: memref<8x256xbf16, #tpu.memory_space<vmem>>) attributes {dimension_semantics = [#tpu.dimension_semantics<parallel>], iteration_bounds = array<i64: 1>, scalar_prefetch = 0 : i64, scratch_operands = 0 : i64, tpu.core_type = #tpu.core_type<tc>, window_params = [{transform_indices = @transform_0, window_bounds = array<i64: 9, 8, 256>}, {transform_indices = @transform_1, window_bounds = array<i64: 8, 256>}]} {
    %c0 = arith.constant 0 : index
    %c0_0 = arith.constant 0 : index
    %c0_1 = arith.constant 0 : index
    %0 = vector.load %arg1[%c0, %c0_0, %c0_1] : memref<9x8x256xbf16, #tpu.memory_space<vmem>>, vector<9x8x256xbf16>
    %cst = arith.constant dense<0xFF80> : vector<8x256xbf16>
    %1 = vector.multi_reduction <maximumf>, %0, %cst [0] : vector<9x8x256xbf16> to vector<8x256xbf16>
    %c0_2 = arith.constant 0 : index
    %c0_3 = arith.constant 0 : index
    %2 = vector.load %arg2[%c0_2, %c0_3] : memref<8x256xbf16, #tpu.memory_space<vmem>>, vector<8x256xbf16>
    tpu.vector_store %arg2[%c0_2, %c0_3], %1 {strides = array<i32>} : memref<8x256xbf16, #tpu.memory_space<vmem>>, vector<8x256xbf16>,
    return
  }
  func.func @transform_0(%arg0: i32) -> (i32, i32, i32) {
    %c0_i32 = arith.constant 0 : i32
    %c0_i32_0 = arith.constant 0 : i32
    %c0_i32_1 = arith.constant 0 : i32
    return %c0_i32, %arg0, %c0_i32_0 : i32, i32, i32
  }
  func.func @transform_1(%arg0: i32) -> (i32, i32) {
    %c0_i32 = arith.constant 0 : i32
    %c0_i32_0 = arith.constant 0 : i32
    return %arg0, %c0_i32 : i32, i32
  }
}

</mosaic_0001>

<bundles_post_ra>
// kernel: features_forward.8
= control target key start
LH: loop header
LB: loop body
LE: loop exit
PB: predicated region body
PF: predicated region fallthrough
CT: control target
= control target key end

     0   :  { %s1358_s12 = smov 0   ;;  %s1360_s13 = smov 0   ;;  %s1530_s0 = inlined_call_operand.vmem [shape: bf16[512,384], index: 0, kind: input, shape index: {}]   ;;  %s1531_s1 = inlined_call_operand.vmem [shape: bf16[384,128], index: 1, kind: input, shape index: {}]   ;;  %s1532_s2 = inlined_call_operand.vmem [shape: f32[1,128], index: 2, kind: input, shape index: {}]   ;;  %s1533_s3 = inlined_call_operand.vmem [shape: bf16[512,128], index: 3, kind: output, shape index: {}]  }
   0x1   :  { %s1362_s14 = smov 0  }
   0x2 LB: > { %s25_s15 = sadd.s32 1, %s1332_s13  ;;  %p986_p0 = scmp.ge.s32.totalorder %s1336_s14, 1  ;;  %s1336_s14 = sphi %s1362_s14, %s13_s14   ;;  %s1332_s13 = sphi %s1360_s13, %s1535_s13   ;;  %s1328_s12 = sphi %s1358_s12, %s1534_s12  }
   0x3   : > { %p27_p1 = scmp.ge.s32.totalorder %s25_s15, 4  ;;  %p170_p2 = scmp.lt.s32.totalorder %s1336_s14, 5 }
   0x5   : > { %s1537_s15 = smov (%p27_p1, %s25_s15), 0  ;;  %p171_p3 = pnand %p986_p0, %p170_p2 }
   0x6   : > { %v1258_v0 = vld [vmem:[%s1531_s1 + $0x40] sm:$0xff] (!%p171_p3)   ;;  %v1260_v2 = vld [vmem:[%s1531_s1 + $0x48] sm:$0xff] (!%p171_p3)   ;;  %v1263_v5 = vld [vmem:[%s1531_s1 + $0x50] sm:$0xff] (!%p171_p3)   ;;  %s987_s30 = sshll.u32 (!%p171_p3), %s1328_s12, 4 }
   0x7   : > { %174 = sbr.rel (%p171_p3) target bundleno = 321 (0x141), region = 32  ;;  %v1259_v1 = vld [vmem:[%s1531_s1] sm:$0xff] (!%p171_p3)   ;;  %1121 = vmatprep.subr.bf16.mxu0 (!%p171_p3), %v1258_v0  ;;  %v1262_v4 = vld [vmem:[%s1531_s1 + $0x8] sm:$0xff] (!%p171_p3)   ;;  %v1265_v7 = vld [vmem:[%s1531_s1 + $0x10] sm:$0xff] (!%p171_p3)   ;;  %p206_p4 = scmp.lt.s32.totalorder (!%p171_p3), %s987_s30, 63 }
   0x8   : > { %1122 = vmatpush3.bf16.msra.mxu0 (!%p171_p3), %v1259_v1  ;;  %v1261_v3 = vld [vmem:[%s1531_s1 + $0x80] sm:$0xff] (!%p171_p3)   ;;  %v1264_v6 = vld [vmem:[%s1531_s1 + $0x88] sm:$0xff] (!%p171_p3)   ;;  %v1266_v8 = vld [vmem:[%s1531_s1 + $0x58] sm:$0xff] (!%p171_p3)  }
   0x9   : > { %1123 = vmatprep.subr.bf16.mxu0 (!%p171_p3), %v1260_v2  ;;  %1201 = vmatprep.subr.bf16.mxu1 (!%p171_p3), %v1261_v3  ;;  %v1267_v9 = vld [vmem:[%s1531_s1 + $0x90] sm:$0xff] (!%p171_p3)   ;;  %v1268_v10 = vld [vmem:[%s1531_s1 + $0x18] sm:$0xff] (!%p171_p3)   ;;  %v1269_v11 = vld [vmem:[%s1531_s1 + $0x60] sm:$0xff] (!%p171_p3)  }
   0xa   : > { %1202 = vmatpush3.bf16.msra.mxu1 (!%p171_p3), %v1261_v3  ;;  %v1270_v12 = vld [vmem:[%s1531_s1 + $0x98] sm:$0xff] (!%p171_p3)   ;;  %v1271_v13 = vld [vmem:[%s1531_s1 + $0x20] sm:$0xff] (!%p171_p3)   ;;  %v1272_v15 = vld [vmem:[%s1531_s1 + $0x68] sm:$0xff] (!%p171_p3)  }
   0xb   : > { %1203 = vmatprep.subr.bf16.mxu1 (!%p171_p3), %v1264_v6  ;;  %v1273_v14 = vld [vmem:[%s1531_s1 + $0xa0] sm:$0xff] (!%p171_p3)   ;;  %v1274_v16 = vld [vmem:[%s1531_s1 + $0x28] sm:$0xff] (!%p171_p3)   ;;  %v1275_v18 = vld [vmem:[%s1531_s1 + $0x70] sm:$0xff] (!%p171_p3)  }
   0xc   : > { %1124 = vmatpush3.bf16.msra.mxu0 (!%p171_p3), %v1262_v4  ;;  %v1276_v17 = vld [vmem:[%s1531_s1 + $0xa8] sm:$0xff] (!%p171_p3)   ;;  %v1277_v19 = vld [vmem:[%s1531_s1 + $0x30] sm:$0xff] (!%p171_p3)   ;;  %v1278_v20 = vld [vmem:[%s1531_s1 + $0x78] sm:$0xff] (!%p171_p3)  }
   0xd   : > { %1125 = vmatprep.subr.bf16.mxu0 (!%p171_p3), %v1263_v5  ;;  %v1279_v21 = vld [vmem:[%s1531_s1 + $0xb0] sm:$0xff] (!%p171_p3)   ;;  %v1280_v23 = vld [vmem:[%s1531_s1 + $0x38] sm:$0xff] (!%p171_p3)   ;;  %v1486_v50 = vld [vmem:[%s1532_s2] ss:$0 sm:$0xff] (!%p171_p3) }
   0xe   : > { %1204 = vmatpush3.bf16.msra.mxu1 %v1264_v6  ;;  %s1539_s30 = smov (!%p206_p4, %s987_s30), 63  ;;  %v1284_v25 = vld [vmem:[%s1531_s1 + $0xb8] sm:$0xff]  }
   0xf   : > { %1205 = vmatprep.subr.bf16.mxu1 %v1267_v9  ;;  %s1233_s25 = smul.u32 12, %s1539_s30  ;;  %s990_s24 = sshll.u32 %s1539_s30, 2 }
  0x10   : > { %1126 = vmatpush3.bf16.msra.mxu0 %v1265_v7  ;;  %s1494_s27 = scalar_lea.vmem %s1533_s3, %s990_s24 }
  0x11   : > { %1127 = vmatprep.subr.bf16.mxu0 %v1266_v8  ;;  %s1445_s10 = scalar_lea.vmem %s1530_s0, %s1233_s25 }
  0x12   : > { %1206 = vmatpush3.bf16.msra.mxu1 %v1267_v9  ;;  %v1283_v22 = vld [vmem:[%s1445_s10 + $0x4] ss:$12 sps:$4 sm:$0xff]   ;;  %v1285_v24 = vld [vmem:[%s1445_s10 + $0x8] ss:$12 sps:$4 sm:$0xff]   ;;  %v1281_v26 = vld [vmem:[%s1445_s10] ss:$12 sps:$4 sm:$0xff]  }
  0x13   : > { %1207 = vmatprep.subr.bf16.mxu1 %v1270_v12  ;;  %620 = vmatprep.mubr.bf16.mxu0 %v1283_v22  ;;  %v1287_v27 = vld [vmem:[%s1445_s10 + $0x1c] ss:$12 sps:$4 sm:$0xff]   ;;  %v1286_v28 = vld [vmem:[%s1445_s10 + $0x20] ss:$12 sps:$4 sm:$0xff]   ;;  %v1293_v29 = vld [vmem:[%s1445_s10 + $0x38] ss:$12 sps:$4 sm:$0xff]  }
  0x14   : > { %1128 = vmatpush3.bf16.msra.mxu0 %v1268_v10  ;;  %1217 = vmatprep.mubr.bf16.mxu1 %v1285_v24  ;;  %v1289_v30 = vld [vmem:[%s1445_s10 + $0x18] ss:$12 sps:$4 sm:$0xff]   ;;  %v1290_v31 = vld [vmem:[%s1445_s10 + $0x34] ss:$12 sps:$4 sm:$0xff]   ;;  %v1294_v32 = vld [vmem:[%s1445_s10 + $0x50] ss:$12 sps:$4 sm:$0xff]  }
  0x15   : > { %1129 = vmatprep.subr.bf16.mxu0 %v1269_v11  ;;  %v1301_v33 = vld [vmem:[%s1445_s10 + $0x68] ss:$12 sps:$4 sm:$0xff]   ;;  %v1292_v34 = vld [vmem:[%s1445_s10 + $0x30] ss:$12 sps:$4 sm:$0xff]   ;;  %v1295_v35 = vld [vmem:[%s1445_s10 + $0x4c] ss:$12 sps:$4 sm:$0xff]  }
  0x16   : > { %1208 = vmatpush3.bf16.msra.mxu1 %v1270_v12  ;;  %v1302_v36 = vld [vmem:[%s1445_s10 + $0x80] ss:$12 sps:$4 sm:$0xff]   ;;  %v1309_v37 = vld [vmem:[%s1445_s10 + $0x98] ss:$12 sps:$4 sm:$0xff]   ;;  %v1297_v38 = vld [vmem:[%s1445_s10 + $0x48] ss:$12 sps:$4 sm:$0xff]  }
  0x17   : > { %1209 = vmatprep.subr.bf16.mxu1 %v1273_v14  ;;  %v1298_v39 = vld [vmem:[%s1445_s10 + $0x64] ss:$12 sps:$4 sm:$0xff]   ;;  %v1300_v41 = vld [vmem:[%s1445_s10 + $0x60] ss:$12 sps:$4 sm:$0xff]   ;;  %v1303_v42 = vld [vmem:[%s1445_s10 + $0x7c] ss:$12 sps:$4 sm:$0xff]  }
  0x18   : > { %1130 = vmatpush3.bf16.msra.mxu0 %v1271_v13  ;;  %v1310_v40 = vld [vmem:[%s1445_s10 + $0xb0] ss:$12 sps:$4 sm:$0xff]   ;;  %v1305_v43 = vld [vmem:[%s1445_s10 + $0x78] ss:$12 sps:$4 sm:$0xff]   ;;  %v1306_v44 = vld [vmem:[%s1445_s10 + $0x94] ss:$12 sps:$4 sm:$0xff]  }
  0x19   : > { %1131 = vmatprep.subr.bf16.mxu0 %v1272_v15  ;;  %v1308_v45 = vld [vmem:[%s1445_s10 + $0x90] ss:$12 sps:$4 sm:$0xff]   ;;  %v1311_v46 = vld [vmem:[%s1445_s10 + $0xac] ss:$12 sps:$4 sm:$0xff]   ;;  %v1313_v47 = vld [vmem:[%s1445_s10 + $0xa8] ss:$12 sps:$4 sm:$0xff]  }
  0x1a   : > { %1210 = vmatpush3.bf16.msra.mxu1 %v1273_v14 }
  0x1b   : > { %1211 = vmatprep.subr.bf16.mxu1 %v1276_v17 }
  0x1c   : > { %1132 = vmatpush3.bf16.msra.mxu0 %v1274_v16 }
  0x1d   : > { %1133 = vmatprep.subr.bf16.mxu0 %v1275_v18 }
  0x1e   : > { %1212 = vmatpush3.bf16.msra.mxu1 %v1276_v17 }
  0x1f   : > { %1213 = vmatprep.subr.bf16.mxu1 %v1279_v21 }
  0x20   : > { %1134 = vmatpush3.bf16.msra.mxu0 %v1277_v19 }
  0x21   : > { %1135 = vmatprep.subr.bf16.mxu0 %v1278_v20 }
  0x22   : > { %1214 = vmatpush3.bf16.msra.mxu1 %v1279_v21 }
  0x23   : > { %1215 = vmatprep.subr.bf16.mxu1 %v1284_v25 }
  0x24   : > { %1136 = vmatpush3.bf16.msra.mxu0 %v1280_v23 }
  0x26   : > { %1216 = vmatpush3.bf16.msra.mxu1 %v1284_v25 }
  0x27   : > { %621 = vmatmul.mubr.bf16.vlgmr.msra.gmra.mrb[0].mxu0 %v1281_v26 }
  0x28   : > { %628 = vmatprep.mubr.bf16.mxu0 %v1287_v27 }
  0x29   : > { %1218 = vmatmul.mubr.bf16.vlgmr.msra.gmra.mrb[0].mxu1 %v1286_v28 }
  0x2a   : > { %1221 = vmatprep.mubr.bf16.mxu1 %v1293_v29 }
  0x2f   : > { %629 = vmatmul.mubr.bf16.gmra.mrb[4].mxu0 %v1289_v30 }
  0x30   : > { %636 = vmatprep.mubr.bf16.mxu0 %v1290_v31 }
  0x31   : > { %1222 = vmatmul.mubr.bf16.gmra.mrb[4].mxu1 %v1294_v32 }
  0x32   : > { %1225 = vmatprep.mubr.bf16.mxu1 %v1301_v33 }
  0x37   : > { %637 = vmatmul.mubr.bf16.gmra.mrb[8].mxu0 %v1292_v34 }
  0x38   : > { %644 = vmatprep.mubr.bf16.mxu0 %v1295_v35 }
  0x39   : > { %1226 = vmatmul.mubr.bf16.gmra.mrb[8].mxu1 %v1302_v36 }
  0x3a   : > { %1229 = vmatprep.mubr.bf16.mxu1 %v1309_v37 }
  0x3f   : > { %645 = vmatmul.mubr.bf16.gmra.mrb[12].mxu0 %v1297_v38 }
  0x40   : > { %652 = vmatprep.mubr.bf16.mxu0 %v1298_v39 }
  0x41   : > { %1230 = vmatmul.mubr.bf16.gmra.mrb[12].mxu1 %v1310_v40 }
  0x47   : > { %653 = vmatmul.mubr.bf16.gmra.mrb[16].mxu0 %v1300_v41 }
  0x48   : > { %660 = vmatprep.mubr.bf16.mxu0 %v1303_v42 }
  0x4f   : > { %661 = vmatmul.mubr.bf16.gmra.mrb[20].mxu0 %v1305_v43 }
  0x50   : > { %668 = vmatprep.mubr.bf16.mxu0 %v1306_v44 }
  0x57   : > { %669 = vmatmul.mubr.bf16.gmra.mrb[24].mxu0 %v1308_v45 }
  0x58   : > { %676 = vmatprep.mubr.bf16.mxu0 %v1311_v46 }
  0x5f   : > { %677 = vmatmul.mubr.bf16.gmra.mrb[28].mxu0 %v1313_v47 }
  0xfa   : > { %v1137_v48 = vpop.f32.mrb[0].mxu0 }
  0xfb   : > { %v1138_v49 = vpop.f32.mrb[1].mxu0 }
  0xfc   : > { %v1139_v51 = vadd.f32 %v1138_v49, %v1137_v48  ;;  %v1140_v52 = vpop.f32.mrb[2].mxu0  ;;  %v1219_v54 = vpop.f32.mrb[0].mxu1 }
  0xfd   : > { %v1141_v53 = vpop.f32.mrb[3].mxu0  ;;  %v719_v57 = vpop.f32.mrb[1].mxu1 }
  0xfe   : > { %v1142_v55 = vadd.f32 %v1141_v53, %v1140_v52  ;;  %v623_v56 = vadd.f32 %v1139_v51, %v1486_v50  ;;  %v1220_v58 = vpop.f32.mrb[2].mxu1 }
  0xff   : > { %v722_v61 = vpop.f32.mrb[3].mxu1 }
 0x100   : > { %v720_v59 = vadd.f32 %v719_v57, %v623_v56  ;;  %v626_v60 = vadd.f32 %v1142_v55, %v1486_v50 }
 0x102   : > { %v723_v62 = vadd.f32 %v722_v61, %v626_v60  ;;  %v1143_v63 = vpop.f32.mrb[4].mxu0  ;;  %v782_v1 = vmax.f32 %v720_v59, 0.0 }
 0x103   : > { %v1144_v0 = vpop.f32.mrb[5].mxu0 }
 0x104   : > { %v783_v2 = vmax.f32 %v723_v62, 0.0  ;;  %v1145_v3 = vadd.f32 %v1144_v0, %v1143_v63  ;;  %v1146_v4 = vpop.f32.mrb[6].mxu0  ;;  %v1223_v6 = vpop.f32.mrb[4].mxu1 }
 0x105   : > { %v1147_v5 = vpop.f32.mrb[7].mxu0  ;;  %v735_v10 = vpop.f32.mrb[5].mxu1 }
 0x106   : > { %v1077_v7 = vpack.c.bf16 %v783_v2, %v782_v1  ;;  %v631_v8 = vadd.f32 %v1145_v3, %v1486_v50  ;;  %v1148_v9 = vadd.f32 %v1147_v5, %v1146_v4  ;;  %v1224_v11 = vpop.f32.mrb[6].mxu1 }
 0x107   : > { %v738_v14 = vpop.f32.mrb[7].mxu1 }
 0x108   : > { %1078 = vst [vmem:[%s1494_s27] sm:$0xff] %v1077_v7   ;;  %v728_v12 = vadd.f32 %v1219_v54, %v631_v8  ;;  %v634_v13 = vadd.f32 %v1148_v9, %v1486_v50 }
 0x10a   : > { %v731_v15 = vadd.f32 %v1220_v58, %v634_v13  ;;  %v1149_v16 = vpop.f32.mrb[8].mxu0  ;;  %v784_v18 = vmax.f32 %v728_v12, 0.0 }
 0x10b   : > { %v1150_v17 = vpop.f32.mrb[9].mxu0 }
 0x10c   : > { %v785_v19 = vmax.f32 %v731_v15, 0.0  ;;  %v1151_v20 = vadd.f32 %v1150_v17, %v1149_v16  ;;  %v1152_v21 = vpop.f32.mrb[10].mxu0  ;;  %v1227_v23 = vpop.f32.mrb[8].mxu1 }
 0x10d   : > { %v1153_v22 = vpop.f32.mrb[11].mxu0  ;;  %v751_v27 = vpop.f32.mrb[9].mxu1 }
 0x10e   : > { %v1082_v24 = vpack.c.bf16 %v785_v19, %v784_v18  ;;  %v1154_v25 = vadd.f32 %v1153_v22, %v1152_v21  ;;  %v639_v26 = vadd.f32 %v1151_v20, %v1486_v50  ;;  %v1228_v28 = vpop.f32.mrb[10].mxu1 }
 0x10f   : > { %v754_v31 = vpop.f32.mrb[11].mxu1 }
 0x110   : > { %1114 = vst [vmem:[%s1494_s27 + $0x8] sm:$0xff] %v1082_v24   ;;  %v736_v29 = vadd.f32 %v735_v10, %v639_v26  ;;  %v642_v30 = vadd.f32 %v1154_v25, %v1486_v50 }
 0x112   : > { %v739_v32 = vadd.f32 %v738_v14, %v642_v30  ;;  %v1155_v33 = vpop.f32.mrb[12].mxu0  ;;  %v786_v35 = vmax.f32 %v736_v29, 0.0 }
 0x113   : > { %v1156_v34 = vpop.f32.mrb[13].mxu0 }
 0x114   : > { %v787_v36 = vmax.f32 %v739_v32, 0.0  ;;  %v1157_v37 = vadd.f32 %v1156_v34, %v1155_v33  ;;  %v1158_v38 = vpop.f32.mrb[14].mxu0  ;;  %v1502_v40 = vpop.f32.mrb[12].mxu1 }
 0x115   : > { %v1159_v39 = vpop.f32.mrb[15].mxu0  ;;  %v767_v44 = vpop.f32.mrb[13].mxu1 }
 0x116   : > { %v1087_v41 = vpack.c.bf16 %v787_v36, %v786_v35  ;;  %v647_v42 = vadd.f32 %v1157_v37, %v1486_v50  ;;  %v1160_v43 = vadd.f32 %v1159_v39, %v1158_v38  ;;  %v1232_v45 = vpop.f32.mrb[14].mxu1 }
 0x117   : > { %v770_v48 = vpop.f32.mrb[15].mxu1 }
 0x118   : > { %1115 = vst [vmem:[%s1494_s27 + $0x10] sm:$0xff] %v1087_v41   ;;  %v744_v46 = vadd.f32 %v1223_v6, %v647_v42  ;;  %v650_v47 = vadd.f32 %v1160_v43, %v1486_v50 }
 0x11a   : > { %v747_v49 = vadd.f32 %v1224_v11, %v650_v47  ;;  %v1161_v51 = vpop.f32.mrb[16].mxu0  ;;  %v788_v53 = vmax.f32 %v744_v46, 0.0 }
 0x11b   : > { %v1162_v52 = vpop.f32.mrb[17].mxu0 }
 0x11c   : > { %v789_v54 = vmax.f32 %v747_v49, 0.0  ;;  %v1163_v55 = vadd.f32 %v1162_v52, %v1161_v51  ;;  %v1164_v56 = vpop.f32.mrb[18].mxu0 }
 0x11d   : > { %v1165_v57 = vpop.f32.mrb[19].mxu0 }
 0x11e   : > { %v1092_v58 = vpack.c.bf16 %v789_v54, %v788_v53  ;;  %v1166_v59 = vadd.f32 %v1165_v57, %v1164_v56  ;;  %v655_v60 = vadd.f32 %v1163_v55, %v1486_v50 }
 0x120   : > { %1116 = vst [vmem:[%s1494_s27 + $0x18] sm:$0xff] %v1092_v58   ;;  %v752_v61 = vadd.f32 %v751_v27, %v655_v60  ;;  %v658_v62 = vadd.f32 %v1166_v59, %v1486_v50 }
 0x122   : > { %v755_v63 = vadd.f32 %v754_v31, %v658_v62  ;;  %v1167_v0 = vpop.f32.mrb[20].mxu0  ;;  %v790_v2 = vmax.f32 %v752_v61, 0.0 }
 0x123   : > { %v1168_v1 = vpop.f32.mrb[21].mxu0 }
 0x124   : > { %v791_v3 = vmax.f32 %v755_v63, 0.0  ;;  %v1169_v4 = vadd.f32 %v1168_v1, %v1167_v0  ;;  %v1170_v5 = vpop.f32.mrb[22].mxu0 }
 0x125   : > { %v1171_v6 = vpop.f32.mrb[23].mxu0 }
 0x126   : > { %v1097_v7 = vpack.c.bf16 %v791_v3, %v790_v2  ;;  %v663_v8 = vadd.f32 %v1169_v4, %v1486_v50  ;;  %v1172_v9 = vadd.f32 %v1171_v6, %v1170_v5 }
 0x128   : > { %1117 = vst [vmem:[%s1494_s27 + $0x20] sm:$0xff] %v1097_v7   ;;  %v760_v10 = vadd.f32 %v1227_v23, %v663_v8  ;;  %v666_v11 = vadd.f32 %v1172_v9, %v1486_v50 }
 0x12a   : > { %v763_v12 = vadd.f32 %v1228_v28, %v666_v11  ;;  %v1173_v13 = vpop.f32.mrb[24].mxu0  ;;  %v792_v15 = vmax.f32 %v760_v10, 0.0 }
 0x12b   : > { %v1174_v14 = vpop.f32.mrb[25].mxu0 }
 0x12c   : > { %v793_v16 = vmax.f32 %v763_v12, 0.0  ;;  %v1175_v17 = vadd.f32 %v1174_v14, %v1173_v13  ;;  %v1176_v18 = vpop.f32.mrb[26].mxu0 }
 0x12d   : > { %v1177_v19 = vpop.f32.mrb[27].mxu0 }
 0x12e   : > { %v1102_v20 = vpack.c.bf16 %v793_v16, %v792_v15  ;;  %v1178_v21 = vadd.f32 %v1177_v19, %v1176_v18  ;;  %v671_v22 = vadd.f32 %v1175_v17, %v1486_v50 }
 0x130   : > { %1118 = vst [vmem:[%s1494_s27 + $0x28] sm:$0xff] %v1102_v20   ;;  %v768_v24 = vadd.f32 %v767_v44, %v671_v22  ;;  %v674_v25 = vadd.f32 %v1178_v21, %v1486_v50 }
 0x132   : > { %v771_v23 = vadd.f32 %v770_v48, %v674_v25  ;;  %v1179_v26 = vpop.f32.mrb[28].mxu0  ;;  %v794_v28 = vmax.f32 %v768_v24, 0.0 }
 0x133   : > { %v1180_v27 = vpop.f32.mrb[29].mxu0 }
 0x134   : > { %v795_v29 = vmax.f32 %v771_v23, 0.0  ;;  %v1181_v30 = vadd.f32 %v1180_v27, %v1179_v26  ;;  %v1182_v31 = vpop.f32.mrb[30].mxu0 }
 0x135   : > { %v1183_v32 = vpop.f32.mrb[31].mxu0 }
 0x136   : > { %v1107_v33 = vpack.c.bf16 %v795_v29, %v794_v28  ;;  %v679_v34 = vadd.f32 %v1181_v30, %v1486_v50  ;;  %v1184_v35 = vadd.f32 %v1183_v32, %v1182_v31 }
 0x138   : > { %1119 = vst [vmem:[%s1494_s27 + $0x30] sm:$0xff] %v1107_v33   ;;  %v776_v36 = vadd.f32 %v1502_v40, %v679_v34  ;;  %v682_v37 = vadd.f32 %v1184_v35, %v1486_v50 }
 0x13a   : > { %v779_v38 = vadd.f32 %v1232_v45, %v682_v37  ;;  %v796_v39 = vmax.f32 %v776_v36, 0.0 }
 0x13c   : > { %v797_v41 = vmax.f32 %v779_v38, 0.0 }
 0x13e   : > { %v1112_v42 = vpack.c.bf16 %v797_v41, %v796_v39 }
 0x140   : > { %1120 = vst [vmem:[%s1494_s27 + $0x38] sm:$0xff] %v1112_v42  }
 0x141 PF: > { %s13_s14 = sadd.s32 1, %s1336_s14   ;;  %s1534_s12 = smov %s1332_s13 }
 0x142   : > { %p10_p5 = scmp.ge.s32.totalorder %s13_s14, 6   ;;  %s1535_s13 = smov %s1537_s15 }
 0x144   :  { %12 = sbr.rel (!%p10_p5) target bundleno = 2 (0x2), region = 68 }

// kernel: features_forward.9
= control target key start
LH: loop header
LB: loop body
LE: loop exit
PB: predicated region body
PF: predicated region fallthrough
CT: control target
= control target key end

     0   :  { %vm126_vm0 = vcmask 519168   ;;  %s1130_s0 = inlined_call_operand.vmem [shape: bf16[9,104,64], index: 0, kind: input, shape index: {}]   ;;  %s1131_s1 = inlined_call_operand.vmem [shape: bf16[104,64], index: 1, kind: output, shape index: {}]  }
   0x1   :  { %v9_v0 = vld [vmem:[%s1130_s0] sm:$0xf]  ;;  %v22_v1 = vld [vmem:[%s1130_s0 + $0x34] sm:$0xf]  ;;  %v35_v2 = vld [vmem:[%s1130_s0 + $0x68] sm:$0xf] }
   0x2   :  { %v48_v3 = vld [vmem:[%s1130_s0 + $0x9c] sm:$0xf]  ;;  %v129_v4 = vsel %vm126_vm0, %v9_v0, 4286644096  ;;  %v132_v5 = vsel %vm126_vm0, %v22_v1, 4286644096 }
   0x3   :  { %v136_v6 = vsel %vm126_vm0, %v35_v2, 4286644096  ;;  %v61_v7 = vld [vmem:[%s1130_s0 + $0xd0] sm:$0xf]  ;;  %v134_v8 = vmax.bf16 %v132_v5, %v129_v4  ;;  %v74_v9 = vld [vmem:[%s1130_s0 + $0x104] sm:$0xf] }
   0x4   :  { %v140_v10 = vsel %vm126_vm0, %v48_v3, 4286644096  ;;  %v10_v12 = vld [vmem:[%s1130_s0 + $0x4] sm:$0xf]  ;;  %v23_v13 = vld [vmem:[%s1130_s0 + $0x38] sm:$0xf] }
   0x5   :  { %v138_v11 = vmax.bf16 %v136_v6, %v134_v8  ;;  %v36_v14 = vld [vmem:[%s1130_s0 + $0x6c] sm:$0xf]  ;;  %v144_v15 = vsel %vm126_vm0, %v61_v7, 4286644096  ;;  %v87_v16 = vld [vmem:[%s1130_s0 + $0x138] sm:$0xf] }
   0x6   :  { %v148_v18 = vsel %vm126_vm0, %v74_v9, 4286644096  ;;  %v49_v19 = vld [vmem:[%s1130_s0 + $0xa0] sm:$0xf]  ;;  %v164_v20 = vsel %vm126_vm0, %v10_v12, 4286644096 }
   0x7   :  { %v142_v17 = vmax.bf16 %v140_v10, %v138_v11  ;;  %v167_v21 = vsel %vm126_vm0, %v23_v13, 4286644096  ;;  %v171_v22 = vsel %vm126_vm0, %v36_v14, 4286644096  ;;  %v100_v23 = vld [vmem:[%s1130_s0 + $0x16c] sm:$0xf] }
   0x8   :  { %v113_v24 = vld [vmem:[%s1130_s0 + $0x1a0] sm:$0xf]  ;;  %v62_v26 = vld [vmem:[%s1130_s0 + $0xd4] sm:$0xf]  ;;  %v169_v27 = vmax.bf16 %v167_v21, %v164_v20  ;;  %v152_v28 = vsel %vm126_vm0, %v87_v16, 4286644096 }
   0x9   :  { %v146_v25 = vmax.bf16 %v144_v15, %v142_v17  ;;  %v75_v29 = vld [vmem:[%s1130_s0 + $0x108] sm:$0xf]  ;;  %v175_v30 = vsel %vm126_vm0, %v49_v19, 4286644096  ;;  %v24_v34 = vld [vmem:[%s1130_s0 + $0x3c] sm:$0xf] }
   0xa   :  { %v173_v32 = vmax.bf16 %v171_v22, %v169_v27  ;;  %v11_v33 = vld [vmem:[%s1130_s0 + $0x8] sm:$0xf]  ;;  %v37_v35 = vld [vmem:[%s1130_s0 + $0x70] sm:$0xf]  ;;  %v156_v36 = vsel %vm126_vm0, %v100_v23, 4286644096 }
   0xb   :  { %v150_v31 = vmax.bf16 %v148_v18, %v146_v25  ;;  %v160_v37 = vsel %vm126_vm0, %v113_v24, 4286644096  ;;  %v179_v38 = vsel %vm126_vm0, %v62_v26, 4286644096  ;;  %v88_v40 = vld [vmem:[%s1130_s0 + $0x13c] sm:$0xf] }
   0xc   :  { %v177_v41 = vmax.bf16 %v175_v30, %v173_v32  ;;  %v183_v42 = vsel %vm126_vm0, %v75_v29, 4286644096  ;;  %v50_v43 = vld [vmem:[%s1130_s0 + $0xa4] sm:$0xf]  ;;  %v199_v44 = vsel %vm126_vm0, %v11_v33, 4286644096 }
   0xd   :  { %v154_v39 = vmax.bf16 %v152_v28, %v150_v31  ;;  %v202_v45 = vsel %vm126_vm0, %v24_v34, 4286644096  ;;  %v206_v46 = vsel %vm126_vm0, %v37_v35, 4286644096  ;;  %v101_v48 = vld [vmem:[%s1130_s0 + $0x170] sm:$0xf] }
   0xe   :  { %v114_v49 = vld [vmem:[%s1130_s0 + $0x1a4] sm:$0xf]  ;;  %v181_v50 = vmax.bf16 %v179_v38, %v177_v41  ;;  %v63_v51 = vld [vmem:[%s1130_s0 + $0xd8] sm:$0xf]  ;;  %v204_v52 = vmax.bf16 %v202_v45, %v199_v44  ;;  %v187_v53 = vsel %vm126_vm0, %v88_v40, 4286644096 }
   0xf   :  { %v158_v47 = vmax.bf16 %v156_v36, %v154_v39  ;;  %v76_v54 = vld [vmem:[%s1130_s0 + $0x10c] sm:$0xf]  ;;  %v210_v55 = vsel %vm126_vm0, %v50_v43, 4286644096  ;;  %v25_v60 = vld [vmem:[%s1130_s0 + $0x40] sm:$0xf] }
  0x10   :  { %v185_v57 = vmax.bf16 %v183_v42, %v181_v50  ;;  %v208_v58 = vmax.bf16 %v206_v46, %v204_v52  ;;  %v12_v59 = vld [vmem:[%s1130_s0 + $0xc] sm:$0xf]  ;;  %v38_v61 = vld [vmem:[%s1130_s0 + $0x74] sm:$0xf]  ;;  %v191_v62 = vsel %vm126_vm0, %v101_v48, 4286644096 }
  0x11   :  { %v162_v56 = vmax.bf16 %v160_v37, %v158_v47  ;;  %v195_v63 = vsel %vm126_vm0, %v114_v49, 4286644096  ;;  %v214_v0 = vsel %vm126_vm0, %v63_v51, 4286644096  ;;  %v89_v2 = vld [vmem:[%s1130_s0 + $0x140] sm:$0xf] }
  0x12   :  { %v189_v1 = vmax.bf16 %v187_v53, %v185_v57  ;;  %v212_v3 = vmax.bf16 %v210_v55, %v208_v58  ;;  %v218_v4 = vsel %vm126_vm0, %v76_v54, 4286644096  ;;  %v51_v5 = vld [vmem:[%s1130_s0 + $0xa8] sm:$0xf]  ;;  %v234_v6 = vsel %vm126_vm0, %v12_v59, 4286644096 }
  0x13   :  { %583 = vst.msk [vmem:[%s1131_s1] sm:$0xf] %vm126_vm0, %v162_v56  ;;  %v237_v7 = vsel %vm126_vm0, %v25_v60, 4286644096  ;;  %v241_v8 = vsel %vm126_vm0, %v38_v61, 4286644096 }
  0x14   :  { %v193_v9 = vmax.bf16 %v191_v62, %v189_v1  ;;  %v102_v10 = vld [vmem:[%s1130_s0 + $0x174] sm:$0xf]  ;;  %v115_v11 = vld [vmem:[%s1130_s0 + $0x1a8] sm:$0xf]  ;;  %v216_v12 = vmax.bf16 %v214_v0, %v212_v3  ;;  %v64_v13 = vld [vmem:[%s1130_s0 + $0xdc] sm:$0xf]  ;;  %v239_v14 = vmax.bf16 %v237_v7, %v234_v6 }
  0x15   :  { %v222_v15 = vsel %vm126_vm0, %v89_v2, 4286644096  ;;  %v77_v16 = vld [vmem:[%s1130_s0 + $0x110] sm:$0xf]  ;;  %v245_v17 = vsel %vm126_vm0, %v51_v5, 4286644096 }
  0x16   :  { %v197_v18 = vmax.bf16 %v195_v63, %v193_v9  ;;  %v220_v19 = vmax.bf16 %v218_v4, %v216_v12  ;;  %v243_v20 = vmax.bf16 %v241_v8, %v239_v14  ;;  %v13_v21 = vld [vmem:[%s1130_s0 + $0x10] sm:$0xf]  ;;  %v26_v22 = vld [vmem:[%s1130_s0 + $0x44] sm:$0xf]  ;;  %v39_v23 = vld [vmem:[%s1130_s0 + $0x78] sm:$0xf] }
  0x17   :  { %v226_v24 = vsel %vm126_vm0, %v102_v10, 4286644096  ;;  %v230_v25 = vsel %vm126_vm0, %v115_v11, 4286644096  ;;  %v249_v26 = vsel %vm126_vm0, %v64_v13, 4286644096 }
  0x18   :  { %584 = vst.msk [vmem:[%s1131_s1 + $0x4] sm:$0xf] %vm126_vm0, %v197_v18  ;;  %v224_v27 = vmax.bf16 %v222_v15, %v220_v19  ;;  %v90_v28 = vld [vmem:[%s1130_s0 + $0x144] sm:$0xf]  ;;  %v247_v29 = vmax.bf16 %v245_v17, %v243_v20  ;;  %v253_v30 = vsel %vm126_vm0, %v77_v16, 4286644096 }
  0x19   :  { %v52_v31 = vld [vmem:[%s1130_s0 + $0xac] sm:$0xf]  ;;  %v269_v32 = vsel %vm126_vm0, %v13_v21, 4286644096  ;;  %v272_v33 = vsel %vm126_vm0, %v26_v22, 4286644096 }
  0x1a   :  { %v276_v34 = vsel %vm126_vm0, %v39_v23, 4286644096  ;;  %v228_v35 = vmax.bf16 %v226_v24, %v224_v27  ;;  %v103_v36 = vld [vmem:[%s1130_s0 + $0x178] sm:$0xf]  ;;  %v116_v37 = vld [vmem:[%s1130_s0 + $0x1ac] sm:$0xf]  ;;  %v251_v38 = vmax.bf16 %v249_v26, %v247_v29  ;;  %v274_v40 = vmax.bf16 %v272_v33, %v269_v32 }
  0x1b   :  { %v65_v39 = vld [vmem:[%s1130_s0 + $0xe0] sm:$0xf]  ;;  %v257_v41 = vsel %vm126_vm0, %v90_v28, 4286644096  ;;  %v78_v42 = vld [vmem:[%s1130_s0 + $0x114] sm:$0xf] }
  0x1c   :  { %v280_v43 = vsel %vm126_vm0, %v52_v31, 4286644096  ;;  %v232_v44 = vmax.bf16 %v230_v25, %v228_v35  ;;  %v255_v45 = vmax.bf16 %v253_v30, %v251_v38  ;;  %v278_v46 = vmax.bf16 %v276_v34, %v274_v40  ;;  %v14_v47 = vld [vmem:[%s1130_s0 + $0x14] sm:$0xf]  ;;  %v27_v48 = vld [vmem:[%s1130_s0 + $0x48] sm:$0xf] }
  0x1d   :  { %v40_v49 = vld [vmem:[%s1130_s0 + $0x7c] sm:$0xf]  ;;  %v261_v50 = vsel %vm126_vm0, %v103_v36, 4286644096  ;;  %v265_v51 = vsel %vm126_vm0, %v116_v37, 4286644096 }
  0x1e   :  { %v284_v52 = vsel %vm126_vm0, %v65_v39, 4286644096  ;;  %585 = vst.msk [vmem:[%s1131_s1 + $0x8] sm:$0xf] %vm126_vm0, %v232_v44  ;;  %v259_v53 = vmax.bf16 %v257_v41, %v255_v45  ;;  %v91_v54 = vld [vmem:[%s1130_s0 + $0x148] sm:$0xf]  ;;  %v282_v55 = vmax.bf16 %v280_v43, %v278_v46 }
  0x1f   :  { %v288_v56 = vsel %vm126_vm0, %v78_v42, 4286644096  ;;  %v53_v57 = vld [vmem:[%s1130_s0 + $0xb0] sm:$0xf]  ;;  %v304_v58 = vsel %vm126_vm0, %v14_v47, 4286644096 }
  0x20   :  { %v307_v59 = vsel %vm126_vm0, %v27_v48, 4286644096  ;;  %v311_v60 = vsel %vm126_vm0, %v40_v49, 4286644096  ;;  %v263_v61 = vmax.bf16 %v261_v50, %v259_v53  ;;  %v104_v62 = vld [vmem:[%s1130_s0 + $0x17c] sm:$0xf]  ;;  %v286_v0 = vmax.bf16 %v284_v52, %v282_v55 }
  0x21   :  { %v117_v63 = vld [vmem:[%s1130_s0 + $0x1b0] sm:$0xf]  ;;  %v66_v1 = vld [vmem:[%s1130_s0 + $0xe4] sm:$0xf]  ;;  %v309_v2 = vmax.bf16 %v307_v59, %v304_v58  ;;  %v292_v3 = vsel %vm126_vm0, %v91_v54, 4286644096 }
  0x22   :  { %v79_v4 = vld [vmem:[%s1130_s0 + $0x118] sm:$0xf]  ;;  %v315_v5 = vsel %vm126_vm0, %v53_v57, 4286644096  ;;  %v267_v6 = vmax.bf16 %v265_v51, %v263_v61  ;;  %v290_v7 = vmax.bf16 %v288_v56, %v286_v0  ;;  %v28_v10 = vld [vmem:[%s1130_s0 + $0x4c] sm:$0xf] }
  0x23   :  { %v313_v8 = vmax.bf16 %v311_v60, %v309_v2  ;;  %v15_v9 = vld [vmem:[%s1130_s0 + $0x18] sm:$0xf]  ;;  %v41_v11 = vld [vmem:[%s1130_s0 + $0x80] sm:$0xf]  ;;  %v296_v12 = vsel %vm126_vm0, %v104_v62, 4286644096 }
  0x24   :  { %v300_v13 = vsel %vm126_vm0, %v117_v63, 4286644096  ;;  %v319_v14 = vsel %vm126_vm0, %v66_v1, 4286644096  ;;  %586 = vst.msk [vmem:[%s1131_s1 + $0xc] sm:$0xf] %vm126_vm0, %v267_v6  ;;  %v294_v15 = vmax.bf16 %v292_v3, %v290_v7 }
  0x25   :  { %v92_v16 = vld [vmem:[%s1130_s0 + $0x14c] sm:$0xf]  ;;  %v317_v17 = vmax.bf16 %v315_v5, %v313_v8  ;;  %v323_v18 = vsel %vm126_vm0, %v79_v4, 4286644096  ;;  %v54_v19 = vld [vmem:[%s1130_s0 + $0xb4] sm:$0xf] }
  0x26   :  { %v339_v20 = vsel %vm126_vm0, %v15_v9, 4286644096  ;;  %v342_v21 = vsel %vm126_vm0, %v28_v10, 4286644096  ;;  %v346_v22 = vsel %vm126_vm0, %v41_v11, 4286644096  ;;  %v298_v23 = vmax.bf16 %v296_v12, %v294_v15 }
  0x27   :  { %v105_v24 = vld [vmem:[%s1130_s0 + $0x180] sm:$0xf]  ;;  %v118_v25 = vld [vmem:[%s1130_s0 + $0x1b4] sm:$0xf]  ;;  %v321_v26 = vmax.bf16 %v319_v14, %v317_v17  ;;  %v67_v27 = vld [vmem:[%s1130_s0 + $0xe8] sm:$0xf]  ;;  %v344_v28 = vmax.bf16 %v342_v21, %v339_v20 }
  0x28   :  { %v327_v29 = vsel %vm126_vm0, %v92_v16, 4286644096  ;;  %v80_v30 = vld [vmem:[%s1130_s0 + $0x11c] sm:$0xf]  ;;  %v350_v31 = vsel %vm126_vm0, %v54_v19, 4286644096  ;;  %v302_v32 = vmax.bf16 %v300_v13, %v298_v23 }
  0x29   :  { %v325_v33 = vmax.bf16 %v323_v18, %v321_v26  ;;  %v348_v34 = vmax.bf16 %v346_v22, %v344_v28  ;;  %v16_v35 = vld [vmem:[%s1130_s0 + $0x1c] sm:$0xf]  ;;  %v29_v36 = vld [vmem:[%s1130_s0 + $0x50] sm:$0xf]  ;;  %v42_v37 = vld [vmem:[%s1130_s0 + $0x84] sm:$0xf] }
  0x2a   :  { %v331_v38 = vsel %vm126_vm0, %v105_v24, 4286644096  ;;  %v335_v39 = vsel %vm126_vm0, %v118_v25, 4286644096  ;;  %v354_v40 = vsel %vm126_vm0, %v67_v27, 4286644096 }
  0x2b   :  { %587 = vst.msk [vmem:[%s1131_s1 + $0x10] sm:$0xf] %vm126_vm0, %v302_v32  ;;  %v329_v41 = vmax.bf16 %v327_v29, %v325_v33  ;;  %v93_v42 = vld [vmem:[%s1130_s0 + $0x150] sm:$0xf]  ;;  %v352_v43 = vmax.bf16 %v350_v31, %v348_v34  ;;  %v358_v44 = vsel %vm126_vm0, %v80_v30, 4286644096 }
  0x2c   :  { %v55_v45 = vld [vmem:[%s1130_s0 + $0xb8] sm:$0xf]  ;;  %v374_v46 = vsel %vm126_vm0, %v16_v35, 4286644096  ;;  %v377_v47 = vsel %vm126_vm0, %v29_v36, 4286644096 }
  0x2d   :  { %v381_v48 = vsel %vm126_vm0, %v42_v37, 4286644096  ;;  %v333_v49 = vmax.bf16 %v331_v38, %v329_v41  ;;  %v106_v50 = vld [vmem:[%s1130_s0 + $0x184] sm:$0xf]  ;;  %v119_v51 = vld [vmem:[%s1130_s0 + $0x1b8] sm:$0xf]  ;;  %v356_v52 = vmax.bf16 %v354_v40, %v352_v43  ;;  %v379_v54 = vmax.bf16 %v377_v47, %v374_v46 }
  0x2e   :  { %v68_v53 = vld [vmem:[%s1130_s0 + $0xec] sm:$0xf]  ;;  %v362_v55 = vsel %vm126_vm0, %v93_v42, 4286644096  ;;  %v81_v56 = vld [vmem:[%s1130_s0 + $0x120] sm:$0xf] }
  0x2f   :  { %v385_v57 = vsel %vm126_vm0, %v55_v45, 4286644096  ;;  %v337_v58 = vmax.bf16 %v335_v39, %v333_v49  ;;  %v360_v59 = vmax.bf16 %v358_v44, %v356_v52  ;;  %v383_v60 = vmax.bf16 %v381_v48, %v379_v54  ;;  %v17_v61 = vld [vmem:[%s1130_s0 + $0x20] sm:$0xf]  ;;  %v30_v62 = vld [vmem:[%s1130_s0 + $0x54] sm:$0xf] }
  0x30   :  { %v43_v63 = vld [vmem:[%s1130_s0 + $0x88] sm:$0xf]  ;;  %v366_v0 = vsel %vm126_vm0, %v106_v50, 4286644096  ;;  %v370_v1 = vsel %vm126_vm0, %v119_v51, 4286644096 }
  0x31   :  { %v389_v2 = vsel %vm126_vm0, %v68_v53, 4286644096  ;;  %588 = vst.msk [vmem:[%s1131_s1 + $0x14] sm:$0xf] %vm126_vm0, %v337_v58  ;;  %v364_v3 = vmax.bf16 %v362_v55, %v360_v59  ;;  %v94_v4 = vld [vmem:[%s1130_s0 + $0x154] sm:$0xf]  ;;  %v387_v5 = vmax.bf16 %v385_v57, %v383_v60 }
  0x32   :  { %v393_v6 = vsel %vm126_vm0, %v81_v56, 4286644096  ;;  %v56_v7 = vld [vmem:[%s1130_s0 + $0xbc] sm:$0xf]  ;;  %v409_v8 = vsel %vm126_vm0, %v17_v61, 4286644096 }
  0x33   :  { %v412_v9 = vsel %vm126_vm0, %v30_v62, 4286644096  ;;  %v416_v10 = vsel %vm126_vm0, %v43_v63, 4286644096  ;;  %v368_v11 = vmax.bf16 %v366_v0, %v364_v3  ;;  %v107_v12 = vld [vmem:[%s1130_s0 + $0x188] sm:$0xf]  ;;  %v391_v14 = vmax.bf16 %v389_v2, %v387_v5 }
  0x34   :  { %v120_v13 = vld [vmem:[%s1130_s0 + $0x1bc] sm:$0xf]  ;;  %v69_v15 = vld [vmem:[%s1130_s0 + $0xf0] sm:$0xf]  ;;  %v414_v16 = vmax.bf16 %v412_v9, %v409_v8  ;;  %v397_v17 = vsel %vm126_vm0, %v94_v4, 4286644096 }
  0x35   :  { %v82_v18 = vld [vmem:[%s1130_s0 + $0x124] sm:$0xf]  ;;  %v420_v19 = vsel %vm126_vm0, %v56_v7, 4286644096  ;;  %v372_v20 = vmax.bf16 %v370_v1, %v368_v11  ;;  %v395_v21 = vmax.bf16 %v393_v6, %v391_v14  ;;  %v31_v24 = vld [vmem:[%s1130_s0 + $0x58] sm:$0xf] }
  0x36   :  { %v418_v22 = vmax.bf16 %v416_v10, %v414_v16  ;;  %v18_v23 = vld [vmem:[%s1130_s0 + $0x24] sm:$0xf]  ;;  %v44_v25 = vld [vmem:[%s1130_s0 + $0x8c] sm:$0xf]  ;;  %v401_v26 = vsel %vm126_vm0, %v107_v12, 4286644096 }
  0x37   :  { %v405_v27 = vsel %vm126_vm0, %v120_v13, 4286644096  ;;  %v424_v28 = vsel %vm126_vm0, %v69_v15, 4286644096  ;;  %589 = vst.msk [vmem:[%s1131_s1 + $0x18] sm:$0xf] %vm126_vm0, %v372_v20  ;;  %v399_v29 = vmax.bf16 %v397_v17, %v395_v21 }
  0x38   :  { %v95_v30 = vld [vmem:[%s1130_s0 + $0x158] sm:$0xf]  ;;  %v422_v31 = vmax.bf16 %v420_v19, %v418_v22  ;;  %v428_v32 = vsel %vm126_vm0, %v82_v18, 4286644096  ;;  %v57_v33 = vld [vmem:[%s1130_s0 + $0xc0] sm:$0xf] }
  0x39   :  { %v444_v34 = vsel %vm126_vm0, %v18_v23, 4286644096  ;;  %v447_v35 = vsel %vm126_vm0, %v31_v24, 4286644096  ;;  %v451_v36 = vsel %vm126_vm0, %v44_v25, 4286644096  ;;  %v403_v37 = vmax.bf16 %v401_v26, %v399_v29 }
  0x3a   :  { %v108_v38 = vld [vmem:[%s1130_s0 + $0x18c] sm:$0xf]  ;;  %v121_v39 = vld [vmem:[%s1130_s0 + $0x1c0] sm:$0xf]  ;;  %v426_v40 = vmax.bf16 %v424_v28, %v422_v31  ;;  %v70_v41 = vld [vmem:[%s1130_s0 + $0xf4] sm:$0xf]  ;;  %v449_v42 = vmax.bf16 %v447_v35, %v444_v34 }
  0x3b   :  { %v432_v43 = vsel %vm126_vm0, %v95_v30, 4286644096  ;;  %v83_v44 = vld [vmem:[%s1130_s0 + $0x128] sm:$0xf]  ;;  %v455_v45 = vsel %vm126_vm0, %v57_v33, 4286644096  ;;  %v407_v46 = vmax.bf16 %v405_v27, %v403_v37 }
  0x3c   :  { %v430_v47 = vmax.bf16 %v428_v32, %v426_v40  ;;  %v453_v48 = vmax.bf16 %v451_v36, %v449_v42  ;;  %v19_v49 = vld [vmem:[%s1130_s0 + $0x28] sm:$0xf]  ;;  %v32_v50 = vld [vmem:[%s1130_s0 + $0x5c] sm:$0xf]  ;;  %v45_v51 = vld [vmem:[%s1130_s0 + $0x90] sm:$0xf] }
  0x3d   :  { %v436_v52 = vsel %vm126_vm0, %v108_v38, 4286644096  ;;  %v440_v53 = vsel %vm126_vm0, %v121_v39, 4286644096  ;;  %v459_v54 = vsel %vm126_vm0, %v70_v41, 4286644096 }
  0x3e   :  { %590 = vst.msk [vmem:[%s1131_s1 + $0x1c] sm:$0xf] %vm126_vm0, %v407_v46  ;;  %v434_v55 = vmax.bf16 %v432_v43, %v430_v47  ;;  %v96_v56 = vld [vmem:[%s1130_s0 + $0x15c] sm:$0xf]  ;;  %v457_v57 = vmax.bf16 %v455_v45, %v453_v48  ;;  %v463_v58 = vsel %vm126_vm0, %v83_v44, 4286644096 }
  0x3f   :  { %v58_v59 = vld [vmem:[%s1130_s0 + $0xc4] sm:$0xf]  ;;  %v479_v60 = vsel %vm126_vm0, %v19_v49, 4286644096  ;;  %v482_v61 = vsel %vm126_vm0, %v32_v50, 4286644096 }
  0x40   :  { %v486_v62 = vsel %vm126_vm0, %v45_v51, 4286644096  ;;  %v438_v63 = vmax.bf16 %v436_v52, %v434_v55  ;;  %v109_v0 = vld [vmem:[%s1130_s0 + $0x190] sm:$0xf]  ;;  %v122_v1 = vld [vmem:[%s1130_s0 + $0x1c4] sm:$0xf]  ;;  %v461_v2 = vmax.bf16 %v459_v54, %v457_v57  ;;  %v484_v4 = vmax.bf16 %v482_v61, %v479_v60 }
  0x41   :  { %v71_v3 = vld [vmem:[%s1130_s0 + $0xf8] sm:$0xf]  ;;  %v467_v5 = vsel %vm126_vm0, %v96_v56, 4286644096  ;;  %v84_v6 = vld [vmem:[%s1130_s0 + $0x12c] sm:$0xf] }
  0x42   :  { %v490_v7 = vsel %vm126_vm0, %v58_v59, 4286644096  ;;  %v442_v8 = vmax.bf16 %v440_v53, %v438_v63  ;;  %v465_v9 = vmax.bf16 %v463_v58, %v461_v2  ;;  %v488_v10 = vmax.bf16 %v486_v62, %v484_v4  ;;  %v20_v11 = vld [vmem:[%s1130_s0 + $0x2c] sm:$0xf]  ;;  %v33_v12 = vld [vmem:[%s1130_s0 + $0x60] sm:$0xf] }
  0x43   :  { %v46_v13 = vld [vmem:[%s1130_s0 + $0x94] sm:$0xf]  ;;  %v471_v14 = vsel %vm126_vm0, %v109_v0, 4286644096  ;;  %v475_v15 = vsel %vm126_vm0, %v122_v1, 4286644096 }
  0x44   :  { %v494_v16 = vsel %vm126_vm0, %v71_v3, 4286644096  ;;  %591 = vst.msk [vmem:[%s1131_s1 + $0x20] sm:$0xf] %vm126_vm0, %v442_v8  ;;  %v469_v17 = vmax.bf16 %v467_v5, %v465_v9  ;;  %v97_v18 = vld [vmem:[%s1130_s0 + $0x160] sm:$0xf]  ;;  %v492_v19 = vmax.bf16 %v490_v7, %v488_v10 }
  0x45   :  { %v498_v20 = vsel %vm126_vm0, %v84_v6, 4286644096  ;;  %v59_v21 = vld [vmem:[%s1130_s0 + $0xc8] sm:$0xf]  ;;  %v514_v22 = vsel %vm126_vm0, %v20_v11, 4286644096 }
  0x46   :  { %v517_v23 = vsel %vm126_vm0, %v33_v12, 4286644096  ;;  %v521_v24 = vsel %vm126_vm0, %v46_v13, 4286644096  ;;  %v473_v25 = vmax.bf16 %v471_v14, %v469_v17  ;;  %v110_v26 = vld [vmem:[%s1130_s0 + $0x194] sm:$0xf]  ;;  %v496_v28 = vmax.bf16 %v494_v16, %v492_v19 }
  0x47   :  { %v123_v27 = vld [vmem:[%s1130_s0 + $0x1c8] sm:$0xf]  ;;  %v72_v29 = vld [vmem:[%s1130_s0 + $0xfc] sm:$0xf]  ;;  %v519_v30 = vmax.bf16 %v517_v23, %v514_v22  ;;  %v502_v31 = vsel %vm126_vm0, %v97_v18, 4286644096 }
  0x48   :  { %v85_v32 = vld [vmem:[%s1130_s0 + $0x130] sm:$0xf]  ;;  %v525_v33 = vsel %vm126_vm0, %v59_v21, 4286644096  ;;  %v477_v34 = vmax.bf16 %v475_v15, %v473_v25  ;;  %v500_v35 = vmax.bf16 %v498_v20, %v496_v28  ;;  %v34_v38 = vld [vmem:[%s1130_s0 + $0x64] sm:$0xf] }
  0x49   :  { %v523_v36 = vmax.bf16 %v521_v24, %v519_v30  ;;  %v21_v37 = vld [vmem:[%s1130_s0 + $0x30] sm:$0xf]  ;;  %v47_v39 = vld [vmem:[%s1130_s0 + $0x98] sm:$0xf]  ;;  %v506_v40 = vsel %vm126_vm0, %v110_v26, 4286644096 }
  0x4a   :  { %v510_v41 = vsel %vm126_vm0, %v123_v27, 4286644096  ;;  %v529_v42 = vsel %vm126_vm0, %v72_v29, 4286644096  ;;  %592 = vst.msk [vmem:[%s1131_s1 + $0x24] sm:$0xf] %vm126_vm0, %v477_v34  ;;  %v504_v43 = vmax.bf16 %v502_v31, %v500_v35 }
  0x4b   :  { %v98_v44 = vld [vmem:[%s1130_s0 + $0x164] sm:$0xf]  ;;  %v527_v45 = vmax.bf16 %v525_v33, %v523_v36  ;;  %v533_v46 = vsel %vm126_vm0, %v85_v32, 4286644096  ;;  %v60_v47 = vld [vmem:[%s1130_s0 + $0xcc] sm:$0xf] }
  0x4c   :  { %v549_v48 = vsel %vm126_vm0, %v21_v37, 4286644096  ;;  %v552_v49 = vsel %vm126_vm0, %v34_v38, 4286644096  ;;  %v556_v50 = vsel %vm126_vm0, %v47_v39, 4286644096  ;;  %v508_v51 = vmax.bf16 %v506_v40, %v504_v43 }
  0x4d   :  { %v111_v52 = vld [vmem:[%s1130_s0 + $0x198] sm:$0xf]  ;;  %v531_v53 = vmax.bf16 %v529_v42, %v527_v45  ;;  %v73_v54 = vld [vmem:[%s1130_s0 + $0x100] sm:$0xf]  ;;  %v554_v55 = vmax.bf16 %v552_v49, %v549_v48  ;;  %v537_v56 = vsel %vm126_vm0, %v98_v44, 4286644096 }
  0x4e   :  { %v560_v57 = vsel %vm126_vm0, %v60_v47, 4286644096  ;;  %v512_v58 = vmax.bf16 %v510_v41, %v508_v51  ;;  %v124_v59 = vld [vmem:[%s1130_s0 + $0x1cc] sm:$0xf]  ;;  %v86_v61 = vld [vmem:[%s1130_s0 + $0x134] sm:$0xf] }
  0x4f   :  { %v535_v60 = vmax.bf16 %v533_v46, %v531_v53  ;;  %v558_v62 = vmax.bf16 %v556_v50, %v554_v55  ;;  %v541_v63 = vsel %vm126_vm0, %v111_v52, 4286644096  ;;  %v564_v0 = vsel %vm126_vm0, %v73_v54, 4286644096  ;;  %v99_v2 = vld [vmem:[%s1130_s0 + $0x168] sm:$0xf] }
  0x50   :  { %593 = vst.msk [vmem:[%s1131_s1 + $0x28] sm:$0xf] %vm126_vm0, %v512_v58  ;;  %v545_v4 = vsel %vm126_vm0, %v124_v59, 4286644096  ;;  %v568_v5 = vsel %vm126_vm0, %v86_v61, 4286644096 }
  0x51   :  { %v539_v1 = vmax.bf16 %v537_v56, %v535_v60  ;;  %v562_v3 = vmax.bf16 %v560_v57, %v558_v62  ;;  %v112_v7 = vld [vmem:[%s1130_s0 + $0x19c] sm:$0xf]  ;;  %v572_v9 = vsel %vm126_vm0, %v99_v2, 4286644096  ;;  %v125_v11 = vld [vmem:[%s1130_s0 + $0x1d0] sm:$0xf] }
  0x52   :  { %v576_v13 = vsel %vm126_vm0, %v112_v7, 4286644096  ;;  %v580_v15 = vsel %vm126_vm0, %v125_v11, 4286644096 }
  0x53   :  { %v543_v6 = vmax.bf16 %v541_v63, %v539_v1  ;;  %v566_v8 = vmax.bf16 %v564_v0, %v562_v3 }
  0x55   :  { %v547_v10 = vmax.bf16 %v545_v4, %v543_v6  ;;  %v570_v12 = vmax.bf16 %v568_v5, %v566_v8 }
  0x57   :  { %594 = vst.msk [vmem:[%s1131_s1 + $0x2c] sm:$0xf] %vm126_vm0, %v547_v10  ;;  %v574_v14 = vmax.bf16 %v572_v9, %v570_v12 }
  0x59   :  { %v578_v16 = vmax.bf16 %v576_v13, %v574_v14 }
  0x5b   :  { %v582_v17 = vmax.bf16 %v580_v15, %v578_v16 }
  0x5d   :  { %595 = vst.msk [vmem:[%s1131_s1 + $0x30] sm:$0xf] %vm126_vm0, %v582_v17 }

// kernel: features_forward.10
= control target key start
LH: loop header
LB: loop body
LE: loop exit
PB: predicated region body
PF: predicated region fallthrough
CT: control target
= control target key end

     0   :  { %s4795_s1 = inlined_call_operand.vmem [shape: bf16[1664,256], index: 1, kind: input, shape index: {}]   ;;  %s4796_s0 = inlined_call_operand.vmem [shape: bf16[104,1664], index: 0, kind: input, shape index: {}]   ;;  %s4797_s2 = inlined_call_operand.vmem [shape: f32[1,256], index: 2, kind: input, shape index: {}]   ;;  %s4798_s3 = inlined_call_operand.vmem [shape: bf16[104,256], index: 3, kind: output, shape index: {}]  }
   0x1   :  { %v3184_v0 = vld [vmem:[%s4795_s1 + $0x4] ss:$8 sps:$4 sm:$0xff]   ;;  %v3188_v2 = vld [vmem:[%s4795_s1] ss:$8 sps:$4 sm:$0xff]   ;;  %v3190_v4 = vld [vmem:[%s4795_s1 + $0x14] ss:$8 sps:$4 sm:$0xff]  }
   0x2   :  { %v3186_v1 = vld [vmem:[%s4795_s1 + $0x304] ss:$8 sps:$4 sm:$0xff]   ;;  %1808 = vmatprep.subr.bf16.mxu1 %v3184_v0  ;;  %v3189_v3 = vld [vmem:[%s4795_s1 + $0x300] ss:$8 sps:$4 sm:$0xff]   ;;  %v3192_v5 = vld [vmem:[%s4795_s1 + $0x314] ss:$8 sps:$4 sm:$0xff]  }
   0x3   :  { %2111 = vmatprep.subr.bf16.mxu0 %v3186_v1  ;;  %1809 = vmatpush1.bf16.msra.mxu1 %v3188_v2  ;;  %v3194_v6 = vld [vmem:[%s4795_s1 + $0x10] ss:$8 sps:$4 sm:$0xff]   ;;  %v3196_v8 = vld [vmem:[%s4795_s1 + $0x24] ss:$8 sps:$4 sm:$0xff]   ;;  %v3200_v10 = vld [vmem:[%s4795_s1 + $0x20] ss:$8 sps:$4 sm:$0xff]  }
   0x4   :  { %2112 = vmatpush1.bf16.msra.mxu0 %v3189_v3  ;;  %1810 = vmatprep.subr.bf16.mxu1 %v3190_v4  ;;  %v3195_v7 = vld [vmem:[%s4795_s1 + $0x310] ss:$8 sps:$4 sm:$0xff]   ;;  %v3198_v9 = vld [vmem:[%s4795_s1 + $0x324] ss:$8 sps:$4 sm:$0xff]   ;;  %v3201_v11 = vld [vmem:[%s4795_s1 + $0x320] ss:$8 sps:$4 sm:$0xff]  }
   0x5   :  { %2113 = vmatprep.subr.bf16.mxu0 %v3192_v5  ;;  %v3202_v12 = vld [vmem:[%s4795_s1 + $0x34] ss:$8 sps:$4 sm:$0xff]   ;;  %v3206_v14 = vld [vmem:[%s4795_s1 + $0x30] ss:$8 sps:$4 sm:$0xff]   ;;  %v3208_v16 = vld [vmem:[%s4795_s1 + $0x44] ss:$8 sps:$4 sm:$0xff]  }
   0x6   :  { %v3204_v13 = vld [vmem:[%s4795_s1 + $0x334] ss:$8 sps:$4 sm:$0xff]   ;;  %v3207_v15 = vld [vmem:[%s4795_s1 + $0x330] ss:$8 sps:$4 sm:$0xff]   ;;  %v3210_v17 = vld [vmem:[%s4795_s1 + $0x344] ss:$8 sps:$4 sm:$0xff]  }
   0x7   :  { %1811 = vmatpush1.bf16.msra.mxu1 %v3194_v6  ;;  %v3212_v18 = vld [vmem:[%s4795_s1 + $0x40] ss:$8 sps:$4 sm:$0xff]   ;;  %v3214_v20 = vld [vmem:[%s4795_s1 + $0x54] ss:$8 sps:$4 sm:$0xff]   ;;  %v3218_v22 = vld [vmem:[%s4795_s1 + $0x50] ss:$8 sps:$4 sm:$0xff]  }
   0x8   :  { %2114 = vmatpush1.bf16.msra.mxu0 %v3195_v7  ;;  %1812 = vmatprep.subr.bf16.mxu1 %v3196_v8  ;;  %v3213_v19 = vld [vmem:[%s4795_s1 + $0x340] ss:$8 sps:$4 sm:$0xff]   ;;  %v3216_v21 = vld [vmem:[%s4795_s1 + $0x354] ss:$8 sps:$4 sm:$0xff]   ;;  %v3219_v23 = vld [vmem:[%s4795_s1 + $0x350] ss:$8 sps:$4 sm:$0xff]  }
   0x9   :  { %2115 = vmatprep.subr.bf16.mxu0 %v3198_v9  ;;  %v3220_v24 = vld [vmem:[%s4795_s1 + $0x64] ss:$8 sps:$4 sm:$0xff]   ;;  %v3224_v26 = vld [vmem:[%s4795_s1 + $0x60] ss:$8 sps:$4 sm:$0xff]   ;;  %v3226_v28 = vld [vmem:[%s4795_s1 + $0x74] ss:$8 sps:$4 sm:$0xff]  }
   0xa   :  { %v3222_v25 = vld [vmem:[%s4795_s1 + $0x364] ss:$8 sps:$4 sm:$0xff]   ;;  %v3225_v27 = vld [vmem:[%s4795_s1 + $0x360] ss:$8 sps:$4 sm:$0xff]   ;;  %v3228_v29 = vld [vmem:[%s4795_s1 + $0x374] ss:$8 sps:$4 sm:$0xff]  }
   0xb   :  { %1813 = vmatpush1.bf16.msra.mxu1 %v3200_v10  ;;  %v3230_v30 = vld [vmem:[%s4795_s1 + $0x70] ss:$8 sps:$4 sm:$0xff]   ;;  %v3232_v32 = vld [vmem:[%s4795_s1 + $0x84] ss:$8 sps:$4 sm:$0xff]   ;;  %v3236_v34 = vld [vmem:[%s4795_s1 + $0x80] ss:$8 sps:$4 sm:$0xff]  }
   0xc   :  { %2116 = vmatpush1.bf16.msra.mxu0 %v3201_v11  ;;  %1814 = vmatprep.subr.bf16.mxu1 %v3202_v12  ;;  %v3231_v31 = vld [vmem:[%s4795_s1 + $0x370] ss:$8 sps:$4 sm:$0xff]   ;;  %v3234_v33 = vld [vmem:[%s4795_s1 + $0x384] ss:$8 sps:$4 sm:$0xff]   ;;  %v3237_v35 = vld [vmem:[%s4795_s1 + $0x380] ss:$8 sps:$4 sm:$0xff]  }
   0xd   :  { %2117 = vmatprep.subr.bf16.mxu0 %v3204_v13  ;;  %v3238_v36 = vld [vmem:[%s4795_s1 + $0x94] ss:$8 sps:$4 sm:$0xff]   ;;  %v3242_v38 = vld [vmem:[%s4795_s1 + $0x90] ss:$8 sps:$4 sm:$0xff]   ;;  %v3244_v40 = vld [vmem:[%s4795_s1 + $0xa4] ss:$8 sps:$4 sm:$0xff]  }
   0xe   :  { %v3240_v37 = vld [vmem:[%s4795_s1 + $0x394] ss:$8 sps:$4 sm:$0xff]   ;;  %v3243_v39 = vld [vmem:[%s4795_s1 + $0x390] ss:$8 sps:$4 sm:$0xff]   ;;  %v3246_v41 = vld [vmem:[%s4795_s1 + $0x3a4] ss:$8 sps:$4 sm:$0xff]  }
   0xf   :  { %1815 = vmatpush1.bf16.msra.mxu1 %v3206_v14  ;;  %v3248_v42 = vld [vmem:[%s4795_s1 + $0xa0] ss:$8 sps:$4 sm:$0xff]   ;;  %v3250_v44 = vld [vmem:[%s4795_s1 + $0xb4] ss:$8 sps:$4 sm:$0xff]   ;;  %v3254_v46 = vld [vmem:[%s4795_s1 + $0xb0] ss:$8 sps:$4 sm:$0xff]  }
  0x10   :  { %2118 = vmatpush1.bf16.msra.mxu0 %v3207_v15  ;;  %1816 = vmatprep.subr.bf16.mxu1 %v3208_v16  ;;  %v3249_v43 = vld [vmem:[%s4795_s1 + $0x3a0] ss:$8 sps:$4 sm:$0xff]   ;;  %v3252_v45 = vld [vmem:[%s4795_s1 + $0x3b4] ss:$8 sps:$4 sm:$0xff]   ;;  %v3255_v47 = vld [vmem:[%s4795_s1 + $0x3b0] ss:$8 sps:$4 sm:$0xff]  }
  0x11   :  { %2119 = vmatprep.subr.bf16.mxu0 %v3210_v17  ;;  %v3282_v48 = vld [vmem:[%s4796_s0 + $0x4] ss:$52 sps:$4 sm:$0xff]   ;;  %v3288_v51 = vld [vmem:[%s4796_s0 + $0x1c] ss:$52 sps:$4 sm:$0xff]   ;;  %v3260_v52 = vld [vmem:[%s4795_s1 + $0xc0] ss:$8 sps:$4 sm:$0xff]  }
  0x12   :  { %v3256_v49 = vld [vmem:[%s4795_s1 + $0xc4] ss:$8 sps:$4 sm:$0xff]   ;;  %1840 = vmatprep.mubr.bf16.mxu1 %v3282_v48  ;;  %v3261_v53 = vld [vmem:[%s4795_s1 + $0x3c0] ss:$8 sps:$4 sm:$0xff]   ;;  %v3262_v54 = vld [vmem:[%s4795_s1 + $0xd4] ss:$8 sps:$4 sm:$0xff]   ;;  %2143 = vmatprep.mubr.bf16.mxu0 %v3288_v51 }
  0x13   :  { %1817 = vmatpush1.bf16.msra.mxu1 %v3212_v18  ;;  %v3258_v50 = vld [vmem:[%s4795_s1 + $0x3c4] ss:$8 sps:$4 sm:$0xff]   ;;  %v3264_v55 = vld [vmem:[%s4795_s1 + $0x3d4] ss:$8 sps:$4 sm:$0xff]   ;;  %v3266_v56 = vld [vmem:[%s4795_s1 + $0xd0] ss:$8 sps:$4 sm:$0xff]  }
  0x14   :  { %2120 = vmatpush1.bf16.msra.mxu0 %v3213_v19  ;;  %1818 = vmatprep.subr.bf16.mxu1 %v3214_v20  ;;  %v3267_v57 = vld [vmem:[%s4795_s1 + $0x3d0] ss:$8 sps:$4 sm:$0xff]   ;;  %v3268_v58 = vld [vmem:[%s4795_s1 + $0xe4] ss:$8 sps:$4 sm:$0xff]   ;;  %v3272_v60 = vld [vmem:[%s4795_s1 + $0xe0] ss:$8 sps:$4 sm:$0xff]  }
  0x15   :  { %2121 = vmatprep.subr.bf16.mxu0 %v3216_v21  ;;  %v3270_v59 = vld [vmem:[%s4795_s1 + $0x3e4] ss:$8 sps:$4 sm:$0xff]   ;;  %v3273_v61 = vld [vmem:[%s4795_s1 + $0x3e0] ss:$8 sps:$4 sm:$0xff]   ;;  %v3274_v62 = vld [vmem:[%s4795_s1 + $0xf4] ss:$8 sps:$4 sm:$0xff]  }
  0x16   :  { %v3276_v63 = vld [vmem:[%s4795_s1 + $0x3f4] ss:$8 sps:$4 sm:$0xff]   ;;  %v3278_v0 = vld [vmem:[%s4795_s1 + $0xf0] ss:$8 sps:$4 sm:$0xff]   ;;  %v3285_v2 = vld [vmem:[%s4795_s1 + $0x104] ss:$8 sps:$4 sm:$0xff]  }
  0x17   :  { %1819 = vmatpush1.bf16.msra.mxu1 %v3218_v22  ;;  %v3279_v1 = vld [vmem:[%s4795_s1 + $0x3f0] ss:$8 sps:$4 sm:$0xff]   ;;  %v3280_v3 = vld [vmem:[%s4796_s0] ss:$52 sps:$4 sm:$0xff]   ;;  %v3291_v4 = vld [vmem:[%s4795_s1 + $0x404] ss:$8 sps:$4 sm:$0xff]  }
  0x18   :  { %2122 = vmatpush1.bf16.msra.mxu0 %v3219_v23  ;;  %1820 = vmatprep.subr.bf16.mxu1 %v3220_v24  ;;  %v3283_v5 = vld [vmem:[%s4795_s1 + $0x100] ss:$8 sps:$4 sm:$0xff]   ;;  %v3286_v6 = vld [vmem:[%s4796_s0 + $0x18] ss:$52 sps:$4 sm:$0xff]   ;;  %v3294_v8 = vld [vmem:[%s4795_s1 + $0x114] ss:$8 sps:$4 sm:$0xff]  }
  0x19   :  { %2123 = vmatprep.subr.bf16.mxu0 %v3222_v25  ;;  %v3289_v7 = vld [vmem:[%s4795_s1 + $0x400] ss:$8 sps:$4 sm:$0xff]   ;;  %v3297_v9 = vld [vmem:[%s4795_s1 + $0x414] ss:$8 sps:$4 sm:$0xff]   ;;  %v3310_v10 = vld [vmem:[%s4796_s0 + $0x84] ss:$52 sps:$4 sm:$0xff]  }
  0x1a   :  { %v3312_v11 = vld [vmem:[%s4796_s0 + $0x6c] ss:$52 sps:$4 sm:$0xff]   ;;  %v3292_v12 = vld [vmem:[%s4795_s1 + $0x110] ss:$8 sps:$4 sm:$0xff]   ;;  %v3306_v18 = vld [vmem:[%s4795_s1 + $0x134] ss:$8 sps:$4 sm:$0xff]  }
  0x1b   :  { %1821 = vmatpush1.bf16.msra.mxu1 %v3224_v26  ;;  %v3295_v13 = vld [vmem:[%s4795_s1 + $0x410] ss:$8 sps:$4 sm:$0xff]   ;;  %v3300_v14 = vld [vmem:[%s4795_s1 + $0x124] ss:$8 sps:$4 sm:$0xff]   ;;  %v3298_v16 = vld [vmem:[%s4795_s1 + $0x120] ss:$8 sps:$4 sm:$0xff]  }
  0x1c   :  { %2124 = vmatpush1.bf16.msra.mxu0 %v3225_v27  ;;  %1822 = vmatprep.subr.bf16.mxu1 %v3226_v28  ;;  %v3303_v15 = vld [vmem:[%s4795_s1 + $0x424] ss:$8 sps:$4 sm:$0xff]   ;;  %v3301_v17 = vld [vmem:[%s4795_s1 + $0x420] ss:$8 sps:$4 sm:$0xff]   ;;  %v3309_v21 = vld [vmem:[%s4795_s1 + $0x434] ss:$8 sps:$4 sm:$0xff]  }
  0x1d   :  { %2125 = vmatprep.subr.bf16.mxu0 %v3228_v29  ;;  %v3317_v19 = vld [vmem:[%s4796_s0 + $0x80] ss:$52 sps:$4 sm:$0xff]   ;;  %v3321_v20 = vld [vmem:[%s4796_s0 + $0x68] ss:$52 sps:$4 sm:$0xff]   ;;  %v3304_v24 = vld [vmem:[%s4795_s1 + $0x130] ss:$8 sps:$4 sm:$0xff]  }
  0x1e   :  { %v3328_v22 = vld [vmem:[%s4796_s0 + $0xec] ss:$52 sps:$4 sm:$0xff]   ;;  %v3330_v23 = vld [vmem:[%s4796_s0 + $0xd4] ss:$52 sps:$4 sm:$0xff]   ;;  %v3307_v25 = vld [vmem:[%s4795_s1 + $0x430] ss:$8 sps:$4 sm:$0xff]  }
  0x1f   :  { %1823 = vmatpush1.bf16.msra.mxu1 %v3230_v30  ;;  %v3316_v26 = vld [vmem:[%s4795_s1 + $0x144] ss:$8 sps:$4 sm:$0xff]   ;;  %v3314_v28 = vld [vmem:[%s4795_s1 + $0x140] ss:$8 sps:$4 sm:$0xff]   ;;  %v3324_v30 = vld [vmem:[%s4795_s1 + $0x154] ss:$8 sps:$4 sm:$0xff]  }
  0x20   :  { %2126 = vmatpush1.bf16.msra.mxu0 %v3231_v31  ;;  %1824 = vmatprep.subr.bf16.mxu1 %v3232_v32  ;;  %v3320_v27 = vld [vmem:[%s4795_s1 + $0x444] ss:$8 sps:$4 sm:$0xff]   ;;  %v3318_v29 = vld [vmem:[%s4795_s1 + $0x440] ss:$8 sps:$4 sm:$0xff]   ;;  %v3340_v48 = vld [vmem:[%s4795_s1 + $0x170] ss:$8 sps:$4 sm:$0xff]  }
  0x21   :  { %2127 = vmatprep.subr.bf16.mxu0 %v3234_v33  ;;  %v3335_v31 = vld [vmem:[%s4796_s0 + $0xe8] ss:$52 sps:$4 sm:$0xff]   ;;  %v3339_v32 = vld [vmem:[%s4796_s0 + $0xd0] ss:$52 sps:$4 sm:$0xff]  }
  0x22   :  { %v3327_v33 = vld [vmem:[%s4795_s1 + $0x454] ss:$8 sps:$4 sm:$0xff]   ;;  %v3356_v51 = vld [vmem:[%s4795_s1 + $0x484] ss:$8 sps:$4 sm:$0xff]  }
  0x23   :  { %1825 = vmatpush1.bf16.msra.mxu1 %v3236_v34  ;;  %v3346_v34 = vld [vmem:[%s4796_s0 + $0x154] ss:$52 sps:$4 sm:$0xff]  }
  0x24   :  { %2128 = vmatpush1.bf16.msra.mxu0 %v3237_v35  ;;  %1826 = vmatprep.subr.bf16.mxu1 %v3238_v36  ;;  %v3348_v35 = vld [vmem:[%s4796_s0 + $0x13c] ss:$52 sps:$4 sm:$0xff]  }
  0x25   :  { %2129 = vmatprep.subr.bf16.mxu0 %v3240_v37  ;;  %v3322_v36 = vld [vmem:[%s4795_s1 + $0x150] ss:$8 sps:$4 sm:$0xff]  }
  0x26   :  { %v3325_v37 = vld [vmem:[%s4795_s1 + $0x450] ss:$8 sps:$4 sm:$0xff]  }
  0x27   :  { %1827 = vmatpush1.bf16.msra.mxu1 %v3242_v38  ;;  %v3334_v38 = vld [vmem:[%s4795_s1 + $0x164] ss:$8 sps:$4 sm:$0xff]  }
  0x28   :  { %2130 = vmatpush1.bf16.msra.mxu0 %v3243_v39  ;;  %1828 = vmatprep.subr.bf16.mxu1 %v3244_v40  ;;  %v3338_v39 = vld [vmem:[%s4795_s1 + $0x464] ss:$8 sps:$4 sm:$0xff]   ;;  %v3332_v40 = vld [vmem:[%s4795_s1 + $0x160] ss:$8 sps:$4 sm:$0xff]  }
  0x29   :  { %2131 = vmatprep.subr.bf16.mxu0 %v3246_v41  ;;  %v3336_v41 = vld [vmem:[%s4795_s1 + $0x460] ss:$8 sps:$4 sm:$0xff]  }
  0x2b   :  { %1829 = vmatpush1.bf16.msra.mxu1 %v3248_v42  ;;  %v3342_v42 = vld [vmem:[%s4795_s1 + $0x174] ss:$8 sps:$4 sm:$0xff]  }
  0x2c   :  { %2132 = vmatpush1.bf16.msra.mxu0 %v3249_v43  ;;  %1830 = vmatprep.subr.bf16.mxu1 %v3250_v44  ;;  %v3353_v43 = vld [vmem:[%s4796_s0 + $0x150] ss:$52 sps:$4 sm:$0xff]   ;;  %v3357_v44 = vld [vmem:[%s4796_s0 + $0x138] ss:$52 sps:$4 sm:$0xff]  }
  0x2d   :  { %2133 = vmatprep.subr.bf16.mxu0 %v3252_v45  ;;  %v3345_v45 = vld [vmem:[%s4795_s1 + $0x474] ss:$8 sps:$4 sm:$0xff]  }
  0x2f   :  { %1831 = vmatpush1.bf16.msra.mxu1 %v3254_v46  ;;  %v3364_v46 = vld [vmem:[%s4796_s0 + $0x1bc] ss:$52 sps:$4 sm:$0xff]  }
  0x30   :  { %2134 = vmatpush1.bf16.msra.mxu0 %v3255_v47  ;;  %1832 = vmatprep.subr.bf16.mxu1 %v3256_v49  ;;  %v3366_v47 = vld [vmem:[%s4796_s0 + $0x1a4] ss:$52 sps:$4 sm:$0xff]  }
  0x31   :  { %2135 = vmatprep.subr.bf16.mxu0 %v3258_v50  ;;  %v3343_v49 = vld [vmem:[%s4795_s1 + $0x470] ss:$8 sps:$4 sm:$0xff]   ;;  %v3352_v50 = vld [vmem:[%s4795_s1 + $0x184] ss:$8 sps:$4 sm:$0xff]  }
  0x33   :  { %1833 = vmatpush1.bf16.msra.mxu1 %v3260_v52  ;;  %v3350_v52 = vld [vmem:[%s4795_s1 + $0x180] ss:$8 sps:$4 sm:$0xff]  }
  0x34   :  { %2136 = vmatpush1.bf16.msra.mxu0 %v3261_v53  ;;  %1834 = vmatprep.subr.bf16.mxu1 %v3262_v54  ;;  %v3371_v53 = vld [vmem:[%s4796_s0 + $0x1b8] ss:$52 sps:$4 sm:$0xff]   ;;  %v3375_v54 = vld [vmem:[%s4796_s0 + $0x1a0] ss:$52 sps:$4 sm:$0xff]  }
  0x35   :  { %2137 = vmatprep.subr.bf16.mxu0 %v3264_v55  ;;  %v3354_v55 = vld [vmem:[%s4795_s1 + $0x480] ss:$8 sps:$4 sm:$0xff]  }
  0x37   :  { %1835 = vmatpush1.bf16.msra.mxu1 %v3266_v56  ;;  %v3360_v56 = vld [vmem:[%s4795_s1 + $0x194] ss:$8 sps:$4 sm:$0xff]  }
  0x38   :  { %2138 = vmatpush1.bf16.msra.mxu0 %v3267_v57  ;;  %1836 = vmatprep.subr.bf16.mxu1 %v3268_v58  ;;  %v3363_v57 = vld [vmem:[%s4795_s1 + $0x494] ss:$8 sps:$4 sm:$0xff]   ;;  %v3382_v58 = vld [vmem:[%s4796_s0 + $0x224] ss:$52 sps:$4 sm:$0xff]  }
  0x39   :  { %2139 = vmatprep.subr.bf16.mxu0 %v3270_v59  ;;  %v3358_v59 = vld [vmem:[%s4795_s1 + $0x190] ss:$8 sps:$4 sm:$0xff]  }
  0x3b   :  { %1837 = vmatpush1.bf16.msra.mxu1 %v3272_v60  ;;  %v3384_v60 = vld [vmem:[%s4796_s0 + $0x20c] ss:$52 sps:$4 sm:$0xff]  }
  0x3c   :  { %2140 = vmatpush1.bf16.msra.mxu0 %v3273_v61  ;;  %1838 = vmatprep.subr.bf16.mxu1 %v3274_v62  ;;  %v3361_v61 = vld [vmem:[%s4795_s1 + $0x490] ss:$8 sps:$4 sm:$0xff]   ;;  %v3370_v62 = vld [vmem:[%s4795_s1 + $0x1a4] ss:$8 sps:$4 sm:$0xff]  }
  0x3d   :  { %2141 = vmatprep.subr.bf16.mxu0 %v3276_v63  ;;  %v3374_v63 = vld [vmem:[%s4795_s1 + $0x4a4] ss:$8 sps:$4 sm:$0xff]  }
  0x3f   :  { %1839 = vmatpush1.bf16.msra.mxu1 %v3278_v0  ;;  %v3389_v0 = vld [vmem:[%s4796_s0 + $0x220] ss:$52 sps:$4 sm:$0xff]  }
  0x40   :  { %2142 = vmatpush1.bf16.msra.mxu0 %v3279_v1  ;;  %1909 = vmatprep.subr.bf16.mxu1 %v3285_v2  ;;  %v3393_v1 = vld [vmem:[%s4796_s0 + $0x208] ss:$52 sps:$4 sm:$0xff]  }
  0x41   :  { %2212 = vmatprep.subr.bf16.mxu0 %v3291_v4  ;;  %v102_v2 = vld [vmem:[%s4796_s0 + $0x288] sm:$0xff] }
  0x42   :  { %1841 = vmatmul.mubr.bf16.vlgmr.msra.gmra.mrb[0].mxu1 %v3280_v3  ;;  %v99_v3 = vld [vmem:[%s4796_s0 + $0x270] sm:$0xff]  ;;  %v3368_v4 = vld [vmem:[%s4795_s1 + $0x1a0] ss:$8 sps:$4 sm:$0xff]  }
  0x43   :  { %2144 = vmatmul.mubr.bf16.vlgmr.msra.gmra.mrb[0].mxu0 %v3286_v6  ;;  %1910 = vmatpush1.bf16.msra.mxu1 %v3283_v5  ;;  %v3372_v5 = vld [vmem:[%s4795_s1 + $0x4a0] ss:$8 sps:$4 sm:$0xff]   ;;  %v3378_v6 = vld [vmem:[%s4795_s1 + $0x1b4] ss:$8 sps:$4 sm:$0xff]  }
  0x44   :  { %2213 = vmatpush1.bf16.msra.mxu0 %v3289_v7  ;;  %1911 = vmatprep.subr.bf16.mxu1 %v3294_v8  ;;  %v3381_v7 = vld [vmem:[%s4795_s1 + $0x4b4] ss:$8 sps:$4 sm:$0xff]   ;;  %v2723_v8 = vcombine.high %v102_v2, %v102_v2 }
  0x45   :  { %2214 = vmatprep.subr.bf16.mxu0 %v3297_v9  ;;  %2153 = vmatprep.mubr.bf16.mxu0 %v3310_v10  ;;  %v2717_v9 = vcombine.high %v99_v3, %v99_v3  ;;  %v3376_v10 = vld [vmem:[%s4795_s1 + $0x1b0] ss:$8 sps:$4 sm:$0xff]  }
  0x46   :  { %1850 = vmatprep.mubr.bf16.mxu1 %v3312_v11  ;;  %v3379_v11 = vld [vmem:[%s4795_s1 + $0x4b0] ss:$8 sps:$4 sm:$0xff]  }
  0x47   :  { %1912 = vmatpush1.bf16.msra.mxu1 %v3292_v12  ;;  %v3388_v12 = vld [vmem:[%s4795_s1 + $0x1c4] ss:$8 sps:$4 sm:$0xff]  }
  0x48   :  { %2215 = vmatpush1.bf16.msra.mxu0 %v3295_v13  ;;  %1913 = vmatprep.subr.bf16.mxu1 %v3300_v14  ;;  %v3392_v13 = vld [vmem:[%s4795_s1 + $0x4c4] ss:$8 sps:$4 sm:$0xff]   ;;  %v3386_v14 = vld [vmem:[%s4795_s1 + $0x1c0] ss:$8 sps:$4 sm:$0xff]  }
  0x49   :  { %2216 = vmatprep.subr.bf16.mxu0 %v3303_v15  ;;  %v2722_v15 = vcombine.low %v102_v2, %v102_v2  ;;  %v3461_v2 = vld [vmem:[%s4795_s1 + $0x250] ss:$8 sps:$4 sm:$0xff]  }
  0x4a   :  { %1851 = vmatmul.mubr.bf16.gmra.mrb[4].mxu1 %v3321_v20  ;;  %v3418_v20 = vld [vmem:[%s4796_s0 + $0x24] ss:$52 sps:$4 sm:$0xff]  }
  0x4b   :  { %2154 = vmatmul.mubr.bf16.gmra.mrb[4].mxu0 %v3317_v19  ;;  %1914 = vmatpush1.bf16.msra.mxu1 %v3298_v16  ;;  %v2716_v16 = vcombine.low %v99_v3, %v99_v3  ;;  %v3399_v19 = vld [vmem:[%s4795_s1 + $0x4d4] ss:$8 sps:$4 sm:$0xff]   ;;  %v4252_v3 = vld [vmem:[%s4795_s1 + $0x550] ss:$8 sps:$4 sm:$0xff]  }
  0x4c   :  { %2217 = vmatpush1.bf16.msra.mxu0 %v3301_v17  ;;  %1915 = vmatprep.subr.bf16.mxu1 %v3306_v18  ;;  %v3390_v17 = vld [vmem:[%s4795_s1 + $0x4c0] ss:$8 sps:$4 sm:$0xff]   ;;  %v3396_v18 = vld [vmem:[%s4795_s1 + $0x1d4] ss:$8 sps:$4 sm:$0xff]  }
  0x4d   :  { %2218 = vmatprep.subr.bf16.mxu0 %v3309_v21  ;;  %2163 = vmatprep.mubr.bf16.mxu0 %v3328_v22  ;;  %v3421_v21 = vld [vmem:[%s4796_s0 + $0xc] ss:$52 sps:$4 sm:$0xff]   ;;  %v3394_v22 = vld [vmem:[%s4795_s1 + $0x1d0] ss:$8 sps:$4 sm:$0xff]  }
  0x4e   :  { %1860 = vmatprep.mubr.bf16.mxu1 %v3330_v23  ;;  %v3397_v23 = vld [vmem:[%s4795_s1 + $0x4d0] ss:$8 sps:$4 sm:$0xff]  }
  0x4f   :  { %1916 = vmatpush1.bf16.msra.mxu1 %v3304_v24  ;;  %v3404_v24 = vld [vmem:[%s4795_s1 + $0x1e4] ss:$8 sps:$4 sm:$0xff]  }
  0x50   :  { %2219 = vmatpush1.bf16.msra.mxu0 %v3307_v25  ;;  %1917 = vmatprep.subr.bf16.mxu1 %v3316_v26  ;;  %v3408_v25 = vld [vmem:[%s4795_s1 + $0x4e4] ss:$8 sps:$4 sm:$0xff]   ;;  %v3402_v26 = vld [vmem:[%s4795_s1 + $0x1e0] ss:$8 sps:$4 sm:$0xff]  }
  0x51   :  { %2220 = vmatprep.subr.bf16.mxu0 %v3320_v27  ;;  %v3406_v27 = vld [vmem:[%s4795_s1 + $0x4e0] ss:$8 sps:$4 sm:$0xff]  }
  0x52   :  { %1861 = vmatmul.mubr.bf16.gmra.mrb[8].mxu1 %v3339_v32  ;;  %v3424_v32 = vld [vmem:[%s4795_s1 + $0x204] ss:$8 sps:$4 sm:$0xff]  }
  0x53   :  { %2164 = vmatmul.mubr.bf16.gmra.mrb[8].mxu0 %v3335_v31  ;;  %1918 = vmatpush1.bf16.msra.mxu1 %v3314_v28  ;;  %v3412_v28 = vld [vmem:[%s4795_s1 + $0x1f4] ss:$8 sps:$4 sm:$0xff]   ;;  %v3413_v31 = vld [vmem:[%s4795_s1 + $0x4f0] ss:$8 sps:$4 sm:$0xff]  }
  0x54   :  { %2221 = vmatpush1.bf16.msra.mxu0 %v3318_v29  ;;  %1919 = vmatprep.subr.bf16.mxu1 %v3324_v30  ;;  %v3415_v29 = vld [vmem:[%s4795_s1 + $0x4f4] ss:$8 sps:$4 sm:$0xff]   ;;  %v3410_v30 = vld [vmem:[%s4795_s1 + $0x1f0] ss:$8 sps:$4 sm:$0xff]  }
  0x55   :  { %2222 = vmatprep.subr.bf16.mxu0 %v3327_v33  ;;  %2173 = vmatprep.mubr.bf16.mxu0 %v3346_v34  ;;  %v4118_v33 = vld [vmem:[%s4795_s1 + $0x504] ss:$8 sps:$4 sm:$0xff]   ;;  %v3416_v34 = vld [vmem:[%s4796_s0 + $0x20] ss:$52 sps:$4 sm:$0xff]  }
  0x56   :  { %1870 = vmatprep.mubr.bf16.mxu1 %v3348_v35  ;;  %v3419_v35 = vld [vmem:[%s4796_s0 + $0x8] ss:$52 sps:$4 sm:$0xff]  }
  0x57   :  { %1920 = vmatpush1.bf16.msra.mxu1 %v3322_v36  ;;  %v3422_v36 = vld [vmem:[%s4795_s1 + $0x200] ss:$8 sps:$4 sm:$0xff]  }
  0x58   :  { %2223 = vmatpush1.bf16.msra.mxu0 %v3325_v37  ;;  %1921 = vmatprep.subr.bf16.mxu1 %v3334_v38  ;;  %v4132_v37 = vld [vmem:[%s4795_s1 + $0x500] ss:$8 sps:$4 sm:$0xff]   ;;  %v3430_v38 = vld [vmem:[%s4795_s1 + $0x214] ss:$8 sps:$4 sm:$0xff]  }
  0x59   :  { %2224 = vmatprep.subr.bf16.mxu0 %v3338_v39  ;;  %v4141_v39 = vld [vmem:[%s4795_s1 + $0x514] ss:$8 sps:$4 sm:$0xff]  }
  0x5a   :  { %1871 = vmatmul.mubr.bf16.gmra.mrb[12].mxu1 %v3357_v44  ;;  %v3438_v44 = vld [vmem:[%s4795_s1 + $0x224] ss:$8 sps:$4 sm:$0xff]  }
  0x5b   :  { %2174 = vmatmul.mubr.bf16.gmra.mrb[12].mxu0 %v3353_v43  ;;  %1922 = vmatpush1.bf16.msra.mxu1 %v3332_v40  ;;  %v3434_v40 = vld [vmem:[%s4796_s0 + $0x8c] ss:$52 sps:$4 sm:$0xff]   ;;  %v4156_v43 = vld [vmem:[%s4795_s1 + $0x510] ss:$8 sps:$4 sm:$0xff]  }
  0x5c   :  { %2225 = vmatpush1.bf16.msra.mxu0 %v3336_v41  ;;  %1923 = vmatprep.subr.bf16.mxu1 %v3342_v42  ;;  %v3449_v41 = vld [vmem:[%s4796_s0 + $0x74] ss:$52 sps:$4 sm:$0xff]   ;;  %v3428_v42 = vld [vmem:[%s4795_s1 + $0x210] ss:$8 sps:$4 sm:$0xff]  }
  0x5d   :  { %2226 = vmatprep.subr.bf16.mxu0 %v3345_v45  ;;  %2183 = vmatprep.mubr.bf16.mxu0 %v3364_v46  ;;  %v4165_v45 = vld [vmem:[%s4795_s1 + $0x524] ss:$8 sps:$4 sm:$0xff]   ;;  %v3436_v46 = vld [vmem:[%s4795_s1 + $0x220] ss:$8 sps:$4 sm:$0xff]  }
  0x5e   :  { %1880 = vmatprep.mubr.bf16.mxu1 %v3366_v47  ;;  %v3439_v47 = vld [vmem:[%s4796_s0 + $0x88] ss:$52 sps:$4 sm:$0xff]  }
  0x5f   :  { %1924 = vmatpush1.bf16.msra.mxu1 %v3340_v48  ;;  %v3453_v48 = vld [vmem:[%s4796_s0 + $0x70] ss:$52 sps:$4 sm:$0xff]  }
  0x60   :  { %2227 = vmatpush1.bf16.msra.mxu0 %v3343_v49  ;;  %1925 = vmatprep.subr.bf16.mxu1 %v3352_v50  ;;  %v4180_v49 = vld [vmem:[%s4795_s1 + $0x520] ss:$8 sps:$4 sm:$0xff]   ;;  %v3445_v50 = vld [vmem:[%s4795_s1 + $0x234] ss:$8 sps:$4 sm:$0xff]  }
  0x61   :  { %2228 = vmatprep.subr.bf16.mxu0 %v3356_v51  ;;  %v4189_v51 = vld [vmem:[%s4795_s1 + $0x534] ss:$8 sps:$4 sm:$0xff]  }
  0x62   :  { %1881 = vmatmul.mubr.bf16.gmra.mrb[16].mxu1 %v3375_v54  ;;  %v3443_v54 = vld [vmem:[%s4795_s1 + $0x230] ss:$8 sps:$4 sm:$0xff]  }
  0x63   :  { %2184 = vmatmul.mubr.bf16.gmra.mrb[16].mxu0 %v3371_v53  ;;  %1926 = vmatpush1.bf16.msra.mxu1 %v3350_v52  ;;  %v3451_v52 = vld [vmem:[%s4796_s0 + $0xf4] ss:$52 sps:$4 sm:$0xff]   ;;  %v3467_v53 = vld [vmem:[%s4796_s0 + $0xdc] ss:$52 sps:$4 sm:$0xff]  }
  0x64   :  { %2229 = vmatpush1.bf16.msra.mxu0 %v3354_v55  ;;  %1927 = vmatprep.subr.bf16.mxu1 %v3360_v56  ;;  %v4204_v55 = vld [vmem:[%s4795_s1 + $0x530] ss:$8 sps:$4 sm:$0xff]   ;;  %v3456_v56 = vld [vmem:[%s4795_s1 + $0x244] ss:$8 sps:$4 sm:$0xff]  }
  0x65   :  { %2230 = vmatprep.subr.bf16.mxu0 %v3363_v57  ;;  %2193 = vmatprep.mubr.bf16.mxu0 %v3382_v58  ;;  %v4213_v57 = vld [vmem:[%s4795_s1 + $0x544] ss:$8 sps:$4 sm:$0xff]   ;;  %v3454_v58 = vld [vmem:[%s4795_s1 + $0x240] ss:$8 sps:$4 sm:$0xff]  }
  0x66   :  { %1890 = vmatprep.mubr.bf16.mxu1 %v3384_v60  ;;  %v3471_v60 = vld [vmem:[%s4796_s0 + $0xd8] ss:$52 sps:$4 sm:$0xff]  }
  0x67   :  { %1928 = vmatpush1.bf16.msra.mxu1 %v3358_v59  ;;  %v3457_v59 = vld [vmem:[%s4796_s0 + $0xf0] ss:$52 sps:$4 sm:$0xff]  }
  0x68   :  { %2231 = vmatpush1.bf16.msra.mxu0 %v3361_v61  ;;  %1929 = vmatprep.subr.bf16.mxu1 %v3370_v62  ;;  %v4228_v61 = vld [vmem:[%s4795_s1 + $0x540] ss:$8 sps:$4 sm:$0xff]   ;;  %v3463_v62 = vld [vmem:[%s4795_s1 + $0x254] ss:$8 sps:$4 sm:$0xff]  }
  0x69   :  { %2232 = vmatprep.subr.bf16.mxu0 %v3374_v63  ;;  %v4237_v63 = vld [vmem:[%s4795_s1 + $0x554] ss:$8 sps:$4 sm:$0xff]  }
  0x6a   :  { %1891 = vmatmul.mubr.bf16.gmra.mrb[20].mxu1 %v3393_v1  ;;  %v3485_v1 = vld [vmem:[%s4796_s0 + $0x144] ss:$52 sps:$4 sm:$0xff]  }
  0x6b   :  { %2194 = vmatmul.mubr.bf16.gmra.mrb[20].mxu0 %v3389_v0  ;;  %1930 = vmatpush1.bf16.msra.mxu1 %v3368_v4  ;;  %v3469_v0 = vld [vmem:[%s4796_s0 + $0x15c] ss:$52 sps:$4 sm:$0xff]   ;;  %v3474_v4 = vld [vmem:[%s4795_s1 + $0x264] ss:$8 sps:$4 sm:$0xff]  }
  0x6c   :  { %2233 = vmatpush1.bf16.msra.mxu0 %v3372_v5  ;;  %1931 = vmatprep.subr.bf16.mxu1 %v3378_v6  ;;  %v4261_v5 = vld [vmem:[%s4795_s1 + $0x564] ss:$8 sps:$4 sm:$0xff]   ;;  %v3472_v6 = vld [vmem:[%s4795_s1 + $0x260] ss:$8 sps:$4 sm:$0xff]  }
  0x6d   :  { %2234 = vmatprep.subr.bf16.mxu0 %v3381_v7  ;;  %2203 = vmatprep.mubr.bf16.mxu0 %v2723_v8  ;;  %v3475_v7 = vld [vmem:[%s4796_s0 + $0x158] ss:$52 sps:$4 sm:$0xff]   ;;  %v4272_v8 = vld [vmem:[%s4795_s1 + $0x560] ss:$8 sps:$4 sm:$0xff]  }
  0x6e   :  { %1900 = vmatprep.mubr.bf16.mxu1 %v2717_v9  ;;  %v3489_v9 = vld [vmem:[%s4796_s0 + $0x140] ss:$52 sps:$4 sm:$0xff]  }
  0x6f   :  { %1932 = vmatpush1.bf16.msra.mxu1 %v3376_v10  ;;  %v3481_v10 = vld [vmem:[%s4795_s1 + $0x274] ss:$8 sps:$4 sm:$0xff]  }
  0x70   :  { %2235 = vmatpush1.bf16.msra.mxu0 %v3379_v11  ;;  %1933 = vmatprep.subr.bf16.mxu1 %v3388_v12  ;;  %v4284_v11 = vld [vmem:[%s4795_s1 + $0x574] ss:$8 sps:$4 sm:$0xff]   ;;  %v3487_v12 = vld [vmem:[%s4796_s0 + $0x1c4] ss:$52 sps:$4 sm:$0xff]  }
  0x71   :  { %2236 = vmatprep.subr.bf16.mxu0 %v3392_v13  ;;  %v3503_v13 = vld [vmem:[%s4796_s0 + $0x1ac] ss:$52 sps:$4 sm:$0xff]  }
  0x72   :  { %1901 = vmatmul.mubr.bf16.gmra.mrb[24].mxu1 %v2716_v16  ;;  %v3492_v16 = vld [vmem:[%s4795_s1 + $0x284] ss:$8 sps:$4 sm:$0xff]  }
  0x73   :  { %2204 = vmatmul.mubr.bf16.gmra.mrb[24].mxu0 %v2722_v15  ;;  %1934 = vmatpush1.bf16.msra.mxu1 %v3386_v14  ;;  %v3479_v14 = vld [vmem:[%s4795_s1 + $0x270] ss:$8 sps:$4 sm:$0xff]  }
  0x74   :  { %2237 = vmatpush1.bf16.msra.mxu0 %v3390_v17  ;;  %1935 = vmatprep.subr.bf16.mxu1 %v3396_v18  ;;  %v4299_v15 = vld [vmem:[%s4795_s1 + $0x570] ss:$8 sps:$4 sm:$0xff]   ;;  %v4309_v17 = vld [vmem:[%s4795_s1 + $0x584] ss:$8 sps:$4 sm:$0xff]   ;;  %v3490_v18 = vld [vmem:[%s4795_s1 + $0x280] ss:$8 sps:$4 sm:$0xff]  }
  0x75   :  { %2238 = vmatprep.subr.bf16.mxu0 %v3399_v19  ;;  %2244 = vmatprep.mubr.bf16.mxu0 %v3418_v20  ;;  %v3493_v19 = vld [vmem:[%s4796_s0 + $0x1c0] ss:$52 sps:$4 sm:$0xff]  }
  0x76   :  { %1941 = vmatprep.mubr.bf16.mxu1 %v3421_v21  ;;  %v4320_v20 = vld [vmem:[%s4795_s1 + $0x580] ss:$8 sps:$4 sm:$0xff]  }
  0x77   :  { %1936 = vmatpush1.bf16.msra.mxu1 %v3394_v22  ;;  %v3507_v21 = vld [vmem:[%s4796_s0 + $0x1a8] ss:$52 sps:$4 sm:$0xff]  }
  0x78   :  { %2239 = vmatpush1.bf16.msra.mxu0 %v3397_v23  ;;  %1937 = vmatprep.subr.bf16.mxu1 %v3404_v24  ;;  %v3499_v22 = vld [vmem:[%s4795_s1 + $0x294] ss:$8 sps:$4 sm:$0xff]   ;;  %v3505_v24 = vld [vmem:[%s4796_s0 + $0x22c] ss:$52 sps:$4 sm:$0xff]  }
  0x79   :  { %2240 = vmatprep.subr.bf16.mxu0 %v3408_v25  ;;  %v4333_v23 = vld [vmem:[%s4795_s1 + $0x594] ss:$8 sps:$4 sm:$0xff]  }
  0x7a   :  { %v3521_v25 = vld [vmem:[%s4796_s0 + $0x214] ss:$52 sps:$4 sm:$0xff]  }
  0x7b   :  { %1938 = vmatpush1.bf16.msra.mxu1 %v3402_v26  ;;  %v3497_v26 = vld [vmem:[%s4795_s1 + $0x290] ss:$8 sps:$4 sm:$0xff]  }
  0x7c   :  { %2241 = vmatpush1.bf16.msra.mxu0 %v3406_v27  ;;  %1939 = vmatprep.subr.bf16.mxu1 %v3412_v28  ;;  %v4347_v27 = vld [vmem:[%s4795_s1 + $0x590] ss:$8 sps:$4 sm:$0xff]   ;;  %v3510_v28 = vld [vmem:[%s4795_s1 + $0x2a4] ss:$8 sps:$4 sm:$0xff]  }
  0x7d   :  { %2242 = vmatprep.subr.bf16.mxu0 %v3415_v29  ;;  %v3511_v29 = vld [vmem:[%s4796_s0 + $0x228] ss:$52 sps:$4 sm:$0xff]  }
  0x7f   :  { %1940 = vmatpush1.bf16.msra.mxu1 %v3410_v30  ;;  %v4360_v30 = vld [vmem:[%s4795_s1 + $0x5a4] ss:$8 sps:$4 sm:$0xff]  }
  0x80   :  { %2243 = vmatpush1.bf16.msra.mxu0 %v3413_v31  ;;  %2010 = vmatprep.subr.bf16.mxu1 %v3424_v32  ;;  %v3508_v31 = vld [vmem:[%s4795_s1 + $0x2a0] ss:$8 sps:$4 sm:$0xff]   ;;  %v103_v32 = vld [vmem:[%s4796_s0 + $0x290] sm:$0xff] }
  0x81   :  { %2313 = vmatprep.subr.bf16.mxu0 %v4118_v33 }
  0x82   :  { %1942 = vmatmul.mubr.bf16.vlgmr.msra.gmra.mrb[0].mxu1 %v3419_v35  ;;  %v100_v35 = vld [vmem:[%s4796_s0 + $0x278] sm:$0xff] }
  0x83   :  { %2245 = vmatmul.mubr.bf16.vlgmr.msra.gmra.mrb[0].mxu0 %v3416_v34  ;;  %2011 = vmatpush1.bf16.msra.mxu1 %v3422_v36  ;;  %v3524_v34 = vld [vmem:[%s4796_s0 + $0x210] ss:$52 sps:$4 sm:$0xff]   ;;  %v4378_v36 = vld [vmem:[%s4795_s1 + $0x5a0] ss:$8 sps:$4 sm:$0xff]  }
  0x84   :  { %2314 = vmatpush1.bf16.msra.mxu0 %v4132_v37  ;;  %2012 = vmatprep.subr.bf16.mxu1 %v3430_v38  ;;  %v3517_v38 = vld [vmem:[%s4795_s1 + $0x2b4] ss:$8 sps:$4 sm:$0xff]  }
  0x85   :  { %2315 = vmatprep.subr.bf16.mxu0 %v4141_v39  ;;  %2254 = vmatprep.mubr.bf16.mxu0 %v3434_v40  ;;  %v4387_v40 = vld [vmem:[%s4795_s1 + $0x5b4] ss:$8 sps:$4 sm:$0xff]  }
  0x86   :  { %1951 = vmatprep.mubr.bf16.mxu1 %v3449_v41  ;;  %v2725_v41 = vcombine.high %v103_v32, %v103_v32 }
  0x87   :  { %2013 = vmatpush1.bf16.msra.mxu1 %v3428_v42  ;;  %v2719_v42 = vcombine.high %v100_v35, %v100_v35 }
  0x88   :  { %2316 = vmatpush1.bf16.msra.mxu0 %v4156_v43  ;;  %2014 = vmatprep.subr.bf16.mxu1 %v3438_v44  ;;  %v3515_v44 = vld [vmem:[%s4795_s1 + $0x2b0] ss:$8 sps:$4 sm:$0xff]  }
  0x89   :  { %2317 = vmatprep.subr.bf16.mxu0 %v4165_v45 }
  0x8a   :  { %1952 = vmatmul.mubr.bf16.gmra.mrb[4].mxu1 %v3453_v48  ;;  %v4405_v48 = vld [vmem:[%s4795_s1 + $0x5c4] ss:$8 sps:$4 sm:$0xff]  }
  0x8b   :  { %2255 = vmatmul.mubr.bf16.gmra.mrb[4].mxu0 %v3439_v47  ;;  %2015 = vmatpush1.bf16.msra.mxu1 %v3436_v46  ;;  %v4395_v46 = vld [vmem:[%s4795_s1 + $0x5b0] ss:$8 sps:$4 sm:$0xff]   ;;  %v3527_v47 = vld [vmem:[%s4795_s1 + $0x2c4] ss:$8 sps:$4 sm:$0xff]  }
  0x8c   :  { %2318 = vmatpush1.bf16.msra.mxu0 %v4180_v49  ;;  %2016 = vmatprep.subr.bf16.mxu1 %v3445_v50  ;;  %v3525_v50 = vld [vmem:[%s4795_s1 + $0x2c0] ss:$8 sps:$4 sm:$0xff]  }
  0x8d   :  { %2319 = vmatprep.subr.bf16.mxu0 %v4189_v51  ;;  %2264 = vmatprep.mubr.bf16.mxu0 %v3451_v52  ;;  %v2724_v52 = vcombine.low %v103_v32, %v103_v32  ;;  %v3587_v32 = vld [vmem:[%s4795_s1 + $0x654] ss:$8 sps:$4 sm:$0xff]  }
  0x8e   :  { %1961 = vmatprep.mubr.bf16.mxu1 %v3467_v53  ;;  %v4413_v53 = vld [vmem:[%s4795_s1 + $0x5c0] ss:$8 sps:$4 sm:$0xff]  }
  0x8f   :  { %2017 = vmatpush1.bf16.msra.mxu1 %v3443_v54  ;;  %v3534_v54 = vld [vmem:[%s4795_s1 + $0x2d4] ss:$8 sps:$4 sm:$0xff]  }
  0x90   :  { %2320 = vmatpush1.bf16.msra.mxu0 %v4204_v55  ;;  %2018 = vmatprep.subr.bf16.mxu1 %v3456_v56  ;;  %v2718_v56 = vcombine.low %v100_v35, %v100_v35  ;;  %v3596_v35 = vld [vmem:[%s4795_s1 + $0x664] ss:$8 sps:$4 sm:$0xff]  }
  0x91   :  { %2321 = vmatprep.subr.bf16.mxu0 %v4213_v57 }
  0x92   :  { %1962 = vmatmul.mubr.bf16.gmra.mrb[8].mxu1 %v3471_v60  ;;  %v3557_v60 = vld [vmem:[%s4796_s0 + $0x2c] ss:$52 sps:$4 sm:$0xff]  }
  0x93   :  { %2265 = vmatmul.mubr.bf16.gmra.mrb[8].mxu0 %v3457_v59  ;;  %2019 = vmatpush1.bf16.msra.mxu1 %v3454_v58  ;;  %v4422_v58 = vld [vmem:[%s4795_s1 + $0x5d4] ss:$8 sps:$4 sm:$0xff]  }
  0x94   :  { %2322 = vmatpush1.bf16.msra.mxu0 %v4228_v61  ;;  %2020 = vmatprep.subr.bf16.mxu1 %v3463_v62  ;;  %v3554_v59 = vld [vmem:[%s4796_s0 + $0x14] ss:$52 sps:$4 sm:$0xff]   ;;  %v3532_v62 = vld [vmem:[%s4795_s1 + $0x2d0] ss:$8 sps:$4 sm:$0xff]  }
  0x95   :  { %2323 = vmatprep.subr.bf16.mxu0 %v4237_v63  ;;  %2274 = vmatprep.mubr.bf16.mxu0 %v3469_v0  ;;  %v4437_v0 = vld [vmem:[%s4795_s1 + $0x5d0] ss:$8 sps:$4 sm:$0xff]  }
  0x96   :  { %1971 = vmatprep.mubr.bf16.mxu1 %v3485_v1  ;;  %v3542_v1 = vld [vmem:[%s4795_s1 + $0x2e4] ss:$8 sps:$4 sm:$0xff]  }
  0x97   :  { %2021 = vmatpush1.bf16.msra.mxu1 %v3461_v2  ;;  %v4447_v2 = vld [vmem:[%s4795_s1 + $0x5e4] ss:$8 sps:$4 sm:$0xff]  }
  0x98   :  { %2324 = vmatpush1.bf16.msra.mxu0 %v4252_v3  ;;  %2022 = vmatprep.subr.bf16.mxu1 %v3474_v4  ;;  %v3540_v4 = vld [vmem:[%s4795_s1 + $0x2e0] ss:$8 sps:$4 sm:$0xff]  }
  0x99   :  { %2325 = vmatprep.subr.bf16.mxu0 %v4261_v5 }
  0x9a   :  { %1972 = vmatmul.mubr.bf16.gmra.mrb[12].mxu1 %v3489_v9  ;;  %v4465_v9 = vld [vmem:[%s4795_s1 + $0x5f4] ss:$8 sps:$4 sm:$0xff]  }
  0x9b   :  { %2275 = vmatmul.mubr.bf16.gmra.mrb[12].mxu0 %v3475_v7  ;;  %2023 = vmatpush1.bf16.msra.mxu1 %v3472_v6  ;;  %v4455_v6 = vld [vmem:[%s4795_s1 + $0x5e0] ss:$8 sps:$4 sm:$0xff]   ;;  %v3548_v7 = vld [vmem:[%s4795_s1 + $0x2f4] ss:$8 sps:$4 sm:$0xff]  }
  0x9c   :  { %2326 = vmatpush1.bf16.msra.mxu0 %v4272_v8  ;;  %2024 = vmatprep.subr.bf16.mxu1 %v3481_v10  ;;  %v3546_v10 = vld [vmem:[%s4795_s1 + $0x2f0] ss:$8 sps:$4 sm:$0xff]  }
  0x9d   :  { %2327 = vmatprep.subr.bf16.mxu0 %v4284_v11  ;;  %2284 = vmatprep.mubr.bf16.mxu0 %v3487_v12  ;;  %v4474_v12 = vld [vmem:[%s4795_s1 + $0x5f0] ss:$8 sps:$4 sm:$0xff]  }
  0x9e   :  { %1981 = vmatprep.mubr.bf16.mxu1 %v3503_v13  ;;  %v3560_v13 = vld [vmem:[%s4795_s1 + $0x604] ss:$8 sps:$4 sm:$0xff]  }
  0x9f   :  { %2025 = vmatpush1.bf16.msra.mxu1 %v3479_v14  ;;  %v3552_v14 = vld [vmem:[%s4796_s0 + $0x10] ss:$52 sps:$4 sm:$0xff]  }
  0xa0   :  { %2328 = vmatpush1.bf16.msra.mxu0 %v4299_v15  ;;  %2026 = vmatprep.subr.bf16.mxu1 %v3492_v16  ;;  %v3555_v16 = vld [vmem:[%s4796_s0 + $0x28] ss:$52 sps:$4 sm:$0xff]  }
  0xa1   :  { %2329 = vmatprep.subr.bf16.mxu0 %v4309_v17 }
  0xa2   :  { %1982 = vmatmul.mubr.bf16.gmra.mrb[16].mxu1 %v3507_v21  ;;  %v3564_v21 = vld [vmem:[%s4796_s0 + $0x7c] ss:$52 sps:$4 sm:$0xff]  }
  0xa3   :  { %2285 = vmatmul.mubr.bf16.gmra.mrb[16].mxu0 %v3493_v19  ;;  %2027 = vmatpush1.bf16.msra.mxu1 %v3490_v18  ;;  %v3558_v18 = vld [vmem:[%s4795_s1 + $0x600] ss:$8 sps:$4 sm:$0xff]   ;;  %v3563_v19 = vld [vmem:[%s4795_s1 + $0x614] ss:$8 sps:$4 sm:$0xff]  }
  0xa4   :  { %2330 = vmatpush1.bf16.msra.mxu0 %v4320_v20  ;;  %2028 = vmatprep.subr.bf16.mxu1 %v3499_v22  ;;  %v3566_v22 = vld [vmem:[%s4796_s0 + $0x94] ss:$52 sps:$4 sm:$0xff]  }
  0xa5   :  { %2331 = vmatprep.subr.bf16.mxu0 %v4333_v23  ;;  %2294 = vmatprep.mubr.bf16.mxu0 %v3505_v24  ;;  %v3572_v24 = vld [vmem:[%s4795_s1 + $0x624] ss:$8 sps:$4 sm:$0xff]  }
  0xa6   :  { %1991 = vmatprep.mubr.bf16.mxu1 %v3521_v25  ;;  %v3568_v25 = vld [vmem:[%s4796_s0 + $0x78] ss:$52 sps:$4 sm:$0xff]  }
  0xa7   :  { %2029 = vmatpush1.bf16.msra.mxu1 %v3497_v26  ;;  %v3575_v26 = vld [vmem:[%s4795_s1 + $0x634] ss:$8 sps:$4 sm:$0xff]  }
  0xa8   :  { %2332 = vmatpush1.bf16.msra.mxu0 %v4347_v27  ;;  %2030 = vmatprep.subr.bf16.mxu1 %v3510_v28  ;;  %v3576_v28 = vld [vmem:[%s4796_s0 + $0xe4] ss:$52 sps:$4 sm:$0xff]  }
  0xa9   :  { %2333 = vmatprep.subr.bf16.mxu0 %v4360_v30 }
  0xaa   :  { %1992 = vmatmul.mubr.bf16.gmra.mrb[20].mxu1 %v3524_v34  ;;  %v3588_v34 = vld [vmem:[%s4796_s0 + $0x14c] ss:$52 sps:$4 sm:$0xff]  }
  0xab   :  { %2295 = vmatmul.mubr.bf16.gmra.mrb[20].mxu0 %v3511_v29  ;;  %2031 = vmatpush1.bf16.msra.mxu1 %v3508_v31  ;;  %v3584_v29 = vld [vmem:[%s4795_s1 + $0x644] ss:$8 sps:$4 sm:$0xff]   ;;  %v3580_v31 = vld [vmem:[%s4796_s0 + $0xe0] ss:$52 sps:$4 sm:$0xff]  }
  0xac   :  { %2334 = vmatpush1.bf16.msra.mxu0 %v4378_v36  ;;  %2032 = vmatprep.subr.bf16.mxu1 %v3517_v38  ;;  %v3592_v38 = vld [vmem:[%s4796_s0 + $0x148] ss:$52 sps:$4 sm:$0xff]  }
  0xad   :  { %2335 = vmatprep.subr.bf16.mxu0 %v4387_v40  ;;  %2304 = vmatprep.mubr.bf16.mxu0 %v2725_v41  ;;  %v3599_v41 = vld [vmem:[%s4795_s1 + $0x674] ss:$8 sps:$4 sm:$0xff]  }
  0xae   :  { %2001 = vmatprep.mubr.bf16.mxu1 %v2719_v42  ;;  %v3600_v42 = vld [vmem:[%s4796_s0 + $0x1b4] ss:$52 sps:$4 sm:$0xff]  }
  0xaf   :  { %2033 = vmatpush1.bf16.msra.mxu1 %v3515_v44  ;;  %v3602_v44 = vld [vmem:[%s4796_s0 + $0x1b0] ss:$52 sps:$4 sm:$0xff]  }
  0xb0   :  { %2336 = vmatpush1.bf16.msra.mxu0 %v4395_v46  ;;  %2034 = vmatprep.subr.bf16.mxu1 %v3527_v47  ;;  %v3603_v47 = vld [vmem:[%s4796_s0 + $0x30] ss:$52 sps:$4 sm:$0xff]  }
  0xb1   :  { %2337 = vmatprep.subr.bf16.mxu0 %v4405_v48 }
  0xb2   :  { %2002 = vmatmul.mubr.bf16.gmra.mrb[24].mxu1 %v2718_v56 }
  0xb3   :  { %2305 = vmatmul.mubr.bf16.gmra.mrb[24].mxu0 %v2724_v52  ;;  %2035 = vmatpush1.bf16.msra.mxu1 %v3525_v50  ;;  %v3618_v52 = vld [vmem:[%s4796_s0 + $0x230] ss:$52 sps:$4 sm:$0xff]  }
  0xb4   :  { %2338 = vmatpush1.bf16.msra.mxu0 %v4413_v53  ;;  %2036 = vmatprep.subr.bf16.mxu1 %v3534_v54 }
  0xb5   :  { %2339 = vmatprep.subr.bf16.mxu0 %v4422_v58  ;;  %2042 = vmatprep.mubr.bf16.mxu1 %v3554_v59 }
  0xb6   :  { %2345 = vmatprep.mubr.bf16.mxu0 %v3557_v60 }
  0xb7   :  { %2037 = vmatpush1.bf16.msra.mxu1 %v3532_v62 }
  0xb8   :  { %2340 = vmatpush1.bf16.msra.mxu0 %v4437_v0  ;;  %2038 = vmatprep.subr.bf16.mxu1 %v3542_v1 }
  0xb9   :  { %2341 = vmatprep.subr.bf16.mxu0 %v4447_v2 }
  0xbb   :  { %2039 = vmatpush1.bf16.msra.mxu1 %v3540_v4 }
  0xbc   :  { %2342 = vmatpush1.bf16.msra.mxu0 %v4455_v6  ;;  %2040 = vmatprep.subr.bf16.mxu1 %v3548_v7 }
  0xbd   :  { %2343 = vmatprep.subr.bf16.mxu0 %v4465_v9 }
  0xbf   :  { %2041 = vmatpush1.bf16.msra.mxu1 %v3546_v10 }
  0xc0   :  { %2344 = vmatpush1.bf16.msra.mxu0 %v4474_v12  ;;  %2963 = vmatprep.subr.bf16.mxu1 %v4118_v33  ;;  %v3561_v33 = vld [vmem:[%s4795_s1 + $0x610] ss:$8 sps:$4 sm:$0xff]  }
  0xc1   :  { %2414 = vmatprep.subr.bf16.mxu0 %v3560_v13 }
  0xc2   :  { %2043 = vmatmul.mubr.bf16.vlgmr.msra.gmra.mrb[0].mxu1 %v3552_v14 }
  0xc3   :  { %2346 = vmatmul.mubr.bf16.vlgmr.msra.gmra.mrb[0].mxu0 %v3555_v16  ;;  %2979 = vmatpush1.bf16.msra.mxu1 %v4132_v37  ;;  %v3569_v37 = vld [vmem:[%s4796_s0 + $0x90] ss:$52 sps:$4 sm:$0xff]  }
  0xc4   :  { %2415 = vmatpush1.bf16.msra.mxu0 %v3558_v18  ;;  %2964 = vmatprep.subr.bf16.mxu1 %v4141_v39  ;;  %v3570_v39 = vld [vmem:[%s4795_s1 + $0x620] ss:$8 sps:$4 sm:$0xff]  }
  0xc5   :  { %2416 = vmatprep.subr.bf16.mxu0 %v3563_v19  ;;  %2052 = vmatprep.mubr.bf16.mxu1 %v3564_v21 }
  0xc6   :  { %2355 = vmatprep.mubr.bf16.mxu0 %v3566_v22 }
  0xc7   :  { %2980 = vmatpush1.bf16.msra.mxu1 %v4156_v43  ;;  %v3578_v43 = vld [vmem:[%s4796_s0 + $0xfc] ss:$52 sps:$4 sm:$0xff]  }
  0xc8   :  { %2417 = vmatpush1.bf16.msra.mxu0 %v3561_v33  ;;  %2965 = vmatprep.subr.bf16.mxu1 %v4165_v45  ;;  %v3573_v45 = vld [vmem:[%s4795_s1 + $0x630] ss:$8 sps:$4 sm:$0xff]  }
  0xc9   :  { %2418 = vmatprep.subr.bf16.mxu0 %v3572_v24  ;;  %v316_v24 = vlaneseq }
  0xca   :  { %2053 = vmatmul.mubr.bf16.gmra.mrb[4].mxu1 %v3568_v25 }
  0xcb   :  { %2356 = vmatmul.mubr.bf16.gmra.mrb[4].mxu0 %v3569_v37  ;;  %2981 = vmatpush1.bf16.msra.mxu1 %v4180_v49  ;;  %v3581_v49 = vld [vmem:[%s4796_s0 + $0xf8] ss:$52 sps:$4 sm:$0xff]  }
  0xcc   :  { %2419 = vmatpush1.bf16.msra.mxu0 %v3570_v39  ;;  %2966 = vmatprep.subr.bf16.mxu1 %v4189_v51  ;;  %v3582_v51 = vld [vmem:[%s4795_s1 + $0x640] ss:$8 sps:$4 sm:$0xff]  }
  0xcd   :  { %2420 = vmatprep.subr.bf16.mxu0 %v3575_v26  ;;  %2062 = vmatprep.mubr.bf16.mxu1 %v3576_v28  ;;  %v317_v26 = vshrl.u32 %v316_v24, 7 }
  0xce   :  { %2365 = vmatprep.mubr.bf16.mxu0 %v3578_v43 }
  0xcf   :  { %2982 = vmatpush1.bf16.msra.mxu1 %v4204_v55  ;;  %v3590_v55 = vld [vmem:[%s4796_s0 + $0x164] ss:$52 sps:$4 sm:$0xff]   ;;  %v318_v43 = vsub.s32 0, %v317_v26 }
  0xd0   :  { %2421 = vmatpush1.bf16.msra.mxu0 %v3573_v45  ;;  %2967 = vmatprep.subr.bf16.mxu1 %v4213_v57  ;;  %v3585_v57 = vld [vmem:[%s4795_s1 + $0x650] ss:$8 sps:$4 sm:$0xff]   ;;  %v314_v45 = vld [vmem:[%s4797_s2] sm:$0x3] }
  0xd1   :  { %2422 = vmatprep.subr.bf16.mxu0 %v3584_v29  ;;  %v322_v29 = vsub.s32 1, %v317_v26 }
  0xd2   :  { %2063 = vmatmul.mubr.bf16.gmra.mrb[8].mxu1 %v3580_v31 }
  0xd3   :  { %2366 = vmatmul.mubr.bf16.gmra.mrb[8].mxu0 %v3581_v49  ;;  %2983 = vmatpush1.bf16.msra.mxu1 %v4228_v61  ;;  %v3593_v61 = vld [vmem:[%s4796_s0 + $0x160] ss:$52 sps:$4 sm:$0xff]  }
  0xd4   :  { %2423 = vmatpush1.bf16.msra.mxu0 %v3582_v51  ;;  %2968 = vmatprep.subr.bf16.mxu1 %v4237_v63  ;;  %v3594_v63 = vld [vmem:[%s4795_s1 + $0x660] ss:$8 sps:$4 sm:$0xff]  }
  0xd5   :  { %2424 = vmatprep.subr.bf16.mxu0 %v3587_v32  ;;  %2072 = vmatprep.mubr.bf16.mxu1 %v3588_v34  ;;  %v4680_v32 = vrot.slane %v314_v45, %v318_v43 }
  0xd6   :  { %2375 = vmatprep.mubr.bf16.mxu0 %v3590_v55  ;;  %v4684_v55 = vrot.slane %v314_v45, %v322_v29 }
  0xd7   :  { %2984 = vmatpush1.bf16.msra.mxu1 %v4252_v3  ;;  %v3597_v3 = vld [vmem:[%s4795_s1 + $0x670] ss:$8 sps:$4 sm:$0xff]  }
  0xd8   :  { %2425 = vmatpush1.bf16.msra.mxu0 %v3585_v57  ;;  %2969 = vmatprep.subr.bf16.mxu1 %v4261_v5  ;;  %v3623_v5 = vmov 0  }
  0xd9   :  { %2426 = vmatprep.subr.bf16.mxu0 %v3596_v35 }
  0xda   :  { %2073 = vmatmul.mubr.bf16.gmra.mrb[12].mxu1 %v3592_v38 }
  0xdb   :  { %2376 = vmatmul.mubr.bf16.gmra.mrb[12].mxu0 %v3593_v61  ;;  %2985 = vmatpush1.bf16.msra.mxu1 %v4272_v8  ;;  %v3604_v8 = vld [vmem:[%s4796_s0 + $0x21c] ss:$52 sps:$4 sm:$0xff]  }
  0xdc   :  { %2427 = vmatpush1.bf16.msra.mxu0 %v3594_v63  ;;  %2970 = vmatprep.subr.bf16.mxu1 %v4284_v11  ;;  %v101_v11 = vld [vmem:[%s4796_s0 + $0x280] sm:$0xff] }
  0xdd   :  { %2428 = vmatprep.subr.bf16.mxu0 %v3599_v41  ;;  %2082 = vmatprep.mubr.bf16.mxu1 %v3600_v42  ;;  %v2721_v50 = vcombine.high %v101_v11, %v101_v11 }
  0xde   :  { %2446 = vmatprep.mubr.bf16.mxu0 %v3623_v5 }
  0xdf   :  { %2986 = vmatpush1.bf16.msra.mxu1 %v4299_v15  ;;  %v3606_v15 = vld [vmem:[%s4796_s0 + $0x218] ss:$52 sps:$4 sm:$0xff]  }
  0xe0   :  { %2429 = vmatpush1.bf16.msra.mxu0 %v3597_v3  ;;  %2971 = vmatprep.subr.bf16.mxu1 %v4309_v17  ;;  %v3607_v17 = vld [vmem:[%s4796_s0 + $0x98] ss:$52 sps:$4 sm:$0xff]  }
  0xe2   :  { %2083 = vmatmul.mubr.bf16.gmra.mrb[16].mxu1 %v3602_v44 }
  0xe3   :  { %2447 = vmatmul.mubr.bf16.vlgmr.msra.gmra.mrb[0].mxu0 %v3603_v47  ;;  %2987 = vmatpush1.bf16.msra.mxu1 %v4320_v20  ;;  %v2720_v20 = vcombine.low %v101_v11, %v101_v11 }
  0xe4   :  { %2092 = vmatprep.mubr.bf16.mxu1 %v3604_v8  ;;  %2972 = vmatprep.subr.bf16.mxu1 %v4333_v23  ;;  %v3610_v23 = vld [vmem:[%s4796_s0 + $0x100] ss:$52 sps:$4 sm:$0xff]  }
  0xe5   :  { %2456 = vmatprep.mubr.bf16.mxu0 %v3623_v5 }
  0xe7   :  { %2988 = vmatpush1.bf16.msra.mxu1 %v4347_v27  ;;  %v3614_v27 = vld [vmem:[%s4796_s0 + $0x1cc] ss:$52 sps:$4 sm:$0xff]  }
  0xe8   :  { %2973 = vmatprep.subr.bf16.mxu1 %v4360_v30  ;;  %v3611_v30 = vld [vmem:[%s4796_s0 + $0x168] ss:$52 sps:$4 sm:$0xff]  }
  0xea   :  { %2093 = vmatmul.mubr.bf16.gmra.mrb[20].mxu1 %v3606_v15 }
  0xeb   :  { %2457 = vmatmul.mubr.bf16.gmra.mrb[4].mxu0 %v3607_v17  ;;  %2989 = vmatpush1.bf16.msra.mxu1 %v4378_v36  ;;  %v3612_v36 = vld [vmem:[%s4796_s0 + $0x1c8] ss:$52 sps:$4 sm:$0xff]  }
  0xec   :  { %2102 = vmatprep.mubr.bf16.mxu1 %v2721_v50  ;;  %2974 = vmatprep.subr.bf16.mxu1 %v4387_v40  ;;  %v3615_v40 = vld [vmem:[%s4796_s0 + $0x1d0] ss:$52 sps:$4 sm:$0xff]  }
  0xed   :  { %2466 = vmatprep.mubr.bf16.mxu0 %v3623_v5 }
  0xef   :  { %2990 = vmatpush1.bf16.msra.mxu1 %v4395_v46  ;;  %v3616_v46 = vld [vmem:[%s4796_s0 + $0x234] ss:$52 sps:$4 sm:$0xff]  }
  0xf0   :  { %2975 = vmatprep.subr.bf16.mxu1 %v4405_v48  ;;  %v104_v48 = vld [vmem:[%s4796_s0 + $0x298] sm:$0xff] }
  0xf1   :  { %v2727_v54 = vcombine.high %v104_v48, %v104_v48  ;;  %v2726_v56 = vcombine.low %v104_v48, %v104_v48 }
  0xf2   :  { %2103 = vmatmul.mubr.bf16.gmra.mrb[24].mxu1 %v2720_v20 }
  0xf3   :  { %2467 = vmatmul.mubr.bf16.gmra.mrb[8].mxu0 %v3610_v23  ;;  %2991 = vmatpush1.bf16.msra.mxu1 %v4413_v53  ;;  %v3619_v53 = vld [vmem:[%s4796_s0 + $0x238] ss:$52 sps:$4 sm:$0xff]  }
  0xf4   :  { %2476 = vmatprep.mubr.bf16.mxu0 %v3623_v5  ;;  %2976 = vmatprep.subr.bf16.mxu1 %v4422_v58  ;;  %v3622_v58 = vld [vmem:[%s4796_s0 + $0x2a0] ss:$0 sps:$4 sm:$0xff]  }
  0xf5   :  { %2385 = vmatprep.mubr.bf16.mxu1 %v3614_v27 }
  0xf7   :  { %2992 = vmatpush1.bf16.msra.mxu1 %v4437_v0 }
  0xf8   :  { %2977 = vmatprep.subr.bf16.mxu1 %v4447_v2 }
  0xfb   :  { %2477 = vmatmul.mubr.bf16.gmra.mrb[12].mxu0 %v3611_v30  ;;  %2993 = vmatpush1.bf16.msra.mxu1 %v4455_v6 }
  0xfc   :  { %2486 = vmatprep.mubr.bf16.mxu0 %v3623_v5  ;;  %2978 = vmatprep.subr.bf16.mxu1 %v4465_v9 }
  0xff   :  { %2994 = vmatpush1.bf16.msra.mxu1 %v4474_v12 }
 0x102   :  { %2386 = vmatmul.mubr.bf16.vlgmr.msra.gmra.mrb[28].mxu1 %v3612_v36 }
 0x103   :  { %2487 = vmatmul.mubr.bf16.gmra.mrb[28].mxu0 %v3615_v40  ;;  %2395 = vmatprep.mubr.bf16.mxu1 %v3616_v46 }
 0x104   :  { %2496 = vmatprep.mubr.bf16.mxu0 %v3623_v5 }
 0x10a   :  { %2396 = vmatmul.mubr.bf16.gmra.mrb[32].mxu1 %v3618_v52 }
 0x10b   :  { %2497 = vmatmul.mubr.bf16.gmra.mrb[32].mxu0 %v3619_v53  ;;  %2405 = vmatprep.mubr.bf16.mxu1 %v2727_v54 }
 0x10c   :  { %2506 = vmatprep.mubr.bf16.mxu0 %v3623_v5 }
 0x112   :  { %2406 = vmatmul.mubr.bf16.gmra.mrb[36].mxu1 %v2726_v56 }
 0x113   :  { %2507 = vmatmul.mubr.bf16.gmra.mrb[36].mxu0 %v3622_v58 }
 0x176   :  { %v2286_v59 = vpop.f32.mrb[16].mxu0 }
 0x177   :  { %v2288_v60 = vpop.f32.mrb[17].mxu0 }
 0x178   :  { %v2290_v62 = vpop.f32.mrb[18].mxu0 }
 0x179   :  { %v2292_v0 = vpop.f32.mrb[19].mxu0 }
 0x17e   :  { %v4651_v1 = vpop.f32.mrb[20].mxu0 }
 0x17f   :  { %v4653_v2 = vpop.f32.mrb[21].mxu0 }
 0x180   :  { %v4655_v4 = vpop.f32.mrb[22].mxu0 }
 0x181   :  { %v4657_v6 = vpop.f32.mrb[23].mxu0 }
 0x186   :  { %v4659_v7 = vpop.f32.mrb[24].mxu0 }
 0x187   :  { %v4661_v9 = vpop.f32.mrb[25].mxu0 }
 0x188   :  { %v2310_v10 = vpop.f32.mrb[26].mxu0 }
 0x189   :  { %v2311_v12 = vpop.f32.mrb[27].mxu0 }
 0x195   :  { %v2044_v13 = vpop.f32.mrb[0].mxu1 }
 0x196   :  { %v2046_v14 = vpop.f32.mrb[1].mxu1  ;;  %v2995_v57 = vadd.f32 %v2044_v13, %v4680_v32 }
 0x197   :  { %v2048_v16 = vpop.f32.mrb[2].mxu1  ;;  %v2997_v35 = vadd.f32 %v2046_v14, %v4684_v55 }
 0x198   :  { %v2050_v18 = vpop.f32.mrb[3].mxu1  ;;  %v2999_v63 = vadd.f32 %v2048_v16, %v4680_v32 }
 0x199   :  { %v3001_v44 = vadd.f32 %v2050_v18, %v4684_v55 }
 0x19d   :  { %v2054_v19 = vpop.f32.mrb[4].mxu1 }
 0x19e   :  { %v2056_v21 = vpop.f32.mrb[5].mxu1  ;;  %v3003_v10 = vadd.f32 %v2054_v19, %v4680_v32 }
 0x19f   :  { %v2058_v22 = vpop.f32.mrb[6].mxu1  ;;  %v3005_v12 = vadd.f32 %v2056_v21, %v4684_v55 }
 0x1a0   :  { %v2060_v33 = vpop.f32.mrb[7].mxu1 }
 0x1a5   :  { %v4663_v25 = vpop.f32.mrb[8].mxu1 }
 0x1a6   :  { %v4665_v37 = vpop.f32.mrb[9].mxu1 }
 0x1a7   :  { %v4667_v39 = vpop.f32.mrb[10].mxu1 }
 0x1a8   :  { %v4669_v28 = vpop.f32.mrb[11].mxu1 }
 0x1ad   :  { %v4674_v31 = vpop.f32.mrb[12].mxu1 }
 0x1ae   :  { %v4676_v49 = vpop.f32.mrb[13].mxu1 }
 0x1af   :  { %v4678_v51 = vpop.f32.mrb[14].mxu1 }
 0x1b0   :  { %v4682_v34 = vpop.f32.mrb[15].mxu1 }
 0x1b5   :  { %v2084_v38 = vpop.f32.mrb[16].mxu1 }
 0x1b6   :  { %v2448_v61 = vpop.f32.mrb[0].mxu0  ;;  %v3027_v41 = vadd.f32 %v2084_v38, %v4680_v32  ;;  %v2086_v3 = vpop.f32.mrb[17].mxu1 }
 0x1b7   :  { %v2996_v42 = vadd.f32 %v2995_v57, %v2448_v61  ;;  %v2450_v5 = vpop.f32.mrb[1].mxu0  ;;  %v3031_v47 = vadd.f32 %v2086_v3, %v4684_v55  ;;  %v2088_v11 = vpop.f32.mrb[18].mxu1 }
 0x1b8   :  { %v2998_v8 = vadd.f32 %v2997_v35, %v2450_v5  ;;  %v2452_v15 = vpop.f32.mrb[2].mxu0  ;;  %v3035_v50 = vadd.f32 %v2088_v11, %v4680_v32  ;;  %v2090_v23 = vpop.f32.mrb[19].mxu1  ;;  %v4693_v30 = vadd.f32 %v3027_v41, %v2286_v59 }
 0x1b9   :  { %v2515_v17 = vmax.f32 %v2996_v42, 0.0  ;;  %v3000_v20 = vadd.f32 %v2999_v63, %v2452_v15  ;;  %v2454_v27 = vpop.f32.mrb[3].mxu0  ;;  %v3039_v40 = vadd.f32 %v2090_v23, %v4684_v55  ;;  %v4696_v48 = vadd.f32 %v3031_v47, %v2288_v60 }
 0x1ba   :  { %v2516_v36 = vmax.f32 %v2998_v8, 0.0  ;;  %v3002_v46 = vadd.f32 %v3001_v44, %v2454_v27  ;;  %v4698_v53 = vadd.f32 %v3035_v50, %v2290_v62  ;;  %v3007_v60 = vadd.f32 %v2058_v22, %v4680_v32 }
 0x1bb   :  { %v2517_v52 = vmax.f32 %v3000_v20, 0.0  ;;  %v4700_v58 = vadd.f32 %v3039_v40, %v2292_v0  ;;  %v3009_v0 = vadd.f32 %v2060_v33, %v4684_v55  ;;  %v3013_v8 = vadd.f32 %v4665_v37, %v4684_v55 }
 0x1bc   :  { %v2950_v54 = vpack.c.bf16 %v2516_v36, %v2515_v17  ;;  %v2518_v56 = vmax.f32 %v3002_v46, 0.0 }
 0x1bd   :  { %v2094_v13 = vpop.f32.mrb[20].mxu1 }
 0x1be   :  { %2621 = vst [vmem:[%s4798_s3] sm:$0xff] %v2950_v54  ;;  %v2951_v59 = vpack.c.bf16 %v2518_v56, %v2517_v52  ;;  %v2458_v14 = vpop.f32.mrb[4].mxu0  ;;  %v3043_v62 = vadd.f32 %v2094_v13, %v4680_v32  ;;  %v2096_v18 = vpop.f32.mrb[21].mxu1 }
 0x1bf   :  { %v3004_v16 = vadd.f32 %v3003_v10, %v2458_v14  ;;  %v2460_v24 = vpop.f32.mrb[5].mxu0  ;;  %v3047_v19 = vadd.f32 %v2096_v18, %v4684_v55  ;;  %v2098_v26 = vpop.f32.mrb[22].mxu1  ;;  %v3019_v14 = vadd.f32 %v4674_v31, %v4680_v32 }
 0x1c0   :  { %2622 = vst [vmem:[%s4798_s3 + $0x8] sm:$0xff] %v2951_v59  ;;  %v3006_v21 = vadd.f32 %v3005_v12, %v2460_v24  ;;  %v2462_v43 = vpop.f32.mrb[6].mxu0  ;;  %v3051_v29 = vadd.f32 %v2098_v26, %v4680_v32  ;;  %v2100_v57 = vpop.f32.mrb[23].mxu1  ;;  %v4716_v38 = vadd.f32 %v3043_v62, %v4651_v1  ;;  %v3011_v1 = vadd.f32 %v4663_v25, %v4680_v32 }
 0x1c1   :  { %v2519_v45 = vmax.f32 %v3004_v16, 0.0  ;;  %v3008_v22 = vadd.f32 %v3007_v60, %v2462_v43  ;;  %v2464_v35 = vpop.f32.mrb[7].mxu0  ;;  %v3055_v33 = vadd.f32 %v2100_v57, %v4684_v55  ;;  %v4720_v41 = vadd.f32 %v3047_v19, %v4653_v2 }
 0x1c2   :  { %v2520_v61 = vmax.f32 %v3006_v21, 0.0  ;;  %v3010_v63 = vadd.f32 %v3009_v0, %v2464_v35  ;;  %v4723_v3 = vadd.f32 %v3051_v29, %v4655_v4  ;;  %v3015_v4 = vadd.f32 %v4667_v39, %v4680_v32 }
 0x1c3   :  { %v2521_v42 = vmax.f32 %v3008_v22, 0.0  ;;  %v4726_v47 = vadd.f32 %v3055_v33, %v4657_v6  ;;  %v3017_v25 = vadd.f32 %v4669_v28, %v4684_v55  ;;  %v3021_v60 = vadd.f32 %v4676_v49, %v4684_v55 }
 0x1c4   :  { %v2952_v5 = vpack.c.bf16 %v2520_v61, %v2519_v45  ;;  %v2522_v44 = vmax.f32 %v3010_v63, 0.0  ;;  %v3023_v16 = vadd.f32 %v4678_v51, %v4680_v32  ;;  %v3025_v24 = vadd.f32 %v4682_v34, %v4684_v55 }
 0x1c5   :  { %v2104_v11 = vpop.f32.mrb[24].mxu1 }
 0x1c6   :  { %2623 = vst [vmem:[%s4798_s3 + $0x10] sm:$0xff] %v2952_v5  ;;  %v2953_v2 = vpack.c.bf16 %v2522_v44, %v2521_v42  ;;  %v2468_v15 = vpop.f32.mrb[8].mxu0  ;;  %v3059_v17 = vadd.f32 %v2104_v11, %v4680_v32  ;;  %v2106_v50 = vpop.f32.mrb[25].mxu1 }
 0x1c7   :  { %v3012_v6 = vadd.f32 %v3011_v1, %v2468_v15  ;;  %v2470_v20 = vpop.f32.mrb[9].mxu0  ;;  %v3063_v37 = vadd.f32 %v2106_v50, %v4684_v55  ;;  %v2108_v27 = vpop.f32.mrb[26].mxu1 }
 0x1c8   :  { %2624 = vst [vmem:[%s4798_s3 + $0x18] sm:$0xff] %v2953_v2  ;;  %v3014_v23 = vadd.f32 %v3013_v8, %v2470_v20  ;;  %v2472_v36 = vpop.f32.mrb[10].mxu0  ;;  %v2109_v39 = vpop.f32.mrb[27].mxu1  ;;  %v4745_v54 = vadd.f32 %v3059_v17, %v4659_v7 }
 0x1c9   :  { %v2523_v40 = vmax.f32 %v3012_v6, 0.0  ;;  %v3016_v46 = vadd.f32 %v3015_v4, %v2472_v36  ;;  %v2474_v52 = vpop.f32.mrb[11].mxu0  ;;  %v4748_v28 = vadd.f32 %v3063_v37, %v4661_v9 }
 0x1ca   :  { %v2524_v56 = vmax.f32 %v3014_v23, 0.0  ;;  %v3018_v10 = vadd.f32 %v3017_v25, %v2474_v52 }
 0x1cb   :  { %v2525_v12 = vmax.f32 %v3016_v46, 0.0 }
 0x1cc   :  { %v2954_v59 = vpack.c.bf16 %v2524_v56, %v2523_v40  ;;  %v2526_v13 = vmax.f32 %v3018_v10, 0.0 }
 0x1ce   :  { %2625 = vst [vmem:[%s4798_s3 + $0x20] sm:$0xff] %v2954_v59  ;;  %v2955_v7 = vpack.c.bf16 %v2526_v13, %v2525_v12  ;;  %v2478_v62 = vpop.f32.mrb[12].mxu0 }
 0x1cf   :  { %v3020_v9 = vadd.f32 %v3019_v14, %v2478_v62  ;;  %v2480_v18 = vpop.f32.mrb[13].mxu0 }
 0x1d0   :  { %2626 = vst [vmem:[%s4798_s3 + $0x28] sm:$0xff] %v2955_v7  ;;  %v3022_v31 = vadd.f32 %v3021_v60, %v2480_v18  ;;  %v2482_v49 = vpop.f32.mrb[14].mxu0 }
 0x1d1   :  { %v2527_v0 = vmax.f32 %v3020_v9, 0.0  ;;  %v3024_v19 = vadd.f32 %v3023_v16, %v2482_v49  ;;  %v2484_v21 = vpop.f32.mrb[15].mxu0 }
 0x1d2   :  { %v2528_v26 = vmax.f32 %v3022_v31, 0.0  ;;  %v3026_v43 = vadd.f32 %v3025_v24, %v2484_v21 }
 0x1d3   :  { %v2529_v45 = vmax.f32 %v3024_v19, 0.0 }
 0x1d4   :  { %v2956_v29 = vpack.c.bf16 %v2528_v26, %v2527_v0  ;;  %v2530_v22 = vmax.f32 %v3026_v43, 0.0 }
 0x1d5   :  { %v2387_v32 = vpop.f32.mrb[28].mxu1 }
 0x1d6   :  { %2627 = vst [vmem:[%s4798_s3 + $0x30] sm:$0xff] %v2956_v29  ;;  %v2957_v51 = vpack.c.bf16 %v2530_v22, %v2529_v45  ;;  %v2488_v34 = vpop.f32.mrb[28].mxu0  ;;  %v3029_v55 = vadd.f32 %v4693_v30, %v2387_v32  ;;  %v2389_v57 = vpop.f32.mrb[29].mxu1 }
 0x1d7   :  { %v2490_v35 = vpop.f32.mrb[29].mxu0  ;;  %v3033_v61 = vadd.f32 %v4696_v48, %v2389_v57  ;;  %v2391_v33 = vpop.f32.mrb[30].mxu1 }
 0x1d8   :  { %2628 = vst [vmem:[%s4798_s3 + $0x38] sm:$0xff] %v2957_v51  ;;  %v2492_v63 = vpop.f32.mrb[30].mxu0  ;;  %v3030_v42 = vadd.f32 %v3029_v55, %v2488_v34  ;;  %v3037_v5 = vadd.f32 %v4698_v53, %v2391_v33  ;;  %v2393_v44 = vpop.f32.mrb[31].mxu1 }
 0x1d9   :  { %v2494_v1 = vpop.f32.mrb[31].mxu0  ;;  %v3034_v8 = vadd.f32 %v3033_v61, %v2490_v35  ;;  %v3041_v2 = vadd.f32 %v4700_v58, %v2393_v44 }
 0x1da   :  { %v2531_v11 = vmax.f32 %v3030_v42, 0.0  ;;  %v3038_v30 = vadd.f32 %v3037_v5, %v2492_v63 }
 0x1db   :  { %v2532_v15 = vmax.f32 %v3034_v8, 0.0  ;;  %v3042_v4 = vadd.f32 %v3041_v2, %v2494_v1 }
 0x1dc   :  { %v2533_v17 = vmax.f32 %v3038_v30, 0.0 }
 0x1dd   :  { %v2958_v6 = vpack.c.bf16 %v2532_v15, %v2531_v11  ;;  %v2534_v50 = vmax.f32 %v3042_v4, 0.0  ;;  %v2397_v20 = vpop.f32.mrb[32].mxu1 }
 0x1de   :  { %v2498_v25 = vpop.f32.mrb[32].mxu0  ;;  %v3045_v48 = vadd.f32 %v4716_v38, %v2397_v20  ;;  %v2399_v37 = vpop.f32.mrb[33].mxu1 }
 0x1df   :  { %v2500_v23 = vpop.f32.mrb[33].mxu0  ;;  %2629 = vst [vmem:[%s4798_s3 + $0x40] sm:$0xff] %v2958_v6  ;;  %v2959_v53 = vpack.c.bf16 %v2534_v50, %v2533_v17  ;;  %v3049_v58 = vadd.f32 %v4720_v41, %v2399_v37  ;;  %v2401_v27 = vpop.f32.mrb[34].mxu1 }
 0x1e0   :  { %v2502_v36 = vpop.f32.mrb[34].mxu0  ;;  %v3046_v40 = vadd.f32 %v3045_v48, %v2498_v25  ;;  %v3053_v46 = vadd.f32 %v4723_v3, %v2401_v27  ;;  %v2403_v39 = vpop.f32.mrb[35].mxu1 }
 0x1e1   :  { %v2504_v52 = vpop.f32.mrb[35].mxu0  ;;  %2630 = vst [vmem:[%s4798_s3 + $0x48] sm:$0xff] %v2959_v53  ;;  %v3050_v38 = vadd.f32 %v3049_v58, %v2500_v23  ;;  %v3057_v56 = vadd.f32 %v4726_v47, %v2403_v39 }
 0x1e2   :  { %v2535_v10 = vmax.f32 %v3046_v40, 0.0  ;;  %v3054_v12 = vadd.f32 %v3053_v46, %v2502_v36 }
 0x1e3   :  { %v2536_v59 = vmax.f32 %v3050_v38, 0.0  ;;  %v3058_v13 = vadd.f32 %v3057_v56, %v2504_v52 }
 0x1e4   :  { %v2537_v14 = vmax.f32 %v3054_v12, 0.0 }
 0x1e5   :  { %v2960_v41 = vpack.c.bf16 %v2536_v59, %v2535_v10  ;;  %v2538_v60 = vmax.f32 %v3058_v13, 0.0  ;;  %v2407_v7 = vpop.f32.mrb[36].mxu1 }
 0x1e6   :  { %v2508_v62 = vpop.f32.mrb[36].mxu0  ;;  %v3061_v3 = vadd.f32 %v4745_v54, %v2407_v7  ;;  %v2409_v16 = vpop.f32.mrb[37].mxu1 }
 0x1e7   :  { %v2510_v9 = vpop.f32.mrb[37].mxu0  ;;  %2631 = vst [vmem:[%s4798_s3 + $0x50] sm:$0xff] %v2960_v41  ;;  %v2961_v18 = vpack.c.bf16 %v2538_v60, %v2537_v14  ;;  %v3065_v47 = vadd.f32 %v4748_v28, %v2409_v16  ;;  %v2411_v24 = vpop.f32.mrb[38].mxu1 }
 0x1e8   :  { %v2512_v31 = vpop.f32.mrb[38].mxu0  ;;  %v3062_v49 = vadd.f32 %v3061_v3, %v2508_v62  ;;  %v2412_v0 = vpop.f32.mrb[39].mxu1 }
 0x1e9   :  { %v2513_v19 = vpop.f32.mrb[39].mxu0  ;;  %2632 = vst [vmem:[%s4798_s3 + $0x58] sm:$0xff] %v2961_v18  ;;  %v3066_v21 = vadd.f32 %v3065_v47, %v2510_v9 }
 0x1ea   :  { %v2539_v54 = vmax.f32 %v3062_v49, 0.0 }
 0x1eb   :  { %v2540_v26 = vmax.f32 %v3066_v21, 0.0 }
 0x1ed   :  { %v2962_v43 = vpack.c.bf16 %v2540_v26, %v2539_v54 }
 0x1ef   :  { %2633 = vst [vmem:[%s4798_s3 + $0x60] sm:$0xff] %v2962_v43 }

// kernel: features_forward.11
= control target key start
LH: loop header
LB: loop body
LE: loop exit
PB: predicated region body
PF: predicated region fallthrough
CT: control target
= control target key end

     0   :  { %vm36_vm0 = vcmask 1043456   ;;  %vm37_vm1 = vcmask 523268   ;;  %s316_s0 = inlined_call_operand.vmem [shape: bf16[9,24,192], index: 0, kind: input, shape index: {}]   ;;  %s317_s1 = inlined_call_operand.vmem [shape: bf16[24,192], index: 1, kind: output, shape index: {}]  }
   0x1   :  { %v9_v0 = vld [vmem:[%s316_s0] sm:$0xff]  ;;  %v12_v1 = vld [vmem:[%s316_s0 + $0x18] sm:$0xff]  ;;  %v15_v2 = vld [vmem:[%s316_s0 + $0x30] sm:$0xff] }
   0x2   :  { %v18_v3 = vld [vmem:[%s316_s0 + $0x48] sm:$0xff]  ;;  %v21_v4 = vld [vmem:[%s316_s0 + $0x60] sm:$0xff]  ;;  %v24_v5 = vld [vmem:[%s316_s0 + $0x78] sm:$0xff] }
   0x3   :  { %v27_v6 = vld [vmem:[%s316_s0 + $0x90] sm:$0xff]  ;;  %v30_v7 = vld [vmem:[%s316_s0 + $0xa8] sm:$0xff]  ;;  %v33_v8 = vld [vmem:[%s316_s0 + $0xc0] sm:$0xff] }
   0x4   :  { %vm189_vm2 = vmor %vm37_vm1, %vm36_vm0  ;;  %v10_v10 = vld [vmem:[%s316_s0 + $0x8] sm:$0xff]  ;;  %v13_v11 = vld [vmem:[%s316_s0 + $0x20] sm:$0xff] }
   0x5   :  { %v41_v12 = vsel %vm189_vm2, %v9_v0, 4286644096  ;;  %v44_v13 = vsel %vm189_vm2, %v12_v1, 4286644096  ;;  %v47_v14 = vsel %vm189_vm2, %v15_v2, 4286644096 }
   0x6   :  { %v49_v15 = vmax.bf16 %v47_v14, %v41_v12  ;;  %v51_v16 = vsel %vm189_vm2, %v18_v3, 4286644096  ;;  %v55_v17 = vsel %vm189_vm2, %v21_v4, 4286644096  ;;  %v59_v18 = vsel %vm189_vm2, %v24_v5, 4286644096 }
   0x7   :  { %v53_v19 = vmax.bf16 %v51_v16, %v44_v13  ;;  %v63_v20 = vsel %vm189_vm2, %v27_v6, 4286644096  ;;  %v67_v21 = vsel %vm189_vm2, %v30_v7, 4286644096  ;;  %v71_v22 = vsel %vm189_vm2, %v33_v8, 4286644096 }
   0x8   :  { %v57_v23 = vmax.bf16 %v55_v17, %v49_v15  ;;  %v16_v24 = vld [vmem:[%s316_s0 + $0x38] sm:$0xff]  ;;  %v19_v25 = vld [vmem:[%s316_s0 + $0x50] sm:$0xff]  ;;  %v22_v26 = vld [vmem:[%s316_s0 + $0x68] sm:$0xff]  ;;  %v76_v27 = vsel %vm189_vm2, %v10_v10, 4286644096 }
   0x9   :  { %v61_v28 = vmax.bf16 %v59_v18, %v53_v19  ;;  %v25_v29 = vld [vmem:[%s316_s0 + $0x80] sm:$0xff]  ;;  %v28_v30 = vld [vmem:[%s316_s0 + $0x98] sm:$0xff]  ;;  %v31_v31 = vld [vmem:[%s316_s0 + $0xb0] sm:$0xff]  ;;  %v79_v32 = vsel %vm189_vm2, %v13_v11, 4286644096 }
   0xa   :  { %v65_v33 = vmax.bf16 %v63_v20, %v57_v23  ;;  %v34_v34 = vld [vmem:[%s316_s0 + $0xc8] sm:$0xff]  ;;  %v82_v35 = vsel %vm189_vm2, %v16_v24, 4286644096  ;;  %v86_v36 = vsel %vm189_vm2, %v19_v25, 4286644096  ;;  %v11_v37 = vld [vmem:[%s316_s0 + $0x10] sm:$0xff] }
   0xb   :  { %v69_v38 = vmax.bf16 %v67_v21, %v61_v28  ;;  %v84_v39 = vmax.bf16 %v82_v35, %v76_v27  ;;  %v88_v40 = vmax.bf16 %v86_v36, %v79_v32  ;;  %v90_v41 = vsel %vm189_vm2, %v22_v26, 4286644096  ;;  %v14_v42 = vld [vmem:[%s316_s0 + $0x28] sm:$0xff]  ;;  %v17_v43 = vld [vmem:[%s316_s0 + $0x40] sm:$0xff]  ;;  %v20_v44 = vld [vmem:[%s316_s0 + $0x58] sm:$0xff] }
   0xc   :  { %v73_v45 = vmax.bf16 %v71_v22, %v65_v33  ;;  %v94_v46 = vsel %vm189_vm2, %v25_v29, 4286644096  ;;  %v98_v47 = vsel %vm189_vm2, %v28_v30, 4286644096  ;;  %v102_v48 = vsel %vm189_vm2, %v31_v31, 4286644096 }
   0xd   :  { %v92_v49 = vmax.bf16 %v90_v41, %v84_v39  ;;  %v96_v50 = vmax.bf16 %v94_v46, %v88_v40  ;;  %v106_v51 = vsel %vm189_vm2, %v34_v34, 4286644096  ;;  %v23_v52 = vld [vmem:[%s316_s0 + $0x70] sm:$0xff]  ;;  %v26_v53 = vld [vmem:[%s316_s0 + $0x88] sm:$0xff]  ;;  %v29_v55 = vld [vmem:[%s316_s0 + $0xa0] sm:$0xff] }
   0xe   :  { %v74_v54 = vmax.bf16 %v73_v45, %v69_v38  ;;  %v32_v56 = vld [vmem:[%s316_s0 + $0xb8] sm:$0xff]  ;;  %v111_v57 = vsel %vm189_vm2, %v11_v37, 4286644096  ;;  %v114_v58 = vsel %vm189_vm2, %v14_v42, 4286644096  ;;  %v35_v63 = vld [vmem:[%s316_s0 + $0xd0] sm:$0xff] }
   0xf   :  { %v100_v59 = vmax.bf16 %v98_v47, %v92_v49  ;;  %v104_v60 = vmax.bf16 %v102_v48, %v96_v50  ;;  %v117_v61 = vsel %vm189_vm2, %v17_v43, 4286644096  ;;  %v121_v62 = vsel %vm189_vm2, %v20_v44, 4286644096 }
  0x10   :  { %145 = vst.msk [vmem:[%s317_s1] sm:$0xff] %vm189_vm2, %v74_v54  ;;  %v119_v0 = vmax.bf16 %v117_v61, %v111_v57  ;;  %v123_v1 = vmax.bf16 %v121_v62, %v114_v58  ;;  %v125_v2 = vsel %vm189_vm2, %v23_v52, 4286644096  ;;  %v129_v3 = vsel %vm189_vm2, %v26_v53, 4286644096 }
  0x11   :  { %v108_v4 = vmax.bf16 %v106_v51, %v100_v59  ;;  %v133_v5 = vsel %vm189_vm2, %v29_v55, 4286644096  ;;  %v137_v6 = vsel %vm189_vm2, %v32_v56, 4286644096  ;;  %v141_v11 = vsel %vm189_vm2, %v35_v63, 4286644096 }
  0x12   :  { %v127_v7 = vmax.bf16 %v125_v2, %v119_v0  ;;  %v131_v8 = vmax.bf16 %v129_v3, %v123_v1 }
  0x13   :  { %v109_v10 = vmax.bf16 %v108_v4, %v104_v60 }
  0x14   :  { %v135_v12 = vmax.bf16 %v133_v5, %v127_v7  ;;  %v139_v13 = vmax.bf16 %v137_v6, %v131_v8 }
  0x15   :  { %146 = vst.msk [vmem:[%s317_s1 + $0x8] sm:$0xff] %vm189_vm2, %v109_v10 }
  0x16   :  { %v143_v14 = vmax.bf16 %v141_v11, %v135_v12 }
  0x18   :  { %v144_v15 = vmax.bf16 %v143_v14, %v139_v13 }
  0x1a   :  { %147 = vst.msk [vmem:[%s317_s1 + $0x10] sm:$0xff] %vm189_vm2, %v144_v15 }

// kernel: features_forward.12
= control target key start
LH: loop header
LB: loop body
LE: loop exit
PB: predicated region body
PF: predicated region fallthrough
CT: control target
= control target key end

     0   :  { %s5524_s1 = inlined_call_operand.vmem [shape: bf16[1792,384], index: 1, kind: input, shape index: {}]   ;;  %s5525_s0 = inlined_call_operand.vmem [shape: bf16[24,1792], index: 0, kind: input, shape index: {}]   ;;  %s5526_s2 = inlined_call_operand.vmem [shape: f32[1,384], index: 2, kind: input, shape index: {}]   ;;  %s5527_s3 = inlined_call_operand.vmem [shape: bf16[24,384], index: 3, kind: output, shape index: {}]  }
   0x1   :  { %v3797_v0 = vld [vmem:[%s5524_s1 + $0x4] ss:$12 sps:$4 sm:$0xff]   ;;  %v3801_v2 = vld [vmem:[%s5524_s1] ss:$12 sps:$4 sm:$0xff]   ;;  %v3803_v4 = vld [vmem:[%s5524_s1 + $0x1c] ss:$12 sps:$4 sm:$0xff]  }
   0x2   :  { %v3799_v1 = vld [vmem:[%s5524_s1 + $0x304] ss:$12 sps:$4 sm:$0xff]   ;;  %2412 = vmatprep.subr.bf16.mxu1 %v3797_v0  ;;  %v3802_v3 = vld [vmem:[%s5524_s1 + $0x300] ss:$12 sps:$4 sm:$0xff]   ;;  %v3805_v5 = vld [vmem:[%s5524_s1 + $0x31c] ss:$12 sps:$4 sm:$0xff]  }
   0x3   :  { %2514 = vmatprep.subr.bf16.mxu0 %v3799_v1  ;;  %2413 = vmatpush1.bf16.msra.mxu1 %v3801_v2  ;;  %v3807_v6 = vld [vmem:[%s5524_s1 + $0x18] ss:$12 sps:$4 sm:$0xff]   ;;  %v3809_v8 = vld [vmem:[%s5524_s1 + $0x34] ss:$12 sps:$4 sm:$0xff]   ;;  %v3813_v10 = vld [vmem:[%s5524_s1 + $0x30] ss:$12 sps:$4 sm:$0xff]  }
   0x4   :  { %2515 = vmatpush1.bf16.msra.mxu0 %v3802_v3  ;;  %2414 = vmatprep.subr.bf16.mxu1 %v3803_v4  ;;  %v3808_v7 = vld [vmem:[%s5524_s1 + $0x318] ss:$12 sps:$4 sm:$0xff]   ;;  %v3811_v9 = vld [vmem:[%s5524_s1 + $0x334] ss:$12 sps:$4 sm:$0xff]   ;;  %v3814_v11 = vld [vmem:[%s5524_s1 + $0x330] ss:$12 sps:$4 sm:$0xff]  }
   0x5   :  { %2516 = vmatprep.subr.bf16.mxu0 %v3805_v5  ;;  %v3815_v12 = vld [vmem:[%s5524_s1 + $0x4c] ss:$12 sps:$4 sm:$0xff]   ;;  %v3819_v14 = vld [vmem:[%s5524_s1 + $0x48] ss:$12 sps:$4 sm:$0xff]   ;;  %v3821_v16 = vld [vmem:[%s5524_s1 + $0x64] ss:$12 sps:$4 sm:$0xff]  }
   0x6   :  { %v3817_v13 = vld [vmem:[%s5524_s1 + $0x34c] ss:$12 sps:$4 sm:$0xff]   ;;  %v3820_v15 = vld [vmem:[%s5524_s1 + $0x348] ss:$12 sps:$4 sm:$0xff]   ;;  %v3823_v17 = vld [vmem:[%s5524_s1 + $0x364] ss:$12 sps:$4 sm:$0xff]  }
   0x7   :  { %2415 = vmatpush1.bf16.msra.mxu1 %v3807_v6  ;;  %v3825_v18 = vld [vmem:[%s5524_s1 + $0x60] ss:$12 sps:$4 sm:$0xff]   ;;  %v3827_v20 = vld [vmem:[%s5524_s1 + $0x7c] ss:$12 sps:$4 sm:$0xff]   ;;  %v3831_v22 = vld [vmem:[%s5524_s1 + $0x78] ss:$12 sps:$4 sm:$0xff]  }
   0x8   :  { %2517 = vmatpush1.bf16.msra.mxu0 %v3808_v7  ;;  %2416 = vmatprep.subr.bf16.mxu1 %v3809_v8  ;;  %v3826_v19 = vld [vmem:[%s5524_s1 + $0x360] ss:$12 sps:$4 sm:$0xff]   ;;  %v3829_v21 = vld [vmem:[%s5524_s1 + $0x37c] ss:$12 sps:$4 sm:$0xff]   ;;  %v3832_v23 = vld [vmem:[%s5524_s1 + $0x378] ss:$12 sps:$4 sm:$0xff]  }
   0x9   :  { %2518 = vmatprep.subr.bf16.mxu0 %v3811_v9  ;;  %v3833_v24 = vld [vmem:[%s5524_s1 + $0x94] ss:$12 sps:$4 sm:$0xff]   ;;  %v3837_v26 = vld [vmem:[%s5524_s1 + $0x90] ss:$12 sps:$4 sm:$0xff]   ;;  %v3839_v28 = vld [vmem:[%s5524_s1 + $0xac] ss:$12 sps:$4 sm:$0xff]  }
   0xa   :  { %v3835_v25 = vld [vmem:[%s5524_s1 + $0x394] ss:$12 sps:$4 sm:$0xff]   ;;  %v3838_v27 = vld [vmem:[%s5524_s1 + $0x390] ss:$12 sps:$4 sm:$0xff]   ;;  %v3841_v29 = vld [vmem:[%s5524_s1 + $0x3ac] ss:$12 sps:$4 sm:$0xff]  }
   0xb   :  { %2417 = vmatpush1.bf16.msra.mxu1 %v3813_v10  ;;  %v3843_v30 = vld [vmem:[%s5524_s1 + $0xa8] ss:$12 sps:$4 sm:$0xff]   ;;  %v3845_v32 = vld [vmem:[%s5524_s1 + $0xc4] ss:$12 sps:$4 sm:$0xff]   ;;  %v3849_v34 = vld [vmem:[%s5524_s1 + $0xc0] ss:$12 sps:$4 sm:$0xff]  }
   0xc   :  { %2519 = vmatpush1.bf16.msra.mxu0 %v3814_v11  ;;  %2418 = vmatprep.subr.bf16.mxu1 %v3815_v12  ;;  %v3844_v31 = vld [vmem:[%s5524_s1 + $0x3a8] ss:$12 sps:$4 sm:$0xff]   ;;  %v3847_v33 = vld [vmem:[%s5524_s1 + $0x3c4] ss:$12 sps:$4 sm:$0xff]   ;;  %v3850_v35 = vld [vmem:[%s5524_s1 + $0x3c0] ss:$12 sps:$4 sm:$0xff]  }
   0xd   :  { %2520 = vmatprep.subr.bf16.mxu0 %v3817_v13  ;;  %v3851_v36 = vld [vmem:[%s5524_s1 + $0xdc] ss:$12 sps:$4 sm:$0xff]   ;;  %v3855_v38 = vld [vmem:[%s5524_s1 + $0xd8] ss:$12 sps:$4 sm:$0xff]   ;;  %v3857_v40 = vld [vmem:[%s5524_s1 + $0xf4] ss:$12 sps:$4 sm:$0xff]  }
   0xe   :  { %v3853_v37 = vld [vmem:[%s5524_s1 + $0x3dc] ss:$12 sps:$4 sm:$0xff]   ;;  %v3856_v39 = vld [vmem:[%s5524_s1 + $0x3d8] ss:$12 sps:$4 sm:$0xff]   ;;  %v3859_v41 = vld [vmem:[%s5524_s1 + $0x3f4] ss:$12 sps:$4 sm:$0xff]  }
   0xf   :  { %2419 = vmatpush1.bf16.msra.mxu1 %v3819_v14  ;;  %v3861_v42 = vld [vmem:[%s5524_s1 + $0xf0] ss:$12 sps:$4 sm:$0xff]   ;;  %v3863_v44 = vld [vmem:[%s5524_s1 + $0x10c] ss:$12 sps:$4 sm:$0xff]   ;;  %v3867_v46 = vld [vmem:[%s5524_s1 + $0x108] ss:$12 sps:$4 sm:$0xff]  }
  0x10   :  { %2521 = vmatpush1.bf16.msra.mxu0 %v3820_v15  ;;  %2420 = vmatprep.subr.bf16.mxu1 %v3821_v16  ;;  %v3862_v43 = vld [vmem:[%s5524_s1 + $0x3f0] ss:$12 sps:$4 sm:$0xff]   ;;  %v3865_v45 = vld [vmem:[%s5524_s1 + $0x40c] ss:$12 sps:$4 sm:$0xff]   ;;  %v3868_v47 = vld [vmem:[%s5524_s1 + $0x408] ss:$12 sps:$4 sm:$0xff]  }
  0x11   :  { %2522 = vmatprep.subr.bf16.mxu0 %v3823_v17  ;;  %v4451_v48 = vld [vmem:[%s5525_s0 + $0x4] ss:$56 sps:$4 sm:$0xff]   ;;  %v3901_v51 = vld [vmem:[%s5525_s0 + $0x14] ss:$56 sps:$4 sm:$0xff]   ;;  %v4514_v4 = vld [vmem:[%s5525_s0] ss:$56 sps:$4 sm:$0xff]  }
  0x12   :  { %v3869_v49 = vld [vmem:[%s5524_s1 + $0x124] ss:$12 sps:$4 sm:$0xff]   ;;  %2444 = vmatprep.mubr.bf16.mxu1 %v4451_v48  ;;  %v3873_v52 = vld [vmem:[%s5524_s1 + $0x120] ss:$12 sps:$4 sm:$0xff]   ;;  %v3875_v54 = vld [vmem:[%s5524_s1 + $0x13c] ss:$12 sps:$4 sm:$0xff]   ;;  %2546 = vmatprep.mubr.bf16.mxu0 %v3901_v51 }
  0x13   :  { %2421 = vmatpush1.bf16.msra.mxu1 %v3825_v18  ;;  %v3871_v50 = vld [vmem:[%s5524_s1 + $0x424] ss:$12 sps:$4 sm:$0xff]   ;;  %v3874_v53 = vld [vmem:[%s5524_s1 + $0x420] ss:$12 sps:$4 sm:$0xff]   ;;  %v3877_v55 = vld [vmem:[%s5524_s1 + $0x43c] ss:$12 sps:$4 sm:$0xff]  }
  0x14   :  { %2523 = vmatpush1.bf16.msra.mxu0 %v3826_v19  ;;  %2422 = vmatprep.subr.bf16.mxu1 %v3827_v20  ;;  %v3879_v56 = vld [vmem:[%s5524_s1 + $0x138] ss:$12 sps:$4 sm:$0xff]   ;;  %v3881_v58 = vld [vmem:[%s5524_s1 + $0x154] ss:$12 sps:$4 sm:$0xff]   ;;  %v3885_v60 = vld [vmem:[%s5524_s1 + $0x150] ss:$12 sps:$4 sm:$0xff]  }
  0x15   :  { %2524 = vmatprep.subr.bf16.mxu0 %v3829_v21  ;;  %v3880_v57 = vld [vmem:[%s5524_s1 + $0x438] ss:$12 sps:$4 sm:$0xff]   ;;  %v3883_v59 = vld [vmem:[%s5524_s1 + $0x454] ss:$12 sps:$4 sm:$0xff]   ;;  %v3886_v61 = vld [vmem:[%s5524_s1 + $0x450] ss:$12 sps:$4 sm:$0xff]  }
  0x16   :  { %v3887_v62 = vld [vmem:[%s5524_s1 + $0x16c] ss:$12 sps:$4 sm:$0xff]   ;;  %v3891_v0 = vld [vmem:[%s5524_s1 + $0x168] ss:$12 sps:$4 sm:$0xff]   ;;  %v3898_v2 = vld [vmem:[%s5524_s1 + $0x184] ss:$12 sps:$4 sm:$0xff]  }
  0x17   :  { %2423 = vmatpush1.bf16.msra.mxu1 %v3831_v22  ;;  %v3889_v63 = vld [vmem:[%s5524_s1 + $0x46c] ss:$12 sps:$4 sm:$0xff]   ;;  %v3892_v1 = vld [vmem:[%s5524_s1 + $0x468] ss:$12 sps:$4 sm:$0xff]   ;;  %v3904_v3 = vld [vmem:[%s5524_s1 + $0x484] ss:$12 sps:$4 sm:$0xff]  }
  0x18   :  { %2525 = vmatpush1.bf16.msra.mxu0 %v3832_v23  ;;  %2424 = vmatprep.subr.bf16.mxu1 %v3833_v24  ;;  %v3896_v5 = vld [vmem:[%s5524_s1 + $0x180] ss:$12 sps:$4 sm:$0xff]   ;;  %v3899_v6 = vld [vmem:[%s5525_s0 + $0x10] ss:$56 sps:$4 sm:$0xff]   ;;  %v3905_v10 = vld [vmem:[%s5524_s1 + $0x198] ss:$12 sps:$4 sm:$0xff]  }
  0x19   :  { %2526 = vmatprep.subr.bf16.mxu0 %v3835_v25  ;;  %v3902_v7 = vld [vmem:[%s5524_s1 + $0x480] ss:$12 sps:$4 sm:$0xff]   ;;  %v3907_v8 = vld [vmem:[%s5524_s1 + $0x19c] ss:$12 sps:$4 sm:$0xff]   ;;  %v3908_v11 = vld [vmem:[%s5524_s1 + $0x498] ss:$12 sps:$4 sm:$0xff]  }
  0x1a   :  { %v3910_v9 = vld [vmem:[%s5524_s1 + $0x49c] ss:$12 sps:$4 sm:$0xff]   ;;  %v3913_v12 = vld [vmem:[%s5524_s1 + $0x1b4] ss:$12 sps:$4 sm:$0xff]   ;;  %v3919_v16 = vld [vmem:[%s5524_s1 + $0x1cc] ss:$12 sps:$4 sm:$0xff]  }
  0x1b   :  { %2425 = vmatpush1.bf16.msra.mxu1 %v3837_v26  ;;  %v3916_v13 = vld [vmem:[%s5524_s1 + $0x4b4] ss:$12 sps:$4 sm:$0xff]   ;;  %v3911_v14 = vld [vmem:[%s5524_s1 + $0x1b0] ss:$12 sps:$4 sm:$0xff]   ;;  %v3922_v17 = vld [vmem:[%s5524_s1 + $0x4cc] ss:$12 sps:$4 sm:$0xff]  }
  0x1c   :  { %2527 = vmatpush1.bf16.msra.mxu0 %v3838_v27  ;;  %2426 = vmatprep.subr.bf16.mxu1 %v3839_v28  ;;  %v3914_v15 = vld [vmem:[%s5524_s1 + $0x4b0] ss:$12 sps:$4 sm:$0xff]   ;;  %v3917_v18 = vld [vmem:[%s5524_s1 + $0x1c8] ss:$12 sps:$4 sm:$0xff]   ;;  %v3923_v22 = vld [vmem:[%s5524_s1 + $0x1e0] ss:$12 sps:$4 sm:$0xff]  }
  0x1d   :  { %2528 = vmatprep.subr.bf16.mxu0 %v3841_v29  ;;  %v3920_v19 = vld [vmem:[%s5524_s1 + $0x4c8] ss:$12 sps:$4 sm:$0xff]   ;;  %v3925_v20 = vld [vmem:[%s5524_s1 + $0x1e4] ss:$12 sps:$4 sm:$0xff]   ;;  %v3926_v23 = vld [vmem:[%s5524_s1 + $0x4e0] ss:$12 sps:$4 sm:$0xff]  }
  0x1e   :  { %v3928_v21 = vld [vmem:[%s5524_s1 + $0x4e4] ss:$12 sps:$4 sm:$0xff]   ;;  %v3931_v24 = vld [vmem:[%s5524_s1 + $0x1fc] ss:$12 sps:$4 sm:$0xff]  }
  0x1f   :  { %2427 = vmatpush1.bf16.msra.mxu1 %v3843_v30  ;;  %v3934_v25 = vld [vmem:[%s5524_s1 + $0x4fc] ss:$12 sps:$4 sm:$0xff]   ;;  %v29_v26 = vld [vmem:[%s5525_s0 + $0x70] sm:$0xff]  ;;  %v3929_v27 = vld [vmem:[%s5524_s1 + $0x1f8] ss:$12 sps:$4 sm:$0xff]  }
  0x20   :  { %2529 = vmatpush1.bf16.msra.mxu0 %v3844_v31  ;;  %2428 = vmatprep.subr.bf16.mxu1 %v3845_v32  ;;  %v4586_v28 = vcombine.high %v29_v26, %v29_v26  ;;  %v4588_v29 = vcombine.low %v29_v26, %v29_v26  ;;  %v3932_v30 = vld [vmem:[%s5524_s1 + $0x4f8] ss:$12 sps:$4 sm:$0xff]   ;;  %v3937_v32 = vld [vmem:[%s5524_s1 + $0x214] ss:$12 sps:$4 sm:$0xff]  }
  0x21   :  { %2530 = vmatprep.subr.bf16.mxu0 %v3847_v33  ;;  %v31_v31 = vld [vmem:[%s5525_s0 + $0x80] sm:$0xff] }
  0x22   :  { %v3940_v33 = vld [vmem:[%s5524_s1 + $0x514] ss:$12 sps:$4 sm:$0xff]   ;;  %v3953_v51 = vld [vmem:[%s5524_s1 + $0x258] ss:$12 sps:$4 sm:$0xff]  }
  0x23   :  { %2429 = vmatpush1.bf16.msra.mxu1 %v3849_v34  ;;  %v4602_v34 = vcombine.high %v31_v31, %v31_v31  ;;  %v4019_v26 = vld [vmem:[%s5524_s1 + $0x634] ss:$12 sps:$4 sm:$0xff]  }
  0x24   :  { %2531 = vmatpush1.bf16.msra.mxu0 %v3850_v35  ;;  %2430 = vmatprep.subr.bf16.mxu1 %v3851_v36  ;;  %v4605_v35 = vcombine.low %v31_v31, %v31_v31  ;;  %v3935_v36 = vld [vmem:[%s5524_s1 + $0x210] ss:$12 sps:$4 sm:$0xff]  }
  0x25   :  { %2532 = vmatprep.subr.bf16.mxu0 %v3853_v37  ;;  %v3938_v37 = vld [vmem:[%s5524_s1 + $0x510] ss:$12 sps:$4 sm:$0xff]  }
  0x27   :  { %2431 = vmatpush1.bf16.msra.mxu1 %v3855_v38  ;;  %v3943_v38 = vld [vmem:[%s5524_s1 + $0x22c] ss:$12 sps:$4 sm:$0xff]  }
  0x28   :  { %2533 = vmatpush1.bf16.msra.mxu0 %v3856_v39  ;;  %2432 = vmatprep.subr.bf16.mxu1 %v3857_v40  ;;  %v3946_v39 = vld [vmem:[%s5524_s1 + $0x52c] ss:$12 sps:$4 sm:$0xff]  }
  0x29   :  { %2534 = vmatprep.subr.bf16.mxu0 %v3859_v41  ;;  %v4624_v40 = vld [vmem:[%s5525_s0 + $0xc] ss:$56 sps:$4 sm:$0xff]   ;;  %v3941_v41 = vld [vmem:[%s5524_s1 + $0x228] ss:$12 sps:$4 sm:$0xff]  }
  0x2b   :  { %2433 = vmatpush1.bf16.msra.mxu1 %v3861_v42  ;;  %v4004_v42 = vld [vmem:[%s5525_s0 + $0x1c] ss:$56 sps:$4 sm:$0xff]  }
  0x2c   :  { %2535 = vmatpush1.bf16.msra.mxu0 %v3862_v43  ;;  %2434 = vmatprep.subr.bf16.mxu1 %v3863_v44  ;;  %v3944_v43 = vld [vmem:[%s5524_s1 + $0x528] ss:$12 sps:$4 sm:$0xff]   ;;  %v3949_v44 = vld [vmem:[%s5524_s1 + $0x244] ss:$12 sps:$4 sm:$0xff]  }
  0x2d   :  { %2536 = vmatprep.subr.bf16.mxu0 %v3865_v45  ;;  %v3952_v45 = vld [vmem:[%s5524_s1 + $0x544] ss:$12 sps:$4 sm:$0xff]  }
  0x2f   :  { %2435 = vmatpush1.bf16.msra.mxu1 %v3867_v46  ;;  %v3947_v46 = vld [vmem:[%s5524_s1 + $0x240] ss:$12 sps:$4 sm:$0xff]  }
  0x30   :  { %2537 = vmatpush1.bf16.msra.mxu0 %v3868_v47  ;;  %2436 = vmatprep.subr.bf16.mxu1 %v3869_v49  ;;  %v3950_v47 = vld [vmem:[%s5524_s1 + $0x540] ss:$12 sps:$4 sm:$0xff]   ;;  %v3955_v49 = vld [vmem:[%s5524_s1 + $0x25c] ss:$12 sps:$4 sm:$0xff]  }
  0x31   :  { %2538 = vmatprep.subr.bf16.mxu0 %v3871_v50  ;;  %v3958_v50 = vld [vmem:[%s5524_s1 + $0x55c] ss:$12 sps:$4 sm:$0xff]  }
  0x33   :  { %2437 = vmatpush1.bf16.msra.mxu1 %v3873_v52  ;;  %v3956_v52 = vld [vmem:[%s5524_s1 + $0x558] ss:$12 sps:$4 sm:$0xff]  }
  0x34   :  { %2539 = vmatpush1.bf16.msra.mxu0 %v3874_v53  ;;  %2438 = vmatprep.subr.bf16.mxu1 %v3875_v54  ;;  %v3961_v53 = vld [vmem:[%s5524_s1 + $0x274] ss:$12 sps:$4 sm:$0xff]  }
  0x35   :  { %2540 = vmatprep.subr.bf16.mxu0 %v3877_v55  ;;  %v3964_v54 = vld [vmem:[%s5524_s1 + $0x574] ss:$12 sps:$4 sm:$0xff]   ;;  %v3959_v55 = vld [vmem:[%s5524_s1 + $0x270] ss:$12 sps:$4 sm:$0xff]  }
  0x37   :  { %2439 = vmatpush1.bf16.msra.mxu1 %v3879_v56  ;;  %v3962_v56 = vld [vmem:[%s5524_s1 + $0x570] ss:$12 sps:$4 sm:$0xff]  }
  0x38   :  { %2541 = vmatpush1.bf16.msra.mxu0 %v3880_v57  ;;  %2440 = vmatprep.subr.bf16.mxu1 %v3881_v58  ;;  %v3967_v57 = vld [vmem:[%s5524_s1 + $0x28c] ss:$12 sps:$4 sm:$0xff]  }
  0x39   :  { %2542 = vmatprep.subr.bf16.mxu0 %v3883_v59  ;;  %v3970_v58 = vld [vmem:[%s5524_s1 + $0x58c] ss:$12 sps:$4 sm:$0xff]   ;;  %v3965_v59 = vld [vmem:[%s5524_s1 + $0x288] ss:$12 sps:$4 sm:$0xff]  }
  0x3b   :  { %2441 = vmatpush1.bf16.msra.mxu1 %v3885_v60  ;;  %v3968_v60 = vld [vmem:[%s5524_s1 + $0x588] ss:$12 sps:$4 sm:$0xff]  }
  0x3c   :  { %2543 = vmatpush1.bf16.msra.mxu0 %v3886_v61  ;;  %2442 = vmatprep.subr.bf16.mxu1 %v3887_v62  ;;  %v3973_v61 = vld [vmem:[%s5524_s1 + $0x2a4] ss:$12 sps:$4 sm:$0xff]  }
  0x3d   :  { %2544 = vmatprep.subr.bf16.mxu0 %v3889_v63  ;;  %v3976_v62 = vld [vmem:[%s5524_s1 + $0x5a4] ss:$12 sps:$4 sm:$0xff]   ;;  %v3971_v63 = vld [vmem:[%s5524_s1 + $0x2a0] ss:$12 sps:$4 sm:$0xff]  }
  0x3f   :  { %2443 = vmatpush1.bf16.msra.mxu1 %v3891_v0  ;;  %v3974_v0 = vld [vmem:[%s5524_s1 + $0x5a0] ss:$12 sps:$4 sm:$0xff]  }
  0x40   :  { %2545 = vmatpush1.bf16.msra.mxu0 %v3892_v1  ;;  %2463 = vmatprep.subr.bf16.mxu1 %v3898_v2  ;;  %v3979_v1 = vld [vmem:[%s5524_s1 + $0x2bc] ss:$12 sps:$4 sm:$0xff]  }
  0x41   :  { %2565 = vmatprep.subr.bf16.mxu0 %v3904_v3  ;;  %v3982_v2 = vld [vmem:[%s5524_s1 + $0x5bc] ss:$12 sps:$4 sm:$0xff]   ;;  %v3977_v3 = vld [vmem:[%s5524_s1 + $0x2b8] ss:$12 sps:$4 sm:$0xff]  }
  0x42   :  { %2445 = vmatmul.mubr.bf16.vlgmr.msra.gmra.mrb[0].mxu1 %v4514_v4 }
  0x43   :  { %2547 = vmatmul.mubr.bf16.vlgmr.msra.gmra.mrb[0].mxu0 %v3899_v6  ;;  %2464 = vmatpush1.bf16.msra.mxu1 %v3896_v5  ;;  %v3980_v5 = vld [vmem:[%s5524_s1 + $0x5b8] ss:$12 sps:$4 sm:$0xff]   ;;  %v3987_v6 = vld [vmem:[%s5524_s1 + $0x2d4] ss:$12 sps:$4 sm:$0xff]  }
  0x44   :  { %2566 = vmatpush1.bf16.msra.mxu0 %v3902_v7  ;;  %2465 = vmatprep.subr.bf16.mxu1 %v3907_v8  ;;  %v3991_v7 = vld [vmem:[%s5524_s1 + $0x5d4] ss:$12 sps:$4 sm:$0xff]   ;;  %v3985_v8 = vld [vmem:[%s5524_s1 + $0x2d0] ss:$12 sps:$4 sm:$0xff]  }
  0x45   :  { %2567 = vmatprep.subr.bf16.mxu0 %v3910_v9  ;;  %2454 = vmatprep.mubr.bf16.mxu1 %v4586_v28  ;;  %v3989_v9 = vld [vmem:[%s5524_s1 + $0x5d0] ss:$12 sps:$4 sm:$0xff]  }
  0x46   :  { %2556 = vmatprep.mubr.bf16.mxu0 %v4602_v34 }
  0x47   :  { %2466 = vmatpush1.bf16.msra.mxu1 %v3905_v10  ;;  %v3995_v10 = vld [vmem:[%s5524_s1 + $0x2ec] ss:$12 sps:$4 sm:$0xff]  }
  0x48   :  { %2568 = vmatpush1.bf16.msra.mxu0 %v3908_v11  ;;  %2467 = vmatprep.subr.bf16.mxu1 %v3913_v12  ;;  %v3998_v11 = vld [vmem:[%s5524_s1 + $0x5ec] ss:$12 sps:$4 sm:$0xff]   ;;  %v3993_v12 = vld [vmem:[%s5524_s1 + $0x2e8] ss:$12 sps:$4 sm:$0xff]  }
  0x49   :  { %2569 = vmatprep.subr.bf16.mxu0 %v3916_v13  ;;  %v3996_v13 = vld [vmem:[%s5524_s1 + $0x5e8] ss:$12 sps:$4 sm:$0xff]  }
  0x4a   :  { %2455 = vmatmul.mubr.bf16.gmra.mrb[4].mxu1 %v4588_v29 }
  0x4b   :  { %2468 = vmatpush1.bf16.msra.mxu1 %v3911_v14  ;;  %2557 = vmatmul.mubr.bf16.gmra.mrb[4].mxu0 %v4605_v35  ;;  %v4007_v14 = vld [vmem:[%s5524_s1 + $0x604] ss:$12 sps:$4 sm:$0xff]  }
  0x4c   :  { %2570 = vmatpush1.bf16.msra.mxu0 %v3914_v15  ;;  %2469 = vmatprep.subr.bf16.mxu1 %v3919_v16  ;;  %v4739_v15 = vld [vmem:[%s5525_s0 + $0x8] ss:$56 sps:$4 sm:$0xff]   ;;  %v4002_v16 = vld [vmem:[%s5525_s0 + $0x18] ss:$56 sps:$4 sm:$0xff]  }
  0x4d   :  { %2571 = vmatprep.subr.bf16.mxu0 %v3922_v17  ;;  %2495 = vmatprep.mubr.bf16.mxu1 %v4624_v40  ;;  %v4008_v17 = vld [vmem:[%s5524_s1 + $0xc8] ss:$12 sps:$4 sm:$0xff]  }
  0x4e   :  { %2597 = vmatprep.mubr.bf16.mxu0 %v4004_v42 }
  0x4f   :  { %2470 = vmatpush1.bf16.msra.mxu1 %v3917_v18  ;;  %v4005_v18 = vld [vmem:[%s5524_s1 + $0x600] ss:$12 sps:$4 sm:$0xff]  }
  0x50   :  { %2572 = vmatpush1.bf16.msra.mxu0 %v3920_v19  ;;  %2471 = vmatprep.subr.bf16.mxu1 %v3925_v20  ;;  %v30_v19 = vld [vmem:[%s5525_s0 + $0x78] sm:$0xff]  ;;  %v4009_v20 = vld [vmem:[%s5524_s1 + $0x8] ss:$12 sps:$4 sm:$0xff]  }
  0x51   :  { %2573 = vmatprep.subr.bf16.mxu0 %v3928_v21  ;;  %v4012_v21 = vld [vmem:[%s5524_s1 + $0x61c] ss:$12 sps:$4 sm:$0xff]   ;;  %v4781_v31 = vcombine.low %v30_v19, %v30_v19 }
  0x53   :  { %2472 = vmatpush1.bf16.msra.mxu1 %v3923_v22  ;;  %v4013_v22 = vld [vmem:[%s5524_s1 + $0xe0] ss:$12 sps:$4 sm:$0xff]  }
  0x54   :  { %2574 = vmatpush1.bf16.msra.mxu0 %v3926_v23  ;;  %2473 = vmatprep.subr.bf16.mxu1 %v3931_v24  ;;  %v4762_v23 = vcombine.high %v30_v19, %v30_v19  ;;  %v4010_v24 = vld [vmem:[%s5524_s1 + $0x618] ss:$12 sps:$4 sm:$0xff]  }
  0x55   :  { %2575 = vmatprep.subr.bf16.mxu0 %v3934_v25  ;;  %v4014_v25 = vld [vmem:[%s5524_s1 + $0x20] ss:$12 sps:$4 sm:$0xff]   ;;  %v4081_v19 = vld [vmem:[%s5524_s1 + $0x2d8] ss:$12 sps:$4 sm:$0xff]  }
  0x57   :  { %2474 = vmatpush1.bf16.msra.mxu1 %v3929_v27  ;;  %v4020_v27 = vld [vmem:[%s5524_s1 + $0xf8] ss:$12 sps:$4 sm:$0xff]  }
  0x58   :  { %2576 = vmatpush1.bf16.msra.mxu0 %v3932_v30  ;;  %2475 = vmatprep.subr.bf16.mxu1 %v3937_v32  ;;  %v4017_v30 = vld [vmem:[%s5524_s1 + $0x630] ss:$12 sps:$4 sm:$0xff]   ;;  %v4021_v32 = vld [vmem:[%s5524_s1 + $0x38] ss:$12 sps:$4 sm:$0xff]  }
  0x59   :  { %2577 = vmatprep.subr.bf16.mxu0 %v3940_v33  ;;  %v4024_v33 = vld [vmem:[%s5524_s1 + $0x64c] ss:$12 sps:$4 sm:$0xff]  }
  0x5b   :  { %2476 = vmatpush1.bf16.msra.mxu1 %v3935_v36  ;;  %v4025_v36 = vld [vmem:[%s5524_s1 + $0x110] ss:$12 sps:$4 sm:$0xff]  }
  0x5c   :  { %2578 = vmatpush1.bf16.msra.mxu0 %v3938_v37  ;;  %2477 = vmatprep.subr.bf16.mxu1 %v3943_v38  ;;  %v32_v37 = vld [vmem:[%s5525_s0 + $0x88] sm:$0xff] }
  0x5d   :  { %2579 = vmatprep.subr.bf16.mxu0 %v3946_v39  ;;  %v4022_v38 = vld [vmem:[%s5524_s1 + $0x648] ss:$12 sps:$4 sm:$0xff]   ;;  %v4026_v39 = vld [vmem:[%s5524_s1 + $0x50] ss:$12 sps:$4 sm:$0xff]   ;;  %v4804_v42 = vcombine.low %v32_v37, %v32_v37 }
  0x5f   :  { %2478 = vmatpush1.bf16.msra.mxu1 %v3941_v41  ;;  %v4802_v41 = vcombine.high %v32_v37, %v32_v37  ;;  %v4099_v37 = vld [vmem:[%s5524_s1 + $0x79c] ss:$12 sps:$4 sm:$0xff]  }
  0x60   :  { %2580 = vmatpush1.bf16.msra.mxu0 %v3944_v43  ;;  %2479 = vmatprep.subr.bf16.mxu1 %v3949_v44  ;;  %v4029_v43 = vld [vmem:[%s5524_s1 + $0x664] ss:$12 sps:$4 sm:$0xff]   ;;  %v4030_v44 = vld [vmem:[%s5524_s1 + $0x128] ss:$12 sps:$4 sm:$0xff]  }
  0x61   :  { %2581 = vmatprep.subr.bf16.mxu0 %v3952_v45  ;;  %v4027_v45 = vld [vmem:[%s5524_s1 + $0x660] ss:$12 sps:$4 sm:$0xff]  }
  0x63   :  { %2480 = vmatpush1.bf16.msra.mxu1 %v3947_v46  ;;  %v4031_v46 = vld [vmem:[%s5524_s1 + $0x68] ss:$12 sps:$4 sm:$0xff]  }
  0x64   :  { %2582 = vmatpush1.bf16.msra.mxu0 %v3950_v47  ;;  %2481 = vmatprep.subr.bf16.mxu1 %v3955_v49  ;;  %v4034_v47 = vld [vmem:[%s5524_s1 + $0x67c] ss:$12 sps:$4 sm:$0xff]  }
  0x65   :  { %2583 = vmatprep.subr.bf16.mxu0 %v3958_v50  ;;  %v4830_v49 = vld [vmem:[%s5525_s0 + $0x24] ss:$56 sps:$4 sm:$0xff]  }
  0x66   :  { %v4032_v50 = vld [vmem:[%s5524_s1 + $0x678] ss:$12 sps:$4 sm:$0xff]  }
  0x67   :  { %2482 = vmatpush1.bf16.msra.mxu1 %v3953_v51  ;;  %v4036_v51 = vld [vmem:[%s5524_s1 + $0x80] ss:$12 sps:$4 sm:$0xff]  }
  0x68   :  { %2584 = vmatpush1.bf16.msra.mxu0 %v3956_v52  ;;  %2483 = vmatprep.subr.bf16.mxu1 %v3961_v53  ;;  %v4039_v52 = vld [vmem:[%s5524_s1 + $0x694] ss:$12 sps:$4 sm:$0xff]   ;;  %v4040_v53 = vld [vmem:[%s5524_s1 + $0x158] ss:$12 sps:$4 sm:$0xff]  }
  0x69   :  { %2585 = vmatprep.subr.bf16.mxu0 %v3964_v54  ;;  %v4037_v54 = vld [vmem:[%s5524_s1 + $0x690] ss:$12 sps:$4 sm:$0xff]  }
  0x6b   :  { %2484 = vmatpush1.bf16.msra.mxu1 %v3959_v55  ;;  %v4041_v55 = vld [vmem:[%s5524_s1 + $0x98] ss:$12 sps:$4 sm:$0xff]  }
  0x6c   :  { %2586 = vmatpush1.bf16.msra.mxu0 %v3962_v56  ;;  %2485 = vmatprep.subr.bf16.mxu1 %v3967_v57  ;;  %v4044_v56 = vld [vmem:[%s5524_s1 + $0x6ac] ss:$12 sps:$4 sm:$0xff]   ;;  %v4045_v57 = vld [vmem:[%s5524_s1 + $0x170] ss:$12 sps:$4 sm:$0xff]  }
  0x6d   :  { %2587 = vmatprep.subr.bf16.mxu0 %v3970_v58  ;;  %v4042_v58 = vld [vmem:[%s5524_s1 + $0x6a8] ss:$12 sps:$4 sm:$0xff]  }
  0x6f   :  { %2486 = vmatpush1.bf16.msra.mxu1 %v3965_v59  ;;  %v4046_v59 = vld [vmem:[%s5524_s1 + $0xb0] ss:$12 sps:$4 sm:$0xff]  }
  0x70   :  { %2588 = vmatpush1.bf16.msra.mxu0 %v3968_v60  ;;  %2487 = vmatprep.subr.bf16.mxu1 %v3973_v61  ;;  %v4049_v60 = vld [vmem:[%s5524_s1 + $0x6c4] ss:$12 sps:$4 sm:$0xff]   ;;  %v4050_v61 = vld [vmem:[%s5524_s1 + $0x248] ss:$12 sps:$4 sm:$0xff]  }
  0x71   :  { %2589 = vmatprep.subr.bf16.mxu0 %v3976_v62  ;;  %v4047_v62 = vld [vmem:[%s5524_s1 + $0x6c0] ss:$12 sps:$4 sm:$0xff]  }
  0x73   :  { %2488 = vmatpush1.bf16.msra.mxu1 %v3971_v63  ;;  %v4051_v63 = vld [vmem:[%s5524_s1 + $0x188] ss:$12 sps:$4 sm:$0xff]  }
  0x74   :  { %2590 = vmatpush1.bf16.msra.mxu0 %v3974_v0  ;;  %2489 = vmatprep.subr.bf16.mxu1 %v3979_v1  ;;  %v4054_v0 = vld [vmem:[%s5524_s1 + $0x6dc] ss:$12 sps:$4 sm:$0xff]   ;;  %v4055_v1 = vld [vmem:[%s5524_s1 + $0x260] ss:$12 sps:$4 sm:$0xff]  }
  0x75   :  { %2591 = vmatprep.subr.bf16.mxu0 %v3982_v2  ;;  %v4052_v2 = vld [vmem:[%s5524_s1 + $0x6d8] ss:$12 sps:$4 sm:$0xff]  }
  0x77   :  { %2490 = vmatpush1.bf16.msra.mxu1 %v3977_v3  ;;  %v4056_v3 = vld [vmem:[%s5524_s1 + $0x1a0] ss:$12 sps:$4 sm:$0xff]  }
  0x78   :  { %2592 = vmatpush1.bf16.msra.mxu0 %v3980_v5  ;;  %2491 = vmatprep.subr.bf16.mxu1 %v3987_v6  ;;  %v4059_v5 = vld [vmem:[%s5524_s1 + $0x6f4] ss:$12 sps:$4 sm:$0xff]   ;;  %v4057_v6 = vld [vmem:[%s5524_s1 + $0x6f0] ss:$12 sps:$4 sm:$0xff]  }
  0x79   :  { %2593 = vmatprep.subr.bf16.mxu0 %v3991_v7  ;;  %v4061_v7 = vld [vmem:[%s5524_s1 + $0x1b8] ss:$12 sps:$4 sm:$0xff]  }
  0x7b   :  { %2492 = vmatpush1.bf16.msra.mxu1 %v3985_v8  ;;  %v4064_v8 = vld [vmem:[%s5524_s1 + $0x70c] ss:$12 sps:$4 sm:$0xff]  }
  0x7c   :  { %2594 = vmatpush1.bf16.msra.mxu0 %v3989_v9  ;;  %2493 = vmatprep.subr.bf16.mxu1 %v3995_v10  ;;  %v4062_v9 = vld [vmem:[%s5524_s1 + $0x708] ss:$12 sps:$4 sm:$0xff]   ;;  %v4066_v10 = vld [vmem:[%s5524_s1 + $0x1d0] ss:$12 sps:$4 sm:$0xff]  }
  0x7d   :  { %2595 = vmatprep.subr.bf16.mxu0 %v3998_v11  ;;  %v4069_v11 = vld [vmem:[%s5524_s1 + $0x724] ss:$12 sps:$4 sm:$0xff]  }
  0x7f   :  { %2494 = vmatpush1.bf16.msra.mxu1 %v3993_v12  ;;  %v4070_v12 = vld [vmem:[%s5524_s1 + $0x2a8] ss:$12 sps:$4 sm:$0xff]  }
  0x80   :  { %2596 = vmatpush1.bf16.msra.mxu0 %v3996_v13  ;;  %3533 = vmatprep.subr.bf16.mxu1 %v4008_v17  ;;  %v4067_v13 = vld [vmem:[%s5524_s1 + $0x720] ss:$12 sps:$4 sm:$0xff]  }
  0x81   :  { %2616 = vmatprep.subr.bf16.mxu0 %v4007_v14  ;;  %v4074_v14 = vld [vmem:[%s5524_s1 + $0x73c] ss:$12 sps:$4 sm:$0xff]   ;;  %v4076_v17 = vld [vmem:[%s5524_s1 + $0x200] ss:$12 sps:$4 sm:$0xff]  }
  0x82   :  { %2496 = vmatmul.mubr.bf16.vlgmr.msra.gmra.mrb[0].mxu1 %v4739_v15 }
  0x83   :  { %2598 = vmatmul.mubr.bf16.vlgmr.msra.gmra.mrb[0].mxu0 %v4002_v16  ;;  %3534 = vmatpush3.bf16.msra.mxu1 %v4009_v20  ;;  %v4072_v16 = vld [vmem:[%s5524_s1 + $0x738] ss:$12 sps:$4 sm:$0xff]   ;;  %v4078_v20 = vld [vmem:[%s5524_s1 + $0x750] ss:$12 sps:$4 sm:$0xff]  }
  0x84   :  { %2617 = vmatpush1.bf16.msra.mxu0 %v4005_v18  ;;  %3535 = vmatprep.subr.bf16.mxu1 %v4013_v22  ;;  %v4080_v18 = vld [vmem:[%s5524_s1 + $0x754] ss:$12 sps:$4 sm:$0xff]   ;;  %v4086_v22 = vld [vmem:[%s5524_s1 + $0x76c] ss:$12 sps:$4 sm:$0xff]  }
  0x85   :  { %2618 = vmatprep.subr.bf16.mxu0 %v4012_v21  ;;  %2505 = vmatprep.mubr.bf16.mxu1 %v4762_v23  ;;  %v4083_v21 = vld [vmem:[%s5524_s1 + $0x218] ss:$12 sps:$4 sm:$0xff]  }
  0x86   :  { %2607 = vmatprep.mubr.bf16.mxu0 %v4802_v41 }
  0x87   :  { %3536 = vmatpush3.bf16.msra.mxu1 %v4014_v25  ;;  %v4084_v25 = vld [vmem:[%s5524_s1 + $0x768] ss:$12 sps:$4 sm:$0xff]  }
  0x88   :  { %2619 = vmatpush1.bf16.msra.mxu0 %v4010_v24  ;;  %3537 = vmatprep.subr.bf16.mxu1 %v4020_v27  ;;  %v4087_v24 = vld [vmem:[%s5524_s1 + $0x2f0] ss:$12 sps:$4 sm:$0xff]  }
  0x89   :  { %2620 = vmatprep.subr.bf16.mxu0 %v4019_v26  ;;  %v4088_v26 = vld [vmem:[%s5524_s1 + $0x230] ss:$12 sps:$4 sm:$0xff]  }
  0x8a   :  { %2506 = vmatmul.mubr.bf16.gmra.mrb[4].mxu1 %v4781_v31  ;;  %v4094_v27 = vld [vmem:[%s5524_s1 + $0x784] ss:$12 sps:$4 sm:$0xff]  }
  0x8b   :  { %3538 = vmatpush3.bf16.msra.mxu1 %v4021_v32  ;;  %2801 = vmatprep.mubr.bf16.mxu1 %v4451_v48  ;;  %v4035_v48 = vld [vmem:[%s5524_s1 + $0x140] ss:$12 sps:$4 sm:$0xff]   ;;  %v4095_v32 = vld [vmem:[%s5524_s1 + $0x3c8] ss:$12 sps:$4 sm:$0xff]  }
  0x8c   :  { %2621 = vmatpush1.bf16.msra.mxu0 %v4017_v30  ;;  %3539 = vmatprep.subr.bf16.mxu1 %v4025_v36  ;;  %v4969_v30 = vld [vmem:[%s5525_s0 + $0x20] ss:$56 sps:$4 sm:$0xff]   ;;  %v4096_v36 = vld [vmem:[%s5524_s1 + $0x308] ss:$12 sps:$4 sm:$0xff]  }
  0x8d   :  { %2622 = vmatprep.subr.bf16.mxu0 %v4024_v33  ;;  %2608 = vmatmul.mubr.bf16.gmra.mrb[4].mxu0 %v4804_v42  ;;  %v4092_v33 = vld [vmem:[%s5524_s1 + $0x780] ss:$12 sps:$4 sm:$0xff]  }
  0x8e   :  { %2648 = vmatprep.mubr.bf16.mxu0 %v4830_v49 }
  0x8f   :  { %3540 = vmatpush3.bf16.msra.mxu1 %v4026_v39  ;;  %v33_v39 = vld [vmem:[%s5525_s0 + $0x90] sm:$0xff] }
  0x90   :  { %2623 = vmatpush1.bf16.msra.mxu0 %v4022_v38  ;;  %3541 = vmatprep.subr.bf16.mxu1 %v4030_v44  ;;  %v4100_v38 = vld [vmem:[%s5524_s1 + $0x3e0] ss:$12 sps:$4 sm:$0xff]   ;;  %v4992_v44 = vcombine.high %v33_v39, %v33_v39 }
  0x91   :  { %2624 = vmatprep.subr.bf16.mxu0 %v4029_v43  ;;  %v4097_v43 = vld [vmem:[%s5524_s1 + $0x798] ss:$12 sps:$4 sm:$0xff]  }
  0x93   :  { %3542 = vmatpush3.bf16.msra.mxu1 %v4031_v46  ;;  %v4104_v46 = vld [vmem:[%s5524_s1 + $0x7b4] ss:$12 sps:$4 sm:$0xff]  }
  0x94   :  { %2625 = vmatpush1.bf16.msra.mxu0 %v4027_v45  ;;  %3543 = vmatprep.subr.bf16.mxu1 %v4035_v48  ;;  %v4101_v45 = vld [vmem:[%s5524_s1 + $0x320] ss:$12 sps:$4 sm:$0xff]   ;;  %v5010_v48 = vcombine.low %v33_v39, %v33_v39  ;;  %v4168_v39 = vld [vmem:[%s5524_s1 + $0x518] ss:$12 sps:$4 sm:$0xff]  }
  0x95   :  { %2626 = vmatprep.subr.bf16.mxu0 %v4034_v47  ;;  %v4105_v47 = vld [vmem:[%s5524_s1 + $0x3f8] ss:$12 sps:$4 sm:$0xff]  }
  0x97   :  { %3544 = vmatpush3.bf16.msra.mxu1 %v4036_v51  ;;  %v4110_v51 = vld [vmem:[%s5524_s1 + $0x410] ss:$12 sps:$4 sm:$0xff]  }
  0x98   :  { %2627 = vmatpush1.bf16.msra.mxu0 %v4032_v50  ;;  %3545 = vmatprep.subr.bf16.mxu1 %v4040_v53  ;;  %v4106_v50 = vld [vmem:[%s5524_s1 + $0x338] ss:$12 sps:$4 sm:$0xff]  }
  0x99   :  { %2628 = vmatprep.subr.bf16.mxu0 %v4039_v52  ;;  %v4107_v52 = vld [vmem:[%s5524_s1 + $0x7c8] ss:$12 sps:$4 sm:$0xff]   ;;  %v5027_v53 = vld [vmem:[%s5525_s0 + $0x2c] ss:$56 sps:$4 sm:$0xff]  }
  0x9b   :  { %3546 = vmatpush3.bf16.msra.mxu1 %v4041_v55  ;;  %v4114_v55 = vld [vmem:[%s5524_s1 + $0x7e4] ss:$12 sps:$4 sm:$0xff]  }
  0x9c   :  { %2629 = vmatpush1.bf16.msra.mxu0 %v4037_v54  ;;  %3547 = vmatprep.subr.bf16.mxu1 %v4045_v57  ;;  %v4111_v54 = vld [vmem:[%s5524_s1 + $0x350] ss:$12 sps:$4 sm:$0xff]   ;;  %v4112_v57 = vld [vmem:[%s5524_s1 + $0x7e0] ss:$12 sps:$4 sm:$0xff]  }
  0x9d   :  { %2630 = vmatprep.subr.bf16.mxu0 %v4044_v56  ;;  %v4115_v56 = vld [vmem:[%s5524_s1 + $0x428] ss:$12 sps:$4 sm:$0xff]  }
  0x9f   :  { %3548 = vmatpush3.bf16.msra.mxu1 %v4046_v59  ;;  %v4119_v59 = vld [vmem:[%s5524_s1 + $0x7fc] ss:$12 sps:$4 sm:$0xff]  }
  0xa0   :  { %2631 = vmatpush1.bf16.msra.mxu0 %v4042_v58  ;;  %3561 = vmatprep.subr.bf16.mxu1 %v4050_v61  ;;  %v4116_v58 = vld [vmem:[%s5524_s1 + $0x368] ss:$12 sps:$4 sm:$0xff]   ;;  %v4117_v61 = vld [vmem:[%s5524_s1 + $0x7f8] ss:$12 sps:$4 sm:$0xff]  }
  0xa1   :  { %2632 = vmatprep.subr.bf16.mxu0 %v4049_v60  ;;  %v4120_v60 = vld [vmem:[%s5524_s1 + $0x440] ss:$12 sps:$4 sm:$0xff]  }
  0xa2   :  { %2802 = vmatmul.mubr.bf16.vlgmr.msra.gmra.mrb[8].mxu1 %v4514_v4  ;;  %v4060_v4 = vld [vmem:[%s5524_s1 + $0x278] ss:$12 sps:$4 sm:$0xff]  }
  0xa3   :  { %3562 = vmatpush3.bf16.msra.mxu1 %v4051_v63  ;;  %2809 = vmatprep.mubr.bf16.mxu1 %v4586_v28  ;;  %v4065_v28 = vld [vmem:[%s5524_s1 + $0x290] ss:$12 sps:$4 sm:$0xff]   ;;  %v4124_v63 = vld [vmem:[%s5524_s1 + $0x814] ss:$12 sps:$4 sm:$0xff]  }
  0xa4   :  { %2633 = vmatpush1.bf16.msra.mxu0 %v4047_v62  ;;  %3563 = vmatprep.subr.bf16.mxu1 %v4055_v1  ;;  %v4121_v62 = vld [vmem:[%s5524_s1 + $0x380] ss:$12 sps:$4 sm:$0xff]   ;;  %v4122_v1 = vld [vmem:[%s5524_s1 + $0x810] ss:$12 sps:$4 sm:$0xff]  }
  0xa5   :  { %2634 = vmatprep.subr.bf16.mxu0 %v4054_v0  ;;  %v4125_v0 = vld [vmem:[%s5524_s1 + $0x458] ss:$12 sps:$4 sm:$0xff]  }
  0xa7   :  { %3564 = vmatpush3.bf16.msra.mxu1 %v4056_v3  ;;  %v4129_v3 = vld [vmem:[%s5524_s1 + $0x82c] ss:$12 sps:$4 sm:$0xff]  }
  0xa8   :  { %2635 = vmatpush1.bf16.msra.mxu0 %v4052_v2  ;;  %3565 = vmatprep.subr.bf16.mxu1 %v4060_v4  ;;  %v4126_v2 = vld [vmem:[%s5524_s1 + $0x398] ss:$12 sps:$4 sm:$0xff]   ;;  %v4127_v4 = vld [vmem:[%s5524_s1 + $0x828] ss:$12 sps:$4 sm:$0xff]  }
  0xa9   :  { %2636 = vmatprep.subr.bf16.mxu0 %v4059_v5  ;;  %v4130_v5 = vld [vmem:[%s5524_s1 + $0x470] ss:$12 sps:$4 sm:$0xff]  }
  0xaa   :  { %2810 = vmatmul.mubr.bf16.gmra.mrb[12].mxu1 %v4588_v29  ;;  %v4071_v29 = vld [vmem:[%s5524_s1 + $0x1e8] ss:$12 sps:$4 sm:$0xff]  }
  0xab   :  { %3566 = vmatpush3.bf16.msra.mxu1 %v4061_v7  ;;  %2849 = vmatprep.mubr.bf16.mxu1 %v4624_v40  ;;  %v4075_v40 = vld [vmem:[%s5524_s1 + $0x2c0] ss:$12 sps:$4 sm:$0xff]   ;;  %v4134_v7 = vld [vmem:[%s5524_s1 + $0x844] ss:$12 sps:$4 sm:$0xff]  }
  0xac   :  { %2637 = vmatpush1.bf16.msra.mxu0 %v4057_v6  ;;  %3567 = vmatprep.subr.bf16.mxu1 %v4065_v28  ;;  %v4131_v6 = vld [vmem:[%s5524_s1 + $0x3b0] ss:$12 sps:$4 sm:$0xff]   ;;  %v4132_v28 = vld [vmem:[%s5524_s1 + $0x840] ss:$12 sps:$4 sm:$0xff]  }
  0xad   :  { %2638 = vmatprep.subr.bf16.mxu0 %v4064_v8  ;;  %v4135_v8 = vld [vmem:[%s5524_s1 + $0x548] ss:$12 sps:$4 sm:$0xff]  }
  0xaf   :  { %3568 = vmatpush3.bf16.msra.mxu1 %v4066_v10  ;;  %v4139_v10 = vld [vmem:[%s5524_s1 + $0x85c] ss:$12 sps:$4 sm:$0xff]  }
  0xb0   :  { %2639 = vmatpush1.bf16.msra.mxu0 %v4062_v9  ;;  %3569 = vmatprep.subr.bf16.mxu1 %v4070_v12  ;;  %v4136_v9 = vld [vmem:[%s5524_s1 + $0x488] ss:$12 sps:$4 sm:$0xff]  }
  0xb1   :  { %2640 = vmatprep.subr.bf16.mxu0 %v4069_v11  ;;  %v4140_v11 = vld [vmem:[%s5524_s1 + $0x560] ss:$12 sps:$4 sm:$0xff]   ;;  %v4281_v12 = vld [vmem:[%s5525_s0 + $0x10] ss:$56 sps:$4 sm:$0xff]  }
  0xb3   :  { %3570 = vmatpush3.bf16.msra.mxu1 %v4071_v29  ;;  %v4141_v29 = vld [vmem:[%s5524_s1 + $0x4a0] ss:$12 sps:$4 sm:$0xff]  }
  0xb4   :  { %2641 = vmatpush1.bf16.msra.mxu0 %v4067_v13  ;;  %3571 = vmatprep.subr.bf16.mxu1 %v4075_v40  ;;  %v4137_v13 = vld [vmem:[%s5524_s1 + $0x858] ss:$12 sps:$4 sm:$0xff]  }
  0xb5   :  { %2642 = vmatprep.subr.bf16.mxu0 %v4074_v14  ;;  %v4144_v14 = vld [vmem:[%s5524_s1 + $0x874] ss:$12 sps:$4 sm:$0xff]   ;;  %v4145_v40 = vld [vmem:[%s5524_s1 + $0x578] ss:$12 sps:$4 sm:$0xff]  }
  0xb7   :  { %3572 = vmatpush3.bf16.msra.mxu1 %v4076_v17  ;;  %v4146_v17 = vld [vmem:[%s5524_s1 + $0x4b8] ss:$12 sps:$4 sm:$0xff]  }
  0xb8   :  { %2643 = vmatpush1.bf16.msra.mxu0 %v4072_v16  ;;  %3573 = vmatprep.subr.bf16.mxu1 %v4081_v19  ;;  %v4142_v16 = vld [vmem:[%s5524_s1 + $0x870] ss:$12 sps:$4 sm:$0xff]   ;;  %v4147_v19 = vld [vmem:[%s5524_s1 + $0x888] ss:$12 sps:$4 sm:$0xff]  }
  0xb9   :  { %2644 = vmatprep.subr.bf16.mxu0 %v4080_v18  ;;  %v4149_v18 = vld [vmem:[%s5524_s1 + $0x88c] ss:$12 sps:$4 sm:$0xff]  }
  0xbb   :  { %3574 = vmatpush3.bf16.msra.mxu1 %v4083_v21  ;;  %v4154_v21 = vld [vmem:[%s5524_s1 + $0x8a4] ss:$12 sps:$4 sm:$0xff]  }
  0xbc   :  { %2645 = vmatpush1.bf16.msra.mxu0 %v4078_v20  ;;  %3575 = vmatprep.subr.bf16.mxu1 %v4087_v24  ;;  %v4151_v20 = vld [vmem:[%s5524_s1 + $0x4d0] ss:$12 sps:$4 sm:$0xff]   ;;  %v4152_v24 = vld [vmem:[%s5524_s1 + $0x8a0] ss:$12 sps:$4 sm:$0xff]  }
  0xbd   :  { %2646 = vmatprep.subr.bf16.mxu0 %v4086_v22  ;;  %v4155_v22 = vld [vmem:[%s5524_s1 + $0x5a8] ss:$12 sps:$4 sm:$0xff]  }
  0xbf   :  { %3576 = vmatpush3.bf16.msra.mxu1 %v4088_v26  ;;  %v4159_v26 = vld [vmem:[%s5524_s1 + $0x8bc] ss:$12 sps:$4 sm:$0xff]  }
  0xc0   :  { %2647 = vmatpush1.bf16.msra.mxu0 %v4084_v25  ;;  %3589 = vmatprep.subr.bf16.mxu1 %v4095_v32  ;;  %v4156_v25 = vld [vmem:[%s5524_s1 + $0x4e8] ss:$12 sps:$4 sm:$0xff]   ;;  %v4157_v32 = vld [vmem:[%s5524_s1 + $0x8b8] ss:$12 sps:$4 sm:$0xff]  }
  0xc1   :  { %2667 = vmatprep.subr.bf16.mxu0 %v4094_v27  ;;  %v4160_v27 = vld [vmem:[%s5524_s1 + $0x5c0] ss:$12 sps:$4 sm:$0xff]  }
  0xc2   :  { %2850 = vmatmul.mubr.bf16.vlgmr.msra.gmra.mrb[16].mxu1 %v4739_v15  ;;  %v4102_v15 = vld [vmem:[%s5524_s1 + $0x7b0] ss:$12 sps:$4 sm:$0xff]  }
  0xc3   :  { %2649 = vmatmul.mubr.bf16.vlgmr.msra.gmra.mrb[0].mxu0 %v4969_v30  ;;  %3590 = vmatpush3.bf16.msra.mxu1 %v4096_v36  ;;  %v4165_v36 = vld [vmem:[%s5524_s1 + $0x8d4] ss:$12 sps:$4 sm:$0xff]  }
  0xc4   :  { %2668 = vmatpush1.bf16.msra.mxu0 %v4092_v33  ;;  %3591 = vmatprep.subr.bf16.mxu1 %v4100_v38  ;;  %v4161_v33 = vld [vmem:[%s5524_s1 + $0x500] ss:$12 sps:$4 sm:$0xff]   ;;  %v4163_v38 = vld [vmem:[%s5524_s1 + $0x8d0] ss:$12 sps:$4 sm:$0xff]  }
  0xc5   :  { %2669 = vmatprep.subr.bf16.mxu0 %v4099_v37  ;;  %2857 = vmatprep.mubr.bf16.mxu1 %v4762_v23  ;;  %v4109_v23 = vld [vmem:[%s5524_s1 + $0x7cc] ss:$12 sps:$4 sm:$0xff]  }
  0xc6   :  { %2658 = vmatprep.mubr.bf16.mxu0 %v4992_v44  ;;  %v4166_v37 = vld [vmem:[%s5524_s1 + $0x5d8] ss:$12 sps:$4 sm:$0xff]  }
  0xc7   :  { %3592 = vmatpush3.bf16.msra.mxu1 %v4101_v45  ;;  %v4172_v45 = vld [vmem:[%s5524_s1 + $0x5f0] ss:$12 sps:$4 sm:$0xff]  }
  0xc8   :  { %2670 = vmatpush1.bf16.msra.mxu0 %v4097_v43  ;;  %3593 = vmatprep.subr.bf16.mxu1 %v4105_v47  ;;  %v4171_v43 = vld [vmem:[%s5524_s1 + $0x8ec] ss:$12 sps:$4 sm:$0xff]   ;;  %v4173_v47 = vld [vmem:[%s5524_s1 + $0x530] ss:$12 sps:$4 sm:$0xff]  }
  0xc9   :  { %2671 = vmatprep.subr.bf16.mxu0 %v4104_v46  ;;  %v4169_v46 = vld [vmem:[%s5524_s1 + $0x8e8] ss:$12 sps:$4 sm:$0xff]  }
  0xca   :  { %2858 = vmatmul.mubr.bf16.gmra.mrb[20].mxu1 %v4781_v31  ;;  %v4280_v31 = vld [vmem:[%s5525_s0 + $0x14] ss:$56 sps:$4 sm:$0xff]  }
  0xcb   :  { %2659 = vmatmul.mubr.bf16.gmra.mrb[4].mxu0 %v5010_v48  ;;  %3594 = vmatpush3.bf16.msra.mxu1 %v4106_v50  ;;  %v5196_v50 = vld [vmem:[%s5525_s0 + $0x28] ss:$56 sps:$4 sm:$0xff]  }
  0xcc   :  { %2672 = vmatpush1.bf16.msra.mxu0 %v4102_v15  ;;  %3595 = vmatprep.subr.bf16.mxu1 %v4110_v51  ;;  %v4179_v15 = vld [vmem:[%s5524_s1 + $0x904] ss:$12 sps:$4 sm:$0xff]   ;;  %v4177_v51 = vld [vmem:[%s5524_s1 + $0x900] ss:$12 sps:$4 sm:$0xff]  }
  0xcd   :  { %2673 = vmatprep.subr.bf16.mxu0 %v4109_v23  ;;  %2897 = vmatprep.mubr.bf16.mxu1 %v4280_v31  ;;  %v4180_v23 = vld [vmem:[%s5524_s1 + $0x6c8] ss:$12 sps:$4 sm:$0xff]  }
  0xce   :  { %2699 = vmatprep.mubr.bf16.mxu0 %v5027_v53 }
  0xcf   :  { %3596 = vmatpush3.bf16.msra.mxu1 %v4111_v54  ;;  %v4181_v54 = vld [vmem:[%s5524_s1 + $0x608] ss:$12 sps:$4 sm:$0xff]  }
  0xd0   :  { %2674 = vmatpush1.bf16.msra.mxu0 %v4107_v52  ;;  %3597 = vmatprep.subr.bf16.mxu1 %v4115_v56  ;;  %v34_v52 = vld [vmem:[%s5525_s0 + $0x98] sm:$0xff]  ;;  %v4185_v56 = vld [vmem:[%s5524_s1 + $0x6e0] ss:$12 sps:$4 sm:$0xff]  }
  0xd1   :  { %2675 = vmatprep.subr.bf16.mxu0 %v4114_v55  ;;  %v4184_v55 = vld [vmem:[%s5524_s1 + $0x91c] ss:$12 sps:$4 sm:$0xff]   ;;  %v5216_v31 = vcombine.high %v34_v52, %v34_v52 }
  0xd3   :  { %3598 = vmatpush3.bf16.msra.mxu1 %v4116_v58  ;;  %v4182_v58 = vld [vmem:[%s5524_s1 + $0x918] ss:$12 sps:$4 sm:$0xff]  }
  0xd4   :  { %2676 = vmatpush1.bf16.msra.mxu0 %v4112_v57  ;;  %3599 = vmatprep.subr.bf16.mxu1 %v4120_v60  ;;  %v4283_v57 = vld [vmem:[%s5525_s0 + $0x18] ss:$56 sps:$4 sm:$0xff]   ;;  %v4189_v60 = vld [vmem:[%s5524_s1 + $0x934] ss:$12 sps:$4 sm:$0xff]  }
  0xd5   :  { %2677 = vmatprep.subr.bf16.mxu0 %v4119_v59  ;;  %v4186_v59 = vld [vmem:[%s5524_s1 + $0x620] ss:$12 sps:$4 sm:$0xff]  }
  0xd7   :  { %3600 = vmatpush3.bf16.msra.mxu1 %v4121_v62  ;;  %v4187_v62 = vld [vmem:[%s5524_s1 + $0x930] ss:$12 sps:$4 sm:$0xff]  }
  0xd8   :  { %2678 = vmatpush1.bf16.msra.mxu0 %v4117_v61  ;;  %3601 = vmatprep.subr.bf16.mxu1 %v4125_v0  ;;  %v4190_v61 = vld [vmem:[%s5524_s1 + $0x6f8] ss:$12 sps:$4 sm:$0xff]   ;;  %v5242_v0 = vcombine.low %v34_v52, %v34_v52  ;;  %v4257_v52 = vld [vmem:[%s5524_s1 + $0x8f0] ss:$12 sps:$4 sm:$0xff]  }
  0xd9   :  { %2679 = vmatprep.subr.bf16.mxu0 %v4124_v63  ;;  %v4191_v63 = vld [vmem:[%s5524_s1 + $0x638] ss:$12 sps:$4 sm:$0xff]  }
  0xdb   :  { %3602 = vmatpush3.bf16.msra.mxu1 %v4126_v2  ;;  %v4192_v2 = vld [vmem:[%s5524_s1 + $0x948] ss:$12 sps:$4 sm:$0xff]  }
  0xdc   :  { %2680 = vmatpush1.bf16.msra.mxu0 %v4122_v1  ;;  %3603 = vmatprep.subr.bf16.mxu1 %v4130_v5  ;;  %v4194_v1 = vld [vmem:[%s5524_s1 + $0x94c] ss:$12 sps:$4 sm:$0xff]   ;;  %v4196_v5 = vld [vmem:[%s5524_s1 + $0x650] ss:$12 sps:$4 sm:$0xff]  }
  0xdd   :  { %2681 = vmatprep.subr.bf16.mxu0 %v4129_v3  ;;  %v5256_v3 = vld [vmem:[%s5525_s0 + $0x34] ss:$56 sps:$4 sm:$0xff]  }
  0xdf   :  { %3604 = vmatpush3.bf16.msra.mxu1 %v4131_v6  ;;  %v4200_v6 = vld [vmem:[%s5524_s1 + $0x728] ss:$12 sps:$4 sm:$0xff]  }
  0xe0   :  { %2682 = vmatpush1.bf16.msra.mxu0 %v4127_v4  ;;  %3617 = vmatprep.subr.bf16.mxu1 %v4135_v8  ;;  %v4199_v4 = vld [vmem:[%s5524_s1 + $0x964] ss:$12 sps:$4 sm:$0xff]   ;;  %v4204_v8 = vld [vmem:[%s5524_s1 + $0x97c] ss:$12 sps:$4 sm:$0xff]  }
  0xe1   :  { %2683 = vmatprep.subr.bf16.mxu0 %v4134_v7  ;;  %v4201_v7 = vld [vmem:[%s5524_s1 + $0x668] ss:$12 sps:$4 sm:$0xff]  }
  0xe2   :  { %2898 = vmatmul.mubr.bf16.vlgmr.msra.gmra.mrb[24].mxu1 %v4281_v12  ;;  %v4207_v12 = vld [vmem:[%s5524_s1 + $0x990] ss:$12 sps:$4 sm:$0xff]  }
  0xe3   :  { %3618 = vmatpush3.bf16.msra.mxu1 %v4136_v9  ;;  %2905 = vmatprep.mubr.bf16.mxu1 %v4602_v34  ;;  %v4150_v34 = vld [vmem:[%s5524_s1 + $0x590] ss:$12 sps:$4 sm:$0xff]   ;;  %v4206_v9 = vld [vmem:[%s5524_s1 + $0x680] ss:$12 sps:$4 sm:$0xff]  }
  0xe4   :  { %2684 = vmatpush1.bf16.msra.mxu0 %v4132_v28  ;;  %3619 = vmatprep.subr.bf16.mxu1 %v4140_v11  ;;  %v4202_v28 = vld [vmem:[%s5524_s1 + $0x978] ss:$12 sps:$4 sm:$0xff]  }
  0xe5   :  { %2685 = vmatprep.subr.bf16.mxu0 %v4139_v10  ;;  %v4209_v10 = vld [vmem:[%s5524_s1 + $0x994] ss:$12 sps:$4 sm:$0xff]   ;;  %v4210_v11 = vld [vmem:[%s5524_s1 + $0x758] ss:$12 sps:$4 sm:$0xff]  }
  0xe7   :  { %3620 = vmatpush3.bf16.msra.mxu1 %v4141_v29  ;;  %v4214_v29 = vld [vmem:[%s5524_s1 + $0x9ac] ss:$12 sps:$4 sm:$0xff]  }
  0xe8   :  { %2686 = vmatpush1.bf16.msra.mxu0 %v4137_v13  ;;  %3621 = vmatprep.subr.bf16.mxu1 %v4145_v40  ;;  %v4211_v13 = vld [vmem:[%s5524_s1 + $0x698] ss:$12 sps:$4 sm:$0xff]   ;;  %v4212_v40 = vld [vmem:[%s5524_s1 + $0x9a8] ss:$12 sps:$4 sm:$0xff]  }
  0xe9   :  { %2687 = vmatprep.subr.bf16.mxu0 %v4144_v14  ;;  %v4215_v14 = vld [vmem:[%s5524_s1 + $0x770] ss:$12 sps:$4 sm:$0xff]  }
  0xea   :  { %2906 = vmatmul.mubr.bf16.gmra.mrb[28].mxu1 %v4605_v35  ;;  %v4282_v35 = vld [vmem:[%s5525_s0 + $0x1c] ss:$56 sps:$4 sm:$0xff]  }
  0xeb   :  { %3622 = vmatpush3.bf16.msra.mxu1 %v4146_v17  ;;  %2945 = vmatprep.mubr.bf16.mxu1 %v4282_v35  ;;  %v4219_v17 = vld [vmem:[%s5524_s1 + $0x9c4] ss:$12 sps:$4 sm:$0xff]   ;;  %v4226_v35 = vld [vmem:[%s5524_s1 + $0x7a0] ss:$12 sps:$4 sm:$0xff]  }
  0xec   :  { %2688 = vmatpush1.bf16.msra.mxu0 %v4142_v16  ;;  %3623 = vmatprep.subr.bf16.mxu1 %v4150_v34  ;;  %v4216_v16 = vld [vmem:[%s5524_s1 + $0x6b0] ss:$12 sps:$4 sm:$0xff]   ;;  %v4217_v34 = vld [vmem:[%s5524_s1 + $0x9c0] ss:$12 sps:$4 sm:$0xff]  }
  0xed   :  { %2689 = vmatprep.subr.bf16.mxu0 %v4149_v18  ;;  %v4220_v18 = vld [vmem:[%s5524_s1 + $0x848] ss:$12 sps:$4 sm:$0xff]  }
  0xef   :  { %3624 = vmatpush3.bf16.msra.mxu1 %v4151_v20  ;;  %v4224_v20 = vld [vmem:[%s5524_s1 + $0x9dc] ss:$12 sps:$4 sm:$0xff]  }
  0xf0   :  { %2690 = vmatpush1.bf16.msra.mxu0 %v4147_v19  ;;  %3625 = vmatprep.subr.bf16.mxu1 %v4155_v22  ;;  %v4221_v19 = vld [vmem:[%s5524_s1 + $0x788] ss:$12 sps:$4 sm:$0xff]   ;;  %v4222_v22 = vld [vmem:[%s5524_s1 + $0x9d8] ss:$12 sps:$4 sm:$0xff]  }
  0xf1   :  { %2691 = vmatprep.subr.bf16.mxu0 %v4154_v21  ;;  %v4225_v21 = vld [vmem:[%s5524_s1 + $0x860] ss:$12 sps:$4 sm:$0xff]  }
  0xf3   :  { %3626 = vmatpush3.bf16.msra.mxu1 %v4156_v25  ;;  %v4227_v25 = vld [vmem:[%s5524_s1 + $0x9f0] ss:$12 sps:$4 sm:$0xff]  }
  0xf4   :  { %2692 = vmatpush1.bf16.msra.mxu0 %v4152_v24  ;;  %3627 = vmatprep.subr.bf16.mxu1 %v4160_v27  ;;  %v4229_v24 = vld [vmem:[%s5524_s1 + $0x9f4] ss:$12 sps:$4 sm:$0xff]   ;;  %v4234_v27 = vld [vmem:[%s5524_s1 + $0xa0c] ss:$12 sps:$4 sm:$0xff]  }
  0xf5   :  { %2693 = vmatprep.subr.bf16.mxu0 %v4159_v26  ;;  %v4231_v26 = vld [vmem:[%s5524_s1 + $0x7b8] ss:$12 sps:$4 sm:$0xff]  }
  0xf7   :  { %3628 = vmatpush3.bf16.msra.mxu1 %v4161_v33  ;;  %v4236_v33 = vld [vmem:[%s5524_s1 + $0x7d0] ss:$12 sps:$4 sm:$0xff]  }
  0xf8   :  { %2694 = vmatpush1.bf16.msra.mxu0 %v4157_v32  ;;  %3629 = vmatprep.subr.bf16.mxu1 %v4166_v37  ;;  %v4232_v32 = vld [vmem:[%s5524_s1 + $0xa08] ss:$12 sps:$4 sm:$0xff]   ;;  %v4237_v37 = vld [vmem:[%s5524_s1 + $0xa20] ss:$12 sps:$4 sm:$0xff]  }
  0xf9   :  { %2695 = vmatprep.subr.bf16.mxu0 %v4165_v36  ;;  %v4239_v36 = vld [vmem:[%s5524_s1 + $0xa24] ss:$12 sps:$4 sm:$0xff]  }
  0xfb   :  { %3630 = vmatpush3.bf16.msra.mxu1 %v4168_v39  ;;  %v4244_v39 = vld [vmem:[%s5524_s1 + $0xa3c] ss:$12 sps:$4 sm:$0xff]  }
  0xfc   :  { %2696 = vmatpush1.bf16.msra.mxu0 %v4163_v38  ;;  %3631 = vmatprep.subr.bf16.mxu1 %v4172_v45  ;;  %v4241_v38 = vld [vmem:[%s5524_s1 + $0x7e8] ss:$12 sps:$4 sm:$0xff]   ;;  %v4246_v45 = vld [vmem:[%s5524_s1 + $0x800] ss:$12 sps:$4 sm:$0xff]  }
  0xfd   :  { %2697 = vmatprep.subr.bf16.mxu0 %v4171_v43  ;;  %v4242_v43 = vld [vmem:[%s5524_s1 + $0xa38] ss:$12 sps:$4 sm:$0xff]  }
  0xff   :  { %3632 = vmatpush3.bf16.msra.mxu1 %v4173_v47  ;;  %v4252_v47 = vld [vmem:[%s5524_s1 + $0x8d8] ss:$12 sps:$4 sm:$0xff]  }
 0x100   :  { %2698 = vmatpush1.bf16.msra.mxu0 %v4169_v46  ;;  %3645 = vmatprep.subr.bf16.mxu1 %v4180_v23  ;;  %v4251_v46 = vld [vmem:[%s5524_s1 + $0xa54] ss:$12 sps:$4 sm:$0xff]   ;;  %v4253_v23 = vld [vmem:[%s5524_s1 + $0x818] ss:$12 sps:$4 sm:$0xff]  }
 0x101   :  { %2718 = vmatprep.subr.bf16.mxu0 %v4179_v15  ;;  %v4249_v15 = vld [vmem:[%s5524_s1 + $0xa50] ss:$12 sps:$4 sm:$0xff]  }
 0x102   :  { %2946 = vmatmul.mubr.bf16.vlgmr.msra.gmra.mrb[32].mxu1 %v4283_v57  ;;  %v5419_v57 = vld [vmem:[%s5525_s0 + $0x30] ss:$56 sps:$4 sm:$0xff]  }
 0x103   :  { %2700 = vmatmul.mubr.bf16.vlgmr.msra.gmra.mrb[0].mxu0 %v5196_v50  ;;  %3646 = vmatpush3.bf16.msra.mxu1 %v4181_v54  ;;  %v4254_v54 = vld [vmem:[%s5524_s1 + $0xa68] ss:$12 sps:$4 sm:$0xff]  }
 0x104   :  { %2719 = vmatpush1.bf16.msra.mxu0 %v4177_v51  ;;  %3647 = vmatprep.subr.bf16.mxu1 %v4185_v56  ;;  %v4256_v51 = vld [vmem:[%s5524_s1 + $0xa6c] ss:$12 sps:$4 sm:$0xff]   ;;  %v4262_v56 = vld [vmem:[%s5524_s1 + $0x9c8] ss:$12 sps:$4 sm:$0xff]  }
 0x105   :  { %2720 = vmatprep.subr.bf16.mxu0 %v4184_v55  ;;  %2953 = vmatprep.mubr.bf16.mxu1 %v4802_v41  ;;  %v4195_v41 = vld [vmem:[%s5524_s1 + $0x710] ss:$12 sps:$4 sm:$0xff]  }
 0x106   :  { %2709 = vmatprep.mubr.bf16.mxu0 %v5216_v31  ;;  %v4258_v55 = vld [vmem:[%s5524_s1 + $0x830] ss:$12 sps:$4 sm:$0xff]  }
 0x107   :  { %3648 = vmatpush3.bf16.msra.mxu1 %v4186_v59  ;;  %v4263_v59 = vld [vmem:[%s5524_s1 + $0x908] ss:$12 sps:$4 sm:$0xff]  }
 0x108   :  { %2721 = vmatpush1.bf16.msra.mxu0 %v4182_v58  ;;  %3649 = vmatprep.subr.bf16.mxu1 %v4190_v61  ;;  %v35_v58 = vld [vmem:[%s5525_s0 + $0xa0] sm:$0xff] }
 0x109   :  { %2722 = vmatprep.subr.bf16.mxu0 %v4189_v60  ;;  %v4264_v60 = vld [vmem:[%s5524_s1 + $0x9e0] ss:$12 sps:$4 sm:$0xff]   ;;  %v3184_v61 = vcombine.high %v35_v58, %v35_v58 }
 0x10a   :  { %2954 = vmatmul.mubr.bf16.gmra.mrb[36].mxu1 %v4804_v42  ;;  %v4197_v42 = vld [vmem:[%s5524_s1 + $0x960] ss:$12 sps:$4 sm:$0xff]  }
 0x10b   :  { %2710 = vmatmul.mubr.bf16.gmra.mrb[4].mxu0 %v5242_v0  ;;  %3650 = vmatpush3.bf16.msra.mxu1 %v4191_v63  ;;  %v4268_v63 = vld [vmem:[%s5524_s1 + $0x9f8] ss:$12 sps:$4 sm:$0xff]  }
 0x10c   :  { %2723 = vmatpush1.bf16.msra.mxu0 %v4187_v62  ;;  %3651 = vmatprep.subr.bf16.mxu1 %v4195_v41  ;;  %v4265_v62 = vld [vmem:[%s5524_s1 + $0x920] ss:$12 sps:$4 sm:$0xff]   ;;  %v4270_v41 = vld [vmem:[%s5524_s1 + $0xa10] ss:$12 sps:$4 sm:$0xff]  }
 0x10d   :  { %2724 = vmatprep.subr.bf16.mxu0 %v4194_v1  ;;  %2993 = vmatprep.mubr.bf16.mxu1 %v4830_v49  ;;  %v4205_v49 = vld [vmem:[%s5524_s1 + $0x740] ss:$12 sps:$4 sm:$0xff]   ;;  %v3183_v1 = vcombine.low %v35_v58, %v35_v58 }
 0x10e   :  { %2750 = vmatprep.mubr.bf16.mxu0 %v5256_v3 }
 0x10f   :  { %3652 = vmatpush3.bf16.msra.mxu1 %v4196_v5  ;;  %v4274_v5 = vld [vmem:[%s5524_s1 + $0xa40] ss:$12 sps:$4 sm:$0xff]  }
 0x110   :  { %2725 = vmatpush1.bf16.msra.mxu0 %v4192_v2  ;;  %3653 = vmatprep.subr.bf16.mxu1 %v4200_v6  ;;  %v4272_v2 = vld [vmem:[%s5524_s1 + $0xa28] ss:$12 sps:$4 sm:$0xff]  }
 0x111   :  { %2726 = vmatprep.subr.bf16.mxu0 %v4199_v4  ;;  %v4275_v4 = vld [vmem:[%s5524_s1 + $0x980] ss:$12 sps:$4 sm:$0xff]  }
 0x113   :  { %3654 = vmatpush3.bf16.msra.mxu1 %v4201_v7 }
 0x114   :  { %2727 = vmatpush1.bf16.msra.mxu0 %v4197_v42  ;;  %3655 = vmatprep.subr.bf16.mxu1 %v4205_v49 }
 0x115   :  { %2728 = vmatprep.subr.bf16.mxu0 %v4204_v8  ;;  %v4277_v8 = vld [vmem:[%s5524_s1 + $0x998] ss:$12 sps:$4 sm:$0xff]  }
 0x117   :  { %3656 = vmatpush3.bf16.msra.mxu1 %v4206_v9  ;;  %v4279_v9 = vld [vmem:[%s5524_s1 + $0x9b0] ss:$12 sps:$4 sm:$0xff]  }
 0x118   :  { %2729 = vmatpush1.bf16.msra.mxu0 %v4202_v28  ;;  %3657 = vmatprep.subr.bf16.mxu1 %v4210_v11  ;;  %v4278_v28 = vld [vmem:[%s5524_s1 + $0xa70] ss:$12 sps:$4 sm:$0xff]  }
 0x119   :  { %2730 = vmatprep.subr.bf16.mxu0 %v4209_v10 }
 0x11b   :  { %3658 = vmatpush3.bf16.msra.mxu1 %v4211_v13 }
 0x11c   :  { %2731 = vmatpush1.bf16.msra.mxu0 %v4207_v12  ;;  %3659 = vmatprep.subr.bf16.mxu1 %v4215_v14 }
 0x11d   :  { %2732 = vmatprep.subr.bf16.mxu0 %v4214_v29 }
 0x11f   :  { %3660 = vmatpush3.bf16.msra.mxu1 %v4216_v16 }
 0x120   :  { %2733 = vmatpush1.bf16.msra.mxu0 %v4212_v40  ;;  %3673 = vmatprep.subr.bf16.mxu1 %v4220_v18 }
 0x121   :  { %2734 = vmatprep.subr.bf16.mxu0 %v4219_v17 }
 0x122   :  { %2994 = vmatmul.mubr.bf16.vlgmr.msra.gmra.mrb[40].mxu1 %v4969_v30  ;;  %v4230_v30 = vld [vmem:[%s5524_s1 + $0x878] ss:$12 sps:$4 sm:$0xff]  }
 0x123   :  { %3674 = vmatpush3.bf16.msra.mxu1 %v4221_v19  ;;  %3001 = vmatprep.mubr.bf16.mxu1 %v4992_v44  ;;  %v4235_v44 = vld [vmem:[%s5524_s1 + $0x890] ss:$12 sps:$4 sm:$0xff]  }
 0x124   :  { %2735 = vmatpush1.bf16.msra.mxu0 %v4217_v34  ;;  %3675 = vmatprep.subr.bf16.mxu1 %v4225_v21 }
 0x125   :  { %2736 = vmatprep.subr.bf16.mxu0 %v4224_v20 }
 0x127   :  { %3676 = vmatpush3.bf16.msra.mxu1 %v4226_v35  ;;  %v486_v35 = vlaneseq }
 0x128   :  { %2737 = vmatpush1.bf16.msra.mxu0 %v4222_v22  ;;  %3677 = vmatprep.subr.bf16.mxu1 %v4230_v30 }
 0x129   :  { %2738 = vmatprep.subr.bf16.mxu0 %v4229_v24  ;;  %v5487_v24 = vshrl.u32 %v486_v35, 7 }
 0x12a   :  { %3002 = vmatmul.mubr.bf16.gmra.mrb[44].mxu1 %v5010_v48  ;;  %v4240_v48 = vld [vmem:[%s5524_s1 + $0x8a8] ss:$12 sps:$4 sm:$0xff]  }
 0x12b   :  { %3678 = vmatpush3.bf16.msra.mxu1 %v4231_v26  ;;  %3041 = vmatprep.mubr.bf16.mxu1 %v5027_v53  ;;  %v4245_v53 = vld [vmem:[%s5524_s1 + $0x8c0] ss:$12 sps:$4 sm:$0xff]   ;;  %v496_v30 = vsub.s32 2, %v5487_v24 }
 0x12c   :  { %2739 = vmatpush1.bf16.msra.mxu0 %v4227_v25  ;;  %3679 = vmatprep.subr.bf16.mxu1 %v4235_v44  ;;  %v5493_v25 = vld [vmem:[%s5526_s2] sm:$0x7] }
 0x12d   :  { %2740 = vmatprep.subr.bf16.mxu0 %v4234_v27  ;;  %v497_v26 = vrot.slane %v5493_v25, %v496_v30 }
 0x12f   :  { %3680 = vmatpush3.bf16.msra.mxu1 %v4236_v33 }
 0x130   :  { %2741 = vmatpush1.bf16.msra.mxu0 %v4232_v32  ;;  %3681 = vmatprep.subr.bf16.mxu1 %v4240_v48 }
 0x131   :  { %2742 = vmatprep.subr.bf16.mxu0 %v4239_v36 }
 0x133   :  { %3682 = vmatpush3.bf16.msra.mxu1 %v4241_v38 }
 0x134   :  { %2743 = vmatpush1.bf16.msra.mxu0 %v4237_v37  ;;  %3683 = vmatprep.subr.bf16.mxu1 %v4245_v53 }
 0x135   :  { %2744 = vmatprep.subr.bf16.mxu0 %v4244_v39 }
 0x137   :  { %3684 = vmatpush3.bf16.msra.mxu1 %v4246_v45 }
 0x138   :  { %2745 = vmatpush1.bf16.msra.mxu0 %v4242_v43  ;;  %3685 = vmatprep.subr.bf16.mxu1 %v4252_v47 }
 0x139   :  { %2746 = vmatprep.subr.bf16.mxu0 %v4251_v46 }
 0x13b   :  { %3686 = vmatpush3.bf16.msra.mxu1 %v4253_v23 }
 0x13c   :  { %2747 = vmatpush1.bf16.msra.mxu0 %v4249_v15  ;;  %3687 = vmatprep.subr.bf16.mxu1 %v4257_v52 }
 0x13d   :  { %2748 = vmatprep.subr.bf16.mxu0 %v4256_v51 }
 0x13f   :  { %3688 = vmatpush3.bf16.msra.mxu1 %v4258_v55 }
 0x140   :  { %2749 = vmatpush1.bf16.msra.mxu0 %v4254_v54  ;;  %3729 = vmatprep.subr.bf16.mxu1 %v4262_v56 }
 0x141   :  { %3701 = vmatprep.subr.bf16.mxu0 %v4262_v56 }
 0x142   :  { %3042 = vmatmul.mubr.bf16.vlgmr.msra.gmra.mrb[48].mxu1 %v5196_v50  ;;  %v4269_v50 = vld [vmem:[%s5524_s1 + $0x938] ss:$12 sps:$4 sm:$0xff]  }
 0x143   :  { %2751 = vmatmul.mubr.bf16.vlgmr.msra.gmra.mrb[0].mxu0 %v5419_v57  ;;  %3737 = vmatpush3.bf16.msra.mxu1 %v4263_v59 }
 0x144   :  { %3702 = vmatpush3.bf16.msra.mxu0 %v4263_v59  ;;  %3730 = vmatprep.subr.bf16.mxu1 %v4264_v60 }
 0x145   :  { %3703 = vmatprep.subr.bf16.mxu0 %v4264_v60  ;;  %2760 = vmatprep.mubr.bf16.mxu0 %v3184_v61 }
 0x146   :  { %3049 = vmatprep.mubr.bf16.mxu1 %v5216_v31  ;;  %v4271_v31 = vld [vmem:[%s5524_s1 + $0x950] ss:$12 sps:$4 sm:$0xff]  }
 0x147   :  { %3738 = vmatpush3.bf16.msra.mxu1 %v4265_v62 }
 0x148   :  { %3704 = vmatpush3.bf16.msra.mxu0 %v4265_v62  ;;  %3731 = vmatprep.subr.bf16.mxu1 %v4268_v63 }
 0x149   :  { %3705 = vmatprep.subr.bf16.mxu0 %v4268_v63 }
 0x14a   :  { %3050 = vmatmul.mubr.bf16.gmra.mrb[52].mxu1 %v5242_v0  ;;  %v4273_v0 = vld [vmem:[%s5524_s1 + $0x968] ss:$12 sps:$4 sm:$0xff]  }
 0x14b   :  { %2761 = vmatmul.mubr.bf16.gmra.mrb[4].mxu0 %v3183_v1  ;;  %3739 = vmatpush3.bf16.msra.mxu1 %v4269_v50 }
 0x14c   :  { %3706 = vmatpush3.bf16.msra.mxu0 %v4269_v50  ;;  %3732 = vmatprep.subr.bf16.mxu1 %v4270_v41 }
 0x14d   :  { %3707 = vmatprep.subr.bf16.mxu0 %v4270_v41  ;;  %3089 = vmatprep.mubr.bf16.mxu0 %v5256_v3  ;;  %v4276_v3 = vld [vmem:[%s5524_s1 + $0xa58] ss:$12 sps:$4 sm:$0xff]  }
 0x14e   :  { %3097 = vmatprep.mubr.bf16.mxu1 %v3184_v61 }
 0x14f   :  { %3740 = vmatpush3.bf16.msra.mxu1 %v4271_v31 }
 0x150   :  { %3708 = vmatpush3.bf16.msra.mxu0 %v4271_v31  ;;  %3733 = vmatprep.subr.bf16.mxu1 %v4272_v2 }
 0x151   :  { %3709 = vmatprep.subr.bf16.mxu0 %v4272_v2 }
 0x153   :  { %3741 = vmatpush3.bf16.msra.mxu1 %v4273_v0 }
 0x154   :  { %3710 = vmatpush3.bf16.msra.mxu0 %v4273_v0  ;;  %3734 = vmatprep.subr.bf16.mxu1 %v4274_v5 }
 0x155   :  { %3711 = vmatprep.subr.bf16.mxu0 %v4274_v5  ;;  %v5465_v6 = vpop.f32.mrb[0].mxu1 }
 0x156   :  { %v5467_v42 = vpop.f32.mrb[1].mxu1 }
 0x157   :  { %v5469_v7 = vpop.f32.mrb[2].mxu1  ;;  %3742 = vmatpush3.bf16.msra.mxu1 %v4275_v4 }
 0x158   :  { %3712 = vmatpush3.bf16.msra.mxu0 %v4275_v4  ;;  %v5474_v49 = vpop.f32.mrb[3].mxu1  ;;  %3735 = vmatprep.subr.bf16.mxu1 %v4276_v3 }
 0x159   :  { %3713 = vmatprep.subr.bf16.mxu0 %v4276_v3 }
 0x15b   :  { %3743 = vmatpush3.bf16.msra.mxu1 %v4277_v8 }
 0x15c   :  { %3714 = vmatpush3.bf16.msra.mxu0 %v4277_v8  ;;  %3736 = vmatprep.subr.bf16.mxu1 %v4278_v28 }
 0x15d   :  { %3715 = vmatprep.subr.bf16.mxu0 %v4278_v28  ;;  %v5482_v10 = vpop.f32.mrb[4].mxu1 }
 0x15e   :  { %v5484_v11 = vpop.f32.mrb[5].mxu1 }
 0x15f   :  { %v2511_v12 = vpop.f32.mrb[6].mxu1  ;;  %3744 = vmatpush3.bf16.msra.mxu1 %v4279_v9 }
 0x160   :  { %3716 = vmatpush3.bf16.msra.mxu0 %v4279_v9  ;;  %v2512_v13 = vpop.f32.mrb[7].mxu1 }
 0x162   :  { %3098 = vmatmul.mubr.bf16.vlgmr.msra.gmra.mrb[56].mxu1 %v3183_v1 }
 0x163   :  { %3090 = vmatmul.mubr.bf16.vlgmr.msra.gmra.mrb[8].mxu0 %v5419_v57 }
 0x175   :  { %v3549_v29 = vpop.f32.mrb[8].mxu1 }
 0x176   :  { %v3550_v14 = vpop.f32.mrb[9].mxu1 }
 0x177   :  { %v3551_v40 = vadd.f32 %v3550_v14, %v3549_v29  ;;  %v3552_v16 = vpop.f32.mrb[10].mxu1 }
 0x178   :  { %v3553_v17 = vpop.f32.mrb[11].mxu1 }
 0x179   :  { %v3554_v18 = vadd.f32 %v3553_v17, %v3552_v16  ;;  %v2804_v32 = vadd.f32 %v3551_v40, %v497_v26 }
 0x17b   :  { %v2807_v37 = vadd.f32 %v3554_v18, %v497_v26 }
 0x17d   :  { %v3555_v34 = vpop.f32.mrb[12].mxu1 }
 0x17e   :  { %v3556_v19 = vpop.f32.mrb[13].mxu1 }
 0x17f   :  { %v3557_v20 = vadd.f32 %v3556_v19, %v3555_v34  ;;  %v3558_v21 = vpop.f32.mrb[14].mxu1 }
 0x180   :  { %v3559_v22 = vpop.f32.mrb[15].mxu1 }
 0x181   :  { %v2812_v46 = vadd.f32 %v3557_v20, %v497_v26 }
 0x195   :  { %v3577_v27 = vpop.f32.mrb[16].mxu1 }
 0x196   :  { %v3578_v44 = vpop.f32.mrb[17].mxu1 }
 0x197   :  { %v3579_v33 = vadd.f32 %v3578_v44, %v3577_v27  ;;  %v3580_v36 = vpop.f32.mrb[18].mxu1 }
 0x198   :  { %v3581_v48 = vpop.f32.mrb[19].mxu1 }
 0x199   :  { %v2852_v38 = vadd.f32 %v3579_v33, %v2804_v32  ;;  %v3582_v39 = vadd.f32 %v3581_v48, %v3580_v36  ;;  %v488_v33 = vsub.s32 0, %v5487_v24  ;;  %v492_v36 = vsub.s32 1, %v5487_v24 }
 0x19b   :  { %v2855_v53 = vadd.f32 %v3582_v39, %v2807_v37  ;;  %v489_v48 = vrot.slane %v5493_v25, %v488_v33  ;;  %v493_v37 = vrot.slane %v5493_v25, %v492_v36 }
 0x19d   :  { %v3583_v43 = vpop.f32.mrb[20].mxu1  ;;  %v3747_v39 = vadd.f32 %v5467_v42, %v493_v37 }
 0x19e   :  { %v3584_v45 = vpop.f32.mrb[21].mxu1 }
 0x19f   :  { %v3585_v47 = vadd.f32 %v3584_v45, %v3583_v43  ;;  %v3586_v15 = vpop.f32.mrb[22].mxu1  ;;  %v3749_v45 = vadd.f32 %v5469_v7, %v489_v48 }
 0x1a0   :  { %v3587_v23 = vpop.f32.mrb[23].mxu1 }
 0x1a1   :  { %v2860_v51 = vadd.f32 %v3585_v47, %v2812_v46  ;;  %v3751_v23 = vadd.f32 %v5474_v49, %v493_v37  ;;  %v3755_v49 = vadd.f32 %v5484_v11, %v493_v37 }
 0x1b5   :  { %v3605_v52 = vpop.f32.mrb[24].mxu1 }
 0x1b6   :  { %v3606_v54 = vpop.f32.mrb[25].mxu1 }
 0x1b7   :  { %v3607_v55 = vadd.f32 %v3606_v54, %v3605_v52  ;;  %v3608_v56 = vpop.f32.mrb[26].mxu1 }
 0x1b8   :  { %v3609_v57 = vpop.f32.mrb[27].mxu1 }
 0x1b9   :  { %v2900_v58 = vadd.f32 %v3607_v55, %v2852_v38  ;;  %v3610_v59 = vadd.f32 %v3609_v57, %v3608_v56  ;;  %v3745_v38 = vadd.f32 %v5465_v6, %v489_v48 }
 0x1bb   :  { %v2903_v60 = vadd.f32 %v3610_v59, %v2855_v53 }
 0x1bd   :  { %v3611_v61 = vpop.f32.mrb[28].mxu1 }
 0x1be   :  { %v3612_v62 = vpop.f32.mrb[29].mxu1 }
 0x1bf   :  { %v3613_v63 = vadd.f32 %v3612_v62, %v3611_v61  ;;  %v3614_v1 = vpop.f32.mrb[30].mxu1 }
 0x1c0   :  { %v3615_v50 = vpop.f32.mrb[31].mxu1 }
 0x1c1   :  { %v2908_v41 = vadd.f32 %v3613_v63, %v2860_v51  ;;  %v3753_v63 = vadd.f32 %v5482_v10, %v489_v48 }
 0x1d5   :  { %v3633_v31 = vpop.f32.mrb[32].mxu1 }
 0x1d6   :  { %v3634_v2 = vpop.f32.mrb[33].mxu1 }
 0x1d7   :  { %v3635_v0 = vadd.f32 %v3634_v2, %v3633_v31  ;;  %v3636_v5 = vpop.f32.mrb[34].mxu1 }
 0x1d8   :  { %v3637_v4 = vpop.f32.mrb[35].mxu1 }
 0x1d9   :  { %v2948_v3 = vadd.f32 %v3635_v0, %v2900_v58  ;;  %v3638_v8 = vadd.f32 %v3637_v4, %v3636_v5 }
 0x1db   :  { %v2951_v28 = vadd.f32 %v3638_v8, %v2903_v60 }
 0x1dd   :  { %v3639_v9 = vpop.f32.mrb[36].mxu1 }
 0x1de   :  { %v3640_v12 = vpop.f32.mrb[37].mxu1 }
 0x1df   :  { %v3641_v13 = vadd.f32 %v3640_v12, %v3639_v9  ;;  %v3642_v29 = vpop.f32.mrb[38].mxu1 }
 0x1e0   :  { %v3643_v14 = vpop.f32.mrb[39].mxu1 }
 0x1e1   :  { %v2956_v40 = vadd.f32 %v3641_v13, %v2908_v41 }
 0x1f5   :  { %v3661_v16 = vpop.f32.mrb[40].mxu1 }
 0x1f6   :  { %v3662_v17 = vpop.f32.mrb[41].mxu1 }
 0x1f7   :  { %v3663_v18 = vadd.f32 %v3662_v17, %v3661_v16  ;;  %v3664_v34 = vpop.f32.mrb[42].mxu1 }
 0x1f8   :  { %v3665_v19 = vpop.f32.mrb[43].mxu1 }
 0x1f9   :  { %v2996_v20 = vadd.f32 %v3663_v18, %v2948_v3  ;;  %v3666_v21 = vadd.f32 %v3665_v19, %v3664_v34 }
 0x1fb   :  { %v2999_v22 = vadd.f32 %v3666_v21, %v2951_v28 }
 0x1fd   :  { %v3667_v35 = vpop.f32.mrb[44].mxu1 }
 0x1fe   :  { %v3668_v30 = vpop.f32.mrb[45].mxu1 }
 0x1ff   :  { %v3669_v26 = vadd.f32 %v3668_v30, %v3667_v35  ;;  %v3670_v27 = vpop.f32.mrb[46].mxu1 }
 0x200   :  { %v3671_v44 = vpop.f32.mrb[47].mxu1 }
 0x201   :  { %v3004_v32 = vadd.f32 %v3669_v26, %v2956_v40 }
 0x215   :  { %v3689_v43 = vpop.f32.mrb[48].mxu1 }
 0x216   :  { %v2752_v53 = vpop.f32.mrb[0].mxu0  ;;  %v3690_v15 = vpop.f32.mrb[49].mxu1 }
 0x217   :  { %v3746_v46 = vadd.f32 %v3745_v38, %v2752_v53  ;;  %v2754_v47 = vpop.f32.mrb[1].mxu0  ;;  %v3691_v52 = vadd.f32 %v3690_v15, %v3689_v43  ;;  %v3692_v54 = vpop.f32.mrb[50].mxu1 }
 0x218   :  { %v3748_v51 = vadd.f32 %v3747_v39, %v2754_v47  ;;  %v2756_v24 = vpop.f32.mrb[2].mxu0  ;;  %v3693_v57 = vpop.f32.mrb[51].mxu1 }
 0x219   :  { %v3105_v55 = vmax.f32 %v3746_v46, 0.0  ;;  %v3750_v56 = vadd.f32 %v3749_v45, %v2756_v24  ;;  %v2758_v25 = vpop.f32.mrb[3].mxu0  ;;  %v3044_v58 = vadd.f32 %v3691_v52, %v2996_v20  ;;  %v3694_v59 = vadd.f32 %v3693_v57, %v3692_v54 }
 0x21a   :  { %v3106_v6 = vmax.f32 %v3748_v51, 0.0  ;;  %v3752_v42 = vadd.f32 %v3751_v23, %v2758_v25 }
 0x21b   :  { %v3108_v60 = vmax.f32 %v3750_v56, 0.0  ;;  %v3047_v62 = vadd.f32 %v3694_v59, %v2999_v22 }
 0x21c   :  { %v3527_v61 = vpack.c.bf16 %v3106_v6, %v3105_v55  ;;  %v3109_v7 = vmax.f32 %v3752_v42, 0.0 }
 0x21d   :  { %v3695_v41 = vpop.f32.mrb[52].mxu1 }
 0x21e   :  { %3147 = vst [vmem:[%s5527_s3] sm:$0xff] %v3527_v61  ;;  %v3529_v1 = vpack.c.bf16 %v3109_v7, %v3108_v60  ;;  %v2762_v50 = vpop.f32.mrb[4].mxu0  ;;  %v3696_v0 = vpop.f32.mrb[53].mxu1 }
 0x21f   :  { %v3754_v31 = vadd.f32 %v3753_v63, %v2762_v50  ;;  %v2764_v2 = vpop.f32.mrb[5].mxu0  ;;  %v3697_v4 = vadd.f32 %v3696_v0, %v3695_v41  ;;  %v3698_v10 = vpop.f32.mrb[54].mxu1 }
 0x220   :  { %3149 = vst [vmem:[%s5527_s3 + $0xc] sm:$0xff] %v3529_v1  ;;  %v3756_v5 = vadd.f32 %v3755_v49, %v2764_v2  ;;  %v2766_v3 = vpop.f32.mrb[6].mxu0  ;;  %v3699_v28 = vpop.f32.mrb[55].mxu1 }
 0x221   :  { %v3111_v8 = vmax.f32 %v3754_v31, 0.0  ;;  %v2767_v11 = vpop.f32.mrb[7].mxu0  ;;  %v3052_v12 = vadd.f32 %v3697_v4, %v3004_v32 }
 0x222   :  { %v3112_v9 = vmax.f32 %v3756_v5, 0.0 }
 0x224   :  { %v3531_v13 = vpack.c.bf16 %v3112_v9, %v3111_v8 }
 0x226   :  { %3151 = vst [vmem:[%s5527_s3 + $0x18] sm:$0xff] %v3531_v13 }
 0x235   :  { %v3723_v14 = vpop.f32.mrb[56].mxu1 }
 0x236   :  { %v3717_v29 = vpop.f32.mrb[8].mxu0  ;;  %v3724_v16 = vpop.f32.mrb[57].mxu1 }
 0x237   :  { %v3718_v40 = vpop.f32.mrb[9].mxu0  ;;  %v3725_v18 = vadd.f32 %v3724_v16, %v3723_v14  ;;  %v3726_v19 = vpop.f32.mrb[58].mxu1 }
 0x238   :  { %v3719_v17 = vadd.f32 %v3718_v40, %v3717_v29  ;;  %v3720_v34 = vpop.f32.mrb[10].mxu0  ;;  %v3727_v21 = vpop.f32.mrb[59].mxu1 }
 0x239   :  { %v3721_v20 = vpop.f32.mrb[11].mxu0  ;;  %v3100_v35 = vadd.f32 %v3725_v18, %v3052_v12 }
 0x23a   :  { %v3092_v22 = vadd.f32 %v3719_v17, %v3044_v58  ;;  %v3722_v30 = vadd.f32 %v3721_v20, %v3720_v34 }
 0x23b   :  { %v3113_v27 = vmax.f32 %v3100_v35, 0.0 }
 0x23c   :  { %v3107_v26 = vmax.f32 %v3092_v22, 0.0  ;;  %v3095_v44 = vadd.f32 %v3722_v30, %v3047_v62 }
 0x23d   :  { %v3532_v33 = vpack.c.bf16 %v3113_v27, %v3113_v27 }
 0x23e   :  { %v3528_v32 = vpack.c.bf16 %v3107_v26, %v3107_v26  ;;  %v3110_v36 = vmax.f32 %v3095_v44, 0.0 }
 0x23f   :  { %3152 = vst [vmem:[%s5527_s3 + $0x20] sm:$0xf] %v3532_v33 }
 0x240   :  { %3148 = vst [vmem:[%s5527_s3 + $0x8] sm:$0xf] %v3528_v32  ;;  %v3530_v48 = vpack.c.bf16 %v3110_v36, %v3110_v36 }
 0x242   :  { %3150 = vst [vmem:[%s5527_s3 + $0x14] sm:$0xf] %v3530_v48 }

// kernel: features_forward.13
= control target key start
LH: loop header
LB: loop body
LE: loop exit
PB: predicated region body
PF: predicated region fallthrough
CT: control target
= control target key end

     0   :  { %s6407_s1 = inlined_call_operand.vmem [shape: bf16[3456,256], index: 1, kind: input, shape index: {}]   ;;  %s6408_s0 = inlined_call_operand.vmem [shape: bf16[24,3456], index: 0, kind: input, shape index: {}]   ;;  %s6409_s2 = inlined_call_operand.vmem [shape: f32[1,256], index: 2, kind: input, shape index: {}]   ;;  %s6410_s3 = inlined_call_operand.vmem [shape: bf16[24,256], index: 3, kind: output, shape index: {}]  }
   0x1   :  { %v4240_v0 = vld [vmem:[%s6407_s1 + $0x4] ss:$8 sps:$4 sm:$0xff]   ;;  %v4244_v2 = vld [vmem:[%s6407_s1] ss:$8 sps:$4 sm:$0xff]   ;;  %v4246_v4 = vld [vmem:[%s6407_s1 + $0x14] ss:$8 sps:$4 sm:$0xff]  }
   0x2   :  { %v4242_v1 = vld [vmem:[%s6407_s1 + $0x704] ss:$8 sps:$4 sm:$0xff]   ;;  %2892 = vmatprep.subr.bf16.mxu1 %v4240_v0  ;;  %v4245_v3 = vld [vmem:[%s6407_s1 + $0x700] ss:$8 sps:$4 sm:$0xff]   ;;  %v4248_v5 = vld [vmem:[%s6407_s1 + $0x714] ss:$8 sps:$4 sm:$0xff]  }
   0x3   :  { %3249 = vmatprep.subr.bf16.mxu0 %v4242_v1  ;;  %2893 = vmatpush1.bf16.msra.mxu1 %v4244_v2  ;;  %v4250_v6 = vld [vmem:[%s6407_s1 + $0x10] ss:$8 sps:$4 sm:$0xff]   ;;  %v4252_v8 = vld [vmem:[%s6407_s1 + $0x24] ss:$8 sps:$4 sm:$0xff]   ;;  %v4256_v10 = vld [vmem:[%s6407_s1 + $0x20] ss:$8 sps:$4 sm:$0xff]  }
   0x4   :  { %3250 = vmatpush1.bf16.msra.mxu0 %v4245_v3  ;;  %2894 = vmatprep.subr.bf16.mxu1 %v4246_v4  ;;  %v4251_v7 = vld [vmem:[%s6407_s1 + $0x710] ss:$8 sps:$4 sm:$0xff]   ;;  %v4254_v9 = vld [vmem:[%s6407_s1 + $0x724] ss:$8 sps:$4 sm:$0xff]   ;;  %v4257_v11 = vld [vmem:[%s6407_s1 + $0x720] ss:$8 sps:$4 sm:$0xff]  }
   0x5   :  { %3251 = vmatprep.subr.bf16.mxu0 %v4248_v5  ;;  %v4258_v12 = vld [vmem:[%s6407_s1 + $0x34] ss:$8 sps:$4 sm:$0xff]   ;;  %v4262_v14 = vld [vmem:[%s6407_s1 + $0x30] ss:$8 sps:$4 sm:$0xff]   ;;  %v4264_v16 = vld [vmem:[%s6407_s1 + $0x44] ss:$8 sps:$4 sm:$0xff]  }
   0x6   :  { %v4260_v13 = vld [vmem:[%s6407_s1 + $0x734] ss:$8 sps:$4 sm:$0xff]   ;;  %v4263_v15 = vld [vmem:[%s6407_s1 + $0x730] ss:$8 sps:$4 sm:$0xff]   ;;  %v4266_v17 = vld [vmem:[%s6407_s1 + $0x744] ss:$8 sps:$4 sm:$0xff]  }
   0x7   :  { %2895 = vmatpush1.bf16.msra.mxu1 %v4250_v6  ;;  %v4268_v18 = vld [vmem:[%s6407_s1 + $0x40] ss:$8 sps:$4 sm:$0xff]   ;;  %v4270_v20 = vld [vmem:[%s6407_s1 + $0x54] ss:$8 sps:$4 sm:$0xff]   ;;  %v4274_v22 = vld [vmem:[%s6407_s1 + $0x50] ss:$8 sps:$4 sm:$0xff]  }
   0x8   :  { %3252 = vmatpush1.bf16.msra.mxu0 %v4251_v7  ;;  %2896 = vmatprep.subr.bf16.mxu1 %v4252_v8  ;;  %v4269_v19 = vld [vmem:[%s6407_s1 + $0x740] ss:$8 sps:$4 sm:$0xff]   ;;  %v4272_v21 = vld [vmem:[%s6407_s1 + $0x754] ss:$8 sps:$4 sm:$0xff]   ;;  %v4275_v23 = vld [vmem:[%s6407_s1 + $0x750] ss:$8 sps:$4 sm:$0xff]  }
   0x9   :  { %3253 = vmatprep.subr.bf16.mxu0 %v4254_v9  ;;  %v4276_v24 = vld [vmem:[%s6407_s1 + $0x64] ss:$8 sps:$4 sm:$0xff]   ;;  %v4280_v26 = vld [vmem:[%s6407_s1 + $0x60] ss:$8 sps:$4 sm:$0xff]   ;;  %v4282_v28 = vld [vmem:[%s6407_s1 + $0x74] ss:$8 sps:$4 sm:$0xff]  }
   0xa   :  { %v4278_v25 = vld [vmem:[%s6407_s1 + $0x764] ss:$8 sps:$4 sm:$0xff]   ;;  %v4281_v27 = vld [vmem:[%s6407_s1 + $0x760] ss:$8 sps:$4 sm:$0xff]   ;;  %v4284_v29 = vld [vmem:[%s6407_s1 + $0x774] ss:$8 sps:$4 sm:$0xff]  }
   0xb   :  { %2897 = vmatpush1.bf16.msra.mxu1 %v4256_v10  ;;  %v4286_v30 = vld [vmem:[%s6407_s1 + $0x70] ss:$8 sps:$4 sm:$0xff]   ;;  %v4288_v32 = vld [vmem:[%s6407_s1 + $0x84] ss:$8 sps:$4 sm:$0xff]   ;;  %v4292_v34 = vld [vmem:[%s6407_s1 + $0x80] ss:$8 sps:$4 sm:$0xff]  }
   0xc   :  { %3254 = vmatpush1.bf16.msra.mxu0 %v4257_v11  ;;  %2898 = vmatprep.subr.bf16.mxu1 %v4258_v12  ;;  %v4287_v31 = vld [vmem:[%s6407_s1 + $0x770] ss:$8 sps:$4 sm:$0xff]   ;;  %v4290_v33 = vld [vmem:[%s6407_s1 + $0x784] ss:$8 sps:$4 sm:$0xff]   ;;  %v4293_v35 = vld [vmem:[%s6407_s1 + $0x780] ss:$8 sps:$4 sm:$0xff]  }
   0xd   :  { %3255 = vmatprep.subr.bf16.mxu0 %v4260_v13  ;;  %v4294_v36 = vld [vmem:[%s6407_s1 + $0x94] ss:$8 sps:$4 sm:$0xff]   ;;  %v4298_v38 = vld [vmem:[%s6407_s1 + $0x90] ss:$8 sps:$4 sm:$0xff]   ;;  %v4300_v40 = vld [vmem:[%s6407_s1 + $0xa4] ss:$8 sps:$4 sm:$0xff]  }
   0xe   :  { %v4296_v37 = vld [vmem:[%s6407_s1 + $0x794] ss:$8 sps:$4 sm:$0xff]   ;;  %v4299_v39 = vld [vmem:[%s6407_s1 + $0x790] ss:$8 sps:$4 sm:$0xff]   ;;  %v4302_v41 = vld [vmem:[%s6407_s1 + $0x7a4] ss:$8 sps:$4 sm:$0xff]  }
   0xf   :  { %2899 = vmatpush1.bf16.msra.mxu1 %v4262_v14  ;;  %v4304_v42 = vld [vmem:[%s6407_s1 + $0xa0] ss:$8 sps:$4 sm:$0xff]   ;;  %v4306_v44 = vld [vmem:[%s6407_s1 + $0xb4] ss:$8 sps:$4 sm:$0xff]   ;;  %v4310_v46 = vld [vmem:[%s6407_s1 + $0xb0] ss:$8 sps:$4 sm:$0xff]  }
  0x10   :  { %3256 = vmatpush1.bf16.msra.mxu0 %v4263_v15  ;;  %2900 = vmatprep.subr.bf16.mxu1 %v4264_v16  ;;  %v4305_v43 = vld [vmem:[%s6407_s1 + $0x7a0] ss:$8 sps:$4 sm:$0xff]   ;;  %v4308_v45 = vld [vmem:[%s6407_s1 + $0x7b4] ss:$8 sps:$4 sm:$0xff]   ;;  %v4311_v47 = vld [vmem:[%s6407_s1 + $0x7b0] ss:$8 sps:$4 sm:$0xff]  }
  0x11   :  { %3257 = vmatprep.subr.bf16.mxu0 %v4266_v17  ;;  %v4338_v48 = vld [vmem:[%s6408_s0 + $0x4] ss:$108 sps:$4 sm:$0xff]   ;;  %v4344_v51 = vld [vmem:[%s6408_s0 + $0x3c] ss:$108 sps:$4 sm:$0xff]   ;;  %v4336_v4 = vld [vmem:[%s6408_s0] ss:$108 sps:$4 sm:$0xff]  }
  0x12   :  { %v4312_v49 = vld [vmem:[%s6407_s1 + $0xc4] ss:$8 sps:$4 sm:$0xff]   ;;  %2924 = vmatprep.mubr.bf16.mxu1 %v4338_v48  ;;  %v4316_v52 = vld [vmem:[%s6407_s1 + $0xc0] ss:$8 sps:$4 sm:$0xff]   ;;  %v4318_v54 = vld [vmem:[%s6407_s1 + $0xd4] ss:$8 sps:$4 sm:$0xff]   ;;  %3281 = vmatprep.mubr.bf16.mxu0 %v4344_v51 }
  0x13   :  { %2901 = vmatpush1.bf16.msra.mxu1 %v4268_v18  ;;  %v4314_v50 = vld [vmem:[%s6407_s1 + $0x7c4] ss:$8 sps:$4 sm:$0xff]   ;;  %v4317_v53 = vld [vmem:[%s6407_s1 + $0x7c0] ss:$8 sps:$4 sm:$0xff]   ;;  %v4320_v55 = vld [vmem:[%s6407_s1 + $0x7d4] ss:$8 sps:$4 sm:$0xff]  }
  0x14   :  { %3258 = vmatpush1.bf16.msra.mxu0 %v4269_v19  ;;  %2902 = vmatprep.subr.bf16.mxu1 %v4270_v20  ;;  %v4322_v56 = vld [vmem:[%s6407_s1 + $0xd0] ss:$8 sps:$4 sm:$0xff]   ;;  %v4324_v58 = vld [vmem:[%s6407_s1 + $0xe4] ss:$8 sps:$4 sm:$0xff]   ;;  %v4328_v60 = vld [vmem:[%s6407_s1 + $0xe0] ss:$8 sps:$4 sm:$0xff]  }
  0x15   :  { %3259 = vmatprep.subr.bf16.mxu0 %v4272_v21  ;;  %v4323_v57 = vld [vmem:[%s6407_s1 + $0x7d0] ss:$8 sps:$4 sm:$0xff]   ;;  %v4326_v59 = vld [vmem:[%s6407_s1 + $0x7e4] ss:$8 sps:$4 sm:$0xff]   ;;  %v4329_v61 = vld [vmem:[%s6407_s1 + $0x7e0] ss:$8 sps:$4 sm:$0xff]  }
  0x16   :  { %v4330_v62 = vld [vmem:[%s6407_s1 + $0xf4] ss:$8 sps:$4 sm:$0xff]   ;;  %v4334_v0 = vld [vmem:[%s6407_s1 + $0xf0] ss:$8 sps:$4 sm:$0xff]   ;;  %v4341_v2 = vld [vmem:[%s6407_s1 + $0x104] ss:$8 sps:$4 sm:$0xff]  }
  0x17   :  { %2903 = vmatpush1.bf16.msra.mxu1 %v4274_v22  ;;  %v4332_v63 = vld [vmem:[%s6407_s1 + $0x7f4] ss:$8 sps:$4 sm:$0xff]   ;;  %v4335_v1 = vld [vmem:[%s6407_s1 + $0x7f0] ss:$8 sps:$4 sm:$0xff]   ;;  %v4347_v3 = vld [vmem:[%s6407_s1 + $0x804] ss:$8 sps:$4 sm:$0xff]  }
  0x18   :  { %3260 = vmatpush1.bf16.msra.mxu0 %v4275_v23  ;;  %2904 = vmatprep.subr.bf16.mxu1 %v4276_v24  ;;  %v4339_v5 = vld [vmem:[%s6407_s1 + $0x100] ss:$8 sps:$4 sm:$0xff]   ;;  %v4342_v6 = vld [vmem:[%s6408_s0 + $0x38] ss:$108 sps:$4 sm:$0xff]   ;;  %v4350_v8 = vld [vmem:[%s6407_s1 + $0x114] ss:$8 sps:$4 sm:$0xff]  }
  0x19   :  { %3261 = vmatprep.subr.bf16.mxu0 %v4278_v25  ;;  %v4345_v7 = vld [vmem:[%s6407_s1 + $0x800] ss:$8 sps:$4 sm:$0xff]   ;;  %v4353_v9 = vld [vmem:[%s6407_s1 + $0x814] ss:$8 sps:$4 sm:$0xff]   ;;  %v4348_v10 = vld [vmem:[%s6407_s1 + $0x110] ss:$8 sps:$4 sm:$0xff]  }
  0x1a   :  { %v4351_v11 = vld [vmem:[%s6407_s1 + $0x810] ss:$8 sps:$4 sm:$0xff]   ;;  %v4356_v12 = vld [vmem:[%s6407_s1 + $0x124] ss:$8 sps:$4 sm:$0xff]   ;;  %v4354_v14 = vld [vmem:[%s6407_s1 + $0x120] ss:$8 sps:$4 sm:$0xff]  }
  0x1b   :  { %2905 = vmatpush1.bf16.msra.mxu1 %v4280_v26  ;;  %v4359_v13 = vld [vmem:[%s6407_s1 + $0x824] ss:$8 sps:$4 sm:$0xff]   ;;  %v4357_v15 = vld [vmem:[%s6407_s1 + $0x820] ss:$8 sps:$4 sm:$0xff]   ;;  %v4362_v16 = vld [vmem:[%s6407_s1 + $0x134] ss:$8 sps:$4 sm:$0xff]  }
  0x1c   :  { %3262 = vmatpush1.bf16.msra.mxu0 %v4281_v27  ;;  %2906 = vmatprep.subr.bf16.mxu1 %v4282_v28  ;;  %v4365_v17 = vld [vmem:[%s6407_s1 + $0x834] ss:$8 sps:$4 sm:$0xff]   ;;  %v4360_v18 = vld [vmem:[%s6407_s1 + $0x130] ss:$8 sps:$4 sm:$0xff]   ;;  %v4368_v20 = vld [vmem:[%s6407_s1 + $0x144] ss:$8 sps:$4 sm:$0xff]  }
  0x1d   :  { %3263 = vmatprep.subr.bf16.mxu0 %v4284_v29  ;;  %v4363_v19 = vld [vmem:[%s6407_s1 + $0x830] ss:$8 sps:$4 sm:$0xff]   ;;  %v4371_v21 = vld [vmem:[%s6407_s1 + $0x844] ss:$8 sps:$4 sm:$0xff]   ;;  %v4366_v22 = vld [vmem:[%s6407_s1 + $0x140] ss:$8 sps:$4 sm:$0xff]  }
  0x1e   :  { %v4369_v23 = vld [vmem:[%s6407_s1 + $0x840] ss:$8 sps:$4 sm:$0xff]   ;;  %v4374_v24 = vld [vmem:[%s6407_s1 + $0x154] ss:$8 sps:$4 sm:$0xff]   ;;  %v4372_v27 = vld [vmem:[%s6407_s1 + $0x150] ss:$8 sps:$4 sm:$0xff]  }
  0x1f   :  { %2907 = vmatpush1.bf16.msra.mxu1 %v4286_v30  ;;  %v4377_v25 = vld [vmem:[%s6407_s1 + $0x854] ss:$8 sps:$4 sm:$0xff]   ;;  %v4375_v30 = vld [vmem:[%s6407_s1 + $0x850] ss:$8 sps:$4 sm:$0xff]  }
  0x20   :  { %3264 = vmatpush1.bf16.msra.mxu0 %v4287_v31  ;;  %2908 = vmatprep.subr.bf16.mxu1 %v4288_v32  ;;  %v43_v26 = vld [vmem:[%s6408_s0 + $0xd8] sm:$0xff]  ;;  %v50_v31 = vld [vmem:[%s6408_s0 + $0x110] sm:$0xff]  ;;  %v4380_v32 = vld [vmem:[%s6407_s1 + $0x164] ss:$8 sps:$4 sm:$0xff]  }
  0x21   :  { %3265 = vmatprep.subr.bf16.mxu0 %v4290_v33  ;;  %v3667_v28 = vcombine.high %v43_v26, %v43_v26  ;;  %v3666_v29 = vcombine.low %v43_v26, %v43_v26  ;;  %v4383_v33 = vld [vmem:[%s6407_s1 + $0x864] ss:$8 sps:$4 sm:$0xff]   ;;  %v4398_v48 = vld [vmem:[%s6407_s1 + $0x194] ss:$8 sps:$4 sm:$0xff]   ;;  %v4399_v51 = vld [vmem:[%s6407_s1 + $0x890] ss:$8 sps:$4 sm:$0xff]  }
  0x22   :  { %v4462_v26 = vld [vmem:[%s6407_s1 + $0x224] ss:$8 sps:$4 sm:$0xff]  }
  0x23   :  { %2909 = vmatpush1.bf16.msra.mxu1 %v4292_v34  ;;  %v3681_v34 = vcombine.high %v50_v31, %v50_v31 }
  0x24   :  { %3266 = vmatpush1.bf16.msra.mxu0 %v4293_v35  ;;  %2910 = vmatprep.subr.bf16.mxu1 %v4294_v36  ;;  %v3680_v35 = vcombine.low %v50_v31, %v50_v31  ;;  %v4378_v36 = vld [vmem:[%s6407_s1 + $0x160] ss:$8 sps:$4 sm:$0xff]  }
  0x25   :  { %3267 = vmatprep.subr.bf16.mxu0 %v4296_v37  ;;  %v4381_v37 = vld [vmem:[%s6407_s1 + $0x860] ss:$8 sps:$4 sm:$0xff]  }
  0x27   :  { %2911 = vmatpush1.bf16.msra.mxu1 %v4298_v38  ;;  %v4386_v38 = vld [vmem:[%s6407_s1 + $0x174] ss:$8 sps:$4 sm:$0xff]  }
  0x28   :  { %3268 = vmatpush1.bf16.msra.mxu0 %v4299_v39  ;;  %2912 = vmatprep.subr.bf16.mxu1 %v4300_v40  ;;  %v4389_v39 = vld [vmem:[%s6407_s1 + $0x874] ss:$8 sps:$4 sm:$0xff]   ;;  %v4444_v40 = vld [vmem:[%s6408_s0 + $0xc] ss:$108 sps:$4 sm:$0xff]  }
  0x29   :  { %3269 = vmatprep.subr.bf16.mxu0 %v4302_v41  ;;  %v4384_v41 = vld [vmem:[%s6407_s1 + $0x170] ss:$8 sps:$4 sm:$0xff]  }
  0x2b   :  { %2913 = vmatpush1.bf16.msra.mxu1 %v4304_v42  ;;  %v4387_v42 = vld [vmem:[%s6407_s1 + $0x870] ss:$8 sps:$4 sm:$0xff]  }
  0x2c   :  { %3270 = vmatpush1.bf16.msra.mxu0 %v4305_v43  ;;  %2914 = vmatprep.subr.bf16.mxu1 %v4306_v44  ;;  %v4450_v43 = vld [vmem:[%s6408_s0 + $0x44] ss:$108 sps:$4 sm:$0xff]  }
  0x2d   :  { %3271 = vmatprep.subr.bf16.mxu0 %v4308_v45  ;;  %v4392_v44 = vld [vmem:[%s6407_s1 + $0x184] ss:$8 sps:$4 sm:$0xff]  }
  0x2e   :  { %v4395_v45 = vld [vmem:[%s6407_s1 + $0x884] ss:$8 sps:$4 sm:$0xff]  }
  0x2f   :  { %2915 = vmatpush1.bf16.msra.mxu1 %v4310_v46  ;;  %v4390_v46 = vld [vmem:[%s6407_s1 + $0x180] ss:$8 sps:$4 sm:$0xff]  }
  0x30   :  { %3272 = vmatpush1.bf16.msra.mxu0 %v4311_v47  ;;  %2916 = vmatprep.subr.bf16.mxu1 %v4312_v49  ;;  %v4393_v47 = vld [vmem:[%s6407_s1 + $0x880] ss:$8 sps:$4 sm:$0xff]   ;;  %v4401_v49 = vld [vmem:[%s6407_s1 + $0x894] ss:$8 sps:$4 sm:$0xff]  }
  0x31   :  { %3273 = vmatprep.subr.bf16.mxu0 %v4314_v50  ;;  %v4396_v50 = vld [vmem:[%s6407_s1 + $0x190] ss:$8 sps:$4 sm:$0xff]  }
  0x33   :  { %2917 = vmatpush1.bf16.msra.mxu1 %v4316_v52  ;;  %v4404_v52 = vld [vmem:[%s6407_s1 + $0x1a4] ss:$8 sps:$4 sm:$0xff]  }
  0x34   :  { %3274 = vmatpush1.bf16.msra.mxu0 %v4317_v53  ;;  %2918 = vmatprep.subr.bf16.mxu1 %v4318_v54  ;;  %v4407_v53 = vld [vmem:[%s6407_s1 + $0x8a4] ss:$8 sps:$4 sm:$0xff]   ;;  %v4402_v54 = vld [vmem:[%s6407_s1 + $0x1a0] ss:$8 sps:$4 sm:$0xff]  }
  0x35   :  { %3275 = vmatprep.subr.bf16.mxu0 %v4320_v55  ;;  %v4405_v55 = vld [vmem:[%s6407_s1 + $0x8a0] ss:$8 sps:$4 sm:$0xff]  }
  0x37   :  { %2919 = vmatpush1.bf16.msra.mxu1 %v4322_v56  ;;  %v4410_v56 = vld [vmem:[%s6407_s1 + $0x1b4] ss:$8 sps:$4 sm:$0xff]  }
  0x38   :  { %3276 = vmatpush1.bf16.msra.mxu0 %v4323_v57  ;;  %2920 = vmatprep.subr.bf16.mxu1 %v4324_v58  ;;  %v4413_v57 = vld [vmem:[%s6407_s1 + $0x8b4] ss:$8 sps:$4 sm:$0xff]   ;;  %v4408_v58 = vld [vmem:[%s6407_s1 + $0x1b0] ss:$8 sps:$4 sm:$0xff]  }
  0x39   :  { %3277 = vmatprep.subr.bf16.mxu0 %v4326_v59  ;;  %v4411_v59 = vld [vmem:[%s6407_s1 + $0x8b0] ss:$8 sps:$4 sm:$0xff]  }
  0x3b   :  { %2921 = vmatpush1.bf16.msra.mxu1 %v4328_v60  ;;  %v4416_v60 = vld [vmem:[%s6407_s1 + $0x1c4] ss:$8 sps:$4 sm:$0xff]  }
  0x3c   :  { %3278 = vmatpush1.bf16.msra.mxu0 %v4329_v61  ;;  %2922 = vmatprep.subr.bf16.mxu1 %v4330_v62  ;;  %v4419_v61 = vld [vmem:[%s6407_s1 + $0x8c4] ss:$8 sps:$4 sm:$0xff]   ;;  %v4414_v62 = vld [vmem:[%s6407_s1 + $0x1c0] ss:$8 sps:$4 sm:$0xff]  }
  0x3d   :  { %3279 = vmatprep.subr.bf16.mxu0 %v4332_v63  ;;  %v4417_v63 = vld [vmem:[%s6407_s1 + $0x8c0] ss:$8 sps:$4 sm:$0xff]  }
  0x3f   :  { %2923 = vmatpush1.bf16.msra.mxu1 %v4334_v0  ;;  %v4422_v0 = vld [vmem:[%s6407_s1 + $0x1d4] ss:$8 sps:$4 sm:$0xff]  }
  0x40   :  { %3280 = vmatpush1.bf16.msra.mxu0 %v4335_v1  ;;  %2943 = vmatprep.subr.bf16.mxu1 %v4341_v2  ;;  %v4425_v1 = vld [vmem:[%s6407_s1 + $0x8d4] ss:$8 sps:$4 sm:$0xff]   ;;  %v4420_v2 = vld [vmem:[%s6407_s1 + $0x1d0] ss:$8 sps:$4 sm:$0xff]  }
  0x41   :  { %3300 = vmatprep.subr.bf16.mxu0 %v4347_v3  ;;  %v4423_v3 = vld [vmem:[%s6407_s1 + $0x8d0] ss:$8 sps:$4 sm:$0xff]  }
  0x42   :  { %2925 = vmatmul.mubr.bf16.vlgmr.msra.gmra.mrb[0].mxu1 %v4336_v4  ;;  %v4429_v4 = vld [vmem:[%s6407_s1 + $0x1e4] ss:$8 sps:$4 sm:$0xff]  }
  0x43   :  { %3282 = vmatmul.mubr.bf16.vlgmr.msra.gmra.mrb[0].mxu0 %v4342_v6  ;;  %2944 = vmatpush1.bf16.msra.mxu1 %v4339_v5  ;;  %v4433_v5 = vld [vmem:[%s6407_s1 + $0x8e4] ss:$8 sps:$4 sm:$0xff]   ;;  %v4427_v6 = vld [vmem:[%s6407_s1 + $0x1e0] ss:$8 sps:$4 sm:$0xff]  }
  0x44   :  { %3301 = vmatpush1.bf16.msra.mxu0 %v4345_v7  ;;  %2945 = vmatprep.subr.bf16.mxu1 %v4350_v8  ;;  %v4431_v7 = vld [vmem:[%s6407_s1 + $0x8e0] ss:$8 sps:$4 sm:$0xff]   ;;  %v4438_v8 = vld [vmem:[%s6407_s1 + $0x1f4] ss:$8 sps:$4 sm:$0xff]  }
  0x45   :  { %3302 = vmatprep.subr.bf16.mxu0 %v4353_v9  ;;  %2934 = vmatprep.mubr.bf16.mxu1 %v3667_v28  ;;  %v4441_v9 = vld [vmem:[%s6407_s1 + $0x8f4] ss:$8 sps:$4 sm:$0xff]   ;;  %v4460_v28 = vld [vmem:[%s6407_s1 + $0x220] ss:$8 sps:$4 sm:$0xff]  }
  0x46   :  { %3291 = vmatprep.mubr.bf16.mxu0 %v3681_v34  ;;  %v4550_v34 = vld [vmem:[%s6408_s0 + $0x14] ss:$108 sps:$4 sm:$0xff]  }
  0x47   :  { %2946 = vmatpush1.bf16.msra.mxu1 %v4348_v10  ;;  %v4436_v10 = vld [vmem:[%s6407_s1 + $0x1f0] ss:$8 sps:$4 sm:$0xff]  }
  0x48   :  { %3303 = vmatpush1.bf16.msra.mxu0 %v4351_v11  ;;  %2947 = vmatprep.subr.bf16.mxu1 %v4356_v12  ;;  %v4439_v11 = vld [vmem:[%s6407_s1 + $0x8f0] ss:$8 sps:$4 sm:$0xff]   ;;  %v4442_v12 = vld [vmem:[%s6408_s0 + $0x8] ss:$108 sps:$4 sm:$0xff]  }
  0x49   :  { %3304 = vmatprep.subr.bf16.mxu0 %v4359_v13  ;;  %v4447_v13 = vld [vmem:[%s6407_s1 + $0x204] ss:$8 sps:$4 sm:$0xff]  }
  0x4a   :  { %2935 = vmatmul.mubr.bf16.gmra.mrb[4].mxu1 %v3666_v29  ;;  %v4463_v29 = vld [vmem:[%s6407_s1 + $0x920] ss:$8 sps:$4 sm:$0xff]  }
  0x4b   :  { %2948 = vmatpush1.bf16.msra.mxu1 %v4354_v14  ;;  %3292 = vmatmul.mubr.bf16.gmra.mrb[4].mxu0 %v3680_v35  ;;  %v4453_v14 = vld [vmem:[%s6407_s1 + $0x904] ss:$8 sps:$4 sm:$0xff]  }
  0x4c   :  { %3305 = vmatpush1.bf16.msra.mxu0 %v4357_v15  ;;  %2949 = vmatprep.subr.bf16.mxu1 %v4362_v16  ;;  %v4445_v15 = vld [vmem:[%s6407_s1 + $0x200] ss:$8 sps:$4 sm:$0xff]   ;;  %v4556_v35 = vld [vmem:[%s6408_s0 + $0x4c] ss:$108 sps:$4 sm:$0xff]  }
  0x4d   :  { %3306 = vmatprep.subr.bf16.mxu0 %v4365_v17  ;;  %2975 = vmatprep.mubr.bf16.mxu1 %v4444_v40  ;;  %v4448_v16 = vld [vmem:[%s6408_s0 + $0x40] ss:$108 sps:$4 sm:$0xff]  }
  0x4e   :  { %3332 = vmatprep.mubr.bf16.mxu0 %v4450_v43  ;;  %v4451_v17 = vld [vmem:[%s6407_s1 + $0x900] ss:$8 sps:$4 sm:$0xff]   ;;  %v4483_v43 = vld [vmem:[%s6407_s1 + $0x954] ss:$8 sps:$4 sm:$0xff]  }
  0x4f   :  { %2950 = vmatpush1.bf16.msra.mxu1 %v4360_v18  ;;  %v4456_v18 = vld [vmem:[%s6407_s1 + $0x214] ss:$8 sps:$4 sm:$0xff]   ;;  %v4472_v40 = vld [vmem:[%s6407_s1 + $0x240] ss:$8 sps:$4 sm:$0xff]  }
  0x50   :  { %3307 = vmatpush1.bf16.msra.mxu0 %v4363_v19  ;;  %2951 = vmatprep.subr.bf16.mxu1 %v4368_v20  ;;  %v44_v19 = vld [vmem:[%s6408_s0 + $0xe0] sm:$0xff]  ;;  %v4459_v20 = vld [vmem:[%s6407_s1 + $0x914] ss:$8 sps:$4 sm:$0xff]  }
  0x51   :  { %3308 = vmatprep.subr.bf16.mxu0 %v4371_v21  ;;  %v3669_v21 = vcombine.high %v44_v19, %v44_v19 }
  0x53   :  { %2952 = vmatpush1.bf16.msra.mxu1 %v4366_v22  ;;  %v51_v22 = vld [vmem:[%s6408_s0 + $0x118] sm:$0xff] }
  0x54   :  { %3309 = vmatpush1.bf16.msra.mxu0 %v4369_v23  ;;  %2953 = vmatprep.subr.bf16.mxu1 %v4374_v24  ;;  %v4454_v23 = vld [vmem:[%s6407_s1 + $0x210] ss:$8 sps:$4 sm:$0xff]   ;;  %v3682_v31 = vcombine.low %v51_v22, %v51_v22 }
  0x55   :  { %3310 = vmatprep.subr.bf16.mxu0 %v4377_v25  ;;  %v4457_v24 = vld [vmem:[%s6407_s1 + $0x910] ss:$8 sps:$4 sm:$0xff]   ;;  %v3683_v25 = vcombine.high %v51_v22, %v51_v22  ;;  %v4553_v22 = vld [vmem:[%s6407_s1 + $0x304] ss:$8 sps:$4 sm:$0xff]  }
  0x57   :  { %2954 = vmatpush1.bf16.msra.mxu1 %v4372_v27  ;;  %v4465_v27 = vld [vmem:[%s6407_s1 + $0x924] ss:$8 sps:$4 sm:$0xff]  }
  0x58   :  { %3311 = vmatpush1.bf16.msra.mxu0 %v4375_v30  ;;  %2955 = vmatprep.subr.bf16.mxu1 %v4380_v32  ;;  %v3668_v30 = vcombine.low %v44_v19, %v44_v19  ;;  %v4468_v32 = vld [vmem:[%s6407_s1 + $0x234] ss:$8 sps:$4 sm:$0xff]  }
  0x59   :  { %3312 = vmatprep.subr.bf16.mxu0 %v4383_v33  ;;  %v4471_v33 = vld [vmem:[%s6407_s1 + $0x934] ss:$8 sps:$4 sm:$0xff]  }
  0x5a   :  { %v4547_v19 = vld [vmem:[%s6407_s1 + $0x9f4] ss:$8 sps:$4 sm:$0xff]  }
  0x5b   :  { %2956 = vmatpush1.bf16.msra.mxu1 %v4378_v36  ;;  %v4466_v36 = vld [vmem:[%s6407_s1 + $0x230] ss:$8 sps:$4 sm:$0xff]  }
  0x5c   :  { %3313 = vmatpush1.bf16.msra.mxu0 %v4381_v37  ;;  %2957 = vmatprep.subr.bf16.mxu1 %v4386_v38  ;;  %v4469_v37 = vld [vmem:[%s6407_s1 + $0x930] ss:$8 sps:$4 sm:$0xff]   ;;  %v4474_v38 = vld [vmem:[%s6407_s1 + $0x244] ss:$8 sps:$4 sm:$0xff]  }
  0x5d   :  { %3314 = vmatprep.subr.bf16.mxu0 %v4389_v39  ;;  %v4477_v39 = vld [vmem:[%s6407_s1 + $0x944] ss:$8 sps:$4 sm:$0xff]  }
  0x5f   :  { %2958 = vmatpush1.bf16.msra.mxu1 %v4384_v41  ;;  %v4475_v41 = vld [vmem:[%s6407_s1 + $0x940] ss:$8 sps:$4 sm:$0xff]  }
  0x60   :  { %3315 = vmatpush1.bf16.msra.mxu0 %v4387_v42  ;;  %2959 = vmatprep.subr.bf16.mxu1 %v4392_v44  ;;  %v4480_v42 = vld [vmem:[%s6407_s1 + $0x254] ss:$8 sps:$4 sm:$0xff]   ;;  %v4478_v44 = vld [vmem:[%s6407_s1 + $0x250] ss:$8 sps:$4 sm:$0xff]  }
  0x61   :  { %3316 = vmatprep.subr.bf16.mxu0 %v4395_v45  ;;  %v4481_v45 = vld [vmem:[%s6407_s1 + $0x950] ss:$8 sps:$4 sm:$0xff]  }
  0x63   :  { %2960 = vmatpush1.bf16.msra.mxu1 %v4390_v46  ;;  %v4486_v46 = vld [vmem:[%s6407_s1 + $0x264] ss:$8 sps:$4 sm:$0xff]  }
  0x64   :  { %3317 = vmatpush1.bf16.msra.mxu0 %v4393_v47  ;;  %2961 = vmatprep.subr.bf16.mxu1 %v4398_v48  ;;  %v4489_v47 = vld [vmem:[%s6407_s1 + $0x964] ss:$8 sps:$4 sm:$0xff]   ;;  %v4484_v48 = vld [vmem:[%s6407_s1 + $0x260] ss:$8 sps:$4 sm:$0xff]  }
  0x65   :  { %3318 = vmatprep.subr.bf16.mxu0 %v4401_v49  ;;  %v4487_v49 = vld [vmem:[%s6407_s1 + $0x960] ss:$8 sps:$4 sm:$0xff]  }
  0x67   :  { %2962 = vmatpush1.bf16.msra.mxu1 %v4396_v50  ;;  %v4492_v50 = vld [vmem:[%s6407_s1 + $0x274] ss:$8 sps:$4 sm:$0xff]  }
  0x68   :  { %3319 = vmatpush1.bf16.msra.mxu0 %v4399_v51  ;;  %2963 = vmatprep.subr.bf16.mxu1 %v4404_v52  ;;  %v4495_v51 = vld [vmem:[%s6407_s1 + $0x974] ss:$8 sps:$4 sm:$0xff]   ;;  %v4490_v52 = vld [vmem:[%s6407_s1 + $0x270] ss:$8 sps:$4 sm:$0xff]  }
  0x69   :  { %3320 = vmatprep.subr.bf16.mxu0 %v4407_v53  ;;  %v4493_v53 = vld [vmem:[%s6407_s1 + $0x970] ss:$8 sps:$4 sm:$0xff]  }
  0x6b   :  { %2964 = vmatpush1.bf16.msra.mxu1 %v4402_v54  ;;  %v4498_v54 = vld [vmem:[%s6407_s1 + $0x284] ss:$8 sps:$4 sm:$0xff]  }
  0x6c   :  { %3321 = vmatpush1.bf16.msra.mxu0 %v4405_v55  ;;  %2965 = vmatprep.subr.bf16.mxu1 %v4410_v56  ;;  %v4501_v55 = vld [vmem:[%s6407_s1 + $0x984] ss:$8 sps:$4 sm:$0xff]   ;;  %v4496_v56 = vld [vmem:[%s6407_s1 + $0x280] ss:$8 sps:$4 sm:$0xff]  }
  0x6d   :  { %3322 = vmatprep.subr.bf16.mxu0 %v4413_v57  ;;  %v4499_v57 = vld [vmem:[%s6407_s1 + $0x980] ss:$8 sps:$4 sm:$0xff]  }
  0x6f   :  { %2966 = vmatpush1.bf16.msra.mxu1 %v4408_v58  ;;  %v4504_v58 = vld [vmem:[%s6407_s1 + $0x294] ss:$8 sps:$4 sm:$0xff]  }
  0x70   :  { %3323 = vmatpush1.bf16.msra.mxu0 %v4411_v59  ;;  %2967 = vmatprep.subr.bf16.mxu1 %v4416_v60  ;;  %v4507_v59 = vld [vmem:[%s6407_s1 + $0x994] ss:$8 sps:$4 sm:$0xff]   ;;  %v4502_v60 = vld [vmem:[%s6407_s1 + $0x290] ss:$8 sps:$4 sm:$0xff]  }
  0x71   :  { %3324 = vmatprep.subr.bf16.mxu0 %v4419_v61  ;;  %v4505_v61 = vld [vmem:[%s6407_s1 + $0x990] ss:$8 sps:$4 sm:$0xff]  }
  0x73   :  { %2968 = vmatpush1.bf16.msra.mxu1 %v4414_v62  ;;  %v4510_v62 = vld [vmem:[%s6407_s1 + $0x2a4] ss:$8 sps:$4 sm:$0xff]  }
  0x74   :  { %3325 = vmatpush1.bf16.msra.mxu0 %v4417_v63  ;;  %2969 = vmatprep.subr.bf16.mxu1 %v4422_v0  ;;  %v4513_v63 = vld [vmem:[%s6407_s1 + $0x9a4] ss:$8 sps:$4 sm:$0xff]   ;;  %v4508_v0 = vld [vmem:[%s6407_s1 + $0x2a0] ss:$8 sps:$4 sm:$0xff]  }
  0x75   :  { %3326 = vmatprep.subr.bf16.mxu0 %v4425_v1  ;;  %v4511_v1 = vld [vmem:[%s6407_s1 + $0x9a0] ss:$8 sps:$4 sm:$0xff]  }
  0x77   :  { %2970 = vmatpush1.bf16.msra.mxu1 %v4420_v2  ;;  %v4516_v2 = vld [vmem:[%s6407_s1 + $0x2b4] ss:$8 sps:$4 sm:$0xff]  }
  0x78   :  { %3327 = vmatpush1.bf16.msra.mxu0 %v4423_v3  ;;  %2971 = vmatprep.subr.bf16.mxu1 %v4429_v4  ;;  %v4519_v3 = vld [vmem:[%s6407_s1 + $0x9b4] ss:$8 sps:$4 sm:$0xff]   ;;  %v4514_v4 = vld [vmem:[%s6407_s1 + $0x2b0] ss:$8 sps:$4 sm:$0xff]  }
  0x79   :  { %3328 = vmatprep.subr.bf16.mxu0 %v4433_v5  ;;  %v4517_v5 = vld [vmem:[%s6407_s1 + $0x9b0] ss:$8 sps:$4 sm:$0xff]  }
  0x7b   :  { %2972 = vmatpush1.bf16.msra.mxu1 %v4427_v6  ;;  %v4522_v6 = vld [vmem:[%s6407_s1 + $0x2c4] ss:$8 sps:$4 sm:$0xff]  }
  0x7c   :  { %3329 = vmatpush1.bf16.msra.mxu0 %v4431_v7  ;;  %2973 = vmatprep.subr.bf16.mxu1 %v4438_v8  ;;  %v4525_v7 = vld [vmem:[%s6407_s1 + $0x9c4] ss:$8 sps:$4 sm:$0xff]   ;;  %v4520_v8 = vld [vmem:[%s6407_s1 + $0x2c0] ss:$8 sps:$4 sm:$0xff]  }
  0x7d   :  { %3330 = vmatprep.subr.bf16.mxu0 %v4441_v9  ;;  %v4523_v9 = vld [vmem:[%s6407_s1 + $0x9c0] ss:$8 sps:$4 sm:$0xff]  }
  0x7f   :  { %2974 = vmatpush1.bf16.msra.mxu1 %v4436_v10  ;;  %v4528_v10 = vld [vmem:[%s6407_s1 + $0x2d4] ss:$8 sps:$4 sm:$0xff]  }
  0x80   :  { %3331 = vmatpush1.bf16.msra.mxu0 %v4439_v11  ;;  %2994 = vmatprep.subr.bf16.mxu1 %v4447_v13  ;;  %v4531_v11 = vld [vmem:[%s6407_s1 + $0x9d4] ss:$8 sps:$4 sm:$0xff]   ;;  %v4529_v13 = vld [vmem:[%s6407_s1 + $0x9d0] ss:$8 sps:$4 sm:$0xff]  }
  0x81   :  { %3351 = vmatprep.subr.bf16.mxu0 %v4453_v14  ;;  %v4535_v14 = vld [vmem:[%s6407_s1 + $0x2e4] ss:$8 sps:$4 sm:$0xff]  }
  0x82   :  { %2976 = vmatmul.mubr.bf16.vlgmr.msra.gmra.mrb[0].mxu1 %v4442_v12  ;;  %v4526_v12 = vld [vmem:[%s6407_s1 + $0x2d0] ss:$8 sps:$4 sm:$0xff]  }
  0x83   :  { %3333 = vmatmul.mubr.bf16.vlgmr.msra.gmra.mrb[0].mxu0 %v4448_v16  ;;  %2995 = vmatpush1.bf16.msra.mxu1 %v4445_v15  ;;  %v4539_v15 = vld [vmem:[%s6407_s1 + $0x9e4] ss:$8 sps:$4 sm:$0xff]   ;;  %v4533_v16 = vld [vmem:[%s6407_s1 + $0x2e0] ss:$8 sps:$4 sm:$0xff]  }
  0x84   :  { %3352 = vmatpush1.bf16.msra.mxu0 %v4451_v17  ;;  %2996 = vmatprep.subr.bf16.mxu1 %v4456_v18  ;;  %v4537_v17 = vld [vmem:[%s6407_s1 + $0x9e0] ss:$8 sps:$4 sm:$0xff]   ;;  %v4544_v18 = vld [vmem:[%s6407_s1 + $0x2f4] ss:$8 sps:$4 sm:$0xff]  }
  0x85   :  { %3353 = vmatprep.subr.bf16.mxu0 %v4459_v20  ;;  %2985 = vmatprep.mubr.bf16.mxu1 %v3669_v21  ;;  %v4542_v20 = vld [vmem:[%s6407_s1 + $0x2f0] ss:$8 sps:$4 sm:$0xff]  }
  0x86   :  { %3342 = vmatprep.mubr.bf16.mxu0 %v3683_v25  ;;  %v4545_v21 = vld [vmem:[%s6407_s1 + $0x9f0] ss:$8 sps:$4 sm:$0xff]   ;;  %v4559_v25 = vld [vmem:[%s6407_s1 + $0xa04] ss:$8 sps:$4 sm:$0xff]  }
  0x87   :  { %2997 = vmatpush1.bf16.msra.mxu1 %v4454_v23  ;;  %v4548_v23 = vld [vmem:[%s6408_s0 + $0x10] ss:$108 sps:$4 sm:$0xff]  }
  0x88   :  { %3354 = vmatpush1.bf16.msra.mxu0 %v4457_v24  ;;  %2998 = vmatprep.subr.bf16.mxu1 %v4462_v26  ;;  %v4554_v24 = vld [vmem:[%s6408_s0 + $0x48] ss:$108 sps:$4 sm:$0xff]  }
  0x89   :  { %3355 = vmatprep.subr.bf16.mxu0 %v4465_v27  ;;  %v45_v26 = vld [vmem:[%s6408_s0 + $0xe8] sm:$0xff]  ;;  %v52_v27 = vld [vmem:[%s6408_s0 + $0x120] sm:$0xff] }
  0x8a   :  { %2986 = vmatmul.mubr.bf16.gmra.mrb[4].mxu1 %v3668_v30  ;;  %v4562_v30 = vld [vmem:[%s6407_s1 + $0x314] ss:$8 sps:$4 sm:$0xff]  }
  0x8b   :  { %3343 = vmatmul.mubr.bf16.gmra.mrb[4].mxu0 %v3682_v31  ;;  %2999 = vmatpush1.bf16.msra.mxu1 %v4460_v28  ;;  %v4551_v28 = vld [vmem:[%s6407_s1 + $0x300] ss:$8 sps:$4 sm:$0xff]   ;;  %v4565_v31 = vld [vmem:[%s6407_s1 + $0xa14] ss:$8 sps:$4 sm:$0xff]  }
  0x8c   :  { %3356 = vmatpush1.bf16.msra.mxu0 %v4463_v29  ;;  %3000 = vmatprep.subr.bf16.mxu1 %v4468_v32  ;;  %v4557_v29 = vld [vmem:[%s6407_s1 + $0xa00] ss:$8 sps:$4 sm:$0xff]   ;;  %v3671_v32 = vcombine.high %v45_v26, %v45_v26 }
  0x8d   :  { %3357 = vmatprep.subr.bf16.mxu0 %v4471_v33  ;;  %3026 = vmatprep.mubr.bf16.mxu1 %v4550_v34  ;;  %v3685_v33 = vcombine.high %v52_v27, %v52_v27  ;;  %v4560_v34 = vld [vmem:[%s6407_s1 + $0x310] ss:$8 sps:$4 sm:$0xff]  }
  0x8e   :  { %3383 = vmatprep.mubr.bf16.mxu0 %v4556_v35  ;;  %v4563_v35 = vld [vmem:[%s6407_s1 + $0xa10] ss:$8 sps:$4 sm:$0xff]  }
  0x8f   :  { %3001 = vmatpush1.bf16.msra.mxu1 %v4466_v36  ;;  %v4568_v36 = vld [vmem:[%s6407_s1 + $0x324] ss:$8 sps:$4 sm:$0xff]  }
  0x90   :  { %3358 = vmatpush1.bf16.msra.mxu0 %v4469_v37  ;;  %3002 = vmatprep.subr.bf16.mxu1 %v4474_v38  ;;  %v4571_v37 = vld [vmem:[%s6407_s1 + $0xa24] ss:$8 sps:$4 sm:$0xff]   ;;  %v4566_v38 = vld [vmem:[%s6407_s1 + $0x320] ss:$8 sps:$4 sm:$0xff]  }
  0x91   :  { %3359 = vmatprep.subr.bf16.mxu0 %v4477_v39  ;;  %v3670_v39 = vcombine.low %v45_v26, %v45_v26  ;;  %v4639_v26 = vld [vmem:[%s6407_s1 + $0x3e0] ss:$8 sps:$4 sm:$0xff]  }
  0x93   :  { %3003 = vmatpush1.bf16.msra.mxu1 %v4472_v40  ;;  %v3684_v40 = vcombine.low %v52_v27, %v52_v27  ;;  %v4643_v27 = vld [vmem:[%s6407_s1 + $0xae0] ss:$8 sps:$4 sm:$0xff]  }
  0x94   :  { %3360 = vmatpush1.bf16.msra.mxu0 %v4475_v41  ;;  %3004 = vmatprep.subr.bf16.mxu1 %v4480_v42  ;;  %v4569_v41 = vld [vmem:[%s6407_s1 + $0xa20] ss:$8 sps:$4 sm:$0xff]   ;;  %v4574_v42 = vld [vmem:[%s6407_s1 + $0x334] ss:$8 sps:$4 sm:$0xff]  }
  0x95   :  { %3361 = vmatprep.subr.bf16.mxu0 %v4483_v43  ;;  %v4577_v43 = vld [vmem:[%s6407_s1 + $0xa34] ss:$8 sps:$4 sm:$0xff]  }
  0x97   :  { %3005 = vmatpush1.bf16.msra.mxu1 %v4478_v44  ;;  %v4656_v44 = vld [vmem:[%s6408_s0 + $0x1c] ss:$108 sps:$4 sm:$0xff]  }
  0x98   :  { %3362 = vmatpush1.bf16.msra.mxu0 %v4481_v45  ;;  %3006 = vmatprep.subr.bf16.mxu1 %v4486_v46  ;;  %v4662_v45 = vld [vmem:[%s6408_s0 + $0x54] ss:$108 sps:$4 sm:$0xff]   ;;  %v4572_v46 = vld [vmem:[%s6407_s1 + $0x330] ss:$8 sps:$4 sm:$0xff]  }
  0x99   :  { %3363 = vmatprep.subr.bf16.mxu0 %v4489_v47  ;;  %v4575_v47 = vld [vmem:[%s6407_s1 + $0xa30] ss:$8 sps:$4 sm:$0xff]  }
  0x9b   :  { %3007 = vmatpush1.bf16.msra.mxu1 %v4484_v48  ;;  %v4580_v48 = vld [vmem:[%s6407_s1 + $0x344] ss:$8 sps:$4 sm:$0xff]  }
  0x9c   :  { %3364 = vmatpush1.bf16.msra.mxu0 %v4487_v49  ;;  %3008 = vmatprep.subr.bf16.mxu1 %v4492_v50  ;;  %v4583_v49 = vld [vmem:[%s6407_s1 + $0xa44] ss:$8 sps:$4 sm:$0xff]   ;;  %v4578_v50 = vld [vmem:[%s6407_s1 + $0x340] ss:$8 sps:$4 sm:$0xff]  }
  0x9d   :  { %3365 = vmatprep.subr.bf16.mxu0 %v4495_v51  ;;  %v4581_v51 = vld [vmem:[%s6407_s1 + $0xa40] ss:$8 sps:$4 sm:$0xff]  }
  0x9f   :  { %3009 = vmatpush1.bf16.msra.mxu1 %v4490_v52  ;;  %v4586_v52 = vld [vmem:[%s6407_s1 + $0x354] ss:$8 sps:$4 sm:$0xff]  }
  0xa0   :  { %3366 = vmatpush1.bf16.msra.mxu0 %v4493_v53  ;;  %3010 = vmatprep.subr.bf16.mxu1 %v4498_v54  ;;  %v4589_v53 = vld [vmem:[%s6407_s1 + $0xa54] ss:$8 sps:$4 sm:$0xff]   ;;  %v4584_v54 = vld [vmem:[%s6407_s1 + $0x350] ss:$8 sps:$4 sm:$0xff]  }
  0xa1   :  { %3367 = vmatprep.subr.bf16.mxu0 %v4501_v55  ;;  %v4587_v55 = vld [vmem:[%s6407_s1 + $0xa50] ss:$8 sps:$4 sm:$0xff]  }
  0xa3   :  { %3011 = vmatpush1.bf16.msra.mxu1 %v4496_v56  ;;  %v4592_v56 = vld [vmem:[%s6407_s1 + $0x364] ss:$8 sps:$4 sm:$0xff]  }
  0xa4   :  { %3368 = vmatpush1.bf16.msra.mxu0 %v4499_v57  ;;  %3012 = vmatprep.subr.bf16.mxu1 %v4504_v58  ;;  %v4595_v57 = vld [vmem:[%s6407_s1 + $0xa64] ss:$8 sps:$4 sm:$0xff]   ;;  %v4590_v58 = vld [vmem:[%s6407_s1 + $0x360] ss:$8 sps:$4 sm:$0xff]  }
  0xa5   :  { %3369 = vmatprep.subr.bf16.mxu0 %v4507_v59  ;;  %v4593_v59 = vld [vmem:[%s6407_s1 + $0xa60] ss:$8 sps:$4 sm:$0xff]  }
  0xa7   :  { %3013 = vmatpush1.bf16.msra.mxu1 %v4502_v60  ;;  %v4598_v60 = vld [vmem:[%s6407_s1 + $0x374] ss:$8 sps:$4 sm:$0xff]  }
  0xa8   :  { %3370 = vmatpush1.bf16.msra.mxu0 %v4505_v61  ;;  %3014 = vmatprep.subr.bf16.mxu1 %v4510_v62  ;;  %v4601_v61 = vld [vmem:[%s6407_s1 + $0xa74] ss:$8 sps:$4 sm:$0xff]   ;;  %v4596_v62 = vld [vmem:[%s6407_s1 + $0x370] ss:$8 sps:$4 sm:$0xff]  }
  0xa9   :  { %3371 = vmatprep.subr.bf16.mxu0 %v4513_v63  ;;  %v4599_v63 = vld [vmem:[%s6407_s1 + $0xa70] ss:$8 sps:$4 sm:$0xff]  }
  0xab   :  { %3015 = vmatpush1.bf16.msra.mxu1 %v4508_v0  ;;  %v4604_v0 = vld [vmem:[%s6407_s1 + $0x384] ss:$8 sps:$4 sm:$0xff]  }
  0xac   :  { %3372 = vmatpush1.bf16.msra.mxu0 %v4511_v1  ;;  %3016 = vmatprep.subr.bf16.mxu1 %v4516_v2  ;;  %v4607_v1 = vld [vmem:[%s6407_s1 + $0xa84] ss:$8 sps:$4 sm:$0xff]   ;;  %v4602_v2 = vld [vmem:[%s6407_s1 + $0x380] ss:$8 sps:$4 sm:$0xff]  }
  0xad   :  { %3373 = vmatprep.subr.bf16.mxu0 %v4519_v3  ;;  %v4605_v3 = vld [vmem:[%s6407_s1 + $0xa80] ss:$8 sps:$4 sm:$0xff]  }
  0xaf   :  { %3017 = vmatpush1.bf16.msra.mxu1 %v4514_v4  ;;  %v4610_v4 = vld [vmem:[%s6407_s1 + $0x394] ss:$8 sps:$4 sm:$0xff]  }
  0xb0   :  { %3374 = vmatpush1.bf16.msra.mxu0 %v4517_v5  ;;  %3018 = vmatprep.subr.bf16.mxu1 %v4522_v6  ;;  %v4613_v5 = vld [vmem:[%s6407_s1 + $0xa94] ss:$8 sps:$4 sm:$0xff]   ;;  %v4608_v6 = vld [vmem:[%s6407_s1 + $0x390] ss:$8 sps:$4 sm:$0xff]  }
  0xb1   :  { %3375 = vmatprep.subr.bf16.mxu0 %v4525_v7  ;;  %v4611_v7 = vld [vmem:[%s6407_s1 + $0xa90] ss:$8 sps:$4 sm:$0xff]  }
  0xb3   :  { %3019 = vmatpush1.bf16.msra.mxu1 %v4520_v8  ;;  %v4616_v8 = vld [vmem:[%s6407_s1 + $0x3a4] ss:$8 sps:$4 sm:$0xff]  }
  0xb4   :  { %3376 = vmatpush1.bf16.msra.mxu0 %v4523_v9  ;;  %3020 = vmatprep.subr.bf16.mxu1 %v4528_v10  ;;  %v4619_v9 = vld [vmem:[%s6407_s1 + $0xaa4] ss:$8 sps:$4 sm:$0xff]   ;;  %v4614_v10 = vld [vmem:[%s6407_s1 + $0x3a0] ss:$8 sps:$4 sm:$0xff]  }
  0xb5   :  { %3377 = vmatprep.subr.bf16.mxu0 %v4531_v11  ;;  %v4617_v11 = vld [vmem:[%s6407_s1 + $0xaa0] ss:$8 sps:$4 sm:$0xff]  }
  0xb7   :  { %3021 = vmatpush1.bf16.msra.mxu1 %v4526_v12  ;;  %v4622_v12 = vld [vmem:[%s6407_s1 + $0x3b4] ss:$8 sps:$4 sm:$0xff]  }
  0xb8   :  { %3378 = vmatpush1.bf16.msra.mxu0 %v4529_v13  ;;  %3022 = vmatprep.subr.bf16.mxu1 %v4535_v14  ;;  %v4625_v13 = vld [vmem:[%s6407_s1 + $0xab4] ss:$8 sps:$4 sm:$0xff]   ;;  %v4620_v14 = vld [vmem:[%s6407_s1 + $0x3b0] ss:$8 sps:$4 sm:$0xff]  }
  0xb9   :  { %3379 = vmatprep.subr.bf16.mxu0 %v4539_v15  ;;  %v4623_v15 = vld [vmem:[%s6407_s1 + $0xab0] ss:$8 sps:$4 sm:$0xff]  }
  0xbb   :  { %3023 = vmatpush1.bf16.msra.mxu1 %v4533_v16  ;;  %v4628_v16 = vld [vmem:[%s6407_s1 + $0x3c4] ss:$8 sps:$4 sm:$0xff]  }
  0xbc   :  { %3380 = vmatpush1.bf16.msra.mxu0 %v4537_v17  ;;  %3024 = vmatprep.subr.bf16.mxu1 %v4544_v18  ;;  %v4631_v17 = vld [vmem:[%s6407_s1 + $0xac4] ss:$8 sps:$4 sm:$0xff]   ;;  %v4626_v18 = vld [vmem:[%s6407_s1 + $0x3c0] ss:$8 sps:$4 sm:$0xff]  }
  0xbd   :  { %3381 = vmatprep.subr.bf16.mxu0 %v4547_v19  ;;  %v4629_v19 = vld [vmem:[%s6407_s1 + $0xac0] ss:$8 sps:$4 sm:$0xff]  }
  0xbf   :  { %3025 = vmatpush1.bf16.msra.mxu1 %v4542_v20  ;;  %v4634_v20 = vld [vmem:[%s6407_s1 + $0x3d4] ss:$8 sps:$4 sm:$0xff]  }
  0xc0   :  { %3382 = vmatpush1.bf16.msra.mxu0 %v4545_v21  ;;  %3045 = vmatprep.subr.bf16.mxu1 %v4553_v22  ;;  %v4637_v21 = vld [vmem:[%s6407_s1 + $0xad4] ss:$8 sps:$4 sm:$0xff]   ;;  %v4632_v22 = vld [vmem:[%s6407_s1 + $0x3d0] ss:$8 sps:$4 sm:$0xff]  }
  0xc1   :  { %3402 = vmatprep.subr.bf16.mxu0 %v4559_v25  ;;  %v4645_v25 = vld [vmem:[%s6407_s1 + $0xae4] ss:$8 sps:$4 sm:$0xff]  }
  0xc2   :  { %3027 = vmatmul.mubr.bf16.vlgmr.msra.gmra.mrb[0].mxu1 %v4548_v23  ;;  %v4635_v23 = vld [vmem:[%s6407_s1 + $0xad0] ss:$8 sps:$4 sm:$0xff]  }
  0xc3   :  { %3384 = vmatmul.mubr.bf16.vlgmr.msra.gmra.mrb[0].mxu0 %v4554_v24  ;;  %3046 = vmatpush1.bf16.msra.mxu1 %v4551_v28  ;;  %v4641_v24 = vld [vmem:[%s6407_s1 + $0x3e4] ss:$8 sps:$4 sm:$0xff]   ;;  %v4650_v28 = vld [vmem:[%s6407_s1 + $0x3f4] ss:$8 sps:$4 sm:$0xff]  }
  0xc4   :  { %3403 = vmatpush1.bf16.msra.mxu0 %v4557_v29  ;;  %3047 = vmatprep.subr.bf16.mxu1 %v4562_v30  ;;  %v4653_v29 = vld [vmem:[%s6407_s1 + $0xaf4] ss:$8 sps:$4 sm:$0xff]   ;;  %v4648_v30 = vld [vmem:[%s6407_s1 + $0x3f0] ss:$8 sps:$4 sm:$0xff]  }
  0xc5   :  { %3404 = vmatprep.subr.bf16.mxu0 %v4565_v31  ;;  %3036 = vmatprep.mubr.bf16.mxu1 %v3671_v32  ;;  %v4651_v31 = vld [vmem:[%s6407_s1 + $0xaf0] ss:$8 sps:$4 sm:$0xff]   ;;  %v4659_v32 = vld [vmem:[%s6407_s1 + $0x404] ss:$8 sps:$4 sm:$0xff]  }
  0xc6   :  { %3393 = vmatprep.mubr.bf16.mxu0 %v3685_v33  ;;  %v4654_v33 = vld [vmem:[%s6408_s0 + $0x18] ss:$108 sps:$4 sm:$0xff]  }
  0xc7   :  { %3048 = vmatpush1.bf16.msra.mxu1 %v4560_v34  ;;  %v4665_v34 = vld [vmem:[%s6407_s1 + $0xb04] ss:$8 sps:$4 sm:$0xff]  }
  0xc8   :  { %3405 = vmatpush1.bf16.msra.mxu0 %v4563_v35  ;;  %3049 = vmatprep.subr.bf16.mxu1 %v4568_v36  ;;  %v4657_v35 = vld [vmem:[%s6407_s1 + $0x400] ss:$8 sps:$4 sm:$0xff]   ;;  %v4660_v36 = vld [vmem:[%s6408_s0 + $0x50] ss:$108 sps:$4 sm:$0xff]  }
  0xc9   :  { %3406 = vmatprep.subr.bf16.mxu0 %v4571_v37  ;;  %v4663_v37 = vld [vmem:[%s6407_s1 + $0xb00] ss:$8 sps:$4 sm:$0xff]  }
  0xca   :  { %3037 = vmatmul.mubr.bf16.gmra.mrb[4].mxu1 %v3670_v39  ;;  %v53_v39 = vld [vmem:[%s6408_s0 + $0x128] sm:$0xff] }
  0xcb   :  { %3394 = vmatmul.mubr.bf16.gmra.mrb[4].mxu0 %v3684_v40  ;;  %3050 = vmatpush1.bf16.msra.mxu1 %v4566_v38  ;;  %v46_v38 = vld [vmem:[%s6408_s0 + $0xf0] sm:$0xff] }
  0xcc   :  { %3407 = vmatpush1.bf16.msra.mxu0 %v4569_v41  ;;  %3051 = vmatprep.subr.bf16.mxu1 %v4574_v42  ;;  %v4668_v40 = vld [vmem:[%s6407_s1 + $0x414] ss:$8 sps:$4 sm:$0xff]   ;;  %v3673_v42 = vcombine.high %v46_v38, %v46_v38 }
  0xcd   :  { %3408 = vmatprep.subr.bf16.mxu0 %v4577_v43  ;;  %3077 = vmatprep.mubr.bf16.mxu1 %v4656_v44  ;;  %v4671_v41 = vld [vmem:[%s6407_s1 + $0xb14] ss:$8 sps:$4 sm:$0xff]   ;;  %v3687_v43 = vcombine.high %v53_v39, %v53_v39  ;;  %v4666_v44 = vld [vmem:[%s6407_s1 + $0x410] ss:$8 sps:$4 sm:$0xff]  }
  0xce   :  { %3434 = vmatprep.mubr.bf16.mxu0 %v4662_v45  ;;  %v4669_v45 = vld [vmem:[%s6407_s1 + $0xb10] ss:$8 sps:$4 sm:$0xff]  }
  0xcf   :  { %3052 = vmatpush1.bf16.msra.mxu1 %v4572_v46  ;;  %v4674_v46 = vld [vmem:[%s6407_s1 + $0x424] ss:$8 sps:$4 sm:$0xff]  }
  0xd0   :  { %3409 = vmatpush1.bf16.msra.mxu0 %v4575_v47  ;;  %3053 = vmatprep.subr.bf16.mxu1 %v4580_v48  ;;  %v4677_v47 = vld [vmem:[%s6407_s1 + $0xb24] ss:$8 sps:$4 sm:$0xff]   ;;  %v4672_v48 = vld [vmem:[%s6407_s1 + $0x420] ss:$8 sps:$4 sm:$0xff]  }
  0xd1   :  { %3410 = vmatprep.subr.bf16.mxu0 %v4583_v49  ;;  %v4675_v49 = vld [vmem:[%s6407_s1 + $0xb20] ss:$8 sps:$4 sm:$0xff]  }
  0xd3   :  { %3054 = vmatpush1.bf16.msra.mxu1 %v4578_v50  ;;  %v3672_v50 = vcombine.low %v46_v38, %v46_v38  ;;  %v4756_v38 = vld [vmem:[%s6407_s1 + $0x4f4] ss:$8 sps:$4 sm:$0xff]  }
  0xd4   :  { %3411 = vmatpush1.bf16.msra.mxu0 %v4581_v51  ;;  %3055 = vmatprep.subr.bf16.mxu1 %v4586_v52  ;;  %v3686_v51 = vcombine.low %v53_v39, %v53_v39  ;;  %v4680_v52 = vld [vmem:[%s6407_s1 + $0x434] ss:$8 sps:$4 sm:$0xff]  }
  0xd5   :  { %3412 = vmatprep.subr.bf16.mxu0 %v4589_v53  ;;  %v4683_v53 = vld [vmem:[%s6407_s1 + $0xb34] ss:$8 sps:$4 sm:$0xff]  }
  0xd6   :  { %v4759_v39 = vld [vmem:[%s6407_s1 + $0xbf4] ss:$8 sps:$4 sm:$0xff]  }
  0xd7   :  { %3056 = vmatpush1.bf16.msra.mxu1 %v4584_v54  ;;  %v4762_v54 = vld [vmem:[%s6408_s0 + $0x24] ss:$108 sps:$4 sm:$0xff]  }
  0xd8   :  { %3413 = vmatpush1.bf16.msra.mxu0 %v4587_v55  ;;  %3057 = vmatprep.subr.bf16.mxu1 %v4592_v56  ;;  %v4768_v55 = vld [vmem:[%s6408_s0 + $0x5c] ss:$108 sps:$4 sm:$0xff]   ;;  %v4678_v56 = vld [vmem:[%s6407_s1 + $0x430] ss:$8 sps:$4 sm:$0xff]  }
  0xd9   :  { %3414 = vmatprep.subr.bf16.mxu0 %v4595_v57  ;;  %v4681_v57 = vld [vmem:[%s6407_s1 + $0xb30] ss:$8 sps:$4 sm:$0xff]  }
  0xdb   :  { %3058 = vmatpush1.bf16.msra.mxu1 %v4590_v58  ;;  %v4686_v58 = vld [vmem:[%s6407_s1 + $0x444] ss:$8 sps:$4 sm:$0xff]  }
  0xdc   :  { %3415 = vmatpush1.bf16.msra.mxu0 %v4593_v59  ;;  %3059 = vmatprep.subr.bf16.mxu1 %v4598_v60  ;;  %v4689_v59 = vld [vmem:[%s6407_s1 + $0xb44] ss:$8 sps:$4 sm:$0xff]   ;;  %v4684_v60 = vld [vmem:[%s6407_s1 + $0x440] ss:$8 sps:$4 sm:$0xff]  }
  0xdd   :  { %3416 = vmatprep.subr.bf16.mxu0 %v4601_v61  ;;  %v4687_v61 = vld [vmem:[%s6407_s1 + $0xb40] ss:$8 sps:$4 sm:$0xff]  }
  0xdf   :  { %3060 = vmatpush1.bf16.msra.mxu1 %v4596_v62  ;;  %v4692_v62 = vld [vmem:[%s6407_s1 + $0x454] ss:$8 sps:$4 sm:$0xff]  }
  0xe0   :  { %3417 = vmatpush1.bf16.msra.mxu0 %v4599_v63  ;;  %3061 = vmatprep.subr.bf16.mxu1 %v4604_v0  ;;  %v4695_v63 = vld [vmem:[%s6407_s1 + $0xb54] ss:$8 sps:$4 sm:$0xff]   ;;  %v4690_v0 = vld [vmem:[%s6407_s1 + $0x450] ss:$8 sps:$4 sm:$0xff]  }
  0xe1   :  { %3418 = vmatprep.subr.bf16.mxu0 %v4607_v1  ;;  %v4693_v1 = vld [vmem:[%s6407_s1 + $0xb50] ss:$8 sps:$4 sm:$0xff]  }
  0xe3   :  { %3062 = vmatpush1.bf16.msra.mxu1 %v4602_v2  ;;  %v4698_v2 = vld [vmem:[%s6407_s1 + $0x464] ss:$8 sps:$4 sm:$0xff]  }
  0xe4   :  { %3419 = vmatpush1.bf16.msra.mxu0 %v4605_v3  ;;  %3063 = vmatprep.subr.bf16.mxu1 %v4610_v4  ;;  %v4701_v3 = vld [vmem:[%s6407_s1 + $0xb64] ss:$8 sps:$4 sm:$0xff]   ;;  %v4696_v4 = vld [vmem:[%s6407_s1 + $0x460] ss:$8 sps:$4 sm:$0xff]  }
  0xe5   :  { %3420 = vmatprep.subr.bf16.mxu0 %v4613_v5  ;;  %v4699_v5 = vld [vmem:[%s6407_s1 + $0xb60] ss:$8 sps:$4 sm:$0xff]  }
  0xe7   :  { %3064 = vmatpush1.bf16.msra.mxu1 %v4608_v6  ;;  %v4704_v6 = vld [vmem:[%s6407_s1 + $0x474] ss:$8 sps:$4 sm:$0xff]  }
  0xe8   :  { %3421 = vmatpush1.bf16.msra.mxu0 %v4611_v7  ;;  %3065 = vmatprep.subr.bf16.mxu1 %v4616_v8  ;;  %v4707_v7 = vld [vmem:[%s6407_s1 + $0xb74] ss:$8 sps:$4 sm:$0xff]   ;;  %v4702_v8 = vld [vmem:[%s6407_s1 + $0x470] ss:$8 sps:$4 sm:$0xff]  }
  0xe9   :  { %3422 = vmatprep.subr.bf16.mxu0 %v4619_v9  ;;  %v4705_v9 = vld [vmem:[%s6407_s1 + $0xb70] ss:$8 sps:$4 sm:$0xff]  }
  0xeb   :  { %3066 = vmatpush1.bf16.msra.mxu1 %v4614_v10  ;;  %v4710_v10 = vld [vmem:[%s6407_s1 + $0x484] ss:$8 sps:$4 sm:$0xff]  }
  0xec   :  { %3423 = vmatpush1.bf16.msra.mxu0 %v4617_v11  ;;  %3067 = vmatprep.subr.bf16.mxu1 %v4622_v12  ;;  %v4713_v11 = vld [vmem:[%s6407_s1 + $0xb84] ss:$8 sps:$4 sm:$0xff]   ;;  %v4708_v12 = vld [vmem:[%s6407_s1 + $0x480] ss:$8 sps:$4 sm:$0xff]  }
  0xed   :  { %3424 = vmatprep.subr.bf16.mxu0 %v4625_v13  ;;  %v4711_v13 = vld [vmem:[%s6407_s1 + $0xb80] ss:$8 sps:$4 sm:$0xff]  }
  0xef   :  { %3068 = vmatpush1.bf16.msra.mxu1 %v4620_v14  ;;  %v4716_v14 = vld [vmem:[%s6407_s1 + $0x494] ss:$8 sps:$4 sm:$0xff]  }
  0xf0   :  { %3425 = vmatpush1.bf16.msra.mxu0 %v4623_v15  ;;  %3069 = vmatprep.subr.bf16.mxu1 %v4628_v16  ;;  %v4719_v15 = vld [vmem:[%s6407_s1 + $0xb94] ss:$8 sps:$4 sm:$0xff]   ;;  %v4714_v16 = vld [vmem:[%s6407_s1 + $0x490] ss:$8 sps:$4 sm:$0xff]  }
  0xf1   :  { %3426 = vmatprep.subr.bf16.mxu0 %v4631_v17  ;;  %v4717_v17 = vld [vmem:[%s6407_s1 + $0xb90] ss:$8 sps:$4 sm:$0xff]  }
  0xf3   :  { %3070 = vmatpush1.bf16.msra.mxu1 %v4626_v18  ;;  %v4722_v18 = vld [vmem:[%s6407_s1 + $0x4a4] ss:$8 sps:$4 sm:$0xff]  }
  0xf4   :  { %3427 = vmatpush1.bf16.msra.mxu0 %v4629_v19  ;;  %3071 = vmatprep.subr.bf16.mxu1 %v4634_v20  ;;  %v4725_v19 = vld [vmem:[%s6407_s1 + $0xba4] ss:$8 sps:$4 sm:$0xff]   ;;  %v4720_v20 = vld [vmem:[%s6407_s1 + $0x4a0] ss:$8 sps:$4 sm:$0xff]  }
  0xf5   :  { %3428 = vmatprep.subr.bf16.mxu0 %v4637_v21  ;;  %v4723_v21 = vld [vmem:[%s6407_s1 + $0xba0] ss:$8 sps:$4 sm:$0xff]  }
  0xf7   :  { %3072 = vmatpush1.bf16.msra.mxu1 %v4632_v22  ;;  %v4728_v22 = vld [vmem:[%s6407_s1 + $0x4b4] ss:$8 sps:$4 sm:$0xff]  }
  0xf8   :  { %3429 = vmatpush1.bf16.msra.mxu0 %v4635_v23  ;;  %3073 = vmatprep.subr.bf16.mxu1 %v4641_v24  ;;  %v4731_v23 = vld [vmem:[%s6407_s1 + $0xbb4] ss:$8 sps:$4 sm:$0xff]   ;;  %v4726_v24 = vld [vmem:[%s6407_s1 + $0x4b0] ss:$8 sps:$4 sm:$0xff]  }
  0xf9   :  { %3430 = vmatprep.subr.bf16.mxu0 %v4645_v25  ;;  %v4729_v25 = vld [vmem:[%s6407_s1 + $0xbb0] ss:$8 sps:$4 sm:$0xff]  }
  0xfb   :  { %3074 = vmatpush1.bf16.msra.mxu1 %v4639_v26  ;;  %v4734_v26 = vld [vmem:[%s6407_s1 + $0x4c4] ss:$8 sps:$4 sm:$0xff]  }
  0xfc   :  { %3431 = vmatpush1.bf16.msra.mxu0 %v4643_v27  ;;  %3075 = vmatprep.subr.bf16.mxu1 %v4650_v28  ;;  %v4737_v27 = vld [vmem:[%s6407_s1 + $0xbc4] ss:$8 sps:$4 sm:$0xff]   ;;  %v4732_v28 = vld [vmem:[%s6407_s1 + $0x4c0] ss:$8 sps:$4 sm:$0xff]  }
  0xfd   :  { %3432 = vmatprep.subr.bf16.mxu0 %v4653_v29  ;;  %v4735_v29 = vld [vmem:[%s6407_s1 + $0xbc0] ss:$8 sps:$4 sm:$0xff]  }
  0xff   :  { %3076 = vmatpush1.bf16.msra.mxu1 %v4648_v30  ;;  %v4740_v30 = vld [vmem:[%s6407_s1 + $0x4d4] ss:$8 sps:$4 sm:$0xff]  }
 0x100   :  { %3433 = vmatpush1.bf16.msra.mxu0 %v4651_v31  ;;  %3096 = vmatprep.subr.bf16.mxu1 %v4659_v32  ;;  %v4743_v31 = vld [vmem:[%s6407_s1 + $0xbd4] ss:$8 sps:$4 sm:$0xff]   ;;  %v4738_v32 = vld [vmem:[%s6407_s1 + $0x4d0] ss:$8 sps:$4 sm:$0xff]  }
 0x101   :  { %3453 = vmatprep.subr.bf16.mxu0 %v4665_v34  ;;  %v4747_v34 = vld [vmem:[%s6407_s1 + $0x4e4] ss:$8 sps:$4 sm:$0xff]  }
 0x102   :  { %3078 = vmatmul.mubr.bf16.vlgmr.msra.gmra.mrb[0].mxu1 %v4654_v33  ;;  %v4741_v33 = vld [vmem:[%s6407_s1 + $0xbd0] ss:$8 sps:$4 sm:$0xff]  }
 0x103   :  { %3435 = vmatmul.mubr.bf16.vlgmr.msra.gmra.mrb[0].mxu0 %v4660_v36  ;;  %3097 = vmatpush1.bf16.msra.mxu1 %v4657_v35  ;;  %v4751_v35 = vld [vmem:[%s6407_s1 + $0xbe4] ss:$8 sps:$4 sm:$0xff]   ;;  %v4745_v36 = vld [vmem:[%s6407_s1 + $0x4e0] ss:$8 sps:$4 sm:$0xff]  }
 0x104   :  { %3454 = vmatpush1.bf16.msra.mxu0 %v4663_v37  ;;  %3098 = vmatprep.subr.bf16.mxu1 %v4668_v40  ;;  %v4749_v37 = vld [vmem:[%s6407_s1 + $0xbe0] ss:$8 sps:$4 sm:$0xff]   ;;  %v4754_v40 = vld [vmem:[%s6407_s1 + $0x4f0] ss:$8 sps:$4 sm:$0xff]  }
 0x105   :  { %3455 = vmatprep.subr.bf16.mxu0 %v4671_v41  ;;  %3087 = vmatprep.mubr.bf16.mxu1 %v3673_v42  ;;  %v4757_v41 = vld [vmem:[%s6407_s1 + $0xbf0] ss:$8 sps:$4 sm:$0xff]   ;;  %v4765_v42 = vld [vmem:[%s6407_s1 + $0x504] ss:$8 sps:$4 sm:$0xff]  }
 0x106   :  { %3444 = vmatprep.mubr.bf16.mxu0 %v3687_v43  ;;  %v4771_v43 = vld [vmem:[%s6407_s1 + $0xc04] ss:$8 sps:$4 sm:$0xff]  }
 0x107   :  { %3099 = vmatpush1.bf16.msra.mxu1 %v4666_v44  ;;  %v4760_v44 = vld [vmem:[%s6408_s0 + $0x20] ss:$108 sps:$4 sm:$0xff]  }
 0x108   :  { %3456 = vmatpush1.bf16.msra.mxu0 %v4669_v45  ;;  %3100 = vmatprep.subr.bf16.mxu1 %v4674_v46  ;;  %v4766_v45 = vld [vmem:[%s6408_s0 + $0x58] ss:$108 sps:$4 sm:$0xff]  }
 0x109   :  { %3457 = vmatprep.subr.bf16.mxu0 %v4677_v47  ;;  %v47_v46 = vld [vmem:[%s6408_s0 + $0xf8] sm:$0xff]  ;;  %v54_v47 = vld [vmem:[%s6408_s0 + $0x130] sm:$0xff] }
 0x10a   :  { %3088 = vmatmul.mubr.bf16.gmra.mrb[4].mxu1 %v3672_v50  ;;  %v4774_v50 = vld [vmem:[%s6407_s1 + $0x514] ss:$8 sps:$4 sm:$0xff]  }
 0x10b   :  { %3445 = vmatmul.mubr.bf16.gmra.mrb[4].mxu0 %v3686_v51  ;;  %3101 = vmatpush1.bf16.msra.mxu1 %v4672_v48  ;;  %v4763_v48 = vld [vmem:[%s6407_s1 + $0x500] ss:$8 sps:$4 sm:$0xff]   ;;  %v4777_v51 = vld [vmem:[%s6407_s1 + $0xc14] ss:$8 sps:$4 sm:$0xff]  }
 0x10c   :  { %3458 = vmatpush1.bf16.msra.mxu0 %v4675_v49  ;;  %3102 = vmatprep.subr.bf16.mxu1 %v4680_v52  ;;  %v4769_v49 = vld [vmem:[%s6407_s1 + $0xc00] ss:$8 sps:$4 sm:$0xff]   ;;  %v3675_v52 = vcombine.high %v47_v46, %v47_v46 }
 0x10d   :  { %3459 = vmatprep.subr.bf16.mxu0 %v4683_v53  ;;  %3128 = vmatprep.mubr.bf16.mxu1 %v4762_v54  ;;  %v3689_v53 = vcombine.high %v54_v47, %v54_v47  ;;  %v4772_v54 = vld [vmem:[%s6407_s1 + $0x510] ss:$8 sps:$4 sm:$0xff]  }
 0x10e   :  { %3485 = vmatprep.mubr.bf16.mxu0 %v4768_v55  ;;  %v4775_v55 = vld [vmem:[%s6407_s1 + $0xc10] ss:$8 sps:$4 sm:$0xff]  }
 0x10f   :  { %3103 = vmatpush1.bf16.msra.mxu1 %v4678_v56  ;;  %v4780_v56 = vld [vmem:[%s6407_s1 + $0x524] ss:$8 sps:$4 sm:$0xff]  }
 0x110   :  { %3460 = vmatpush1.bf16.msra.mxu0 %v4681_v57  ;;  %3104 = vmatprep.subr.bf16.mxu1 %v4686_v58  ;;  %v4783_v57 = vld [vmem:[%s6407_s1 + $0xc24] ss:$8 sps:$4 sm:$0xff]   ;;  %v3674_v58 = vcombine.low %v47_v46, %v47_v46  ;;  %v4851_v46 = vld [vmem:[%s6407_s1 + $0x5e0] ss:$8 sps:$4 sm:$0xff]  }
 0x111   :  { %3461 = vmatprep.subr.bf16.mxu0 %v4689_v59  ;;  %v3688_v59 = vcombine.low %v54_v47, %v54_v47  ;;  %v4855_v47 = vld [vmem:[%s6407_s1 + $0xce0] ss:$8 sps:$4 sm:$0xff]  }
 0x113   :  { %3105 = vmatpush1.bf16.msra.mxu1 %v4684_v60  ;;  %v4778_v60 = vld [vmem:[%s6407_s1 + $0x520] ss:$8 sps:$4 sm:$0xff]  }
 0x114   :  { %3462 = vmatpush1.bf16.msra.mxu0 %v4687_v61  ;;  %3106 = vmatprep.subr.bf16.mxu1 %v4692_v62  ;;  %v4781_v61 = vld [vmem:[%s6407_s1 + $0xc20] ss:$8 sps:$4 sm:$0xff]   ;;  %v4786_v62 = vld [vmem:[%s6407_s1 + $0x534] ss:$8 sps:$4 sm:$0xff]  }
 0x115   :  { %3463 = vmatprep.subr.bf16.mxu0 %v4695_v63  ;;  %v4789_v63 = vld [vmem:[%s6407_s1 + $0xc34] ss:$8 sps:$4 sm:$0xff]  }
 0x117   :  { %3107 = vmatpush1.bf16.msra.mxu1 %v4690_v0  ;;  %v4868_v0 = vld [vmem:[%s6408_s0 + $0x2c] ss:$108 sps:$4 sm:$0xff]  }
 0x118   :  { %3464 = vmatpush1.bf16.msra.mxu0 %v4693_v1  ;;  %3108 = vmatprep.subr.bf16.mxu1 %v4698_v2  ;;  %v4874_v1 = vld [vmem:[%s6408_s0 + $0x64] ss:$108 sps:$4 sm:$0xff]  }
 0x119   :  { %3465 = vmatprep.subr.bf16.mxu0 %v4701_v3  ;;  %v4784_v2 = vld [vmem:[%s6407_s1 + $0x530] ss:$8 sps:$4 sm:$0xff]  }
 0x11a   :  { %v4787_v3 = vld [vmem:[%s6407_s1 + $0xc30] ss:$8 sps:$4 sm:$0xff]  }
 0x11b   :  { %3109 = vmatpush1.bf16.msra.mxu1 %v4696_v4  ;;  %v4792_v4 = vld [vmem:[%s6407_s1 + $0x544] ss:$8 sps:$4 sm:$0xff]  }
 0x11c   :  { %3466 = vmatpush1.bf16.msra.mxu0 %v4699_v5  ;;  %3110 = vmatprep.subr.bf16.mxu1 %v4704_v6  ;;  %v4795_v5 = vld [vmem:[%s6407_s1 + $0xc44] ss:$8 sps:$4 sm:$0xff]   ;;  %v4790_v6 = vld [vmem:[%s6407_s1 + $0x540] ss:$8 sps:$4 sm:$0xff]  }
 0x11d   :  { %3467 = vmatprep.subr.bf16.mxu0 %v4707_v7  ;;  %v4793_v7 = vld [vmem:[%s6407_s1 + $0xc40] ss:$8 sps:$4 sm:$0xff]  }
 0x11f   :  { %3111 = vmatpush1.bf16.msra.mxu1 %v4702_v8  ;;  %v4798_v8 = vld [vmem:[%s6407_s1 + $0x554] ss:$8 sps:$4 sm:$0xff]  }
 0x120   :  { %3468 = vmatpush1.bf16.msra.mxu0 %v4705_v9  ;;  %3112 = vmatprep.subr.bf16.mxu1 %v4710_v10  ;;  %v4801_v9 = vld [vmem:[%s6407_s1 + $0xc54] ss:$8 sps:$4 sm:$0xff]   ;;  %v4796_v10 = vld [vmem:[%s6407_s1 + $0x550] ss:$8 sps:$4 sm:$0xff]  }
 0x121   :  { %3469 = vmatprep.subr.bf16.mxu0 %v4713_v11  ;;  %v4799_v11 = vld [vmem:[%s6407_s1 + $0xc50] ss:$8 sps:$4 sm:$0xff]  }
 0x123   :  { %3113 = vmatpush1.bf16.msra.mxu1 %v4708_v12  ;;  %v4804_v12 = vld [vmem:[%s6407_s1 + $0x564] ss:$8 sps:$4 sm:$0xff]  }
 0x124   :  { %3470 = vmatpush1.bf16.msra.mxu0 %v4711_v13  ;;  %3114 = vmatprep.subr.bf16.mxu1 %v4716_v14  ;;  %v4807_v13 = vld [vmem:[%s6407_s1 + $0xc64] ss:$8 sps:$4 sm:$0xff]   ;;  %v4802_v14 = vld [vmem:[%s6407_s1 + $0x560] ss:$8 sps:$4 sm:$0xff]  }
 0x125   :  { %3471 = vmatprep.subr.bf16.mxu0 %v4719_v15  ;;  %v4805_v15 = vld [vmem:[%s6407_s1 + $0xc60] ss:$8 sps:$4 sm:$0xff]  }
 0x127   :  { %3115 = vmatpush1.bf16.msra.mxu1 %v4714_v16  ;;  %v4810_v16 = vld [vmem:[%s6407_s1 + $0x574] ss:$8 sps:$4 sm:$0xff]  }
 0x128   :  { %3472 = vmatpush1.bf16.msra.mxu0 %v4717_v17  ;;  %3116 = vmatprep.subr.bf16.mxu1 %v4722_v18  ;;  %v4813_v17 = vld [vmem:[%s6407_s1 + $0xc74] ss:$8 sps:$4 sm:$0xff]   ;;  %v4808_v18 = vld [vmem:[%s6407_s1 + $0x570] ss:$8 sps:$4 sm:$0xff]  }
 0x129   :  { %3473 = vmatprep.subr.bf16.mxu0 %v4725_v19  ;;  %v4811_v19 = vld [vmem:[%s6407_s1 + $0xc70] ss:$8 sps:$4 sm:$0xff]  }
 0x12b   :  { %3117 = vmatpush1.bf16.msra.mxu1 %v4720_v20  ;;  %v4816_v20 = vld [vmem:[%s6407_s1 + $0x584] ss:$8 sps:$4 sm:$0xff]  }
 0x12c   :  { %3474 = vmatpush1.bf16.msra.mxu0 %v4723_v21  ;;  %3118 = vmatprep.subr.bf16.mxu1 %v4728_v22  ;;  %v4819_v21 = vld [vmem:[%s6407_s1 + $0xc84] ss:$8 sps:$4 sm:$0xff]   ;;  %v4814_v22 = vld [vmem:[%s6407_s1 + $0x580] ss:$8 sps:$4 sm:$0xff]  }
 0x12d   :  { %3475 = vmatprep.subr.bf16.mxu0 %v4731_v23  ;;  %v4817_v23 = vld [vmem:[%s6407_s1 + $0xc80] ss:$8 sps:$4 sm:$0xff]  }
 0x12f   :  { %3119 = vmatpush1.bf16.msra.mxu1 %v4726_v24  ;;  %v4822_v24 = vld [vmem:[%s6407_s1 + $0x594] ss:$8 sps:$4 sm:$0xff]  }
 0x130   :  { %3476 = vmatpush1.bf16.msra.mxu0 %v4729_v25  ;;  %3120 = vmatprep.subr.bf16.mxu1 %v4734_v26  ;;  %v4825_v25 = vld [vmem:[%s6407_s1 + $0xc94] ss:$8 sps:$4 sm:$0xff]   ;;  %v4820_v26 = vld [vmem:[%s6407_s1 + $0x590] ss:$8 sps:$4 sm:$0xff]  }
 0x131   :  { %3477 = vmatprep.subr.bf16.mxu0 %v4737_v27  ;;  %v4823_v27 = vld [vmem:[%s6407_s1 + $0xc90] ss:$8 sps:$4 sm:$0xff]  }
 0x133   :  { %3121 = vmatpush1.bf16.msra.mxu1 %v4732_v28  ;;  %v4828_v28 = vld [vmem:[%s6407_s1 + $0x5a4] ss:$8 sps:$4 sm:$0xff]  }
 0x134   :  { %3478 = vmatpush1.bf16.msra.mxu0 %v4735_v29  ;;  %3122 = vmatprep.subr.bf16.mxu1 %v4740_v30  ;;  %v4831_v29 = vld [vmem:[%s6407_s1 + $0xca4] ss:$8 sps:$4 sm:$0xff]   ;;  %v4826_v30 = vld [vmem:[%s6407_s1 + $0x5a0] ss:$8 sps:$4 sm:$0xff]  }
 0x135   :  { %3479 = vmatprep.subr.bf16.mxu0 %v4743_v31  ;;  %v4829_v31 = vld [vmem:[%s6407_s1 + $0xca0] ss:$8 sps:$4 sm:$0xff]  }
 0x137   :  { %3123 = vmatpush1.bf16.msra.mxu1 %v4738_v32  ;;  %v4834_v32 = vld [vmem:[%s6407_s1 + $0x5b4] ss:$8 sps:$4 sm:$0xff]  }
 0x138   :  { %3480 = vmatpush1.bf16.msra.mxu0 %v4741_v33  ;;  %3124 = vmatprep.subr.bf16.mxu1 %v4747_v34  ;;  %v4837_v33 = vld [vmem:[%s6407_s1 + $0xcb4] ss:$8 sps:$4 sm:$0xff]   ;;  %v4832_v34 = vld [vmem:[%s6407_s1 + $0x5b0] ss:$8 sps:$4 sm:$0xff]  }
 0x139   :  { %3481 = vmatprep.subr.bf16.mxu0 %v4751_v35  ;;  %v4835_v35 = vld [vmem:[%s6407_s1 + $0xcb0] ss:$8 sps:$4 sm:$0xff]  }
 0x13b   :  { %3125 = vmatpush1.bf16.msra.mxu1 %v4745_v36  ;;  %v4840_v36 = vld [vmem:[%s6407_s1 + $0x5c4] ss:$8 sps:$4 sm:$0xff]  }
 0x13c   :  { %3482 = vmatpush1.bf16.msra.mxu0 %v4749_v37  ;;  %3126 = vmatprep.subr.bf16.mxu1 %v4756_v38  ;;  %v4843_v37 = vld [vmem:[%s6407_s1 + $0xcc4] ss:$8 sps:$4 sm:$0xff]   ;;  %v4838_v38 = vld [vmem:[%s6407_s1 + $0x5c0] ss:$8 sps:$4 sm:$0xff]  }
 0x13d   :  { %3483 = vmatprep.subr.bf16.mxu0 %v4759_v39  ;;  %v4841_v39 = vld [vmem:[%s6407_s1 + $0xcc0] ss:$8 sps:$4 sm:$0xff]  }
 0x13f   :  { %3127 = vmatpush1.bf16.msra.mxu1 %v4754_v40  ;;  %v4846_v40 = vld [vmem:[%s6407_s1 + $0x5d4] ss:$8 sps:$4 sm:$0xff]  }
 0x140   :  { %3484 = vmatpush1.bf16.msra.mxu0 %v4757_v41  ;;  %3147 = vmatprep.subr.bf16.mxu1 %v4765_v42  ;;  %v4849_v41 = vld [vmem:[%s6407_s1 + $0xcd4] ss:$8 sps:$4 sm:$0xff]   ;;  %v4844_v42 = vld [vmem:[%s6407_s1 + $0x5d0] ss:$8 sps:$4 sm:$0xff]  }
 0x141   :  { %3504 = vmatprep.subr.bf16.mxu0 %v4771_v43  ;;  %v4847_v43 = vld [vmem:[%s6407_s1 + $0xcd0] ss:$8 sps:$4 sm:$0xff]  }
 0x142   :  { %3129 = vmatmul.mubr.bf16.vlgmr.msra.gmra.mrb[0].mxu1 %v4760_v44  ;;  %v4853_v44 = vld [vmem:[%s6407_s1 + $0x5e4] ss:$8 sps:$4 sm:$0xff]  }
 0x143   :  { %3486 = vmatmul.mubr.bf16.vlgmr.msra.gmra.mrb[0].mxu0 %v4766_v45  ;;  %3148 = vmatpush1.bf16.msra.mxu1 %v4763_v48  ;;  %v4857_v45 = vld [vmem:[%s6407_s1 + $0xce4] ss:$8 sps:$4 sm:$0xff]   ;;  %v4862_v48 = vld [vmem:[%s6407_s1 + $0x5f4] ss:$8 sps:$4 sm:$0xff]  }
 0x144   :  { %3505 = vmatpush1.bf16.msra.mxu0 %v4769_v49  ;;  %3149 = vmatprep.subr.bf16.mxu1 %v4774_v50  ;;  %v4865_v49 = vld [vmem:[%s6407_s1 + $0xcf4] ss:$8 sps:$4 sm:$0xff]   ;;  %v4860_v50 = vld [vmem:[%s6407_s1 + $0x5f0] ss:$8 sps:$4 sm:$0xff]  }
 0x145   :  { %3506 = vmatprep.subr.bf16.mxu0 %v4777_v51  ;;  %3138 = vmatprep.mubr.bf16.mxu1 %v3675_v52  ;;  %v4863_v51 = vld [vmem:[%s6407_s1 + $0xcf0] ss:$8 sps:$4 sm:$0xff]   ;;  %v4871_v52 = vld [vmem:[%s6407_s1 + $0x604] ss:$8 sps:$4 sm:$0xff]  }
 0x146   :  { %3495 = vmatprep.mubr.bf16.mxu0 %v3689_v53  ;;  %v4877_v53 = vld [vmem:[%s6407_s1 + $0xd04] ss:$8 sps:$4 sm:$0xff]  }
 0x147   :  { %3150 = vmatpush1.bf16.msra.mxu1 %v4772_v54  ;;  %v4866_v54 = vld [vmem:[%s6408_s0 + $0x28] ss:$108 sps:$4 sm:$0xff]  }
 0x148   :  { %3507 = vmatpush1.bf16.msra.mxu0 %v4775_v55  ;;  %3151 = vmatprep.subr.bf16.mxu1 %v4780_v56  ;;  %v4872_v55 = vld [vmem:[%s6408_s0 + $0x60] ss:$108 sps:$4 sm:$0xff]   ;;  %v55_v56 = vld [vmem:[%s6408_s0 + $0x138] sm:$0xff] }
 0x149   :  { %3508 = vmatprep.subr.bf16.mxu0 %v4783_v57  ;;  %v48_v57 = vld [vmem:[%s6408_s0 + $0x100] sm:$0xff] }
 0x14a   :  { %3139 = vmatmul.mubr.bf16.gmra.mrb[4].mxu1 %v3674_v58  ;;  %v4869_v58 = vld [vmem:[%s6407_s1 + $0x600] ss:$8 sps:$4 sm:$0xff]  }
 0x14b   :  { %3496 = vmatmul.mubr.bf16.gmra.mrb[4].mxu0 %v3688_v59  ;;  %3152 = vmatpush1.bf16.msra.mxu1 %v4778_v60  ;;  %v4875_v59 = vld [vmem:[%s6407_s1 + $0xd00] ss:$8 sps:$4 sm:$0xff]   ;;  %v4880_v60 = vld [vmem:[%s6407_s1 + $0x614] ss:$8 sps:$4 sm:$0xff]  }
 0x14c   :  { %3509 = vmatpush1.bf16.msra.mxu0 %v4781_v61  ;;  %3153 = vmatprep.subr.bf16.mxu1 %v4786_v62  ;;  %v4883_v61 = vld [vmem:[%s6407_s1 + $0xd14] ss:$8 sps:$4 sm:$0xff]   ;;  %v3691_v62 = vcombine.high %v55_v56, %v55_v56 }
 0x14d   :  { %3510 = vmatprep.subr.bf16.mxu0 %v4789_v63  ;;  %3179 = vmatprep.mubr.bf16.mxu1 %v4868_v0  ;;  %v3677_v63 = vcombine.high %v48_v57, %v48_v57  ;;  %v4878_v0 = vld [vmem:[%s6407_s1 + $0x610] ss:$8 sps:$4 sm:$0xff]  }
 0x14e   :  { %3536 = vmatprep.mubr.bf16.mxu0 %v4874_v1  ;;  %v4881_v1 = vld [vmem:[%s6407_s1 + $0xd10] ss:$8 sps:$4 sm:$0xff]  }
 0x14f   :  { %3154 = vmatpush1.bf16.msra.mxu1 %v4784_v2  ;;  %v4886_v2 = vld [vmem:[%s6407_s1 + $0x624] ss:$8 sps:$4 sm:$0xff]  }
 0x150   :  { %3511 = vmatpush1.bf16.msra.mxu0 %v4787_v3  ;;  %3155 = vmatprep.subr.bf16.mxu1 %v4792_v4  ;;  %v4889_v3 = vld [vmem:[%s6407_s1 + $0xd24] ss:$8 sps:$4 sm:$0xff]   ;;  %v3690_v4 = vcombine.low %v55_v56, %v55_v56 }
 0x151   :  { %3512 = vmatprep.subr.bf16.mxu0 %v4795_v5  ;;  %v3676_v5 = vcombine.low %v48_v57, %v48_v57 }
 0x153   :  { %3156 = vmatpush1.bf16.msra.mxu1 %v4790_v6  ;;  %v4884_v6 = vld [vmem:[%s6407_s1 + $0x620] ss:$8 sps:$4 sm:$0xff]  }
 0x154   :  { %3513 = vmatpush1.bf16.msra.mxu0 %v4793_v7  ;;  %3157 = vmatprep.subr.bf16.mxu1 %v4798_v8  ;;  %v4887_v7 = vld [vmem:[%s6407_s1 + $0xd20] ss:$8 sps:$4 sm:$0xff]   ;;  %v4892_v8 = vld [vmem:[%s6407_s1 + $0x634] ss:$8 sps:$4 sm:$0xff]  }
 0x155   :  { %3514 = vmatprep.subr.bf16.mxu0 %v4801_v9  ;;  %v4895_v9 = vld [vmem:[%s6407_s1 + $0xd34] ss:$8 sps:$4 sm:$0xff]  }
 0x157   :  { %3158 = vmatpush1.bf16.msra.mxu1 %v4796_v10  ;;  %v4952_v10 = vld [vmem:[%s6408_s0 + $0x34] ss:$108 sps:$4 sm:$0xff]  }
 0x158   :  { %3515 = vmatpush1.bf16.msra.mxu0 %v4799_v11  ;;  %3159 = vmatprep.subr.bf16.mxu1 %v4804_v12  ;;  %v4890_v11 = vld [vmem:[%s6407_s1 + $0x630] ss:$8 sps:$4 sm:$0xff]  }
 0x159   :  { %3516 = vmatprep.subr.bf16.mxu0 %v4807_v13  ;;  %v4893_v12 = vld [vmem:[%s6407_s1 + $0xd30] ss:$8 sps:$4 sm:$0xff]   ;;  %v4898_v13 = vld [vmem:[%s6407_s1 + $0x644] ss:$8 sps:$4 sm:$0xff]  }
 0x15b   :  { %3160 = vmatpush1.bf16.msra.mxu1 %v4802_v14  ;;  %v4901_v14 = vld [vmem:[%s6407_s1 + $0xd44] ss:$8 sps:$4 sm:$0xff]  }
 0x15c   :  { %3517 = vmatpush1.bf16.msra.mxu0 %v4805_v15  ;;  %3161 = vmatprep.subr.bf16.mxu1 %v4810_v16  ;;  %v4955_v15 = vmov 0   ;;  %v4896_v16 = vld [vmem:[%s6407_s1 + $0x640] ss:$8 sps:$4 sm:$0xff]  }
 0x15d   :  { %3518 = vmatprep.subr.bf16.mxu0 %v4813_v17  ;;  %v4899_v17 = vld [vmem:[%s6407_s1 + $0xd40] ss:$8 sps:$4 sm:$0xff]  }
 0x15f   :  { %3162 = vmatpush1.bf16.msra.mxu1 %v4808_v18  ;;  %v4904_v18 = vld [vmem:[%s6407_s1 + $0x654] ss:$8 sps:$4 sm:$0xff]  }
 0x160   :  { %3519 = vmatpush1.bf16.msra.mxu0 %v4811_v19  ;;  %3163 = vmatprep.subr.bf16.mxu1 %v4816_v20  ;;  %v4907_v19 = vld [vmem:[%s6407_s1 + $0xd54] ss:$8 sps:$4 sm:$0xff]   ;;  %v4902_v20 = vld [vmem:[%s6407_s1 + $0x650] ss:$8 sps:$4 sm:$0xff]  }
 0x161   :  { %3520 = vmatprep.subr.bf16.mxu0 %v4819_v21  ;;  %v4905_v21 = vld [vmem:[%s6407_s1 + $0xd50] ss:$8 sps:$4 sm:$0xff]  }
 0x163   :  { %3164 = vmatpush1.bf16.msra.mxu1 %v4814_v22  ;;  %v4911_v22 = vld [vmem:[%s6407_s1 + $0x664] ss:$8 sps:$4 sm:$0xff]  }
 0x164   :  { %3521 = vmatpush1.bf16.msra.mxu0 %v4817_v23  ;;  %3165 = vmatprep.subr.bf16.mxu1 %v4822_v24  ;;  %v4915_v23 = vld [vmem:[%s6407_s1 + $0xd64] ss:$8 sps:$4 sm:$0xff]   ;;  %v4909_v24 = vld [vmem:[%s6407_s1 + $0x660] ss:$8 sps:$4 sm:$0xff]  }
 0x165   :  { %3522 = vmatprep.subr.bf16.mxu0 %v4825_v25  ;;  %v4913_v25 = vld [vmem:[%s6407_s1 + $0xd60] ss:$8 sps:$4 sm:$0xff]  }
 0x167   :  { %3166 = vmatpush1.bf16.msra.mxu1 %v4820_v26  ;;  %v4918_v26 = vld [vmem:[%s6407_s1 + $0x674] ss:$8 sps:$4 sm:$0xff]  }
 0x168   :  { %3523 = vmatpush1.bf16.msra.mxu0 %v4823_v27  ;;  %3167 = vmatprep.subr.bf16.mxu1 %v4828_v28  ;;  %v4921_v27 = vld [vmem:[%s6407_s1 + $0xd74] ss:$8 sps:$4 sm:$0xff]   ;;  %v4916_v28 = vld [vmem:[%s6407_s1 + $0x670] ss:$8 sps:$4 sm:$0xff]  }
 0x169   :  { %3524 = vmatprep.subr.bf16.mxu0 %v4831_v29  ;;  %v4919_v29 = vld [vmem:[%s6407_s1 + $0xd70] ss:$8 sps:$4 sm:$0xff]  }
 0x16b   :  { %3168 = vmatpush1.bf16.msra.mxu1 %v4826_v30  ;;  %v4924_v30 = vld [vmem:[%s6407_s1 + $0x684] ss:$8 sps:$4 sm:$0xff]  }
 0x16c   :  { %3525 = vmatpush1.bf16.msra.mxu0 %v4829_v31  ;;  %3169 = vmatprep.subr.bf16.mxu1 %v4834_v32  ;;  %v4925_v31 = vld [vmem:[%s6408_s0 + $0x68] ss:$108 sps:$4 sm:$0xff]  }
 0x16d   :  { %3526 = vmatprep.subr.bf16.mxu0 %v4837_v33  ;;  %v4922_v32 = vld [vmem:[%s6407_s1 + $0x680] ss:$8 sps:$4 sm:$0xff]   ;;  %v4928_v33 = vld [vmem:[%s6407_s1 + $0x694] ss:$8 sps:$4 sm:$0xff]  }
 0x16f   :  { %3170 = vmatpush1.bf16.msra.mxu1 %v4832_v34  ;;  %v4926_v34 = vld [vmem:[%s6407_s1 + $0x690] ss:$8 sps:$4 sm:$0xff]  }
 0x170   :  { %3527 = vmatpush1.bf16.msra.mxu0 %v4835_v35  ;;  %3171 = vmatprep.subr.bf16.mxu1 %v4840_v36  ;;  %v4931_v35 = vld [vmem:[%s6407_s1 + $0x6a4] ss:$8 sps:$4 sm:$0xff]   ;;  %v4932_v36 = vld [vmem:[%s6408_s0 + $0x140] ss:$0 sps:$4 sm:$0xff]  }
 0x171   :  { %3528 = vmatprep.subr.bf16.mxu0 %v4843_v37  ;;  %v4929_v37 = vld [vmem:[%s6407_s1 + $0x6a0] ss:$8 sps:$4 sm:$0xff]  }
 0x173   :  { %3172 = vmatpush1.bf16.msra.mxu1 %v4838_v38  ;;  %v4935_v38 = vld [vmem:[%s6407_s1 + $0x6b4] ss:$8 sps:$4 sm:$0xff]  }
 0x174   :  { %3529 = vmatpush1.bf16.msra.mxu0 %v4841_v39  ;;  %3173 = vmatprep.subr.bf16.mxu1 %v4846_v40  ;;  %v4933_v39 = vld [vmem:[%s6407_s1 + $0x6b0] ss:$8 sps:$4 sm:$0xff]   ;;  %v4938_v40 = vld [vmem:[%s6407_s1 + $0x6c4] ss:$8 sps:$4 sm:$0xff]  }
 0x175   :  { %3530 = vmatprep.subr.bf16.mxu0 %v4849_v41  ;;  %v4936_v41 = vld [vmem:[%s6407_s1 + $0x6c0] ss:$8 sps:$4 sm:$0xff]  }
 0x177   :  { %3174 = vmatpush1.bf16.msra.mxu1 %v4844_v42  ;;  %v4941_v42 = vld [vmem:[%s6407_s1 + $0x6d4] ss:$8 sps:$4 sm:$0xff]  }
 0x178   :  { %3531 = vmatpush1.bf16.msra.mxu0 %v4847_v43  ;;  %3175 = vmatprep.subr.bf16.mxu1 %v4853_v44  ;;  %v4939_v43 = vld [vmem:[%s6407_s1 + $0x6d0] ss:$8 sps:$4 sm:$0xff]   ;;  %v4946_v44 = vld [vmem:[%s6407_s1 + $0x6e4] ss:$8 sps:$4 sm:$0xff]  }
 0x179   :  { %3532 = vmatprep.subr.bf16.mxu0 %v4857_v45  ;;  %v4944_v45 = vld [vmem:[%s6407_s1 + $0x6e0] ss:$8 sps:$4 sm:$0xff]  }
 0x17b   :  { %3176 = vmatpush1.bf16.msra.mxu1 %v4851_v46  ;;  %v4949_v46 = vld [vmem:[%s6407_s1 + $0x6f4] ss:$8 sps:$4 sm:$0xff]  }
 0x17c   :  { %3533 = vmatpush1.bf16.msra.mxu0 %v4855_v47  ;;  %3177 = vmatprep.subr.bf16.mxu1 %v4862_v48  ;;  %v4947_v47 = vld [vmem:[%s6407_s1 + $0x6f0] ss:$8 sps:$4 sm:$0xff]   ;;  %v49_v48 = vld [vmem:[%s6408_s0 + $0x108] sm:$0xff] }
 0x17d   :  { %3534 = vmatprep.subr.bf16.mxu0 %v4865_v49  ;;  %v4950_v49 = vld [vmem:[%s6408_s0 + $0x30] ss:$108 sps:$4 sm:$0xff]  }
 0x17f   :  { %3178 = vmatpush1.bf16.msra.mxu1 %v4860_v50  ;;  %v3679_v50 = vcombine.high %v49_v48, %v49_v48 }
 0x180   :  { %3535 = vmatpush1.bf16.msra.mxu0 %v4863_v51  ;;  %3198 = vmatprep.subr.bf16.mxu1 %v4871_v52  ;;  %v3678_v51 = vcombine.low %v49_v48, %v49_v48 }
 0x181   :  { %3555 = vmatprep.subr.bf16.mxu0 %v4877_v53 }
 0x182   :  { %3180 = vmatmul.mubr.bf16.vlgmr.msra.gmra.mrb[0].mxu1 %v4866_v54 }
 0x183   :  { %3537 = vmatmul.mubr.bf16.vlgmr.msra.gmra.mrb[0].mxu0 %v4872_v55  ;;  %3199 = vmatpush1.bf16.msra.mxu1 %v4869_v58 }
 0x184   :  { %3556 = vmatpush1.bf16.msra.mxu0 %v4875_v59  ;;  %3200 = vmatprep.subr.bf16.mxu1 %v4880_v60  ;;  %v491_v60 = vlaneseq }
 0x185   :  { %3557 = vmatprep.subr.bf16.mxu0 %v4883_v61  ;;  %3546 = vmatprep.mubr.bf16.mxu0 %v3691_v62 }
 0x186   :  { %3189 = vmatprep.mubr.bf16.mxu1 %v3677_v63  ;;  %v492_v61 = vshrl.u32 %v491_v60, 7  ;;  %v489_v63 = vld [vmem:[%s6409_s2] sm:$0x3] }
 0x187   :  { %3201 = vmatpush1.bf16.msra.mxu1 %v4878_v0 }
 0x188   :  { %3558 = vmatpush1.bf16.msra.mxu0 %v4881_v1  ;;  %3202 = vmatprep.subr.bf16.mxu1 %v4886_v2  ;;  %v493_v62 = vsub.s32 0, %v492_v61  ;;  %v497_v0 = vsub.s32 1, %v492_v61 }
 0x189   :  { %3559 = vmatprep.subr.bf16.mxu0 %v4889_v3 }
 0x18a   :  { %3190 = vmatmul.mubr.bf16.gmra.mrb[4].mxu1 %v3676_v5  ;;  %v494_v1 = vrot.slane %v489_v63, %v493_v62  ;;  %v498_v2 = vrot.slane %v489_v63, %v497_v0 }
 0x18b   :  { %3547 = vmatmul.mubr.bf16.gmra.mrb[4].mxu0 %v3690_v4  ;;  %3203 = vmatpush1.bf16.msra.mxu1 %v4884_v6 }
 0x18c   :  { %3560 = vmatpush1.bf16.msra.mxu0 %v4887_v7  ;;  %3204 = vmatprep.subr.bf16.mxu1 %v4892_v8 }
 0x18d   :  { %3561 = vmatprep.subr.bf16.mxu0 %v4895_v9  ;;  %3587 = vmatprep.mubr.bf16.mxu0 %v4955_v15 }
 0x18e   :  { %3230 = vmatprep.mubr.bf16.mxu1 %v4952_v10 }
 0x18f   :  { %3205 = vmatpush1.bf16.msra.mxu1 %v4890_v11 }
 0x190   :  { %3562 = vmatpush1.bf16.msra.mxu0 %v4893_v12  ;;  %3206 = vmatprep.subr.bf16.mxu1 %v4898_v13 }
 0x191   :  { %3563 = vmatprep.subr.bf16.mxu0 %v4901_v14 }
 0x193   :  { %3207 = vmatpush1.bf16.msra.mxu1 %v4896_v16 }
 0x194   :  { %3564 = vmatpush1.bf16.msra.mxu0 %v4899_v17  ;;  %3208 = vmatprep.subr.bf16.mxu1 %v4904_v18 }
 0x195   :  { %3565 = vmatprep.subr.bf16.mxu0 %v4907_v19 }
 0x197   :  { %3209 = vmatpush1.bf16.msra.mxu1 %v4902_v20 }
 0x198   :  { %3566 = vmatpush1.bf16.msra.mxu0 %v4905_v21  ;;  %3210 = vmatprep.subr.bf16.mxu1 %v4911_v22 }
 0x199   :  { %3567 = vmatprep.subr.bf16.mxu0 %v4915_v23 }
 0x19b   :  { %3211 = vmatpush1.bf16.msra.mxu1 %v4909_v24 }
 0x19c   :  { %3568 = vmatpush1.bf16.msra.mxu0 %v4913_v25  ;;  %3212 = vmatprep.subr.bf16.mxu1 %v4918_v26 }
 0x19d   :  { %3569 = vmatprep.subr.bf16.mxu0 %v4921_v27 }
 0x19f   :  { %3213 = vmatpush1.bf16.msra.mxu1 %v4916_v28 }
 0x1a0   :  { %3570 = vmatpush1.bf16.msra.mxu0 %v4919_v29  ;;  %3214 = vmatprep.subr.bf16.mxu1 %v4924_v30 }
 0x1a3   :  { %3588 = vmatmul.mubr.bf16.vlgmr.msra.gmra.mrb[0].mxu0 %v4925_v31  ;;  %3215 = vmatpush1.bf16.msra.mxu1 %v4922_v32 }
 0x1a4   :  { %3597 = vmatprep.mubr.bf16.mxu0 %v4955_v15  ;;  %3216 = vmatprep.subr.bf16.mxu1 %v4928_v33 }
 0x1a7   :  { %3217 = vmatpush1.bf16.msra.mxu1 %v4926_v34 }
 0x1a8   :  { %3218 = vmatprep.subr.bf16.mxu1 %v4931_v35 }
 0x1ab   :  { %3598 = vmatmul.mubr.bf16.gmra.mrb[4].mxu0 %v4932_v36  ;;  %3219 = vmatpush1.bf16.msra.mxu1 %v4929_v37 }
 0x1ac   :  { %3220 = vmatprep.subr.bf16.mxu1 %v4935_v38 }
 0x1af   :  { %3221 = vmatpush1.bf16.msra.mxu1 %v4933_v39 }
 0x1b0   :  { %3222 = vmatprep.subr.bf16.mxu1 %v4938_v40 }
 0x1b3   :  { %3223 = vmatpush1.bf16.msra.mxu1 %v4936_v41 }
 0x1b4   :  { %3224 = vmatprep.subr.bf16.mxu1 %v4941_v42 }
 0x1b7   :  { %3225 = vmatpush1.bf16.msra.mxu1 %v4939_v43 }
 0x1b8   :  { %3226 = vmatprep.subr.bf16.mxu1 %v4946_v44 }
 0x1bb   :  { %3227 = vmatpush1.bf16.msra.mxu1 %v4944_v45 }
 0x1bc   :  { %3228 = vmatprep.subr.bf16.mxu1 %v4949_v46 }
 0x1bf   :  { %3229 = vmatpush1.bf16.msra.mxu1 %v4947_v47 }
 0x1c2   :  { %3231 = vmatmul.mubr.bf16.vlgmr.msra.gmra.mrb[0].mxu1 %v4950_v49 }
 0x1c3   :  { %3240 = vmatprep.mubr.bf16.mxu1 %v3679_v50 }
 0x1ca   :  { %3241 = vmatmul.mubr.bf16.gmra.mrb[4].mxu1 %v3678_v51 }
 0x276   :  { %v3589_v52 = vpop.f32.mrb[0].mxu0 }
 0x277   :  { %v3591_v53 = vpop.f32.mrb[1].mxu0 }
 0x278   :  { %v3593_v54 = vpop.f32.mrb[2].mxu0 }
 0x279   :  { %v3595_v55 = vpop.f32.mrb[3].mxu0 }
 0x27e   :  { %v3599_v56 = vpop.f32.mrb[4].mxu0 }
 0x27f   :  { %v3601_v57 = vpop.f32.mrb[5].mxu0 }
 0x280   :  { %v3603_v58 = vpop.f32.mrb[6].mxu0 }
 0x281   :  { %v3604_v59 = vpop.f32.mrb[7].mxu0 }
 0x295   :  { %v3232_v3 = vpop.f32.mrb[0].mxu1 }
 0x296   :  { %v4131_v4 = vadd.f32 %v3232_v3, %v494_v1  ;;  %v3234_v5 = vpop.f32.mrb[1].mxu1 }
 0x297   :  { %v4133_v6 = vadd.f32 %v3234_v5, %v498_v2  ;;  %v3236_v7 = vpop.f32.mrb[2].mxu1 }
 0x298   :  { %v4132_v8 = vadd.f32 %v4131_v4, %v3589_v52  ;;  %v4135_v9 = vadd.f32 %v3236_v7, %v494_v1  ;;  %v3238_v10 = vpop.f32.mrb[3].mxu1 }
 0x299   :  { %v4134_v11 = vadd.f32 %v4133_v6, %v3591_v53  ;;  %v4137_v12 = vadd.f32 %v3238_v10, %v498_v2 }
 0x29a   :  { %v3606_v13 = vmax.f32 %v4132_v8, 0.0  ;;  %v4136_v14 = vadd.f32 %v4135_v9, %v3593_v54 }
 0x29b   :  { %v3607_v15 = vmax.f32 %v4134_v11, 0.0  ;;  %v4138_v16 = vadd.f32 %v4137_v12, %v3595_v55 }
 0x29c   :  { %v3608_v17 = vmax.f32 %v4136_v14, 0.0 }
 0x29d   :  { %v4128_v18 = vpack.c.bf16 %v3607_v15, %v3606_v13  ;;  %v3609_v19 = vmax.f32 %v4138_v16, 0.0  ;;  %v3242_v20 = vpop.f32.mrb[4].mxu1 }
 0x29e   :  { %v4139_v21 = vadd.f32 %v3242_v20, %v494_v1  ;;  %v3244_v22 = vpop.f32.mrb[5].mxu1 }
 0x29f   :  { %3632 = vst [vmem:[%s6410_s3] sm:$0xff] %v4128_v18  ;;  %v4129_v23 = vpack.c.bf16 %v3609_v19, %v3608_v17  ;;  %v4141_v24 = vadd.f32 %v3244_v22, %v498_v2  ;;  %v3246_v25 = vpop.f32.mrb[6].mxu1 }
 0x2a0   :  { %v4140_v26 = vadd.f32 %v4139_v21, %v3599_v56  ;;  %v3247_v27 = vpop.f32.mrb[7].mxu1 }
 0x2a1   :  { %3633 = vst [vmem:[%s6410_s3 + $0x8] sm:$0xff] %v4129_v23  ;;  %v4142_v28 = vadd.f32 %v4141_v24, %v3601_v57 }
 0x2a2   :  { %v3610_v29 = vmax.f32 %v4140_v26, 0.0 }
 0x2a3   :  { %v3611_v30 = vmax.f32 %v4142_v28, 0.0 }
 0x2a5   :  { %v4130_v31 = vpack.c.bf16 %v3611_v30, %v3610_v29 }
 0x2a7   :  { %3634 = vst [vmem:[%s6410_s3 + $0x10] sm:$0xff] %v4130_v31 }

// kernel: features_forward.15
= control target key start
LH: loop header
LB: loop body
LE: loop exit
PB: predicated region body
PF: predicated region fallthrough
CT: control target
= control target key end

     0   :  { %s70_s0 = inlined_call_operand.vmem [shape: bf16[9,8,256], index: 0, kind: input, shape index: {}]   ;;  %s71_s1 = inlined_call_operand.vmem [shape: bf16[8,256], index: 1, kind: output, shape index: {}]  }
   0x1   :  { %v8_v0 = vld [vmem:[%s70_s0] sm:$0xff]  ;;  %v9_v1 = vld [vmem:[%s70_s0 + $0x8] sm:$0xff]  ;;  %v10_v2 = vld [vmem:[%s70_s0 + $0x10] sm:$0xff] }
   0x2   :  { %v11_v3 = vld [vmem:[%s70_s0 + $0x18] sm:$0xff]  ;;  %v12_v4 = vld [vmem:[%s70_s0 + $0x20] sm:$0xff]  ;;  %v13_v5 = vld [vmem:[%s70_s0 + $0x28] sm:$0xff] }
   0x3   :  { %v14_v6 = vld [vmem:[%s70_s0 + $0x30] sm:$0xff]  ;;  %v15_v7 = vld [vmem:[%s70_s0 + $0x38] sm:$0xff]  ;;  %v16_v8 = vld [vmem:[%s70_s0 + $0x40] sm:$0xff]  ;;  %v17_v9 = vmax.bf16 %v12_v4, %v8_v0  ;;  %v18_v10 = vmax.bf16 %v13_v5, %v9_v1 }
   0x4   :  { %v19_v11 = vmax.bf16 %v14_v6, %v10_v2  ;;  %v20_v12 = vmax.bf16 %v15_v7, %v11_v3 }
   0x5   :  { %v21_v13 = vmax.bf16 %v17_v9, %v16_v8 }
   0x6   :  { %v23_v14 = vmax.bf16 %v20_v12, %v19_v11 }
   0x7   :  { %v22_v15 = vmax.bf16 %v21_v13, %v18_v10 }
   0x9   :  { %v24_v16 = vmax.bf16 %v23_v14, %v22_v15 }
   0xb   :  { %25 = vst [vmem:[%s71_s1] sm:$0xff] %v24_v16 }

// kernel: features_forward.14
= control target key start
LH: loop header
LB: loop body
LE: loop exit
PB: predicated region body
PF: predicated region fallthrough
CT: control target
= control target key end

     0   :  { %s4314_s1 = inlined_call_operand.vmem [shape: bf16[2304,256], index: 1, kind: input, shape index: {}]   ;;  %s4315_s0 = inlined_call_operand.vmem [shape: bf16[24,2304], index: 0, kind: input, shape index: {}]   ;;  %s4316_s2 = inlined_call_operand.vmem [shape: f32[1,256], index: 2, kind: input, shape index: {}]   ;;  %s4317_s3 = inlined_call_operand.vmem [shape: bf16[24,256], index: 3, kind: output, shape index: {}]  }
   0x1   :  { %v2854_v0 = vld [vmem:[%s4314_s1 + $0x4] ss:$8 sps:$4 sm:$0xff]   ;;  %v2858_v2 = vld [vmem:[%s4314_s1] ss:$8 sps:$4 sm:$0xff]   ;;  %v2860_v4 = vld [vmem:[%s4314_s1 + $0x14] ss:$8 sps:$4 sm:$0xff]  }
   0x2   :  { %v2856_v1 = vld [vmem:[%s4314_s1 + $0x404] ss:$8 sps:$4 sm:$0xff]   ;;  %1934 = vmatprep.subr.bf16.mxu1 %v2854_v0  ;;  %v2859_v3 = vld [vmem:[%s4314_s1 + $0x400] ss:$8 sps:$4 sm:$0xff]   ;;  %v2862_v5 = vld [vmem:[%s4314_s1 + $0x414] ss:$8 sps:$4 sm:$0xff]  }
   0x3   :  { %2138 = vmatprep.subr.bf16.mxu0 %v2856_v1  ;;  %1935 = vmatpush1.bf16.msra.mxu1 %v2858_v2  ;;  %v2864_v6 = vld [vmem:[%s4314_s1 + $0x10] ss:$8 sps:$4 sm:$0xff]   ;;  %v2866_v8 = vld [vmem:[%s4314_s1 + $0x24] ss:$8 sps:$4 sm:$0xff]   ;;  %v2870_v10 = vld [vmem:[%s4314_s1 + $0x20] ss:$8 sps:$4 sm:$0xff]  }
   0x4   :  { %2139 = vmatpush1.bf16.msra.mxu0 %v2859_v3  ;;  %1936 = vmatprep.subr.bf16.mxu1 %v2860_v4  ;;  %v2865_v7 = vld [vmem:[%s4314_s1 + $0x410] ss:$8 sps:$4 sm:$0xff]   ;;  %v2868_v9 = vld [vmem:[%s4314_s1 + $0x424] ss:$8 sps:$4 sm:$0xff]   ;;  %v2871_v11 = vld [vmem:[%s4314_s1 + $0x420] ss:$8 sps:$4 sm:$0xff]  }
   0x5   :  { %2140 = vmatprep.subr.bf16.mxu0 %v2862_v5  ;;  %v2872_v12 = vld [vmem:[%s4314_s1 + $0x34] ss:$8 sps:$4 sm:$0xff]   ;;  %v2876_v14 = vld [vmem:[%s4314_s1 + $0x30] ss:$8 sps:$4 sm:$0xff]   ;;  %v2878_v16 = vld [vmem:[%s4314_s1 + $0x44] ss:$8 sps:$4 sm:$0xff]  }
   0x6   :  { %v2874_v13 = vld [vmem:[%s4314_s1 + $0x434] ss:$8 sps:$4 sm:$0xff]   ;;  %v2877_v15 = vld [vmem:[%s4314_s1 + $0x430] ss:$8 sps:$4 sm:$0xff]   ;;  %v2880_v17 = vld [vmem:[%s4314_s1 + $0x444] ss:$8 sps:$4 sm:$0xff]  }
   0x7   :  { %1937 = vmatpush1.bf16.msra.mxu1 %v2864_v6  ;;  %v2882_v18 = vld [vmem:[%s4314_s1 + $0x40] ss:$8 sps:$4 sm:$0xff]   ;;  %v2884_v20 = vld [vmem:[%s4314_s1 + $0x54] ss:$8 sps:$4 sm:$0xff]   ;;  %v2888_v22 = vld [vmem:[%s4314_s1 + $0x50] ss:$8 sps:$4 sm:$0xff]  }
   0x8   :  { %2141 = vmatpush1.bf16.msra.mxu0 %v2865_v7  ;;  %1938 = vmatprep.subr.bf16.mxu1 %v2866_v8  ;;  %v2883_v19 = vld [vmem:[%s4314_s1 + $0x440] ss:$8 sps:$4 sm:$0xff]   ;;  %v2886_v21 = vld [vmem:[%s4314_s1 + $0x454] ss:$8 sps:$4 sm:$0xff]   ;;  %v2889_v23 = vld [vmem:[%s4314_s1 + $0x450] ss:$8 sps:$4 sm:$0xff]  }
   0x9   :  { %2142 = vmatprep.subr.bf16.mxu0 %v2868_v9  ;;  %v2890_v24 = vld [vmem:[%s4314_s1 + $0x64] ss:$8 sps:$4 sm:$0xff]   ;;  %v2894_v26 = vld [vmem:[%s4314_s1 + $0x60] ss:$8 sps:$4 sm:$0xff]   ;;  %v2896_v28 = vld [vmem:[%s4314_s1 + $0x74] ss:$8 sps:$4 sm:$0xff]  }
   0xa   :  { %v2892_v25 = vld [vmem:[%s4314_s1 + $0x464] ss:$8 sps:$4 sm:$0xff]   ;;  %v2895_v27 = vld [vmem:[%s4314_s1 + $0x460] ss:$8 sps:$4 sm:$0xff]   ;;  %v2898_v29 = vld [vmem:[%s4314_s1 + $0x474] ss:$8 sps:$4 sm:$0xff]  }
   0xb   :  { %1939 = vmatpush1.bf16.msra.mxu1 %v2870_v10  ;;  %v2900_v30 = vld [vmem:[%s4314_s1 + $0x70] ss:$8 sps:$4 sm:$0xff]   ;;  %v2902_v32 = vld [vmem:[%s4314_s1 + $0x84] ss:$8 sps:$4 sm:$0xff]   ;;  %v2906_v34 = vld [vmem:[%s4314_s1 + $0x80] ss:$8 sps:$4 sm:$0xff]  }
   0xc   :  { %2143 = vmatpush1.bf16.msra.mxu0 %v2871_v11  ;;  %1940 = vmatprep.subr.bf16.mxu1 %v2872_v12  ;;  %v2901_v31 = vld [vmem:[%s4314_s1 + $0x470] ss:$8 sps:$4 sm:$0xff]   ;;  %v2904_v33 = vld [vmem:[%s4314_s1 + $0x484] ss:$8 sps:$4 sm:$0xff]   ;;  %v2907_v35 = vld [vmem:[%s4314_s1 + $0x480] ss:$8 sps:$4 sm:$0xff]  }
   0xd   :  { %2144 = vmatprep.subr.bf16.mxu0 %v2874_v13  ;;  %v2908_v36 = vld [vmem:[%s4314_s1 + $0x94] ss:$8 sps:$4 sm:$0xff]   ;;  %v2912_v38 = vld [vmem:[%s4314_s1 + $0x90] ss:$8 sps:$4 sm:$0xff]   ;;  %v2914_v40 = vld [vmem:[%s4314_s1 + $0xa4] ss:$8 sps:$4 sm:$0xff]  }
   0xe   :  { %v2910_v37 = vld [vmem:[%s4314_s1 + $0x494] ss:$8 sps:$4 sm:$0xff]   ;;  %v2913_v39 = vld [vmem:[%s4314_s1 + $0x490] ss:$8 sps:$4 sm:$0xff]   ;;  %v2916_v41 = vld [vmem:[%s4314_s1 + $0x4a4] ss:$8 sps:$4 sm:$0xff]  }
   0xf   :  { %1941 = vmatpush1.bf16.msra.mxu1 %v2876_v14  ;;  %v2918_v42 = vld [vmem:[%s4314_s1 + $0xa0] ss:$8 sps:$4 sm:$0xff]   ;;  %v2920_v44 = vld [vmem:[%s4314_s1 + $0xb4] ss:$8 sps:$4 sm:$0xff]   ;;  %v2924_v46 = vld [vmem:[%s4314_s1 + $0xb0] ss:$8 sps:$4 sm:$0xff]  }
  0x10   :  { %2145 = vmatpush1.bf16.msra.mxu0 %v2877_v15  ;;  %1942 = vmatprep.subr.bf16.mxu1 %v2878_v16  ;;  %v2919_v43 = vld [vmem:[%s4314_s1 + $0x4a0] ss:$8 sps:$4 sm:$0xff]   ;;  %v2922_v45 = vld [vmem:[%s4314_s1 + $0x4b4] ss:$8 sps:$4 sm:$0xff]   ;;  %v2925_v47 = vld [vmem:[%s4314_s1 + $0x4b0] ss:$8 sps:$4 sm:$0xff]  }
  0x11   :  { %2146 = vmatprep.subr.bf16.mxu0 %v2880_v17  ;;  %v2952_v48 = vld [vmem:[%s4315_s0 + $0x4] ss:$72 sps:$4 sm:$0xff]   ;;  %v2930_v52 = vld [vmem:[%s4314_s1 + $0xc0] ss:$8 sps:$4 sm:$0xff]   ;;  %v2932_v54 = vld [vmem:[%s4314_s1 + $0xd4] ss:$8 sps:$4 sm:$0xff]  }
  0x12   :  { %v2926_v49 = vld [vmem:[%s4314_s1 + $0xc4] ss:$8 sps:$4 sm:$0xff]   ;;  %1966 = vmatprep.mubr.bf16.mxu1 %v2952_v48  ;;  %v2931_v53 = vld [vmem:[%s4314_s1 + $0x4c0] ss:$8 sps:$4 sm:$0xff]   ;;  %v2934_v55 = vld [vmem:[%s4314_s1 + $0x4d4] ss:$8 sps:$4 sm:$0xff]  }
  0x13   :  { %1943 = vmatpush1.bf16.msra.mxu1 %v2882_v18  ;;  %v2928_v50 = vld [vmem:[%s4314_s1 + $0x4c4] ss:$8 sps:$4 sm:$0xff]   ;;  %v2936_v56 = vld [vmem:[%s4314_s1 + $0xd0] ss:$8 sps:$4 sm:$0xff]   ;;  %v2942_v60 = vld [vmem:[%s4314_s1 + $0xe0] ss:$8 sps:$4 sm:$0xff]  }
  0x14   :  { %2147 = vmatpush1.bf16.msra.mxu0 %v2883_v19  ;;  %1944 = vmatprep.subr.bf16.mxu1 %v2884_v20  ;;  %v2958_v51 = vld [vmem:[%s4315_s0 + $0x24] ss:$72 sps:$4 sm:$0xff]   ;;  %v2937_v57 = vld [vmem:[%s4314_s1 + $0x4d0] ss:$8 sps:$4 sm:$0xff]   ;;  %v2943_v61 = vld [vmem:[%s4314_s1 + $0x4e0] ss:$8 sps:$4 sm:$0xff]  }
  0x15   :  { %2148 = vmatprep.subr.bf16.mxu0 %v2886_v21  ;;  %2170 = vmatprep.mubr.bf16.mxu0 %v2958_v51  ;;  %v2938_v58 = vld [vmem:[%s4314_s1 + $0xe4] ss:$8 sps:$4 sm:$0xff]   ;;  %v2944_v62 = vld [vmem:[%s4314_s1 + $0xf4] ss:$8 sps:$4 sm:$0xff]   ;;  %v2948_v0 = vld [vmem:[%s4314_s1 + $0xf0] ss:$8 sps:$4 sm:$0xff]  }
  0x16   :  { %v2940_v59 = vld [vmem:[%s4314_s1 + $0x4e4] ss:$8 sps:$4 sm:$0xff]   ;;  %v2946_v63 = vld [vmem:[%s4314_s1 + $0x4f4] ss:$8 sps:$4 sm:$0xff]   ;;  %v2949_v1 = vld [vmem:[%s4314_s1 + $0x4f0] ss:$8 sps:$4 sm:$0xff]  }
  0x17   :  { %1945 = vmatpush1.bf16.msra.mxu1 %v2888_v22  ;;  %v2955_v2 = vld [vmem:[%s4314_s1 + $0x104] ss:$8 sps:$4 sm:$0xff]   ;;  %v2950_v4 = vld [vmem:[%s4315_s0] ss:$72 sps:$4 sm:$0xff]   ;;  %v2964_v8 = vld [vmem:[%s4314_s1 + $0x114] ss:$8 sps:$4 sm:$0xff]  }
  0x18   :  { %2149 = vmatpush1.bf16.msra.mxu0 %v2889_v23  ;;  %1946 = vmatprep.subr.bf16.mxu1 %v2890_v24  ;;  %v2961_v3 = vld [vmem:[%s4314_s1 + $0x504] ss:$8 sps:$4 sm:$0xff]   ;;  %v2953_v5 = vld [vmem:[%s4314_s1 + $0x100] ss:$8 sps:$4 sm:$0xff]   ;;  %v2967_v9 = vld [vmem:[%s4314_s1 + $0x514] ss:$8 sps:$4 sm:$0xff]  }
  0x19   :  { %2150 = vmatprep.subr.bf16.mxu0 %v2892_v25  ;;  %v2956_v6 = vld [vmem:[%s4315_s0 + $0x20] ss:$72 sps:$4 sm:$0xff]   ;;  %v2962_v10 = vld [vmem:[%s4314_s1 + $0x110] ss:$8 sps:$4 sm:$0xff]   ;;  %v2970_v12 = vld [vmem:[%s4314_s1 + $0x124] ss:$8 sps:$4 sm:$0xff]  }
  0x1a   :  { %v2959_v7 = vld [vmem:[%s4314_s1 + $0x500] ss:$8 sps:$4 sm:$0xff]   ;;  %v2965_v11 = vld [vmem:[%s4314_s1 + $0x510] ss:$8 sps:$4 sm:$0xff]   ;;  %v2973_v13 = vld [vmem:[%s4314_s1 + $0x524] ss:$8 sps:$4 sm:$0xff]  }
  0x1b   :  { %1947 = vmatpush1.bf16.msra.mxu1 %v2894_v26  ;;  %v2968_v14 = vld [vmem:[%s4314_s1 + $0x120] ss:$8 sps:$4 sm:$0xff]   ;;  %v2976_v16 = vld [vmem:[%s4314_s1 + $0x134] ss:$8 sps:$4 sm:$0xff]   ;;  %v2974_v18 = vld [vmem:[%s4314_s1 + $0x130] ss:$8 sps:$4 sm:$0xff]  }
  0x1c   :  { %2151 = vmatpush1.bf16.msra.mxu0 %v2895_v27  ;;  %1948 = vmatprep.subr.bf16.mxu1 %v2896_v28  ;;  %v2971_v15 = vld [vmem:[%s4314_s1 + $0x520] ss:$8 sps:$4 sm:$0xff]   ;;  %v2979_v17 = vld [vmem:[%s4314_s1 + $0x534] ss:$8 sps:$4 sm:$0xff]   ;;  %v2977_v19 = vld [vmem:[%s4314_s1 + $0x530] ss:$8 sps:$4 sm:$0xff]  }
  0x1d   :  { %2152 = vmatprep.subr.bf16.mxu0 %v2898_v29  ;;  %v2982_v20 = vld [vmem:[%s4314_s1 + $0x144] ss:$8 sps:$4 sm:$0xff]   ;;  %v2980_v22 = vld [vmem:[%s4314_s1 + $0x140] ss:$8 sps:$4 sm:$0xff]   ;;  %v2988_v24 = vld [vmem:[%s4314_s1 + $0x154] ss:$8 sps:$4 sm:$0xff]  }
  0x1e   :  { %v2985_v21 = vld [vmem:[%s4314_s1 + $0x544] ss:$8 sps:$4 sm:$0xff]   ;;  %v2983_v23 = vld [vmem:[%s4314_s1 + $0x540] ss:$8 sps:$4 sm:$0xff]   ;;  %v2991_v25 = vld [vmem:[%s4314_s1 + $0x554] ss:$8 sps:$4 sm:$0xff]  }
  0x1f   :  { %1949 = vmatpush1.bf16.msra.mxu1 %v2900_v30  ;;  %v32_v26 = vld [vmem:[%s4315_s0 + $0x90] sm:$0xff] }
  0x20   :  { %2153 = vmatpush1.bf16.msra.mxu0 %v2901_v31  ;;  %1950 = vmatprep.subr.bf16.mxu1 %v2902_v32  ;;  %v2986_v27 = vld [vmem:[%s4314_s1 + $0x150] ss:$8 sps:$4 sm:$0xff]   ;;  %v2445_v28 = vcombine.high %v32_v26, %v32_v26  ;;  %v2444_v29 = vcombine.low %v32_v26, %v32_v26  ;;  %v2994_v32 = vld [vmem:[%s4314_s1 + $0x164] ss:$8 sps:$4 sm:$0xff]   ;;  %v3012_v48 = vld [vmem:[%s4314_s1 + $0x194] ss:$8 sps:$4 sm:$0xff]  }
  0x21   :  { %2154 = vmatprep.subr.bf16.mxu0 %v2904_v33  ;;  %v2989_v30 = vld [vmem:[%s4314_s1 + $0x550] ss:$8 sps:$4 sm:$0xff]   ;;  %v2997_v33 = vld [vmem:[%s4314_s1 + $0x564] ss:$8 sps:$4 sm:$0xff]  }
  0x22   :  { %v36_v31 = vld [vmem:[%s4315_s0 + $0xb0] sm:$0xff]  ;;  %v3076_v26 = vld [vmem:[%s4314_s1 + $0x224] ss:$8 sps:$4 sm:$0xff]  }
  0x23   :  { %1951 = vmatpush1.bf16.msra.mxu1 %v2906_v34  ;;  %v2453_v34 = vcombine.high %v36_v31, %v36_v31  ;;  %v3013_v51 = vld [vmem:[%s4314_s1 + $0x590] ss:$8 sps:$4 sm:$0xff]  }
  0x24   :  { %2155 = vmatpush1.bf16.msra.mxu0 %v2907_v35  ;;  %1952 = vmatprep.subr.bf16.mxu1 %v2908_v36  ;;  %v2452_v35 = vcombine.low %v36_v31, %v36_v31  ;;  %v2992_v36 = vld [vmem:[%s4314_s1 + $0x160] ss:$8 sps:$4 sm:$0xff]  }
  0x25   :  { %2156 = vmatprep.subr.bf16.mxu0 %v2910_v37  ;;  %v2995_v37 = vld [vmem:[%s4314_s1 + $0x560] ss:$8 sps:$4 sm:$0xff]  }
  0x27   :  { %1953 = vmatpush1.bf16.msra.mxu1 %v2912_v38  ;;  %v3000_v38 = vld [vmem:[%s4314_s1 + $0x174] ss:$8 sps:$4 sm:$0xff]  }
  0x28   :  { %2157 = vmatpush1.bf16.msra.mxu0 %v2913_v39  ;;  %1954 = vmatprep.subr.bf16.mxu1 %v2914_v40  ;;  %v3003_v39 = vld [vmem:[%s4314_s1 + $0x574] ss:$8 sps:$4 sm:$0xff]  }
  0x29   :  { %2158 = vmatprep.subr.bf16.mxu0 %v2916_v41  ;;  %v3058_v40 = vld [vmem:[%s4315_s0 + $0xc] ss:$72 sps:$4 sm:$0xff]   ;;  %v2998_v41 = vld [vmem:[%s4314_s1 + $0x170] ss:$8 sps:$4 sm:$0xff]  }
  0x2b   :  { %1955 = vmatpush1.bf16.msra.mxu1 %v2918_v42  ;;  %v3001_v42 = vld [vmem:[%s4314_s1 + $0x570] ss:$8 sps:$4 sm:$0xff]  }
  0x2c   :  { %2159 = vmatpush1.bf16.msra.mxu0 %v2919_v43  ;;  %1956 = vmatprep.subr.bf16.mxu1 %v2920_v44  ;;  %v3064_v43 = vld [vmem:[%s4315_s0 + $0x2c] ss:$72 sps:$4 sm:$0xff]  }
  0x2d   :  { %2160 = vmatprep.subr.bf16.mxu0 %v2922_v45  ;;  %v3006_v44 = vld [vmem:[%s4314_s1 + $0x184] ss:$8 sps:$4 sm:$0xff]  }
  0x2e   :  { %v3009_v45 = vld [vmem:[%s4314_s1 + $0x584] ss:$8 sps:$4 sm:$0xff]  }
  0x2f   :  { %1957 = vmatpush1.bf16.msra.mxu1 %v2924_v46  ;;  %v3004_v46 = vld [vmem:[%s4314_s1 + $0x180] ss:$8 sps:$4 sm:$0xff]  }
  0x30   :  { %2161 = vmatpush1.bf16.msra.mxu0 %v2925_v47  ;;  %1958 = vmatprep.subr.bf16.mxu1 %v2926_v49  ;;  %v3007_v47 = vld [vmem:[%s4314_s1 + $0x580] ss:$8 sps:$4 sm:$0xff]   ;;  %v3015_v49 = vld [vmem:[%s4314_s1 + $0x594] ss:$8 sps:$4 sm:$0xff]  }
  0x31   :  { %2162 = vmatprep.subr.bf16.mxu0 %v2928_v50  ;;  %v3010_v50 = vld [vmem:[%s4314_s1 + $0x190] ss:$8 sps:$4 sm:$0xff]  }
  0x33   :  { %1959 = vmatpush1.bf16.msra.mxu1 %v2930_v52  ;;  %v3018_v52 = vld [vmem:[%s4314_s1 + $0x1a4] ss:$8 sps:$4 sm:$0xff]  }
  0x34   :  { %2163 = vmatpush1.bf16.msra.mxu0 %v2931_v53  ;;  %1960 = vmatprep.subr.bf16.mxu1 %v2932_v54  ;;  %v3021_v53 = vld [vmem:[%s4314_s1 + $0x5a4] ss:$8 sps:$4 sm:$0xff]   ;;  %v3016_v54 = vld [vmem:[%s4314_s1 + $0x1a0] ss:$8 sps:$4 sm:$0xff]  }
  0x35   :  { %2164 = vmatprep.subr.bf16.mxu0 %v2934_v55  ;;  %v3019_v55 = vld [vmem:[%s4314_s1 + $0x5a0] ss:$8 sps:$4 sm:$0xff]  }
  0x37   :  { %1961 = vmatpush1.bf16.msra.mxu1 %v2936_v56  ;;  %v3024_v56 = vld [vmem:[%s4314_s1 + $0x1b4] ss:$8 sps:$4 sm:$0xff]  }
  0x38   :  { %2165 = vmatpush1.bf16.msra.mxu0 %v2937_v57  ;;  %1962 = vmatprep.subr.bf16.mxu1 %v2938_v58  ;;  %v3027_v57 = vld [vmem:[%s4314_s1 + $0x5b4] ss:$8 sps:$4 sm:$0xff]   ;;  %v3022_v58 = vld [vmem:[%s4314_s1 + $0x1b0] ss:$8 sps:$4 sm:$0xff]  }
  0x39   :  { %2166 = vmatprep.subr.bf16.mxu0 %v2940_v59  ;;  %v3025_v59 = vld [vmem:[%s4314_s1 + $0x5b0] ss:$8 sps:$4 sm:$0xff]  }
  0x3b   :  { %1963 = vmatpush1.bf16.msra.mxu1 %v2942_v60  ;;  %v3030_v60 = vld [vmem:[%s4314_s1 + $0x1c4] ss:$8 sps:$4 sm:$0xff]  }
  0x3c   :  { %2167 = vmatpush1.bf16.msra.mxu0 %v2943_v61  ;;  %1964 = vmatprep.subr.bf16.mxu1 %v2944_v62  ;;  %v3033_v61 = vld [vmem:[%s4314_s1 + $0x5c4] ss:$8 sps:$4 sm:$0xff]   ;;  %v3028_v62 = vld [vmem:[%s4314_s1 + $0x1c0] ss:$8 sps:$4 sm:$0xff]  }
  0x3d   :  { %2168 = vmatprep.subr.bf16.mxu0 %v2946_v63  ;;  %v3031_v63 = vld [vmem:[%s4314_s1 + $0x5c0] ss:$8 sps:$4 sm:$0xff]  }
  0x3f   :  { %1965 = vmatpush1.bf16.msra.mxu1 %v2948_v0  ;;  %v3036_v0 = vld [vmem:[%s4314_s1 + $0x1d4] ss:$8 sps:$4 sm:$0xff]  }
  0x40   :  { %2169 = vmatpush1.bf16.msra.mxu0 %v2949_v1  ;;  %1985 = vmatprep.subr.bf16.mxu1 %v2955_v2  ;;  %v3039_v1 = vld [vmem:[%s4314_s1 + $0x5d4] ss:$8 sps:$4 sm:$0xff]   ;;  %v3034_v2 = vld [vmem:[%s4314_s1 + $0x1d0] ss:$8 sps:$4 sm:$0xff]  }
  0x41   :  { %2189 = vmatprep.subr.bf16.mxu0 %v2961_v3  ;;  %v3037_v3 = vld [vmem:[%s4314_s1 + $0x5d0] ss:$8 sps:$4 sm:$0xff]  }
  0x42   :  { %1967 = vmatmul.mubr.bf16.vlgmr.msra.gmra.mrb[0].mxu1 %v2950_v4  ;;  %v3043_v4 = vld [vmem:[%s4314_s1 + $0x1e4] ss:$8 sps:$4 sm:$0xff]  }
  0x43   :  { %2171 = vmatmul.mubr.bf16.vlgmr.msra.gmra.mrb[0].mxu0 %v2956_v6  ;;  %1986 = vmatpush1.bf16.msra.mxu1 %v2953_v5  ;;  %v3047_v5 = vld [vmem:[%s4314_s1 + $0x5e4] ss:$8 sps:$4 sm:$0xff]   ;;  %v3041_v6 = vld [vmem:[%s4314_s1 + $0x1e0] ss:$8 sps:$4 sm:$0xff]  }
  0x44   :  { %2190 = vmatpush1.bf16.msra.mxu0 %v2959_v7  ;;  %1987 = vmatprep.subr.bf16.mxu1 %v2964_v8  ;;  %v3045_v7 = vld [vmem:[%s4314_s1 + $0x5e0] ss:$8 sps:$4 sm:$0xff]   ;;  %v3052_v8 = vld [vmem:[%s4314_s1 + $0x1f4] ss:$8 sps:$4 sm:$0xff]  }
  0x45   :  { %2191 = vmatprep.subr.bf16.mxu0 %v2967_v9  ;;  %1976 = vmatprep.mubr.bf16.mxu1 %v2445_v28  ;;  %v3055_v9 = vld [vmem:[%s4314_s1 + $0x5f4] ss:$8 sps:$4 sm:$0xff]   ;;  %v3074_v28 = vld [vmem:[%s4314_s1 + $0x220] ss:$8 sps:$4 sm:$0xff]  }
  0x46   :  { %2180 = vmatprep.mubr.bf16.mxu0 %v2453_v34  ;;  %v3164_v34 = vld [vmem:[%s4315_s0 + $0x14] ss:$72 sps:$4 sm:$0xff]  }
  0x47   :  { %1988 = vmatpush1.bf16.msra.mxu1 %v2962_v10  ;;  %v3050_v10 = vld [vmem:[%s4314_s1 + $0x1f0] ss:$8 sps:$4 sm:$0xff]  }
  0x48   :  { %2192 = vmatpush1.bf16.msra.mxu0 %v2965_v11  ;;  %1989 = vmatprep.subr.bf16.mxu1 %v2970_v12  ;;  %v3053_v11 = vld [vmem:[%s4314_s1 + $0x5f0] ss:$8 sps:$4 sm:$0xff]  }
  0x49   :  { %2193 = vmatprep.subr.bf16.mxu0 %v2973_v13  ;;  %v3056_v12 = vld [vmem:[%s4315_s0 + $0x8] ss:$72 sps:$4 sm:$0xff]   ;;  %v3061_v13 = vld [vmem:[%s4314_s1 + $0x204] ss:$8 sps:$4 sm:$0xff]  }
  0x4a   :  { %1977 = vmatmul.mubr.bf16.gmra.mrb[4].mxu1 %v2444_v29  ;;  %v3077_v29 = vld [vmem:[%s4314_s1 + $0x620] ss:$8 sps:$4 sm:$0xff]  }
  0x4b   :  { %1990 = vmatpush1.bf16.msra.mxu1 %v2968_v14  ;;  %2181 = vmatmul.mubr.bf16.gmra.mrb[4].mxu0 %v2452_v35  ;;  %v3067_v14 = vld [vmem:[%s4314_s1 + $0x604] ss:$8 sps:$4 sm:$0xff]   ;;  %v3170_v35 = vld [vmem:[%s4315_s0 + $0x34] ss:$72 sps:$4 sm:$0xff]  }
  0x4c   :  { %2194 = vmatpush1.bf16.msra.mxu0 %v2971_v15  ;;  %1991 = vmatprep.subr.bf16.mxu1 %v2976_v16  ;;  %v3059_v15 = vld [vmem:[%s4314_s1 + $0x200] ss:$8 sps:$4 sm:$0xff]  }
  0x4d   :  { %2195 = vmatprep.subr.bf16.mxu0 %v2979_v17  ;;  %2017 = vmatprep.mubr.bf16.mxu1 %v3058_v40  ;;  %v3062_v16 = vld [vmem:[%s4315_s0 + $0x28] ss:$72 sps:$4 sm:$0xff]  }
  0x4e   :  { %2221 = vmatprep.mubr.bf16.mxu0 %v3064_v43  ;;  %v3065_v17 = vld [vmem:[%s4314_s1 + $0x600] ss:$8 sps:$4 sm:$0xff]   ;;  %v3097_v43 = vld [vmem:[%s4314_s1 + $0x654] ss:$8 sps:$4 sm:$0xff]  }
  0x4f   :  { %1992 = vmatpush1.bf16.msra.mxu1 %v2974_v18  ;;  %v3070_v18 = vld [vmem:[%s4314_s1 + $0x214] ss:$8 sps:$4 sm:$0xff]   ;;  %v3086_v40 = vld [vmem:[%s4314_s1 + $0x240] ss:$8 sps:$4 sm:$0xff]  }
  0x50   :  { %2196 = vmatpush1.bf16.msra.mxu0 %v2977_v19  ;;  %1993 = vmatprep.subr.bf16.mxu1 %v2982_v20  ;;  %v33_v19 = vld [vmem:[%s4315_s0 + $0x98] sm:$0xff] }
  0x51   :  { %2197 = vmatprep.subr.bf16.mxu0 %v2985_v21  ;;  %v3073_v20 = vld [vmem:[%s4314_s1 + $0x614] ss:$8 sps:$4 sm:$0xff]   ;;  %v2447_v21 = vcombine.high %v33_v19, %v33_v19 }
  0x53   :  { %1994 = vmatpush1.bf16.msra.mxu1 %v2980_v22  ;;  %v37_v22 = vld [vmem:[%s4315_s0 + $0xb8] sm:$0xff] }
  0x54   :  { %2198 = vmatpush1.bf16.msra.mxu0 %v2983_v23  ;;  %1995 = vmatprep.subr.bf16.mxu1 %v2988_v24  ;;  %v3068_v23 = vld [vmem:[%s4314_s1 + $0x210] ss:$8 sps:$4 sm:$0xff]   ;;  %v2454_v31 = vcombine.low %v37_v22, %v37_v22 }
  0x55   :  { %2199 = vmatprep.subr.bf16.mxu0 %v2991_v25  ;;  %v3071_v24 = vld [vmem:[%s4314_s1 + $0x610] ss:$8 sps:$4 sm:$0xff]   ;;  %v2455_v25 = vcombine.high %v37_v22, %v37_v22  ;;  %v3167_v22 = vld [vmem:[%s4314_s1 + $0x304] ss:$8 sps:$4 sm:$0xff]  }
  0x57   :  { %1996 = vmatpush1.bf16.msra.mxu1 %v2986_v27  ;;  %v3079_v27 = vld [vmem:[%s4314_s1 + $0x624] ss:$8 sps:$4 sm:$0xff]  }
  0x58   :  { %2200 = vmatpush1.bf16.msra.mxu0 %v2989_v30  ;;  %1997 = vmatprep.subr.bf16.mxu1 %v2994_v32  ;;  %v2446_v30 = vcombine.low %v33_v19, %v33_v19  ;;  %v3082_v32 = vld [vmem:[%s4314_s1 + $0x234] ss:$8 sps:$4 sm:$0xff]  }
  0x59   :  { %2201 = vmatprep.subr.bf16.mxu0 %v2997_v33  ;;  %v3085_v33 = vld [vmem:[%s4314_s1 + $0x634] ss:$8 sps:$4 sm:$0xff]  }
  0x5a   :  { %v3161_v19 = vld [vmem:[%s4314_s1 + $0x6f4] ss:$8 sps:$4 sm:$0xff]  }
  0x5b   :  { %1998 = vmatpush1.bf16.msra.mxu1 %v2992_v36  ;;  %v3080_v36 = vld [vmem:[%s4314_s1 + $0x230] ss:$8 sps:$4 sm:$0xff]  }
  0x5c   :  { %2202 = vmatpush1.bf16.msra.mxu0 %v2995_v37  ;;  %1999 = vmatprep.subr.bf16.mxu1 %v3000_v38  ;;  %v3083_v37 = vld [vmem:[%s4314_s1 + $0x630] ss:$8 sps:$4 sm:$0xff]   ;;  %v3088_v38 = vld [vmem:[%s4314_s1 + $0x244] ss:$8 sps:$4 sm:$0xff]  }
  0x5d   :  { %2203 = vmatprep.subr.bf16.mxu0 %v3003_v39  ;;  %v3091_v39 = vld [vmem:[%s4314_s1 + $0x644] ss:$8 sps:$4 sm:$0xff]  }
  0x5f   :  { %2000 = vmatpush1.bf16.msra.mxu1 %v2998_v41  ;;  %v3089_v41 = vld [vmem:[%s4314_s1 + $0x640] ss:$8 sps:$4 sm:$0xff]  }
  0x60   :  { %2204 = vmatpush1.bf16.msra.mxu0 %v3001_v42  ;;  %2001 = vmatprep.subr.bf16.mxu1 %v3006_v44  ;;  %v3094_v42 = vld [vmem:[%s4314_s1 + $0x254] ss:$8 sps:$4 sm:$0xff]   ;;  %v3092_v44 = vld [vmem:[%s4314_s1 + $0x250] ss:$8 sps:$4 sm:$0xff]  }
  0x61   :  { %2205 = vmatprep.subr.bf16.mxu0 %v3009_v45  ;;  %v3095_v45 = vld [vmem:[%s4314_s1 + $0x650] ss:$8 sps:$4 sm:$0xff]  }
  0x63   :  { %2002 = vmatpush1.bf16.msra.mxu1 %v3004_v46  ;;  %v3100_v46 = vld [vmem:[%s4314_s1 + $0x264] ss:$8 sps:$4 sm:$0xff]  }
  0x64   :  { %2206 = vmatpush1.bf16.msra.mxu0 %v3007_v47  ;;  %2003 = vmatprep.subr.bf16.mxu1 %v3012_v48  ;;  %v3103_v47 = vld [vmem:[%s4314_s1 + $0x664] ss:$8 sps:$4 sm:$0xff]   ;;  %v3098_v48 = vld [vmem:[%s4314_s1 + $0x260] ss:$8 sps:$4 sm:$0xff]  }
  0x65   :  { %2207 = vmatprep.subr.bf16.mxu0 %v3015_v49  ;;  %v3101_v49 = vld [vmem:[%s4314_s1 + $0x660] ss:$8 sps:$4 sm:$0xff]  }
  0x67   :  { %2004 = vmatpush1.bf16.msra.mxu1 %v3010_v50  ;;  %v3106_v50 = vld [vmem:[%s4314_s1 + $0x274] ss:$8 sps:$4 sm:$0xff]  }
  0x68   :  { %2208 = vmatpush1.bf16.msra.mxu0 %v3013_v51  ;;  %2005 = vmatprep.subr.bf16.mxu1 %v3018_v52  ;;  %v3109_v51 = vld [vmem:[%s4314_s1 + $0x674] ss:$8 sps:$4 sm:$0xff]   ;;  %v3104_v52 = vld [vmem:[%s4314_s1 + $0x270] ss:$8 sps:$4 sm:$0xff]  }
  0x69   :  { %2209 = vmatprep.subr.bf16.mxu0 %v3021_v53  ;;  %v3107_v53 = vld [vmem:[%s4314_s1 + $0x670] ss:$8 sps:$4 sm:$0xff]  }
  0x6b   :  { %2006 = vmatpush1.bf16.msra.mxu1 %v3016_v54  ;;  %v3112_v54 = vld [vmem:[%s4314_s1 + $0x284] ss:$8 sps:$4 sm:$0xff]  }
  0x6c   :  { %2210 = vmatpush1.bf16.msra.mxu0 %v3019_v55  ;;  %2007 = vmatprep.subr.bf16.mxu1 %v3024_v56  ;;  %v3115_v55 = vld [vmem:[%s4314_s1 + $0x684] ss:$8 sps:$4 sm:$0xff]   ;;  %v3110_v56 = vld [vmem:[%s4314_s1 + $0x280] ss:$8 sps:$4 sm:$0xff]  }
  0x6d   :  { %2211 = vmatprep.subr.bf16.mxu0 %v3027_v57  ;;  %v3113_v57 = vld [vmem:[%s4314_s1 + $0x680] ss:$8 sps:$4 sm:$0xff]  }
  0x6f   :  { %2008 = vmatpush1.bf16.msra.mxu1 %v3022_v58  ;;  %v3118_v58 = vld [vmem:[%s4314_s1 + $0x294] ss:$8 sps:$4 sm:$0xff]  }
  0x70   :  { %2212 = vmatpush1.bf16.msra.mxu0 %v3025_v59  ;;  %2009 = vmatprep.subr.bf16.mxu1 %v3030_v60  ;;  %v3121_v59 = vld [vmem:[%s4314_s1 + $0x694] ss:$8 sps:$4 sm:$0xff]   ;;  %v3116_v60 = vld [vmem:[%s4314_s1 + $0x290] ss:$8 sps:$4 sm:$0xff]  }
  0x71   :  { %2213 = vmatprep.subr.bf16.mxu0 %v3033_v61  ;;  %v3119_v61 = vld [vmem:[%s4314_s1 + $0x690] ss:$8 sps:$4 sm:$0xff]  }
  0x73   :  { %2010 = vmatpush1.bf16.msra.mxu1 %v3028_v62  ;;  %v3124_v62 = vld [vmem:[%s4314_s1 + $0x2a4] ss:$8 sps:$4 sm:$0xff]  }
  0x74   :  { %2214 = vmatpush1.bf16.msra.mxu0 %v3031_v63  ;;  %2011 = vmatprep.subr.bf16.mxu1 %v3036_v0  ;;  %v3127_v63 = vld [vmem:[%s4314_s1 + $0x6a4] ss:$8 sps:$4 sm:$0xff]   ;;  %v3122_v0 = vld [vmem:[%s4314_s1 + $0x2a0] ss:$8 sps:$4 sm:$0xff]  }
  0x75   :  { %2215 = vmatprep.subr.bf16.mxu0 %v3039_v1  ;;  %v3125_v1 = vld [vmem:[%s4314_s1 + $0x6a0] ss:$8 sps:$4 sm:$0xff]  }
  0x77   :  { %2012 = vmatpush1.bf16.msra.mxu1 %v3034_v2  ;;  %v3130_v2 = vld [vmem:[%s4314_s1 + $0x2b4] ss:$8 sps:$4 sm:$0xff]  }
  0x78   :  { %2216 = vmatpush1.bf16.msra.mxu0 %v3037_v3  ;;  %2013 = vmatprep.subr.bf16.mxu1 %v3043_v4  ;;  %v3133_v3 = vld [vmem:[%s4314_s1 + $0x6b4] ss:$8 sps:$4 sm:$0xff]   ;;  %v3128_v4 = vld [vmem:[%s4314_s1 + $0x2b0] ss:$8 sps:$4 sm:$0xff]  }
  0x79   :  { %2217 = vmatprep.subr.bf16.mxu0 %v3047_v5  ;;  %v3131_v5 = vld [vmem:[%s4314_s1 + $0x6b0] ss:$8 sps:$4 sm:$0xff]  }
  0x7b   :  { %2014 = vmatpush1.bf16.msra.mxu1 %v3041_v6  ;;  %v3136_v6 = vld [vmem:[%s4314_s1 + $0x2c4] ss:$8 sps:$4 sm:$0xff]  }
  0x7c   :  { %2218 = vmatpush1.bf16.msra.mxu0 %v3045_v7  ;;  %2015 = vmatprep.subr.bf16.mxu1 %v3052_v8  ;;  %v3139_v7 = vld [vmem:[%s4314_s1 + $0x6c4] ss:$8 sps:$4 sm:$0xff]   ;;  %v3134_v8 = vld [vmem:[%s4314_s1 + $0x2c0] ss:$8 sps:$4 sm:$0xff]  }
  0x7d   :  { %2219 = vmatprep.subr.bf16.mxu0 %v3055_v9  ;;  %v3137_v9 = vld [vmem:[%s4314_s1 + $0x6c0] ss:$8 sps:$4 sm:$0xff]  }
  0x7f   :  { %2016 = vmatpush1.bf16.msra.mxu1 %v3050_v10  ;;  %v3142_v10 = vld [vmem:[%s4314_s1 + $0x2d4] ss:$8 sps:$4 sm:$0xff]  }
  0x80   :  { %2220 = vmatpush1.bf16.msra.mxu0 %v3053_v11  ;;  %2036 = vmatprep.subr.bf16.mxu1 %v3061_v13  ;;  %v3145_v11 = vld [vmem:[%s4314_s1 + $0x6d4] ss:$8 sps:$4 sm:$0xff]   ;;  %v3143_v13 = vld [vmem:[%s4314_s1 + $0x6d0] ss:$8 sps:$4 sm:$0xff]  }
  0x81   :  { %2240 = vmatprep.subr.bf16.mxu0 %v3067_v14  ;;  %v3149_v14 = vld [vmem:[%s4314_s1 + $0x2e4] ss:$8 sps:$4 sm:$0xff]  }
  0x82   :  { %2018 = vmatmul.mubr.bf16.vlgmr.msra.gmra.mrb[0].mxu1 %v3056_v12  ;;  %v3140_v12 = vld [vmem:[%s4314_s1 + $0x2d0] ss:$8 sps:$4 sm:$0xff]  }
  0x83   :  { %2222 = vmatmul.mubr.bf16.vlgmr.msra.gmra.mrb[0].mxu0 %v3062_v16  ;;  %2037 = vmatpush1.bf16.msra.mxu1 %v3059_v15  ;;  %v3153_v15 = vld [vmem:[%s4314_s1 + $0x6e4] ss:$8 sps:$4 sm:$0xff]   ;;  %v3147_v16 = vld [vmem:[%s4314_s1 + $0x2e0] ss:$8 sps:$4 sm:$0xff]  }
  0x84   :  { %2241 = vmatpush1.bf16.msra.mxu0 %v3065_v17  ;;  %2038 = vmatprep.subr.bf16.mxu1 %v3070_v18  ;;  %v3151_v17 = vld [vmem:[%s4314_s1 + $0x6e0] ss:$8 sps:$4 sm:$0xff]   ;;  %v3158_v18 = vld [vmem:[%s4314_s1 + $0x2f4] ss:$8 sps:$4 sm:$0xff]  }
  0x85   :  { %2242 = vmatprep.subr.bf16.mxu0 %v3073_v20  ;;  %2027 = vmatprep.mubr.bf16.mxu1 %v2447_v21  ;;  %v3156_v20 = vld [vmem:[%s4314_s1 + $0x2f0] ss:$8 sps:$4 sm:$0xff]  }
  0x86   :  { %2231 = vmatprep.mubr.bf16.mxu0 %v2455_v25  ;;  %v3159_v21 = vld [vmem:[%s4314_s1 + $0x6f0] ss:$8 sps:$4 sm:$0xff]   ;;  %v3165_v25 = vld [vmem:[%s4314_s1 + $0x300] ss:$8 sps:$4 sm:$0xff]  }
  0x87   :  { %2039 = vmatpush1.bf16.msra.mxu1 %v3068_v23  ;;  %v3162_v23 = vld [vmem:[%s4315_s0 + $0x10] ss:$72 sps:$4 sm:$0xff]  }
  0x88   :  { %2243 = vmatpush1.bf16.msra.mxu0 %v3071_v24  ;;  %2040 = vmatprep.subr.bf16.mxu1 %v3076_v26  ;;  %v3173_v24 = vld [vmem:[%s4314_s1 + $0x704] ss:$8 sps:$4 sm:$0xff]   ;;  %v3168_v26 = vld [vmem:[%s4315_s0 + $0x30] ss:$72 sps:$4 sm:$0xff]  }
  0x89   :  { %2244 = vmatprep.subr.bf16.mxu0 %v3079_v27  ;;  %v3171_v27 = vld [vmem:[%s4314_s1 + $0x700] ss:$8 sps:$4 sm:$0xff]  }
  0x8a   :  { %2028 = vmatmul.mubr.bf16.gmra.mrb[4].mxu1 %v2446_v30  ;;  %v3176_v30 = vld [vmem:[%s4314_s1 + $0x314] ss:$8 sps:$4 sm:$0xff]  }
  0x8b   :  { %2232 = vmatmul.mubr.bf16.gmra.mrb[4].mxu0 %v2454_v31  ;;  %2041 = vmatpush1.bf16.msra.mxu1 %v3074_v28  ;;  %v34_v28 = vld [vmem:[%s4315_s0 + $0xa0] sm:$0xff]  ;;  %v3179_v31 = vld [vmem:[%s4314_s1 + $0x714] ss:$8 sps:$4 sm:$0xff]  }
  0x8c   :  { %2245 = vmatpush1.bf16.msra.mxu0 %v3077_v29  ;;  %2042 = vmatprep.subr.bf16.mxu1 %v3082_v32  ;;  %v38_v29 = vld [vmem:[%s4315_s0 + $0xc0] sm:$0xff]  ;;  %v2449_v32 = vcombine.high %v34_v28, %v34_v28 }
  0x8d   :  { %2246 = vmatprep.subr.bf16.mxu0 %v3085_v33  ;;  %2068 = vmatprep.mubr.bf16.mxu1 %v3164_v34  ;;  %v2457_v33 = vcombine.high %v38_v29, %v38_v29  ;;  %v3174_v34 = vld [vmem:[%s4314_s1 + $0x310] ss:$8 sps:$4 sm:$0xff]  }
  0x8e   :  { %2272 = vmatprep.mubr.bf16.mxu0 %v3170_v35  ;;  %v3177_v35 = vld [vmem:[%s4314_s1 + $0x710] ss:$8 sps:$4 sm:$0xff]  }
  0x8f   :  { %2043 = vmatpush1.bf16.msra.mxu1 %v3080_v36  ;;  %v3182_v36 = vld [vmem:[%s4314_s1 + $0x324] ss:$8 sps:$4 sm:$0xff]  }
  0x90   :  { %2247 = vmatpush1.bf16.msra.mxu0 %v3083_v37  ;;  %2044 = vmatprep.subr.bf16.mxu1 %v3088_v38  ;;  %v3185_v37 = vld [vmem:[%s4314_s1 + $0x724] ss:$8 sps:$4 sm:$0xff]   ;;  %v3180_v38 = vld [vmem:[%s4314_s1 + $0x320] ss:$8 sps:$4 sm:$0xff]  }
  0x91   :  { %2248 = vmatprep.subr.bf16.mxu0 %v3091_v39  ;;  %v3183_v39 = vld [vmem:[%s4314_s1 + $0x720] ss:$8 sps:$4 sm:$0xff]  }
  0x93   :  { %2045 = vmatpush1.bf16.msra.mxu1 %v3086_v40  ;;  %v2448_v40 = vcombine.low %v34_v28, %v34_v28  ;;  %v3264_v28 = vld [vmem:[%s4314_s1 + $0x3f4] ss:$8 sps:$4 sm:$0xff]  }
  0x94   :  { %2249 = vmatpush1.bf16.msra.mxu0 %v3089_v41  ;;  %2046 = vmatprep.subr.bf16.mxu1 %v3094_v42  ;;  %v2456_v41 = vcombine.low %v38_v29, %v38_v29  ;;  %v3188_v42 = vld [vmem:[%s4314_s1 + $0x334] ss:$8 sps:$4 sm:$0xff]  }
  0x95   :  { %2250 = vmatprep.subr.bf16.mxu0 %v3097_v43  ;;  %v3191_v43 = vld [vmem:[%s4314_s1 + $0x734] ss:$8 sps:$4 sm:$0xff]  }
  0x96   :  { %v3267_v29 = vld [vmem:[%s4314_s1 + $0x7f4] ss:$8 sps:$4 sm:$0xff]  }
  0x97   :  { %2047 = vmatpush1.bf16.msra.mxu1 %v3092_v44  ;;  %v3270_v44 = vld [vmem:[%s4315_s0 + $0x1c] ss:$72 sps:$4 sm:$0xff]  }
  0x98   :  { %2251 = vmatpush1.bf16.msra.mxu0 %v3095_v45  ;;  %2048 = vmatprep.subr.bf16.mxu1 %v3100_v46  ;;  %v3273_v45 = vld [vmem:[%s4315_s0 + $0x3c] ss:$72 sps:$4 sm:$0xff]   ;;  %v3186_v46 = vld [vmem:[%s4314_s1 + $0x330] ss:$8 sps:$4 sm:$0xff]  }
  0x99   :  { %2252 = vmatprep.subr.bf16.mxu0 %v3103_v47  ;;  %v3189_v47 = vld [vmem:[%s4314_s1 + $0x730] ss:$8 sps:$4 sm:$0xff]  }
  0x9b   :  { %2049 = vmatpush1.bf16.msra.mxu1 %v3098_v48  ;;  %v3194_v48 = vld [vmem:[%s4314_s1 + $0x344] ss:$8 sps:$4 sm:$0xff]  }
  0x9c   :  { %2253 = vmatpush1.bf16.msra.mxu0 %v3101_v49  ;;  %2050 = vmatprep.subr.bf16.mxu1 %v3106_v50  ;;  %v3197_v49 = vld [vmem:[%s4314_s1 + $0x744] ss:$8 sps:$4 sm:$0xff]   ;;  %v3192_v50 = vld [vmem:[%s4314_s1 + $0x340] ss:$8 sps:$4 sm:$0xff]  }
  0x9d   :  { %2254 = vmatprep.subr.bf16.mxu0 %v3109_v51  ;;  %v3195_v51 = vld [vmem:[%s4314_s1 + $0x740] ss:$8 sps:$4 sm:$0xff]  }
  0x9f   :  { %2051 = vmatpush1.bf16.msra.mxu1 %v3104_v52  ;;  %v3200_v52 = vld [vmem:[%s4314_s1 + $0x354] ss:$8 sps:$4 sm:$0xff]  }
  0xa0   :  { %2255 = vmatpush1.bf16.msra.mxu0 %v3107_v53  ;;  %2052 = vmatprep.subr.bf16.mxu1 %v3112_v54  ;;  %v3203_v53 = vld [vmem:[%s4314_s1 + $0x754] ss:$8 sps:$4 sm:$0xff]   ;;  %v3198_v54 = vld [vmem:[%s4314_s1 + $0x350] ss:$8 sps:$4 sm:$0xff]  }
  0xa1   :  { %2256 = vmatprep.subr.bf16.mxu0 %v3115_v55  ;;  %v3201_v55 = vld [vmem:[%s4314_s1 + $0x750] ss:$8 sps:$4 sm:$0xff]  }
  0xa3   :  { %2053 = vmatpush1.bf16.msra.mxu1 %v3110_v56  ;;  %v3206_v56 = vld [vmem:[%s4314_s1 + $0x364] ss:$8 sps:$4 sm:$0xff]  }
  0xa4   :  { %2257 = vmatpush1.bf16.msra.mxu0 %v3113_v57  ;;  %2054 = vmatprep.subr.bf16.mxu1 %v3118_v58  ;;  %v3209_v57 = vld [vmem:[%s4314_s1 + $0x764] ss:$8 sps:$4 sm:$0xff]   ;;  %v3204_v58 = vld [vmem:[%s4314_s1 + $0x360] ss:$8 sps:$4 sm:$0xff]  }
  0xa5   :  { %2258 = vmatprep.subr.bf16.mxu0 %v3121_v59  ;;  %v3207_v59 = vld [vmem:[%s4314_s1 + $0x760] ss:$8 sps:$4 sm:$0xff]  }
  0xa7   :  { %2055 = vmatpush1.bf16.msra.mxu1 %v3116_v60  ;;  %v3212_v60 = vld [vmem:[%s4314_s1 + $0x374] ss:$8 sps:$4 sm:$0xff]  }
  0xa8   :  { %2259 = vmatpush1.bf16.msra.mxu0 %v3119_v61  ;;  %2056 = vmatprep.subr.bf16.mxu1 %v3124_v62  ;;  %v3215_v61 = vld [vmem:[%s4314_s1 + $0x774] ss:$8 sps:$4 sm:$0xff]   ;;  %v3210_v62 = vld [vmem:[%s4314_s1 + $0x370] ss:$8 sps:$4 sm:$0xff]  }
  0xa9   :  { %2260 = vmatprep.subr.bf16.mxu0 %v3127_v63  ;;  %v3213_v63 = vld [vmem:[%s4314_s1 + $0x770] ss:$8 sps:$4 sm:$0xff]  }
  0xab   :  { %2057 = vmatpush1.bf16.msra.mxu1 %v3122_v0  ;;  %v3218_v0 = vld [vmem:[%s4314_s1 + $0x384] ss:$8 sps:$4 sm:$0xff]  }
  0xac   :  { %2261 = vmatpush1.bf16.msra.mxu0 %v3125_v1  ;;  %2058 = vmatprep.subr.bf16.mxu1 %v3130_v2  ;;  %v3221_v1 = vld [vmem:[%s4314_s1 + $0x784] ss:$8 sps:$4 sm:$0xff]   ;;  %v3216_v2 = vld [vmem:[%s4314_s1 + $0x380] ss:$8 sps:$4 sm:$0xff]  }
  0xad   :  { %2262 = vmatprep.subr.bf16.mxu0 %v3133_v3  ;;  %v3219_v3 = vld [vmem:[%s4314_s1 + $0x780] ss:$8 sps:$4 sm:$0xff]  }
  0xaf   :  { %2059 = vmatpush1.bf16.msra.mxu1 %v3128_v4  ;;  %v3224_v4 = vld [vmem:[%s4314_s1 + $0x394] ss:$8 sps:$4 sm:$0xff]  }
  0xb0   :  { %2263 = vmatpush1.bf16.msra.mxu0 %v3131_v5  ;;  %2060 = vmatprep.subr.bf16.mxu1 %v3136_v6  ;;  %v3227_v5 = vld [vmem:[%s4314_s1 + $0x794] ss:$8 sps:$4 sm:$0xff]   ;;  %v3222_v6 = vld [vmem:[%s4314_s1 + $0x390] ss:$8 sps:$4 sm:$0xff]  }
  0xb1   :  { %2264 = vmatprep.subr.bf16.mxu0 %v3139_v7  ;;  %v3225_v7 = vld [vmem:[%s4314_s1 + $0x790] ss:$8 sps:$4 sm:$0xff]  }
  0xb3   :  { %2061 = vmatpush1.bf16.msra.mxu1 %v3134_v8  ;;  %v3230_v8 = vld [vmem:[%s4314_s1 + $0x3a4] ss:$8 sps:$4 sm:$0xff]  }
  0xb4   :  { %2265 = vmatpush1.bf16.msra.mxu0 %v3137_v9  ;;  %2062 = vmatprep.subr.bf16.mxu1 %v3142_v10  ;;  %v3233_v9 = vld [vmem:[%s4314_s1 + $0x7a4] ss:$8 sps:$4 sm:$0xff]   ;;  %v3228_v10 = vld [vmem:[%s4314_s1 + $0x3a0] ss:$8 sps:$4 sm:$0xff]  }
  0xb5   :  { %2266 = vmatprep.subr.bf16.mxu0 %v3145_v11  ;;  %v3231_v11 = vld [vmem:[%s4314_s1 + $0x7a0] ss:$8 sps:$4 sm:$0xff]  }
  0xb7   :  { %2063 = vmatpush1.bf16.msra.mxu1 %v3140_v12  ;;  %v3236_v12 = vld [vmem:[%s4314_s1 + $0x3b4] ss:$8 sps:$4 sm:$0xff]  }
  0xb8   :  { %2267 = vmatpush1.bf16.msra.mxu0 %v3143_v13  ;;  %2064 = vmatprep.subr.bf16.mxu1 %v3149_v14  ;;  %v3239_v13 = vld [vmem:[%s4314_s1 + $0x7b4] ss:$8 sps:$4 sm:$0xff]   ;;  %v3234_v14 = vld [vmem:[%s4314_s1 + $0x3b0] ss:$8 sps:$4 sm:$0xff]  }
  0xb9   :  { %2268 = vmatprep.subr.bf16.mxu0 %v3153_v15  ;;  %v3237_v15 = vld [vmem:[%s4314_s1 + $0x7b0] ss:$8 sps:$4 sm:$0xff]  }
  0xbb   :  { %2065 = vmatpush1.bf16.msra.mxu1 %v3147_v16  ;;  %v3242_v16 = vld [vmem:[%s4314_s1 + $0x3c4] ss:$8 sps:$4 sm:$0xff]  }
  0xbc   :  { %2269 = vmatpush1.bf16.msra.mxu0 %v3151_v17  ;;  %2066 = vmatprep.subr.bf16.mxu1 %v3158_v18  ;;  %v3245_v17 = vld [vmem:[%s4314_s1 + $0x7c4] ss:$8 sps:$4 sm:$0xff]   ;;  %v3240_v18 = vld [vmem:[%s4314_s1 + $0x3c0] ss:$8 sps:$4 sm:$0xff]  }
  0xbd   :  { %2270 = vmatprep.subr.bf16.mxu0 %v3161_v19  ;;  %v3243_v19 = vld [vmem:[%s4314_s1 + $0x7c0] ss:$8 sps:$4 sm:$0xff]  }
  0xbf   :  { %2067 = vmatpush1.bf16.msra.mxu1 %v3156_v20  ;;  %v3248_v20 = vld [vmem:[%s4314_s1 + $0x3d4] ss:$8 sps:$4 sm:$0xff]  }
  0xc0   :  { %2271 = vmatpush1.bf16.msra.mxu0 %v3159_v21  ;;  %2087 = vmatprep.subr.bf16.mxu1 %v3167_v22  ;;  %v3251_v21 = vld [vmem:[%s4314_s1 + $0x7d4] ss:$8 sps:$4 sm:$0xff]   ;;  %v3246_v22 = vld [vmem:[%s4314_s1 + $0x3d0] ss:$8 sps:$4 sm:$0xff]  }
  0xc1   :  { %2291 = vmatprep.subr.bf16.mxu0 %v3173_v24  ;;  %v3257_v24 = vld [vmem:[%s4314_s1 + $0x3e4] ss:$8 sps:$4 sm:$0xff]  }
  0xc2   :  { %2069 = vmatmul.mubr.bf16.vlgmr.msra.gmra.mrb[0].mxu1 %v3162_v23  ;;  %v3249_v23 = vld [vmem:[%s4314_s1 + $0x7d0] ss:$8 sps:$4 sm:$0xff]  }
  0xc3   :  { %2273 = vmatmul.mubr.bf16.vlgmr.msra.gmra.mrb[0].mxu0 %v3168_v26  ;;  %2088 = vmatpush1.bf16.msra.mxu1 %v3165_v25  ;;  %v3261_v25 = vld [vmem:[%s4314_s1 + $0x7e4] ss:$8 sps:$4 sm:$0xff]   ;;  %v3255_v26 = vld [vmem:[%s4314_s1 + $0x3e0] ss:$8 sps:$4 sm:$0xff]  }
  0xc4   :  { %2292 = vmatpush1.bf16.msra.mxu0 %v3171_v27  ;;  %2089 = vmatprep.subr.bf16.mxu1 %v3176_v30  ;;  %v3259_v27 = vld [vmem:[%s4314_s1 + $0x7e0] ss:$8 sps:$4 sm:$0xff]   ;;  %v3262_v30 = vld [vmem:[%s4314_s1 + $0x3f0] ss:$8 sps:$4 sm:$0xff]  }
  0xc5   :  { %2293 = vmatprep.subr.bf16.mxu0 %v3179_v31  ;;  %2078 = vmatprep.mubr.bf16.mxu1 %v2449_v32  ;;  %v3265_v31 = vld [vmem:[%s4314_s1 + $0x7f0] ss:$8 sps:$4 sm:$0xff]   ;;  %v3276_v32 = vld [vmem:[%s4314_s1 + $0x804] ss:$8 sps:$4 sm:$0xff]  }
  0xc6   :  { %2282 = vmatprep.mubr.bf16.mxu0 %v2457_v33  ;;  %v3268_v33 = vld [vmem:[%s4315_s0 + $0x18] ss:$72 sps:$4 sm:$0xff]  }
  0xc7   :  { %2090 = vmatpush1.bf16.msra.mxu1 %v3174_v34  ;;  %v3271_v34 = vld [vmem:[%s4315_s0 + $0x38] ss:$72 sps:$4 sm:$0xff]  }
  0xc8   :  { %2294 = vmatpush1.bf16.msra.mxu0 %v3177_v35  ;;  %2091 = vmatprep.subr.bf16.mxu1 %v3182_v36  ;;  %v35_v35 = vld [vmem:[%s4315_s0 + $0xa8] sm:$0xff] }
  0xc9   :  { %2295 = vmatprep.subr.bf16.mxu0 %v3185_v37  ;;  %v39_v36 = vld [vmem:[%s4315_s0 + $0xc8] sm:$0xff] }
  0xca   :  { %2079 = vmatmul.mubr.bf16.gmra.mrb[4].mxu1 %v2448_v40  ;;  %v3274_v37 = vld [vmem:[%s4314_s1 + $0x800] ss:$8 sps:$4 sm:$0xff]   ;;  %v2459_v40 = vcombine.high %v39_v36, %v39_v36 }
  0xcb   :  { %2283 = vmatmul.mubr.bf16.gmra.mrb[4].mxu0 %v2456_v41  ;;  %2092 = vmatpush1.bf16.msra.mxu1 %v3180_v38  ;;  %v3279_v38 = vld [vmem:[%s4314_s1 + $0x814] ss:$8 sps:$4 sm:$0xff]   ;;  %v3277_v41 = vld [vmem:[%s4314_s1 + $0x810] ss:$8 sps:$4 sm:$0xff]  }
  0xcc   :  { %2296 = vmatpush1.bf16.msra.mxu0 %v3183_v39  ;;  %2093 = vmatprep.subr.bf16.mxu1 %v3188_v42  ;;  %v2451_v39 = vcombine.high %v35_v35, %v35_v35  ;;  %v3286_v42 = vld [vmem:[%s4314_s1 + $0x824] ss:$8 sps:$4 sm:$0xff]  }
  0xcd   :  { %2297 = vmatprep.subr.bf16.mxu0 %v3191_v43  ;;  %2119 = vmatprep.mubr.bf16.mxu1 %v3270_v44  ;;  %v2450_v43 = vcombine.low %v35_v35, %v35_v35  ;;  %v2458_v44 = vcombine.low %v39_v36, %v39_v36 }
  0xce   :  { %2323 = vmatprep.mubr.bf16.mxu0 %v3273_v45  ;;  %v4209_v45 = vld [vmem:[%s4315_s0 + $0xd0] sm:$0xff] }
  0xcf   :  { %2094 = vmatpush1.bf16.msra.mxu1 %v3186_v46  ;;  %v3284_v46 = vld [vmem:[%s4314_s1 + $0x820] ss:$8 sps:$4 sm:$0xff]  }
  0xd0   :  { %2298 = vmatpush1.bf16.msra.mxu0 %v3189_v47  ;;  %2095 = vmatprep.subr.bf16.mxu1 %v3194_v48  ;;  %v3289_v47 = vld [vmem:[%s4314_s1 + $0x834] ss:$8 sps:$4 sm:$0xff]   ;;  %v3328_v48 = vld [vmem:[%s4315_s0 + $0x44] ss:$72 sps:$4 sm:$0xff]  }
  0xd1   :  { %2299 = vmatprep.subr.bf16.mxu0 %v3197_v49  ;;  %v2461_v49 = vcombine.high %v4209_v45, %v4209_v45 }
  0xd3   :  { %2096 = vmatpush1.bf16.msra.mxu1 %v3192_v50  ;;  %v3287_v50 = vld [vmem:[%s4314_s1 + $0x830] ss:$8 sps:$4 sm:$0xff]  }
  0xd4   :  { %2300 = vmatpush1.bf16.msra.mxu0 %v3195_v51  ;;  %2097 = vmatprep.subr.bf16.mxu1 %v3200_v52  ;;  %v3292_v51 = vld [vmem:[%s4314_s1 + $0x844] ss:$8 sps:$4 sm:$0xff]   ;;  %v3290_v52 = vld [vmem:[%s4314_s1 + $0x840] ss:$8 sps:$4 sm:$0xff]  }
  0xd5   :  { %2301 = vmatprep.subr.bf16.mxu0 %v3203_v53  ;;  %v3295_v53 = vld [vmem:[%s4314_s1 + $0x854] ss:$8 sps:$4 sm:$0xff]  }
  0xd7   :  { %2098 = vmatpush1.bf16.msra.mxu1 %v3198_v54  ;;  %v3293_v54 = vld [vmem:[%s4314_s1 + $0x850] ss:$8 sps:$4 sm:$0xff]  }
  0xd8   :  { %2302 = vmatpush1.bf16.msra.mxu0 %v3201_v55  ;;  %2099 = vmatprep.subr.bf16.mxu1 %v3206_v56  ;;  %v3298_v55 = vld [vmem:[%s4314_s1 + $0x864] ss:$8 sps:$4 sm:$0xff]   ;;  %v3296_v56 = vld [vmem:[%s4314_s1 + $0x860] ss:$8 sps:$4 sm:$0xff]  }
  0xd9   :  { %2303 = vmatprep.subr.bf16.mxu0 %v3209_v57  ;;  %v3301_v57 = vld [vmem:[%s4314_s1 + $0x874] ss:$8 sps:$4 sm:$0xff]  }
  0xdb   :  { %2100 = vmatpush1.bf16.msra.mxu1 %v3204_v58  ;;  %v3299_v58 = vld [vmem:[%s4314_s1 + $0x870] ss:$8 sps:$4 sm:$0xff]  }
  0xdc   :  { %2304 = vmatpush1.bf16.msra.mxu0 %v3207_v59  ;;  %2101 = vmatprep.subr.bf16.mxu1 %v3212_v60  ;;  %v3304_v59 = vld [vmem:[%s4314_s1 + $0x884] ss:$8 sps:$4 sm:$0xff]   ;;  %v3302_v60 = vld [vmem:[%s4314_s1 + $0x880] ss:$8 sps:$4 sm:$0xff]  }
  0xdd   :  { %2305 = vmatprep.subr.bf16.mxu0 %v3215_v61  ;;  %v3307_v61 = vld [vmem:[%s4314_s1 + $0x894] ss:$8 sps:$4 sm:$0xff]  }
  0xdf   :  { %2102 = vmatpush1.bf16.msra.mxu1 %v3210_v62  ;;  %v3305_v62 = vld [vmem:[%s4314_s1 + $0x890] ss:$8 sps:$4 sm:$0xff]  }
  0xe0   :  { %2306 = vmatpush1.bf16.msra.mxu0 %v3213_v63  ;;  %2103 = vmatprep.subr.bf16.mxu1 %v3218_v0  ;;  %v3310_v63 = vld [vmem:[%s4314_s1 + $0x8a4] ss:$8 sps:$4 sm:$0xff]   ;;  %v3308_v0 = vld [vmem:[%s4314_s1 + $0x8a0] ss:$8 sps:$4 sm:$0xff]  }
  0xe1   :  { %2307 = vmatprep.subr.bf16.mxu0 %v3221_v1  ;;  %v3313_v1 = vld [vmem:[%s4314_s1 + $0x8b4] ss:$8 sps:$4 sm:$0xff]  }
  0xe3   :  { %2104 = vmatpush1.bf16.msra.mxu1 %v3216_v2  ;;  %v3311_v2 = vld [vmem:[%s4314_s1 + $0x8b0] ss:$8 sps:$4 sm:$0xff]  }
  0xe4   :  { %2308 = vmatpush1.bf16.msra.mxu0 %v3219_v3  ;;  %2105 = vmatprep.subr.bf16.mxu1 %v3224_v4  ;;  %v3316_v3 = vld [vmem:[%s4314_s1 + $0x8c4] ss:$8 sps:$4 sm:$0xff]   ;;  %v3314_v4 = vld [vmem:[%s4314_s1 + $0x8c0] ss:$8 sps:$4 sm:$0xff]  }
  0xe5   :  { %2309 = vmatprep.subr.bf16.mxu0 %v3227_v5  ;;  %v3319_v5 = vld [vmem:[%s4314_s1 + $0x8d4] ss:$8 sps:$4 sm:$0xff]  }
  0xe7   :  { %2106 = vmatpush1.bf16.msra.mxu1 %v3222_v6  ;;  %v3317_v6 = vld [vmem:[%s4314_s1 + $0x8d0] ss:$8 sps:$4 sm:$0xff]  }
  0xe8   :  { %2310 = vmatpush1.bf16.msra.mxu0 %v3225_v7  ;;  %2107 = vmatprep.subr.bf16.mxu1 %v3230_v8  ;;  %v3322_v7 = vld [vmem:[%s4314_s1 + $0x8e4] ss:$8 sps:$4 sm:$0xff]   ;;  %v3320_v8 = vld [vmem:[%s4314_s1 + $0x8e0] ss:$8 sps:$4 sm:$0xff]  }
  0xe9   :  { %2311 = vmatprep.subr.bf16.mxu0 %v3233_v9  ;;  %v3325_v9 = vld [vmem:[%s4314_s1 + $0x8f4] ss:$8 sps:$4 sm:$0xff]  }
  0xeb   :  { %2108 = vmatpush1.bf16.msra.mxu1 %v3228_v10  ;;  %v3323_v10 = vld [vmem:[%s4314_s1 + $0x8f0] ss:$8 sps:$4 sm:$0xff]  }
  0xec   :  { %2312 = vmatpush1.bf16.msra.mxu0 %v3231_v11  ;;  %2109 = vmatprep.subr.bf16.mxu1 %v3236_v12  ;;  %v3326_v11 = vld [vmem:[%s4315_s0 + $0x40] ss:$72 sps:$4 sm:$0xff]   ;;  %v2460_v12 = vcombine.low %v4209_v45, %v4209_v45 }
  0xed   :  { %2313 = vmatprep.subr.bf16.mxu0 %v3239_v13  ;;  %v331_v13 = vlaneseq }
  0xef   :  { %2110 = vmatpush1.bf16.msra.mxu1 %v3234_v14  ;;  %v332_v14 = vshrl.u32 %v331_v13, 7 }
  0xf0   :  { %2314 = vmatpush1.bf16.msra.mxu0 %v3237_v15  ;;  %2111 = vmatprep.subr.bf16.mxu1 %v3242_v16 }
  0xf1   :  { %2315 = vmatprep.subr.bf16.mxu0 %v3245_v17 }
  0xf3   :  { %2112 = vmatpush1.bf16.msra.mxu1 %v3240_v18  ;;  %v333_v18 = vsub.s32 0, %v332_v14 }
  0xf4   :  { %2316 = vmatpush1.bf16.msra.mxu0 %v3243_v19  ;;  %2113 = vmatprep.subr.bf16.mxu1 %v3248_v20  ;;  %v329_v20 = vld [vmem:[%s4316_s2] sm:$0x3] }
  0xf5   :  { %2317 = vmatprep.subr.bf16.mxu0 %v3251_v21  ;;  %v337_v21 = vsub.s32 1, %v332_v14 }
  0xf7   :  { %2114 = vmatpush1.bf16.msra.mxu1 %v3246_v22  ;;  %v334_v22 = vrot.slane %v329_v20, %v333_v18 }
  0xf8   :  { %2318 = vmatpush1.bf16.msra.mxu0 %v3249_v23  ;;  %2115 = vmatprep.subr.bf16.mxu1 %v3257_v24  ;;  %v338_v23 = vrot.slane %v329_v20, %v337_v21 }
  0xf9   :  { %2319 = vmatprep.subr.bf16.mxu0 %v3261_v25 }
  0xfb   :  { %2116 = vmatpush1.bf16.msra.mxu1 %v3255_v26 }
  0xfc   :  { %2320 = vmatpush1.bf16.msra.mxu0 %v3259_v27  ;;  %2117 = vmatprep.subr.bf16.mxu1 %v3264_v28 }
  0xfd   :  { %2321 = vmatprep.subr.bf16.mxu0 %v3267_v29 }
  0xff   :  { %2118 = vmatpush1.bf16.msra.mxu1 %v3262_v30 }
 0x100   :  { %2322 = vmatpush1.bf16.msra.mxu0 %v3265_v31  ;;  %2756 = vmatprep.subr.bf16.mxu1 %v3276_v32 }
 0x101   :  { %2342 = vmatprep.subr.bf16.mxu0 %v3276_v32 }
 0x102   :  { %2120 = vmatmul.mubr.bf16.vlgmr.msra.gmra.mrb[0].mxu1 %v3268_v33 }
 0x103   :  { %2324 = vmatmul.mubr.bf16.vlgmr.msra.gmra.mrb[0].mxu0 %v3271_v34  ;;  %2772 = vmatpush1.bf16.msra.mxu1 %v3274_v37 }
 0x104   :  { %2343 = vmatpush1.bf16.msra.mxu0 %v3274_v37  ;;  %2757 = vmatprep.subr.bf16.mxu1 %v3279_v38 }
 0x105   :  { %2344 = vmatprep.subr.bf16.mxu0 %v3279_v38  ;;  %2129 = vmatprep.mubr.bf16.mxu1 %v2451_v39 }
 0x106   :  { %2333 = vmatprep.mubr.bf16.mxu0 %v2459_v40 }
 0x107   :  { %2773 = vmatpush1.bf16.msra.mxu1 %v3277_v41 }
 0x108   :  { %2345 = vmatpush1.bf16.msra.mxu0 %v3277_v41  ;;  %2758 = vmatprep.subr.bf16.mxu1 %v3286_v42 }
 0x109   :  { %2346 = vmatprep.subr.bf16.mxu0 %v3286_v42 }
 0x10a   :  { %2130 = vmatmul.mubr.bf16.gmra.mrb[4].mxu1 %v2450_v43 }
 0x10b   :  { %2334 = vmatmul.mubr.bf16.gmra.mrb[4].mxu0 %v2458_v44  ;;  %2774 = vmatpush1.bf16.msra.mxu1 %v3284_v46 }
 0x10c   :  { %2347 = vmatpush1.bf16.msra.mxu0 %v3284_v46  ;;  %2759 = vmatprep.subr.bf16.mxu1 %v3289_v47 }
 0x10d   :  { %2348 = vmatprep.subr.bf16.mxu0 %v3289_v47  ;;  %2374 = vmatprep.mubr.bf16.mxu0 %v3328_v48 }
 0x10e   :  { %2384 = vmatprep.mubr.bf16.mxu1 %v2461_v49 }
 0x10f   :  { %2775 = vmatpush1.bf16.msra.mxu1 %v3287_v50 }
 0x110   :  { %2349 = vmatpush1.bf16.msra.mxu0 %v3287_v50  ;;  %2760 = vmatprep.subr.bf16.mxu1 %v3292_v51 }
 0x111   :  { %2350 = vmatprep.subr.bf16.mxu0 %v3292_v51 }
 0x113   :  { %2776 = vmatpush1.bf16.msra.mxu1 %v3290_v52 }
 0x114   :  { %2351 = vmatpush1.bf16.msra.mxu0 %v3290_v52  ;;  %2761 = vmatprep.subr.bf16.mxu1 %v3295_v53 }
 0x115   :  { %2352 = vmatprep.subr.bf16.mxu0 %v3295_v53 }
 0x117   :  { %2777 = vmatpush1.bf16.msra.mxu1 %v3293_v54 }
 0x118   :  { %2353 = vmatpush1.bf16.msra.mxu0 %v3293_v54  ;;  %2762 = vmatprep.subr.bf16.mxu1 %v3298_v55 }
 0x119   :  { %2354 = vmatprep.subr.bf16.mxu0 %v3298_v55 }
 0x11b   :  { %2778 = vmatpush1.bf16.msra.mxu1 %v3296_v56 }
 0x11c   :  { %2355 = vmatpush1.bf16.msra.mxu0 %v3296_v56  ;;  %2763 = vmatprep.subr.bf16.mxu1 %v3301_v57 }
 0x11d   :  { %2356 = vmatprep.subr.bf16.mxu0 %v3301_v57 }
 0x11f   :  { %2779 = vmatpush1.bf16.msra.mxu1 %v3299_v58 }
 0x120   :  { %2357 = vmatpush1.bf16.msra.mxu0 %v3299_v58  ;;  %2764 = vmatprep.subr.bf16.mxu1 %v3304_v59 }
 0x121   :  { %2358 = vmatprep.subr.bf16.mxu0 %v3304_v59 }
 0x123   :  { %2780 = vmatpush1.bf16.msra.mxu1 %v3302_v60 }
 0x124   :  { %2359 = vmatpush1.bf16.msra.mxu0 %v3302_v60  ;;  %2765 = vmatprep.subr.bf16.mxu1 %v3307_v61 }
 0x125   :  { %2360 = vmatprep.subr.bf16.mxu0 %v3307_v61 }
 0x127   :  { %2781 = vmatpush1.bf16.msra.mxu1 %v3305_v62 }
 0x128   :  { %2361 = vmatpush1.bf16.msra.mxu0 %v3305_v62  ;;  %2766 = vmatprep.subr.bf16.mxu1 %v3310_v63 }
 0x129   :  { %2362 = vmatprep.subr.bf16.mxu0 %v3310_v63 }
 0x12b   :  { %2782 = vmatpush1.bf16.msra.mxu1 %v3308_v0 }
 0x12c   :  { %2363 = vmatpush1.bf16.msra.mxu0 %v3308_v0  ;;  %2767 = vmatprep.subr.bf16.mxu1 %v3313_v1 }
 0x12d   :  { %2364 = vmatprep.subr.bf16.mxu0 %v3313_v1 }
 0x12f   :  { %2783 = vmatpush1.bf16.msra.mxu1 %v3311_v2 }
 0x130   :  { %2365 = vmatpush1.bf16.msra.mxu0 %v3311_v2  ;;  %2768 = vmatprep.subr.bf16.mxu1 %v3316_v3 }
 0x131   :  { %2366 = vmatprep.subr.bf16.mxu0 %v3316_v3 }
 0x133   :  { %2784 = vmatpush1.bf16.msra.mxu1 %v3314_v4 }
 0x134   :  { %2367 = vmatpush1.bf16.msra.mxu0 %v3314_v4  ;;  %2769 = vmatprep.subr.bf16.mxu1 %v3319_v5 }
 0x135   :  { %2368 = vmatprep.subr.bf16.mxu0 %v3319_v5 }
 0x137   :  { %2785 = vmatpush1.bf16.msra.mxu1 %v3317_v6 }
 0x138   :  { %2369 = vmatpush1.bf16.msra.mxu0 %v3317_v6  ;;  %2770 = vmatprep.subr.bf16.mxu1 %v3322_v7 }
 0x139   :  { %2370 = vmatprep.subr.bf16.mxu0 %v3322_v7 }
 0x13b   :  { %2786 = vmatpush1.bf16.msra.mxu1 %v3320_v8 }
 0x13c   :  { %2371 = vmatpush1.bf16.msra.mxu0 %v3320_v8  ;;  %2771 = vmatprep.subr.bf16.mxu1 %v3325_v9 }
 0x13d   :  { %2372 = vmatprep.subr.bf16.mxu0 %v3325_v9 }
 0x13f   :  { %2787 = vmatpush1.bf16.msra.mxu1 %v3323_v10 }
 0x140   :  { %2373 = vmatpush1.bf16.msra.mxu0 %v3323_v10 }
 0x142   :  { %2385 = vmatmul.mubr.bf16.vlgmr.msra.gmra.mrb[8].mxu1 %v2460_v12 }
 0x143   :  { %2375 = vmatmul.mubr.bf16.vlgmr.msra.gmra.mrb[0].mxu0 %v3326_v11 }
 0x1d5   :  { %v2121_v15 = vpop.f32.mrb[0].mxu1 }
 0x1d6   :  { %v2123_v16 = vpop.f32.mrb[1].mxu1  ;;  %v2788_v36 = vadd.f32 %v2121_v15, %v334_v22 }
 0x1d7   :  { %v2125_v17 = vpop.f32.mrb[2].mxu1  ;;  %v2790_v37 = vadd.f32 %v2123_v16, %v338_v23 }
 0x1d8   :  { %v2127_v19 = vpop.f32.mrb[3].mxu1  ;;  %v2792_v40 = vadd.f32 %v2125_v17, %v334_v22 }
 0x1d9   :  { %v2794_v45 = vadd.f32 %v2127_v19, %v338_v23 }
 0x1dd   :  { %v2131_v24 = vpop.f32.mrb[4].mxu1 }
 0x1de   :  { %v2335_v25 = vpop.f32.mrb[4].mxu0  ;;  %v2796_v26 = vadd.f32 %v2131_v24, %v334_v22  ;;  %v2133_v27 = vpop.f32.mrb[5].mxu1 }
 0x1df   :  { %v2337_v28 = vpop.f32.mrb[5].mxu0  ;;  %v2799_v29 = vadd.f32 %v2133_v27, %v338_v23  ;;  %v2135_v30 = vpop.f32.mrb[6].mxu1 }
 0x1e0   :  { %v2339_v31 = vpop.f32.mrb[6].mxu0  ;;  %v2797_v32 = vadd.f32 %v2796_v26, %v2335_v25  ;;  %v2136_v33 = vpop.f32.mrb[7].mxu1 }
 0x1e1   :  { %v2340_v34 = vpop.f32.mrb[7].mxu0  ;;  %v2800_v35 = vadd.f32 %v2799_v29, %v2337_v28 }
 0x215   :  { %v2386_v39 = vpop.f32.mrb[8].mxu1 }
 0x216   :  { %v2376_v38 = vpop.f32.mrb[0].mxu0  ;;  %v2798_v42 = vadd.f32 %v2797_v32, %v2386_v39  ;;  %v2388_v44 = vpop.f32.mrb[9].mxu1 }
 0x217   :  { %v2789_v41 = vadd.f32 %v2788_v36, %v2376_v38  ;;  %v2378_v43 = vpop.f32.mrb[1].mxu0  ;;  %v2801_v47 = vadd.f32 %v2800_v35, %v2388_v44  ;;  %v2390_v49 = vpop.f32.mrb[10].mxu1 }
 0x218   :  { %v2791_v46 = vadd.f32 %v2790_v37, %v2378_v43  ;;  %v2380_v48 = vpop.f32.mrb[2].mxu0  ;;  %v2397_v51 = vmax.f32 %v2798_v42, 0.0  ;;  %v2391_v54 = vpop.f32.mrb[11].mxu1 }
 0x219   :  { %v2393_v50 = vmax.f32 %v2789_v41, 0.0  ;;  %v2793_v52 = vadd.f32 %v2792_v40, %v2380_v48  ;;  %v2382_v53 = vpop.f32.mrb[3].mxu0  ;;  %v2398_v56 = vmax.f32 %v2801_v47, 0.0 }
 0x21a   :  { %v2394_v55 = vmax.f32 %v2791_v46, 0.0  ;;  %v2795_v57 = vadd.f32 %v2794_v45, %v2382_v53 }
 0x21b   :  { %v2395_v58 = vmax.f32 %v2793_v52, 0.0  ;;  %v2755_v60 = vpack.c.bf16 %v2398_v56, %v2397_v51 }
 0x21c   :  { %v2753_v59 = vpack.c.bf16 %v2394_v55, %v2393_v50  ;;  %v2396_v61 = vmax.f32 %v2795_v57, 0.0 }
 0x21d   :  { %2421 = vst [vmem:[%s4317_s3 + $0x10] sm:$0xff] %v2755_v60 }
 0x21e   :  { %2419 = vst [vmem:[%s4317_s3] sm:$0xff] %v2753_v59  ;;  %v2754_v62 = vpack.c.bf16 %v2396_v61, %v2395_v58 }
 0x220   :  { %2420 = vst [vmem:[%s4317_s3 + $0x8] sm:$0xff] %v2754_v62 }

</bundles_post_ra>
